<compile_context>
chip_gen: v7x
topology: tpu7x:2x2x1
jax: 0.10.0
libtpu: 0.0.40
codegen_flags: <defaults>
</compile_context>

<pallas_src>
import jax
import jax.numpy as jnp
from jax.experimental import pallas as pl
from jax.experimental.pallas import tpu as pltpu

EPS = 1e-5


def _make_kernel(N, H, W, C, Lpad):
    Hp, Wp = H + 2, W + 2
    inv_m = 1.0 / float(N * H * W)   # BN normalizer (interior positions only)

    def kernel(x_ref, mask_ref,
               w1_ref, g1_ref, bt1_ref,
               w2_ref, g2_ref, bt2_ref,
               o_ref, y_ref, h_ref):
        mask = mask_ref[...]                                   # (1, Lpad): 1.0 at interior pixels

        # 3x3 "same" conv on the flat padded layout:
        #   out[co, p] = sum_{dy,dx,ci} w[co,ci,dy,dx] * in[ci, p + (dy-1)*Wp + (dx-1)]
        # Shifts are lane-rolls (wrap never reaches interior positions because
        # of the spatial halo + lane-padding tail); channel mixing is
        # scalar-broadcast FMAs with weights read from SMEM.  Rows are staged
        # into a VMEM scratch and returned as one (C, Lpad) block.
        def conv3x3(src_ref, w_ref):
            acc = [None] * C
            for ci in range(C):
                row = src_ref[ci:ci + 1, :]                    # (1, Lpad)
                for dy in range(3):
                    for dx in range(3):
                        shift = ((1 - dy) * Wp + (1 - dx)) % Lpad
                        shifted = pltpu.roll(row, shift=shift, axis=1) if shift else row
                        base = ((dy * 3 + dx) * C + ci) * C
                        for co in range(C):
                            term = w_ref[base + co] * shifted
                            acc[co] = term if acc[co] is None else acc[co] + term
            for co in range(C):
                y_ref[co:co + 1, :] = acc[co]
            return y_ref[...]                                  # (C, Lpad)

        # Training-mode BN folded to per-channel (scale, shift); single stats
        # pass, vectorised over channels via (C, 1) lane-broadcasts.
        def bn_scale_shift(y, g_ref, b_ref):
            ym = y * mask                                      # exclude halo / tail garbage
            s = jnp.sum(ym, axis=1, keepdims=True)             # (C, 1)
            ss = jnp.sum(ym * ym, axis=1, keepdims=True)       # (C, 1)
            mean = s * inv_m
            var = ss * inv_m - mean * mean                     # biased variance
            scale = g_ref[...] * jax.lax.rsqrt(var + EPS)      # (C, 1)
            shift = b_ref[...] - mean * scale                  # (C, 1)
            return scale, shift

        # ---- conv1 -> bn1 -> relu (halo re-zeroed by the fused mask multiply) ----
        y1 = conv3x3(x_ref, w1_ref)
        sc1, sh1 = bn_scale_shift(y1, g1_ref, bt1_ref)
        h_ref[...] = jnp.maximum(mask * (y1 * sc1 + sh1), 0.0)

        # ---- conv2 -> bn2 -> + residual -> relu (one fused full-block store) ----
        y2 = conv3x3(h_ref, w2_ref)
        sc2, sh2 = bn_scale_shift(y2, g2_ref, bt2_ref)
        res = x_ref[...]       # padded input == residual at interior (halo discarded by wrapper)
        o_ref[...] = jnp.maximum(y2 * sc2 + sh2 + res, 0.0)

    return kernel


def residual_block_pallas(x_nchw, params):
    N, C, H, W = x_nchw.shape
    Hp, Wp = H + 2, W + 2
    L = N * Hp * Wp
    Lpad = ((L + 127) // 128) * 128                            # lane-dense last dim

    x = x_nchw.astype(jnp.float32)

    # Channel-planar, spatially zero-padded, flattened + lane-padded: (C, Lpad)
    xpad = jnp.pad(x, ((0, 0), (0, 0), (1, 1), (1, 1)))        # (N, C, Hp, Wp)
    x_cp = jnp.transpose(xpad, (1, 0, 2, 3)).reshape(C, L)
    x_cp = jnp.pad(x_cp, ((0, 0), (0, Lpad - L)))

    # Interior mask: 1 at real pixels, 0 at halo and lane-padding tail.
    hp = jnp.arange(Hp)
    wp = jnp.arange(Wp)
    m2 = ((hp >= 1) & (hp <= H))[:, None] & ((wp >= 1) & (wp <= W))[None, :]
    mask = jnp.broadcast_to(m2[None], (N, Hp, Wp)).reshape(1, L).astype(jnp.float32)
    mask = jnp.pad(mask, ((0, 0), (0, Lpad - L)))

    # OIHW -> flat (ky, kx, ci, co) for scalar SMEM reads.  Conv biases are NOT
    # passed: training-mode BN mean subtraction cancels them exactly.
    w1f = jnp.transpose(params["w1"], (2, 3, 1, 0)).reshape(-1).astype(jnp.float32)
    w2f = jnp.transpose(params["w2"], (2, 3, 1, 0)).reshape(-1).astype(jnp.float32)
    g1 = params["g1"].astype(jnp.float32).reshape(C, 1)
    bt1 = params["be1"].astype(jnp.float32).reshape(C, 1)
    g2 = params["g2"].astype(jnp.float32).reshape(C, 1)
    bt2 = params["be2"].astype(jnp.float32).reshape(C, 1)

    vmem = pl.BlockSpec(memory_space=pltpu.MemorySpace.VMEM)
    smem = pl.BlockSpec(memory_space=pltpu.MemorySpace.SMEM)

    # TODO(synk): for ResNet-scale shapes, tile (N x row-blocks) over a
    # "parallel" grid with a two-pass BN-stats sweep so the working set fits
    # v7x's 64 MiB VMEM and both TensorCores are used; at these toy sizes a
    # single resident block (~12 KiB of activations) is already optimal.
    out_cp = pl.pallas_call(
        _make_kernel(N, H, W, C, Lpad),
        out_shape=jax.ShapeDtypeStruct((C, Lpad), jnp.float32),
        in_specs=[vmem, vmem, smem, vmem, vmem, smem, vmem, vmem],
        out_specs=vmem,
        scratch_shapes=[pltpu.VMEM((C, Lpad), jnp.float32),    # conv staging
                        pltpu.VMEM((C, Lpad), jnp.float32)],   # h1 (conv2 input)
    )(x_cp, mask, w1f, g1, bt1, w2f, g2, bt2)

    out = out_cp[:, :L].reshape(C, N, Hp, Wp)[:, :, 1:H + 1, 1:W + 1]
    return jnp.transpose(out, (1, 0, 2, 3))                    # back to NCHW


def _reference_nchw(x, params):
    # Pure-JAX reference in the original NCHW/OIHW layout (includes conv bias).
    def conv(h, w, b):
        y = jax.lax.conv_general_dilated(
            h, w, window_strides=(1, 1), padding=((1, 1), (1, 1)),
            dimension_numbers=("NCHW", "OIHW", "NCHW"))
        return y + b.reshape(1, -1, 1, 1)

    def bn(y, g, be):
        mean = jnp.mean(y, axis=(0, 2, 3), keepdims=True)
        var = jnp.mean((y - mean) ** 2, axis=(0, 2, 3), keepdims=True)
        return (g.reshape(1, -1, 1, 1) * (y - mean) * jax.lax.rsqrt(var + EPS)
                + be.reshape(1, -1, 1, 1))

    h = jax.nn.relu(bn(conv(x, params["w1"], params["b1"]), params["g1"], params["be1"]))
    h = bn(conv(h, params["w2"], params["b2"]), params["g2"], params["be2"])
    return jax.nn.relu(h + x)


if __name__ == "__main__":
    N, C, H, W = 2, 4, 16, 16
    key = jax.random.PRNGKey(0)
    kx, k1, k2, kb1, kb2 = jax.random.split(key, 5)

    x = jax.random.normal(kx, (N, C, H, W), jnp.float32)
    params = {
        # Conv2d(channels, channels, 3, padding=1): weight OIHW, bias (C,)
        "w1": jax.random.normal(k1, (C, C, 3, 3), jnp.float32) * 0.2,
        "b1": jax.random.normal(kb1, (C,), jnp.float32) * 0.1,
        "w2": jax.random.normal(k2, (C, C, 3, 3), jnp.float32) * 0.2,
        "b2": jax.random.normal(kb2, (C,), jnp.float32) * 0.1,
        # BatchNorm2d default affine init: gamma=1, beta=0
        "g1": jnp.ones((C,), jnp.float32), "be1": jnp.zeros((C,), jnp.float32),
        "g2": jnp.ones((C,), jnp.float32), "be2": jnp.zeros((C,), jnp.float32),
    }

    out = jax.block_until_ready(residual_block_pallas(x, params))
    ref = jax.block_until_ready(_reference_nchw(x, params))

    assert out.shape == (N, C, H, W)
    assert jnp.allclose(out, ref, atol=1e-4, rtol=1e-4), \
        f"max abs err {jnp.max(jnp.abs(out - ref))}"
    print("KERNEL_OK")
</pallas_src>

<mosaic_0001>
module attributes {stable_mosaic.version = 11 : i64} {
  func.func @kernel(%arg0: memref<4x768xf32, #tpu.memory_space<vmem>>, %arg1: memref<1x768xf32, #tpu.memory_space<vmem>>, %arg2: memref<144xf32, #tpu.memory_space<smem>>, %arg3: memref<4x1xf32, #tpu.memory_space<vmem>>, %arg4: memref<4x1xf32, #tpu.memory_space<vmem>>, %arg5: memref<144xf32, #tpu.memory_space<smem>>, %arg6: memref<4x1xf32, #tpu.memory_space<vmem>>, %arg7: memref<4x1xf32, #tpu.memory_space<vmem>>, %arg8: memref<4x768xf32, #tpu.memory_space<vmem>>, %arg9: memref<4x768xf32, #tpu.memory_space<vmem>>, %arg10: memref<4x768xf32, #tpu.memory_space<vmem>>) attributes {dimension_semantics = [], scalar_prefetch = 0 : i64, scratch_operands = 2 : i64, tpu.core_type = #tpu.core_type<tc>} {
    %c0 = arith.constant 0 : index
    %c0_0 = arith.constant 0 : index
    %0 = vector.load %arg1[%c0, %c0_0] : memref<1x768xf32, #tpu.memory_space<vmem>>, vector<1x768xf32>
    %c0_1 = arith.constant 0 : index
    %c0_2 = arith.constant 0 : index
    %1 = vector.load %arg0[%c0_1, %c0_2] : memref<4x768xf32, #tpu.memory_space<vmem>>, vector<1x768xf32>
    %c19_i32 = arith.constant 19 : i32
    %2 = tpu.dynamic_rotate %1 by %c19_i32 dim 1 : vector<1x768xf32>, i32 -> vector<1x768xf32>
    %c0_3 = arith.constant 0 : index
    %3 = memref.load %arg2[%c0_3] : memref<144xf32, #tpu.memory_space<smem>>
    %4 = vector.broadcast %3 : f32 to vector<1x768xf32>
    %5 = arith.mulf %4, %2 : vector<1x768xf32>
    %c1 = arith.constant 1 : index
    %6 = memref.load %arg2[%c1] : memref<144xf32, #tpu.memory_space<smem>>
    %7 = vector.broadcast %6 : f32 to vector<1x768xf32>
    %8 = arith.mulf %7, %2 : vector<1x768xf32>
    %c2 = arith.constant 2 : index
    %9 = memref.load %arg2[%c2] : memref<144xf32, #tpu.memory_space<smem>>
    %10 = vector.broadcast %9 : f32 to vector<1x768xf32>
    %11 = arith.mulf %10, %2 : vector<1x768xf32>
    %c3 = arith.constant 3 : index
    %12 = memref.load %arg2[%c3] : memref<144xf32, #tpu.memory_space<smem>>
    %13 = vector.broadcast %12 : f32 to vector<1x768xf32>
    %14 = arith.mulf %13, %2 : vector<1x768xf32>
    %c18_i32 = arith.constant 18 : i32
    %15 = tpu.dynamic_rotate %1 by %c18_i32 dim 1 : vector<1x768xf32>, i32 -> vector<1x768xf32>
    %c16 = arith.constant 16 : index
    %16 = memref.load %arg2[%c16] : memref<144xf32, #tpu.memory_space<smem>>
    %17 = vector.broadcast %16 : f32 to vector<1x768xf32>
    %18 = arith.mulf %17, %15 : vector<1x768xf32>
    %19 = arith.addf %5, %18 : vector<1x768xf32>
    %c17 = arith.constant 17 : index
    %20 = memref.load %arg2[%c17] : memref<144xf32, #tpu.memory_space<smem>>
    %21 = vector.broadcast %20 : f32 to vector<1x768xf32>
    %22 = arith.mulf %21, %15 : vector<1x768xf32>
    %23 = arith.addf %8, %22 : vector<1x768xf32>
    %c18 = arith.constant 18 : index
    %24 = memref.load %arg2[%c18] : memref<144xf32, #tpu.memory_space<smem>>
    %25 = vector.broadcast %24 : f32 to vector<1x768xf32>
    %26 = arith.mulf %25, %15 : vector<1x768xf32>
    %27 = arith.addf %11, %26 : vector<1x768xf32>
    %c19 = arith.constant 19 : index
    %28 = memref.load %arg2[%c19] : memref<144xf32, #tpu.memory_space<smem>>
    %29 = vector.broadcast %28 : f32 to vector<1x768xf32>
    %30 = arith.mulf %29, %15 : vector<1x768xf32>
    %31 = arith.addf %14, %30 : vector<1x768xf32>
    %c17_i32 = arith.constant 17 : i32
    %32 = tpu.dynamic_rotate %1 by %c17_i32 dim 1 : vector<1x768xf32>, i32 -> vector<1x768xf32>
    %c32 = arith.constant 32 : index
    %33 = memref.load %arg2[%c32] : memref<144xf32, #tpu.memory_space<smem>>
    %34 = vector.broadcast %33 : f32 to vector<1x768xf32>
    %35 = arith.mulf %34, %32 : vector<1x768xf32>
    %36 = arith.addf %19, %35 : vector<1x768xf32>
    %c33 = arith.constant 33 : index
    %37 = memref.load %arg2[%c33] : memref<144xf32, #tpu.memory_space<smem>>
    %38 = vector.broadcast %37 : f32 to vector<1x768xf32>
    %39 = arith.mulf %38, %32 : vector<1x768xf32>
    %40 = arith.addf %23, %39 : vector<1x768xf32>
    %c34 = arith.constant 34 : index
    %41 = memref.load %arg2[%c34] : memref<144xf32, #tpu.memory_space<smem>>
    %42 = vector.broadcast %41 : f32 to vector<1x768xf32>
    %43 = arith.mulf %42, %32 : vector<1x768xf32>
    %44 = arith.addf %27, %43 : vector<1x768xf32>
    %c35 = arith.constant 35 : index
    %45 = memref.load %arg2[%c35] : memref<144xf32, #tpu.memory_space<smem>>
    %46 = vector.broadcast %45 : f32 to vector<1x768xf32>
    %47 = arith.mulf %46, %32 : vector<1x768xf32>
    %48 = arith.addf %31, %47 : vector<1x768xf32>
    %c1_i32 = arith.constant 1 : i32
    %49 = tpu.dynamic_rotate %1 by %c1_i32 dim 1 : vector<1x768xf32>, i32 -> vector<1x768xf32>
    %c48 = arith.constant 48 : index
    %50 = memref.load %arg2[%c48] : memref<144xf32, #tpu.memory_space<smem>>
    %51 = vector.broadcast %50 : f32 to vector<1x768xf32>
    %52 = arith.mulf %51, %49 : vector<1x768xf32>
    %53 = arith.addf %36, %52 : vector<1x768xf32>
    %c49 = arith.constant 49 : index
    %54 = memref.load %arg2[%c49] : memref<144xf32, #tpu.memory_space<smem>>
    %55 = vector.broadcast %54 : f32 to vector<1x768xf32>
    %56 = arith.mulf %55, %49 : vector<1x768xf32>
    %57 = arith.addf %40, %56 : vector<1x768xf32>
    %c50 = arith.constant 50 : index
    %58 = memref.load %arg2[%c50] : memref<144xf32, #tpu.memory_space<smem>>
    %59 = vector.broadcast %58 : f32 to vector<1x768xf32>
    %60 = arith.mulf %59, %49 : vector<1x768xf32>
    %61 = arith.addf %44, %60 : vector<1x768xf32>
    %c51 = arith.constant 51 : index
    %62 = memref.load %arg2[%c51] : memref<144xf32, #tpu.memory_space<smem>>
    %63 = vector.broadcast %62 : f32 to vector<1x768xf32>
    %64 = arith.mulf %63, %49 : vector<1x768xf32>
    %65 = arith.addf %48, %64 : vector<1x768xf32>
    %c64 = arith.constant 64 : index
    %66 = memref.load %arg2[%c64] : memref<144xf32, #tpu.memory_space<smem>>
    %67 = vector.broadcast %66 : f32 to vector<1x768xf32>
    %68 = arith.mulf %67, %1 : vector<1x768xf32>
    %69 = arith.addf %53, %68 : vector<1x768xf32>
    %c65 = arith.constant 65 : index
    %70 = memref.load %arg2[%c65] : memref<144xf32, #tpu.memory_space<smem>>
    %71 = vector.broadcast %70 : f32 to vector<1x768xf32>
    %72 = arith.mulf %71, %1 : vector<1x768xf32>
    %73 = arith.addf %57, %72 : vector<1x768xf32>
    %c66 = arith.constant 66 : index
    %74 = memref.load %arg2[%c66] : memref<144xf32, #tpu.memory_space<smem>>
    %75 = vector.broadcast %74 : f32 to vector<1x768xf32>
    %76 = arith.mulf %75, %1 : vector<1x768xf32>
    %77 = arith.addf %61, %76 : vector<1x768xf32>
    %c67 = arith.constant 67 : index
    %78 = memref.load %arg2[%c67] : memref<144xf32, #tpu.memory_space<smem>>
    %79 = vector.broadcast %78 : f32 to vector<1x768xf32>
    %80 = arith.mulf %79, %1 : vector<1x768xf32>
    %81 = arith.addf %65, %80 : vector<1x768xf32>
    %c767_i32 = arith.constant 767 : i32
    %82 = tpu.dynamic_rotate %1 by %c767_i32 dim 1 : vector<1x768xf32>, i32 -> vector<1x768xf32>
    %c80 = arith.constant 80 : index
    %83 = memref.load %arg2[%c80] : memref<144xf32, #tpu.memory_space<smem>>
    %84 = vector.broadcast %83 : f32 to vector<1x768xf32>
    %85 = arith.mulf %84, %82 : vector<1x768xf32>
    %86 = arith.addf %69, %85 : vector<1x768xf32>
    %c81 = arith.constant 81 : index
    %87 = memref.load %arg2[%c81] : memref<144xf32, #tpu.memory_space<smem>>
    %88 = vector.broadcast %87 : f32 to vector<1x768xf32>
    %89 = arith.mulf %88, %82 : vector<1x768xf32>
    %90 = arith.addf %73, %89 : vector<1x768xf32>
    %c82 = arith.constant 82 : index
    %91 = memref.load %arg2[%c82] : memref<144xf32, #tpu.memory_space<smem>>
    %92 = vector.broadcast %91 : f32 to vector<1x768xf32>
    %93 = arith.mulf %92, %82 : vector<1x768xf32>
    %94 = arith.addf %77, %93 : vector<1x768xf32>
    %c83 = arith.constant 83 : index
    %95 = memref.load %arg2[%c83] : memref<144xf32, #tpu.memory_space<smem>>
    %96 = vector.broadcast %95 : f32 to vector<1x768xf32>
    %97 = arith.mulf %96, %82 : vector<1x768xf32>
    %98 = arith.addf %81, %97 : vector<1x768xf32>
    %c751_i32 = arith.constant 751 : i32
    %99 = tpu.dynamic_rotate %1 by %c751_i32 dim 1 : vector<1x768xf32>, i32 -> vector<1x768xf32>
    %c96 = arith.constant 96 : index
    %100 = memref.load %arg2[%c96] : memref<144xf32, #tpu.memory_space<smem>>
    %101 = vector.broadcast %100 : f32 to vector<1x768xf32>
    %102 = arith.mulf %101, %99 : vector<1x768xf32>
    %103 = arith.addf %86, %102 : vector<1x768xf32>
    %c97 = arith.constant 97 : index
    %104 = memref.load %arg2[%c97] : memref<144xf32, #tpu.memory_space<smem>>
    %105 = vector.broadcast %104 : f32 to vector<1x768xf32>
    %106 = arith.mulf %105, %99 : vector<1x768xf32>
    %107 = arith.addf %90, %106 : vector<1x768xf32>
    %c98 = arith.constant 98 : index
    %108 = memref.load %arg2[%c98] : memref<144xf32, #tpu.memory_space<smem>>
    %109 = vector.broadcast %108 : f32 to vector<1x768xf32>
    %110 = arith.mulf %109, %99 : vector<1x768xf32>
    %111 = arith.addf %94, %110 : vector<1x768xf32>
    %c99 = arith.constant 99 : index
    %112 = memref.load %arg2[%c99] : memref<144xf32, #tpu.memory_space<smem>>
    %113 = vector.broadcast %112 : f32 to vector<1x768xf32>
    %114 = arith.mulf %113, %99 : vector<1x768xf32>
    %115 = arith.addf %98, %114 : vector<1x768xf32>
    %c750_i32 = arith.constant 750 : i32
    %116 = tpu.dynamic_rotate %1 by %c750_i32 dim 1 : vector<1x768xf32>, i32 -> vector<1x768xf32>
    %c112 = arith.constant 112 : index
    %117 = memref.load %arg2[%c112] : memref<144xf32, #tpu.memory_space<smem>>
    %118 = vector.broadcast %117 : f32 to vector<1x768xf32>
    %119 = arith.mulf %118, %116 : vector<1x768xf32>
    %120 = arith.addf %103, %119 : vector<1x768xf32>
    %c113 = arith.constant 113 : index
    %121 = memref.load %arg2[%c113] : memref<144xf32, #tpu.memory_space<smem>>
    %122 = vector.broadcast %121 : f32 to vector<1x768xf32>
    %123 = arith.mulf %122, %116 : vector<1x768xf32>
    %124 = arith.addf %107, %123 : vector<1x768xf32>
    %c114 = arith.constant 114 : index
    %125 = memref.load %arg2[%c114] : memref<144xf32, #tpu.memory_space<smem>>
    %126 = vector.broadcast %125 : f32 to vector<1x768xf32>
    %127 = arith.mulf %126, %116 : vector<1x768xf32>
    %128 = arith.addf %111, %127 : vector<1x768xf32>
    %c115 = arith.constant 115 : index
    %129 = memref.load %arg2[%c115] : memref<144xf32, #tpu.memory_space<smem>>
    %130 = vector.broadcast %129 : f32 to vector<1x768xf32>
    %131 = arith.mulf %130, %116 : vector<1x768xf32>
    %132 = arith.addf %115, %131 : vector<1x768xf32>
    %c749_i32 = arith.constant 749 : i32
    %133 = tpu.dynamic_rotate %1 by %c749_i32 dim 1 : vector<1x768xf32>, i32 -> vector<1x768xf32>
    %c128 = arith.constant 128 : index
    %134 = memref.load %arg2[%c128] : memref<144xf32, #tpu.memory_space<smem>>
    %135 = vector.broadcast %134 : f32 to vector<1x768xf32>
    %136 = arith.mulf %135, %133 : vector<1x768xf32>
    %137 = arith.addf %120, %136 : vector<1x768xf32>
    %c129 = arith.constant 129 : index
    %138 = memref.load %arg2[%c129] : memref<144xf32, #tpu.memory_space<smem>>
    %139 = vector.broadcast %138 : f32 to vector<1x768xf32>
    %140 = arith.mulf %139, %133 : vector<1x768xf32>
    %141 = arith.addf %124, %140 : vector<1x768xf32>
    %c130 = arith.constant 130 : index
    %142 = memref.load %arg2[%c130] : memref<144xf32, #tpu.memory_space<smem>>
    %143 = vector.broadcast %142 : f32 to vector<1x768xf32>
    %144 = arith.mulf %143, %133 : vector<1x768xf32>
    %145 = arith.addf %128, %144 : vector<1x768xf32>
    %c131 = arith.constant 131 : index
    %146 = memref.load %arg2[%c131] : memref<144xf32, #tpu.memory_space<smem>>
    %147 = vector.broadcast %146 : f32 to vector<1x768xf32>
    %148 = arith.mulf %147, %133 : vector<1x768xf32>
    %149 = arith.addf %132, %148 : vector<1x768xf32>
    %c1_4 = arith.constant 1 : index
    %c0_5 = arith.constant 0 : index
    %150 = vector.load %arg0[%c1_4, %c0_5] : memref<4x768xf32, #tpu.memory_space<vmem>>, vector<1x768xf32>
    %c19_i32_6 = arith.constant 19 : i32
    %151 = tpu.dynamic_rotate %150 by %c19_i32_6 dim 1 : vector<1x768xf32>, i32 -> vector<1x768xf32>
    %c4 = arith.constant 4 : index
    %152 = memref.load %arg2[%c4] : memref<144xf32, #tpu.memory_space<smem>>
    %153 = vector.broadcast %152 : f32 to vector<1x768xf32>
    %154 = arith.mulf %153, %151 : vector<1x768xf32>
    %155 = arith.addf %137, %154 : vector<1x768xf32>
    %c5 = arith.constant 5 : index
    %156 = memref.load %arg2[%c5] : memref<144xf32, #tpu.memory_space<smem>>
    %157 = vector.broadcast %156 : f32 to vector<1x768xf32>
    %158 = arith.mulf %157, %151 : vector<1x768xf32>
    %159 = arith.addf %141, %158 : vector<1x768xf32>
    %c6 = arith.constant 6 : index
    %160 = memref.load %arg2[%c6] : memref<144xf32, #tpu.memory_space<smem>>
    %161 = vector.broadcast %160 : f32 to vector<1x768xf32>
    %162 = arith.mulf %161, %151 : vector<1x768xf32>
    %163 = arith.addf %145, %162 : vector<1x768xf32>
    %c7 = arith.constant 7 : index
    %164 = memref.load %arg2[%c7] : memref<144xf32, #tpu.memory_space<smem>>
    %165 = vector.broadcast %164 : f32 to vector<1x768xf32>
    %166 = arith.mulf %165, %151 : vector<1x768xf32>
    %167 = arith.addf %149, %166 : vector<1x768xf32>
    %c18_i32_7 = arith.constant 18 : i32
    %168 = tpu.dynamic_rotate %150 by %c18_i32_7 dim 1 : vector<1x768xf32>, i32 -> vector<1x768xf32>
    %c20 = arith.constant 20 : index
    %169 = memref.load %arg2[%c20] : memref<144xf32, #tpu.memory_space<smem>>
    %170 = vector.broadcast %169 : f32 to vector<1x768xf32>
    %171 = arith.mulf %170, %168 : vector<1x768xf32>
    %172 = arith.addf %155, %171 : vector<1x768xf32>
    %c21 = arith.constant 21 : index
    %173 = memref.load %arg2[%c21] : memref<144xf32, #tpu.memory_space<smem>>
    %174 = vector.broadcast %173 : f32 to vector<1x768xf32>
    %175 = arith.mulf %174, %168 : vector<1x768xf32>
    %176 = arith.addf %159, %175 : vector<1x768xf32>
    %c22 = arith.constant 22 : index
    %177 = memref.load %arg2[%c22] : memref<144xf32, #tpu.memory_space<smem>>
    %178 = vector.broadcast %177 : f32 to vector<1x768xf32>
    %179 = arith.mulf %178, %168 : vector<1x768xf32>
    %180 = arith.addf %163, %179 : vector<1x768xf32>
    %c23 = arith.constant 23 : index
    %181 = memref.load %arg2[%c23] : memref<144xf32, #tpu.memory_space<smem>>
    %182 = vector.broadcast %181 : f32 to vector<1x768xf32>
    %183 = arith.mulf %182, %168 : vector<1x768xf32>
    %184 = arith.addf %167, %183 : vector<1x768xf32>
    %c17_i32_8 = arith.constant 17 : i32
    %185 = tpu.dynamic_rotate %150 by %c17_i32_8 dim 1 : vector<1x768xf32>, i32 -> vector<1x768xf32>
    %c36 = arith.constant 36 : index
    %186 = memref.load %arg2[%c36] : memref<144xf32, #tpu.memory_space<smem>>
    %187 = vector.broadcast %186 : f32 to vector<1x768xf32>
    %188 = arith.mulf %187, %185 : vector<1x768xf32>
    %189 = arith.addf %172, %188 : vector<1x768xf32>
    %c37 = arith.constant 37 : index
    %190 = memref.load %arg2[%c37] : memref<144xf32, #tpu.memory_space<smem>>
    %191 = vector.broadcast %190 : f32 to vector<1x768xf32>
    %192 = arith.mulf %191, %185 : vector<1x768xf32>
    %193 = arith.addf %176, %192 : vector<1x768xf32>
    %c38 = arith.constant 38 : index
    %194 = memref.load %arg2[%c38] : memref<144xf32, #tpu.memory_space<smem>>
    %195 = vector.broadcast %194 : f32 to vector<1x768xf32>
    %196 = arith.mulf %195, %185 : vector<1x768xf32>
    %197 = arith.addf %180, %196 : vector<1x768xf32>
    %c39 = arith.constant 39 : index
    %198 = memref.load %arg2[%c39] : memref<144xf32, #tpu.memory_space<smem>>
    %199 = vector.broadcast %198 : f32 to vector<1x768xf32>
    %200 = arith.mulf %199, %185 : vector<1x768xf32>
    %201 = arith.addf %184, %200 : vector<1x768xf32>
    %c1_i32_9 = arith.constant 1 : i32
    %202 = tpu.dynamic_rotate %150 by %c1_i32_9 dim 1 : vector<1x768xf32>, i32 -> vector<1x768xf32>
    %c52 = arith.constant 52 : index
    %203 = memref.load %arg2[%c52] : memref<144xf32, #tpu.memory_space<smem>>
    %204 = vector.broadcast %203 : f32 to vector<1x768xf32>
    %205 = arith.mulf %204, %202 : vector<1x768xf32>
    %206 = arith.addf %189, %205 : vector<1x768xf32>
    %c53 = arith.constant 53 : index
    %207 = memref.load %arg2[%c53] : memref<144xf32, #tpu.memory_space<smem>>
    %208 = vector.broadcast %207 : f32 to vector<1x768xf32>
    %209 = arith.mulf %208, %202 : vector<1x768xf32>
    %210 = arith.addf %193, %209 : vector<1x768xf32>
    %c54 = arith.constant 54 : index
    %211 = memref.load %arg2[%c54] : memref<144xf32, #tpu.memory_space<smem>>
    %212 = vector.broadcast %211 : f32 to vector<1x768xf32>
    %213 = arith.mulf %212, %202 : vector<1x768xf32>
    %214 = arith.addf %197, %213 : vector<1x768xf32>
    %c55 = arith.constant 55 : index
    %215 = memref.load %arg2[%c55] : memref<144xf32, #tpu.memory_space<smem>>
    %216 = vector.broadcast %215 : f32 to vector<1x768xf32>
    %217 = arith.mulf %216, %202 : vector<1x768xf32>
    %218 = arith.addf %201, %217 : vector<1x768xf32>
    %c68 = arith.constant 68 : index
    %219 = memref.load %arg2[%c68] : memref<144xf32, #tpu.memory_space<smem>>
    %220 = vector.broadcast %219 : f32 to vector<1x768xf32>
    %221 = arith.mulf %220, %150 : vector<1x768xf32>
    %222 = arith.addf %206, %221 : vector<1x768xf32>
    %c69 = arith.constant 69 : index
    %223 = memref.load %arg2[%c69] : memref<144xf32, #tpu.memory_space<smem>>
    %224 = vector.broadcast %223 : f32 to vector<1x768xf32>
    %225 = arith.mulf %224, %150 : vector<1x768xf32>
    %226 = arith.addf %210, %225 : vector<1x768xf32>
    %c70 = arith.constant 70 : index
    %227 = memref.load %arg2[%c70] : memref<144xf32, #tpu.memory_space<smem>>
    %228 = vector.broadcast %227 : f32 to vector<1x768xf32>
    %229 = arith.mulf %228, %150 : vector<1x768xf32>
    %230 = arith.addf %214, %229 : vector<1x768xf32>
    %c71 = arith.constant 71 : index
    %231 = memref.load %arg2[%c71] : memref<144xf32, #tpu.memory_space<smem>>
    %232 = vector.broadcast %231 : f32 to vector<1x768xf32>
    %233 = arith.mulf %232, %150 : vector<1x768xf32>
    %234 = arith.addf %218, %233 : vector<1x768xf32>
    %c767_i32_10 = arith.constant 767 : i32
    %235 = tpu.dynamic_rotate %150 by %c767_i32_10 dim 1 : vector<1x768xf32>, i32 -> vector<1x768xf32>
    %c84 = arith.constant 84 : index
    %236 = memref.load %arg2[%c84] : memref<144xf32, #tpu.memory_space<smem>>
    %237 = vector.broadcast %236 : f32 to vector<1x768xf32>
    %238 = arith.mulf %237, %235 : vector<1x768xf32>
    %239 = arith.addf %222, %238 : vector<1x768xf32>
    %c85 = arith.constant 85 : index
    %240 = memref.load %arg2[%c85] : memref<144xf32, #tpu.memory_space<smem>>
    %241 = vector.broadcast %240 : f32 to vector<1x768xf32>
    %242 = arith.mulf %241, %235 : vector<1x768xf32>
    %243 = arith.addf %226, %242 : vector<1x768xf32>
    %c86 = arith.constant 86 : index
    %244 = memref.load %arg2[%c86] : memref<144xf32, #tpu.memory_space<smem>>
    %245 = vector.broadcast %244 : f32 to vector<1x768xf32>
    %246 = arith.mulf %245, %235 : vector<1x768xf32>
    %247 = arith.addf %230, %246 : vector<1x768xf32>
    %c87 = arith.constant 87 : index
    %248 = memref.load %arg2[%c87] : memref<144xf32, #tpu.memory_space<smem>>
    %249 = vector.broadcast %248 : f32 to vector<1x768xf32>
    %250 = arith.mulf %249, %235 : vector<1x768xf32>
    %251 = arith.addf %234, %250 : vector<1x768xf32>
    %c751_i32_11 = arith.constant 751 : i32
    %252 = tpu.dynamic_rotate %150 by %c751_i32_11 dim 1 : vector<1x768xf32>, i32 -> vector<1x768xf32>
    %c100 = arith.constant 100 : index
    %253 = memref.load %arg2[%c100] : memref<144xf32, #tpu.memory_space<smem>>
    %254 = vector.broadcast %253 : f32 to vector<1x768xf32>
    %255 = arith.mulf %254, %252 : vector<1x768xf32>
    %256 = arith.addf %239, %255 : vector<1x768xf32>
    %c101 = arith.constant 101 : index
    %257 = memref.load %arg2[%c101] : memref<144xf32, #tpu.memory_space<smem>>
    %258 = vector.broadcast %257 : f32 to vector<1x768xf32>
    %259 = arith.mulf %258, %252 : vector<1x768xf32>
    %260 = arith.addf %243, %259 : vector<1x768xf32>
    %c102 = arith.constant 102 : index
    %261 = memref.load %arg2[%c102] : memref<144xf32, #tpu.memory_space<smem>>
    %262 = vector.broadcast %261 : f32 to vector<1x768xf32>
    %263 = arith.mulf %262, %252 : vector<1x768xf32>
    %264 = arith.addf %247, %263 : vector<1x768xf32>
    %c103 = arith.constant 103 : index
    %265 = memref.load %arg2[%c103] : memref<144xf32, #tpu.memory_space<smem>>
    %266 = vector.broadcast %265 : f32 to vector<1x768xf32>
    %267 = arith.mulf %266, %252 : vector<1x768xf32>
    %268 = arith.addf %251, %267 : vector<1x768xf32>
    %c750_i32_12 = arith.constant 750 : i32
    %269 = tpu.dynamic_rotate %150 by %c750_i32_12 dim 1 : vector<1x768xf32>, i32 -> vector<1x768xf32>
    %c116 = arith.constant 116 : index
    %270 = memref.load %arg2[%c116] : memref<144xf32, #tpu.memory_space<smem>>
    %271 = vector.broadcast %270 : f32 to vector<1x768xf32>
    %272 = arith.mulf %271, %269 : vector<1x768xf32>
    %273 = arith.addf %256, %272 : vector<1x768xf32>
    %c117 = arith.constant 117 : index
    %274 = memref.load %arg2[%c117] : memref<144xf32, #tpu.memory_space<smem>>
    %275 = vector.broadcast %274 : f32 to vector<1x768xf32>
    %276 = arith.mulf %275, %269 : vector<1x768xf32>
    %277 = arith.addf %260, %276 : vector<1x768xf32>
    %c118 = arith.constant 118 : index
    %278 = memref.load %arg2[%c118] : memref<144xf32, #tpu.memory_space<smem>>
    %279 = vector.broadcast %278 : f32 to vector<1x768xf32>
    %280 = arith.mulf %279, %269 : vector<1x768xf32>
    %281 = arith.addf %264, %280 : vector<1x768xf32>
    %c119 = arith.constant 119 : index
    %282 = memref.load %arg2[%c119] : memref<144xf32, #tpu.memory_space<smem>>
    %283 = vector.broadcast %282 : f32 to vector<1x768xf32>
    %284 = arith.mulf %283, %269 : vector<1x768xf32>
    %285 = arith.addf %268, %284 : vector<1x768xf32>
    %c749_i32_13 = arith.constant 749 : i32
    %286 = tpu.dynamic_rotate %150 by %c749_i32_13 dim 1 : vector<1x768xf32>, i32 -> vector<1x768xf32>
    %c132 = arith.constant 132 : index
    %287 = memref.load %arg2[%c132] : memref<144xf32, #tpu.memory_space<smem>>
    %288 = vector.broadcast %287 : f32 to vector<1x768xf32>
    %289 = arith.mulf %288, %286 : vector<1x768xf32>
    %290 = arith.addf %273, %289 : vector<1x768xf32>
    %c133 = arith.constant 133 : index
    %291 = memref.load %arg2[%c133] : memref<144xf32, #tpu.memory_space<smem>>
    %292 = vector.broadcast %291 : f32 to vector<1x768xf32>
    %293 = arith.mulf %292, %286 : vector<1x768xf32>
    %294 = arith.addf %277, %293 : vector<1x768xf32>
    %c134 = arith.constant 134 : index
    %295 = memref.load %arg2[%c134] : memref<144xf32, #tpu.memory_space<smem>>
    %296 = vector.broadcast %295 : f32 to vector<1x768xf32>
    %297 = arith.mulf %296, %286 : vector<1x768xf32>
    %298 = arith.addf %281, %297 : vector<1x768xf32>
    %c135 = arith.constant 135 : index
    %299 = memref.load %arg2[%c135] : memref<144xf32, #tpu.memory_space<smem>>
    %300 = vector.broadcast %299 : f32 to vector<1x768xf32>
    %301 = arith.mulf %300, %286 : vector<1x768xf32>
    %302 = arith.addf %285, %301 : vector<1x768xf32>
    %c2_14 = arith.constant 2 : index
    %c0_15 = arith.constant 0 : index
    %303 = vector.load %arg0[%c2_14, %c0_15] : memref<4x768xf32, #tpu.memory_space<vmem>>, vector<1x768xf32>
    %c19_i32_16 = arith.constant 19 : i32
    %304 = tpu.dynamic_rotate %303 by %c19_i32_16 dim 1 : vector<1x768xf32>, i32 -> vector<1x768xf32>
    %c8 = arith.constant 8 : index
    %305 = memref.load %arg2[%c8] : memref<144xf32, #tpu.memory_space<smem>>
    %306 = vector.broadcast %305 : f32 to vector<1x768xf32>
    %307 = arith.mulf %306, %304 : vector<1x768xf32>
    %308 = arith.addf %290, %307 : vector<1x768xf32>
    %c9 = arith.constant 9 : index
    %309 = memref.load %arg2[%c9] : memref<144xf32, #tpu.memory_space<smem>>
    %310 = vector.broadcast %309 : f32 to vector<1x768xf32>
    %311 = arith.mulf %310, %304 : vector<1x768xf32>
    %312 = arith.addf %294, %311 : vector<1x768xf32>
    %c10 = arith.constant 10 : index
    %313 = memref.load %arg2[%c10] : memref<144xf32, #tpu.memory_space<smem>>
    %314 = vector.broadcast %313 : f32 to vector<1x768xf32>
    %315 = arith.mulf %314, %304 : vector<1x768xf32>
    %316 = arith.addf %298, %315 : vector<1x768xf32>
    %c11 = arith.constant 11 : index
    %317 = memref.load %arg2[%c11] : memref<144xf32, #tpu.memory_space<smem>>
    %318 = vector.broadcast %317 : f32 to vector<1x768xf32>
    %319 = arith.mulf %318, %304 : vector<1x768xf32>
    %320 = arith.addf %302, %319 : vector<1x768xf32>
    %c18_i32_17 = arith.constant 18 : i32
    %321 = tpu.dynamic_rotate %303 by %c18_i32_17 dim 1 : vector<1x768xf32>, i32 -> vector<1x768xf32>
    %c24 = arith.constant 24 : index
    %322 = memref.load %arg2[%c24] : memref<144xf32, #tpu.memory_space<smem>>
    %323 = vector.broadcast %322 : f32 to vector<1x768xf32>
    %324 = arith.mulf %323, %321 : vector<1x768xf32>
    %325 = arith.addf %308, %324 : vector<1x768xf32>
    %c25 = arith.constant 25 : index
    %326 = memref.load %arg2[%c25] : memref<144xf32, #tpu.memory_space<smem>>
    %327 = vector.broadcast %326 : f32 to vector<1x768xf32>
    %328 = arith.mulf %327, %321 : vector<1x768xf32>
    %329 = arith.addf %312, %328 : vector<1x768xf32>
    %c26 = arith.constant 26 : index
    %330 = memref.load %arg2[%c26] : memref<144xf32, #tpu.memory_space<smem>>
    %331 = vector.broadcast %330 : f32 to vector<1x768xf32>
    %332 = arith.mulf %331, %321 : vector<1x768xf32>
    %333 = arith.addf %316, %332 : vector<1x768xf32>
    %c27 = arith.constant 27 : index
    %334 = memref.load %arg2[%c27] : memref<144xf32, #tpu.memory_space<smem>>
    %335 = vector.broadcast %334 : f32 to vector<1x768xf32>
    %336 = arith.mulf %335, %321 : vector<1x768xf32>
    %337 = arith.addf %320, %336 : vector<1x768xf32>
    %c17_i32_18 = arith.constant 17 : i32
    %338 = tpu.dynamic_rotate %303 by %c17_i32_18 dim 1 : vector<1x768xf32>, i32 -> vector<1x768xf32>
    %c40 = arith.constant 40 : index
    %339 = memref.load %arg2[%c40] : memref<144xf32, #tpu.memory_space<smem>>
    %340 = vector.broadcast %339 : f32 to vector<1x768xf32>
    %341 = arith.mulf %340, %338 : vector<1x768xf32>
    %342 = arith.addf %325, %341 : vector<1x768xf32>
    %c41 = arith.constant 41 : index
    %343 = memref.load %arg2[%c41] : memref<144xf32, #tpu.memory_space<smem>>
    %344 = vector.broadcast %343 : f32 to vector<1x768xf32>
    %345 = arith.mulf %344, %338 : vector<1x768xf32>
    %346 = arith.addf %329, %345 : vector<1x768xf32>
    %c42 = arith.constant 42 : index
    %347 = memref.load %arg2[%c42] : memref<144xf32, #tpu.memory_space<smem>>
    %348 = vector.broadcast %347 : f32 to vector<1x768xf32>
    %349 = arith.mulf %348, %338 : vector<1x768xf32>
    %350 = arith.addf %333, %349 : vector<1x768xf32>
    %c43 = arith.constant 43 : index
    %351 = memref.load %arg2[%c43] : memref<144xf32, #tpu.memory_space<smem>>
    %352 = vector.broadcast %351 : f32 to vector<1x768xf32>
    %353 = arith.mulf %352, %338 : vector<1x768xf32>
    %354 = arith.addf %337, %353 : vector<1x768xf32>
    %c1_i32_19 = arith.constant 1 : i32
    %355 = tpu.dynamic_rotate %303 by %c1_i32_19 dim 1 : vector<1x768xf32>, i32 -> vector<1x768xf32>
    %c56 = arith.constant 56 : index
    %356 = memref.load %arg2[%c56] : memref<144xf32, #tpu.memory_space<smem>>
    %357 = vector.broadcast %356 : f32 to vector<1x768xf32>
    %358 = arith.mulf %357, %355 : vector<1x768xf32>
    %359 = arith.addf %342, %358 : vector<1x768xf32>
    %c57 = arith.constant 57 : index
    %360 = memref.load %arg2[%c57] : memref<144xf32, #tpu.memory_space<smem>>
    %361 = vector.broadcast %360 : f32 to vector<1x768xf32>
    %362 = arith.mulf %361, %355 : vector<1x768xf32>
    %363 = arith.addf %346, %362 : vector<1x768xf32>
    %c58 = arith.constant 58 : index
    %364 = memref.load %arg2[%c58] : memref<144xf32, #tpu.memory_space<smem>>
    %365 = vector.broadcast %364 : f32 to vector<1x768xf32>
    %366 = arith.mulf %365, %355 : vector<1x768xf32>
    %367 = arith.addf %350, %366 : vector<1x768xf32>
    %c59 = arith.constant 59 : index
    %368 = memref.load %arg2[%c59] : memref<144xf32, #tpu.memory_space<smem>>
    %369 = vector.broadcast %368 : f32 to vector<1x768xf32>
    %370 = arith.mulf %369, %355 : vector<1x768xf32>
    %371 = arith.addf %354, %370 : vector<1x768xf32>
    %c72 = arith.constant 72 : index
    %372 = memref.load %arg2[%c72] : memref<144xf32, #tpu.memory_space<smem>>
    %373 = vector.broadcast %372 : f32 to vector<1x768xf32>
    %374 = arith.mulf %373, %303 : vector<1x768xf32>
    %375 = arith.addf %359, %374 : vector<1x768xf32>
    %c73 = arith.constant 73 : index
    %376 = memref.load %arg2[%c73] : memref<144xf32, #tpu.memory_space<smem>>
    %377 = vector.broadcast %376 : f32 to vector<1x768xf32>
    %378 = arith.mulf %377, %303 : vector<1x768xf32>
    %379 = arith.addf %363, %378 : vector<1x768xf32>
    %c74 = arith.constant 74 : index
    %380 = memref.load %arg2[%c74] : memref<144xf32, #tpu.memory_space<smem>>
    %381 = vector.broadcast %380 : f32 to vector<1x768xf32>
    %382 = arith.mulf %381, %303 : vector<1x768xf32>
    %383 = arith.addf %367, %382 : vector<1x768xf32>
    %c75 = arith.constant 75 : index
    %384 = memref.load %arg2[%c75] : memref<144xf32, #tpu.memory_space<smem>>
    %385 = vector.broadcast %384 : f32 to vector<1x768xf32>
    %386 = arith.mulf %385, %303 : vector<1x768xf32>
    %387 = arith.addf %371, %386 : vector<1x768xf32>
    %c767_i32_20 = arith.constant 767 : i32
    %388 = tpu.dynamic_rotate %303 by %c767_i32_20 dim 1 : vector<1x768xf32>, i32 -> vector<1x768xf32>
    %c88 = arith.constant 88 : index
    %389 = memref.load %arg2[%c88] : memref<144xf32, #tpu.memory_space<smem>>
    %390 = vector.broadcast %389 : f32 to vector<1x768xf32>
    %391 = arith.mulf %390, %388 : vector<1x768xf32>
    %392 = arith.addf %375, %391 : vector<1x768xf32>
    %c89 = arith.constant 89 : index
    %393 = memref.load %arg2[%c89] : memref<144xf32, #tpu.memory_space<smem>>
    %394 = vector.broadcast %393 : f32 to vector<1x768xf32>
    %395 = arith.mulf %394, %388 : vector<1x768xf32>
    %396 = arith.addf %379, %395 : vector<1x768xf32>
    %c90 = arith.constant 90 : index
    %397 = memref.load %arg2[%c90] : memref<144xf32, #tpu.memory_space<smem>>
    %398 = vector.broadcast %397 : f32 to vector<1x768xf32>
    %399 = arith.mulf %398, %388 : vector<1x768xf32>
    %400 = arith.addf %383, %399 : vector<1x768xf32>
    %c91 = arith.constant 91 : index
    %401 = memref.load %arg2[%c91] : memref<144xf32, #tpu.memory_space<smem>>
    %402 = vector.broadcast %401 : f32 to vector<1x768xf32>
    %403 = arith.mulf %402, %388 : vector<1x768xf32>
    %404 = arith.addf %387, %403 : vector<1x768xf32>
    %c751_i32_21 = arith.constant 751 : i32
    %405 = tpu.dynamic_rotate %303 by %c751_i32_21 dim 1 : vector<1x768xf32>, i32 -> vector<1x768xf32>
    %c104 = arith.constant 104 : index
    %406 = memref.load %arg2[%c104] : memref<144xf32, #tpu.memory_space<smem>>
    %407 = vector.broadcast %406 : f32 to vector<1x768xf32>
    %408 = arith.mulf %407, %405 : vector<1x768xf32>
    %409 = arith.addf %392, %408 : vector<1x768xf32>
    %c105 = arith.constant 105 : index
    %410 = memref.load %arg2[%c105] : memref<144xf32, #tpu.memory_space<smem>>
    %411 = vector.broadcast %410 : f32 to vector<1x768xf32>
    %412 = arith.mulf %411, %405 : vector<1x768xf32>
    %413 = arith.addf %396, %412 : vector<1x768xf32>
    %c106 = arith.constant 106 : index
    %414 = memref.load %arg2[%c106] : memref<144xf32, #tpu.memory_space<smem>>
    %415 = vector.broadcast %414 : f32 to vector<1x768xf32>
    %416 = arith.mulf %415, %405 : vector<1x768xf32>
    %417 = arith.addf %400, %416 : vector<1x768xf32>
    %c107 = arith.constant 107 : index
    %418 = memref.load %arg2[%c107] : memref<144xf32, #tpu.memory_space<smem>>
    %419 = vector.broadcast %418 : f32 to vector<1x768xf32>
    %420 = arith.mulf %419, %405 : vector<1x768xf32>
    %421 = arith.addf %404, %420 : vector<1x768xf32>
    %c750_i32_22 = arith.constant 750 : i32
    %422 = tpu.dynamic_rotate %303 by %c750_i32_22 dim 1 : vector<1x768xf32>, i32 -> vector<1x768xf32>
    %c120 = arith.constant 120 : index
    %423 = memref.load %arg2[%c120] : memref<144xf32, #tpu.memory_space<smem>>
    %424 = vector.broadcast %423 : f32 to vector<1x768xf32>
    %425 = arith.mulf %424, %422 : vector<1x768xf32>
    %426 = arith.addf %409, %425 : vector<1x768xf32>
    %c121 = arith.constant 121 : index
    %427 = memref.load %arg2[%c121] : memref<144xf32, #tpu.memory_space<smem>>
    %428 = vector.broadcast %427 : f32 to vector<1x768xf32>
    %429 = arith.mulf %428, %422 : vector<1x768xf32>
    %430 = arith.addf %413, %429 : vector<1x768xf32>
    %c122 = arith.constant 122 : index
    %431 = memref.load %arg2[%c122] : memref<144xf32, #tpu.memory_space<smem>>
    %432 = vector.broadcast %431 : f32 to vector<1x768xf32>
    %433 = arith.mulf %432, %422 : vector<1x768xf32>
    %434 = arith.addf %417, %433 : vector<1x768xf32>
    %c123 = arith.constant 123 : index
    %435 = memref.load %arg2[%c123] : memref<144xf32, #tpu.memory_space<smem>>
    %436 = vector.broadcast %435 : f32 to vector<1x768xf32>
    %437 = arith.mulf %436, %422 : vector<1x768xf32>
    %438 = arith.addf %421, %437 : vector<1x768xf32>
    %c749_i32_23 = arith.constant 749 : i32
    %439 = tpu.dynamic_rotate %303 by %c749_i32_23 dim 1 : vector<1x768xf32>, i32 -> vector<1x768xf32>
    %c136 = arith.constant 136 : index
    %440 = memref.load %arg2[%c136] : memref<144xf32, #tpu.memory_space<smem>>
    %441 = vector.broadcast %440 : f32 to vector<1x768xf32>
    %442 = arith.mulf %441, %439 : vector<1x768xf32>
    %443 = arith.addf %426, %442 : vector<1x768xf32>
    %c137 = arith.constant 137 : index
    %444 = memref.load %arg2[%c137] : memref<144xf32, #tpu.memory_space<smem>>
    %445 = vector.broadcast %444 : f32 to vector<1x768xf32>
    %446 = arith.mulf %445, %439 : vector<1x768xf32>
    %447 = arith.addf %430, %446 : vector<1x768xf32>
    %c138 = arith.constant 138 : index
    %448 = memref.load %arg2[%c138] : memref<144xf32, #tpu.memory_space<smem>>
    %449 = vector.broadcast %448 : f32 to vector<1x768xf32>
    %450 = arith.mulf %449, %439 : vector<1x768xf32>
    %451 = arith.addf %434, %450 : vector<1x768xf32>
    %c139 = arith.constant 139 : index
    %452 = memref.load %arg2[%c139] : memref<144xf32, #tpu.memory_space<smem>>
    %453 = vector.broadcast %452 : f32 to vector<1x768xf32>
    %454 = arith.mulf %453, %439 : vector<1x768xf32>
    %455 = arith.addf %438, %454 : vector<1x768xf32>
    %c3_24 = arith.constant 3 : index
    %c0_25 = arith.constant 0 : index
    %456 = vector.load %arg0[%c3_24, %c0_25] : memref<4x768xf32, #tpu.memory_space<vmem>>, vector<1x768xf32>
    %c19_i32_26 = arith.constant 19 : i32
    %457 = tpu.dynamic_rotate %456 by %c19_i32_26 dim 1 : vector<1x768xf32>, i32 -> vector<1x768xf32>
    %c12 = arith.constant 12 : index
    %458 = memref.load %arg2[%c12] : memref<144xf32, #tpu.memory_space<smem>>
    %459 = vector.broadcast %458 : f32 to vector<1x768xf32>
    %460 = arith.mulf %459, %457 : vector<1x768xf32>
    %461 = arith.addf %443, %460 : vector<1x768xf32>
    %c13 = arith.constant 13 : index
    %462 = memref.load %arg2[%c13] : memref<144xf32, #tpu.memory_space<smem>>
    %463 = vector.broadcast %462 : f32 to vector<1x768xf32>
    %464 = arith.mulf %463, %457 : vector<1x768xf32>
    %465 = arith.addf %447, %464 : vector<1x768xf32>
    %c14 = arith.constant 14 : index
    %466 = memref.load %arg2[%c14] : memref<144xf32, #tpu.memory_space<smem>>
    %467 = vector.broadcast %466 : f32 to vector<1x768xf32>
    %468 = arith.mulf %467, %457 : vector<1x768xf32>
    %469 = arith.addf %451, %468 : vector<1x768xf32>
    %c15 = arith.constant 15 : index
    %470 = memref.load %arg2[%c15] : memref<144xf32, #tpu.memory_space<smem>>
    %471 = vector.broadcast %470 : f32 to vector<1x768xf32>
    %472 = arith.mulf %471, %457 : vector<1x768xf32>
    %473 = arith.addf %455, %472 : vector<1x768xf32>
    %c18_i32_27 = arith.constant 18 : i32
    %474 = tpu.dynamic_rotate %456 by %c18_i32_27 dim 1 : vector<1x768xf32>, i32 -> vector<1x768xf32>
    %c28 = arith.constant 28 : index
    %475 = memref.load %arg2[%c28] : memref<144xf32, #tpu.memory_space<smem>>
    %476 = vector.broadcast %475 : f32 to vector<1x768xf32>
    %477 = arith.mulf %476, %474 : vector<1x768xf32>
    %478 = arith.addf %461, %477 : vector<1x768xf32>
    %c29 = arith.constant 29 : index
    %479 = memref.load %arg2[%c29] : memref<144xf32, #tpu.memory_space<smem>>
    %480 = vector.broadcast %479 : f32 to vector<1x768xf32>
    %481 = arith.mulf %480, %474 : vector<1x768xf32>
    %482 = arith.addf %465, %481 : vector<1x768xf32>
    %c30 = arith.constant 30 : index
    %483 = memref.load %arg2[%c30] : memref<144xf32, #tpu.memory_space<smem>>
    %484 = vector.broadcast %483 : f32 to vector<1x768xf32>
    %485 = arith.mulf %484, %474 : vector<1x768xf32>
    %486 = arith.addf %469, %485 : vector<1x768xf32>
    %c31 = arith.constant 31 : index
    %487 = memref.load %arg2[%c31] : memref<144xf32, #tpu.memory_space<smem>>
    %488 = vector.broadcast %487 : f32 to vector<1x768xf32>
    %489 = arith.mulf %488, %474 : vector<1x768xf32>
    %490 = arith.addf %473, %489 : vector<1x768xf32>
    %c17_i32_28 = arith.constant 17 : i32
    %491 = tpu.dynamic_rotate %456 by %c17_i32_28 dim 1 : vector<1x768xf32>, i32 -> vector<1x768xf32>
    %c44 = arith.constant 44 : index
    %492 = memref.load %arg2[%c44] : memref<144xf32, #tpu.memory_space<smem>>
    %493 = vector.broadcast %492 : f32 to vector<1x768xf32>
    %494 = arith.mulf %493, %491 : vector<1x768xf32>
    %495 = arith.addf %478, %494 : vector<1x768xf32>
    %c45 = arith.constant 45 : index
    %496 = memref.load %arg2[%c45] : memref<144xf32, #tpu.memory_space<smem>>
    %497 = vector.broadcast %496 : f32 to vector<1x768xf32>
    %498 = arith.mulf %497, %491 : vector<1x768xf32>
    %499 = arith.addf %482, %498 : vector<1x768xf32>
    %c46 = arith.constant 46 : index
    %500 = memref.load %arg2[%c46] : memref<144xf32, #tpu.memory_space<smem>>
    %501 = vector.broadcast %500 : f32 to vector<1x768xf32>
    %502 = arith.mulf %501, %491 : vector<1x768xf32>
    %503 = arith.addf %486, %502 : vector<1x768xf32>
    %c47 = arith.constant 47 : index
    %504 = memref.load %arg2[%c47] : memref<144xf32, #tpu.memory_space<smem>>
    %505 = vector.broadcast %504 : f32 to vector<1x768xf32>
    %506 = arith.mulf %505, %491 : vector<1x768xf32>
    %507 = arith.addf %490, %506 : vector<1x768xf32>
    %c1_i32_29 = arith.constant 1 : i32
    %508 = tpu.dynamic_rotate %456 by %c1_i32_29 dim 1 : vector<1x768xf32>, i32 -> vector<1x768xf32>
    %c60 = arith.constant 60 : index
    %509 = memref.load %arg2[%c60] : memref<144xf32, #tpu.memory_space<smem>>
    %510 = vector.broadcast %509 : f32 to vector<1x768xf32>
    %511 = arith.mulf %510, %508 : vector<1x768xf32>
    %512 = arith.addf %495, %511 : vector<1x768xf32>
    %c61 = arith.constant 61 : index
    %513 = memref.load %arg2[%c61] : memref<144xf32, #tpu.memory_space<smem>>
    %514 = vector.broadcast %513 : f32 to vector<1x768xf32>
    %515 = arith.mulf %514, %508 : vector<1x768xf32>
    %516 = arith.addf %499, %515 : vector<1x768xf32>
    %c62 = arith.constant 62 : index
    %517 = memref.load %arg2[%c62] : memref<144xf32, #tpu.memory_space<smem>>
    %518 = vector.broadcast %517 : f32 to vector<1x768xf32>
    %519 = arith.mulf %518, %508 : vector<1x768xf32>
    %520 = arith.addf %503, %519 : vector<1x768xf32>
    %c63 = arith.constant 63 : index
    %521 = memref.load %arg2[%c63] : memref<144xf32, #tpu.memory_space<smem>>
    %522 = vector.broadcast %521 : f32 to vector<1x768xf32>
    %523 = arith.mulf %522, %508 : vector<1x768xf32>
    %524 = arith.addf %507, %523 : vector<1x768xf32>
    %c76 = arith.constant 76 : index
    %525 = memref.load %arg2[%c76] : memref<144xf32, #tpu.memory_space<smem>>
    %526 = vector.broadcast %525 : f32 to vector<1x768xf32>
    %527 = arith.mulf %526, %456 : vector<1x768xf32>
    %528 = arith.addf %512, %527 : vector<1x768xf32>
    %c77 = arith.constant 77 : index
    %529 = memref.load %arg2[%c77] : memref<144xf32, #tpu.memory_space<smem>>
    %530 = vector.broadcast %529 : f32 to vector<1x768xf32>
    %531 = arith.mulf %530, %456 : vector<1x768xf32>
    %532 = arith.addf %516, %531 : vector<1x768xf32>
    %c78 = arith.constant 78 : index
    %533 = memref.load %arg2[%c78] : memref<144xf32, #tpu.memory_space<smem>>
    %534 = vector.broadcast %533 : f32 to vector<1x768xf32>
    %535 = arith.mulf %534, %456 : vector<1x768xf32>
    %536 = arith.addf %520, %535 : vector<1x768xf32>
    %c79 = arith.constant 79 : index
    %537 = memref.load %arg2[%c79] : memref<144xf32, #tpu.memory_space<smem>>
    %538 = vector.broadcast %537 : f32 to vector<1x768xf32>
    %539 = arith.mulf %538, %456 : vector<1x768xf32>
    %540 = arith.addf %524, %539 : vector<1x768xf32>
    %c767_i32_30 = arith.constant 767 : i32
    %541 = tpu.dynamic_rotate %456 by %c767_i32_30 dim 1 : vector<1x768xf32>, i32 -> vector<1x768xf32>
    %c92 = arith.constant 92 : index
    %542 = memref.load %arg2[%c92] : memref<144xf32, #tpu.memory_space<smem>>
    %543 = vector.broadcast %542 : f32 to vector<1x768xf32>
    %544 = arith.mulf %543, %541 : vector<1x768xf32>
    %545 = arith.addf %528, %544 : vector<1x768xf32>
    %c93 = arith.constant 93 : index
    %546 = memref.load %arg2[%c93] : memref<144xf32, #tpu.memory_space<smem>>
    %547 = vector.broadcast %546 : f32 to vector<1x768xf32>
    %548 = arith.mulf %547, %541 : vector<1x768xf32>
    %549 = arith.addf %532, %548 : vector<1x768xf32>
    %c94 = arith.constant 94 : index
    %550 = memref.load %arg2[%c94] : memref<144xf32, #tpu.memory_space<smem>>
    %551 = vector.broadcast %550 : f32 to vector<1x768xf32>
    %552 = arith.mulf %551, %541 : vector<1x768xf32>
    %553 = arith.addf %536, %552 : vector<1x768xf32>
    %c95 = arith.constant 95 : index
    %554 = memref.load %arg2[%c95] : memref<144xf32, #tpu.memory_space<smem>>
    %555 = vector.broadcast %554 : f32 to vector<1x768xf32>
    %556 = arith.mulf %555, %541 : vector<1x768xf32>
    %557 = arith.addf %540, %556 : vector<1x768xf32>
    %c751_i32_31 = arith.constant 751 : i32
    %558 = tpu.dynamic_rotate %456 by %c751_i32_31 dim 1 : vector<1x768xf32>, i32 -> vector<1x768xf32>
    %c108 = arith.constant 108 : index
    %559 = memref.load %arg2[%c108] : memref<144xf32, #tpu.memory_space<smem>>
    %560 = vector.broadcast %559 : f32 to vector<1x768xf32>
    %561 = arith.mulf %560, %558 : vector<1x768xf32>
    %562 = arith.addf %545, %561 : vector<1x768xf32>
    %c109 = arith.constant 109 : index
    %563 = memref.load %arg2[%c109] : memref<144xf32, #tpu.memory_space<smem>>
    %564 = vector.broadcast %563 : f32 to vector<1x768xf32>
    %565 = arith.mulf %564, %558 : vector<1x768xf32>
    %566 = arith.addf %549, %565 : vector<1x768xf32>
    %c110 = arith.constant 110 : index
    %567 = memref.load %arg2[%c110] : memref<144xf32, #tpu.memory_space<smem>>
    %568 = vector.broadcast %567 : f32 to vector<1x768xf32>
    %569 = arith.mulf %568, %558 : vector<1x768xf32>
    %570 = arith.addf %553, %569 : vector<1x768xf32>
    %c111 = arith.constant 111 : index
    %571 = memref.load %arg2[%c111] : memref<144xf32, #tpu.memory_space<smem>>
    %572 = vector.broadcast %571 : f32 to vector<1x768xf32>
    %573 = arith.mulf %572, %558 : vector<1x768xf32>
    %574 = arith.addf %557, %573 : vector<1x768xf32>
    %c750_i32_32 = arith.constant 750 : i32
    %575 = tpu.dynamic_rotate %456 by %c750_i32_32 dim 1 : vector<1x768xf32>, i32 -> vector<1x768xf32>
    %c124 = arith.constant 124 : index
    %576 = memref.load %arg2[%c124] : memref<144xf32, #tpu.memory_space<smem>>
    %577 = vector.broadcast %576 : f32 to vector<1x768xf32>
    %578 = arith.mulf %577, %575 : vector<1x768xf32>
    %579 = arith.addf %562, %578 : vector<1x768xf32>
    %c125 = arith.constant 125 : index
    %580 = memref.load %arg2[%c125] : memref<144xf32, #tpu.memory_space<smem>>
    %581 = vector.broadcast %580 : f32 to vector<1x768xf32>
    %582 = arith.mulf %581, %575 : vector<1x768xf32>
    %583 = arith.addf %566, %582 : vector<1x768xf32>
    %c126 = arith.constant 126 : index
    %584 = memref.load %arg2[%c126] : memref<144xf32, #tpu.memory_space<smem>>
    %585 = vector.broadcast %584 : f32 to vector<1x768xf32>
    %586 = arith.mulf %585, %575 : vector<1x768xf32>
    %587 = arith.addf %570, %586 : vector<1x768xf32>
    %c127 = arith.constant 127 : index
    %588 = memref.load %arg2[%c127] : memref<144xf32, #tpu.memory_space<smem>>
    %589 = vector.broadcast %588 : f32 to vector<1x768xf32>
    %590 = arith.mulf %589, %575 : vector<1x768xf32>
    %591 = arith.addf %574, %590 : vector<1x768xf32>
    %c749_i32_33 = arith.constant 749 : i32
    %592 = tpu.dynamic_rotate %456 by %c749_i32_33 dim 1 : vector<1x768xf32>, i32 -> vector<1x768xf32>
    %c140 = arith.constant 140 : index
    %593 = memref.load %arg2[%c140] : memref<144xf32, #tpu.memory_space<smem>>
    %594 = vector.broadcast %593 : f32 to vector<1x768xf32>
    %595 = arith.mulf %594, %592 : vector<1x768xf32>
    %596 = arith.addf %579, %595 : vector<1x768xf32>
    %c141 = arith.constant 141 : index
    %597 = memref.load %arg2[%c141] : memref<144xf32, #tpu.memory_space<smem>>
    %598 = vector.broadcast %597 : f32 to vector<1x768xf32>
    %599 = arith.mulf %598, %592 : vector<1x768xf32>
    %600 = arith.addf %583, %599 : vector<1x768xf32>
    %c142 = arith.constant 142 : index
    %601 = memref.load %arg2[%c142] : memref<144xf32, #tpu.memory_space<smem>>
    %602 = vector.broadcast %601 : f32 to vector<1x768xf32>
    %603 = arith.mulf %602, %592 : vector<1x768xf32>
    %604 = arith.addf %587, %603 : vector<1x768xf32>
    %c143 = arith.constant 143 : index
    %605 = memref.load %arg2[%c143] : memref<144xf32, #tpu.memory_space<smem>>
    %606 = vector.broadcast %605 : f32 to vector<1x768xf32>
    %607 = arith.mulf %606, %592 : vector<1x768xf32>
    %608 = arith.addf %591, %607 : vector<1x768xf32>
    %c0_34 = arith.constant 0 : index
    %c0_35 = arith.constant 0 : index
    %609 = vector.load %arg9[%c0_34, %c0_35] : memref<4x768xf32, #tpu.memory_space<vmem>>, vector<1x768xf32>
    tpu.vector_store %arg9[%c0_34, %c0_35], %596 {strides = array<i32>} : memref<4x768xf32, #tpu.memory_space<vmem>>, vector<1x768xf32>,
    %c1_36 = arith.constant 1 : index
    %c0_37 = arith.constant 0 : index
    %610 = vector.load %arg9[%c1_36, %c0_37] : memref<4x768xf32, #tpu.memory_space<vmem>>, vector<1x768xf32>
    tpu.vector_store %arg9[%c1_36, %c0_37], %600 {strides = array<i32>} : memref<4x768xf32, #tpu.memory_space<vmem>>, vector<1x768xf32>,
    %c2_38 = arith.constant 2 : index
    %c0_39 = arith.constant 0 : index
    %611 = vector.load %arg9[%c2_38, %c0_39] : memref<4x768xf32, #tpu.memory_space<vmem>>, vector<1x768xf32>
    tpu.vector_store %arg9[%c2_38, %c0_39], %604 {strides = array<i32>} : memref<4x768xf32, #tpu.memory_space<vmem>>, vector<1x768xf32>,
    %c3_40 = arith.constant 3 : index
    %c0_41 = arith.constant 0 : index
    %612 = vector.load %arg9[%c3_40, %c0_41] : memref<4x768xf32, #tpu.memory_space<vmem>>, vector<1x768xf32>
    tpu.vector_store %arg9[%c3_40, %c0_41], %608 {strides = array<i32>} : memref<4x768xf32, #tpu.memory_space<vmem>>, vector<1x768xf32>,
    %c0_42 = arith.constant 0 : index
    %c0_43 = arith.constant 0 : index
    %613 = vector.load %arg9[%c0_42, %c0_43] : memref<4x768xf32, #tpu.memory_space<vmem>>, vector<4x768xf32>
    %614 = vector.broadcast %0 : vector<1x768xf32> to vector<4x768xf32>
    %615 = arith.mulf %613, %614 : vector<4x768xf32>
    %cst = arith.constant dense<0.000000e+00> : vector<4xf32>
    %616 = vector.multi_reduction <add>, %615, %cst [1] : vector<4x768xf32> to vector<4xf32>
    %617 = vector.shape_cast %616 : vector<4xf32> to vector<4x1xf32>
    %618 = arith.mulf %615, %615 : vector<4x768xf32>
    %cst_44 = arith.constant dense<0.000000e+00> : vector<4xf32>
    %619 = vector.multi_reduction <add>, %618, %cst_44 [1] : vector<4x768xf32> to vector<4xf32>
    %620 = vector.shape_cast %619 : vector<4xf32> to vector<4x1xf32>
    %cst_45 = arith.constant 0.001953125 : f32
    %621 = vector.broadcast %cst_45 : f32 to vector<4x1xf32>
    %622 = arith.mulf %617, %621 : vector<4x1xf32>
    %cst_46 = arith.constant 0.001953125 : f32
    %623 = vector.broadcast %cst_46 : f32 to vector<4x1xf32>
    %624 = arith.mulf %620, %623 : vector<4x1xf32>
    %625 = arith.mulf %622, %622 : vector<4x1xf32>
    %626 = arith.subf %624, %625 : vector<4x1xf32>
    %c0_47 = arith.constant 0 : index
    %c0_48 = arith.constant 0 : index
    %627 = vector.load %arg3[%c0_47, %c0_48] : memref<4x1xf32, #tpu.memory_space<vmem>>, vector<4x1xf32>
    %cst_49 = arith.constant 9.99999974E-6 : f32
    %628 = vector.broadcast %cst_49 : f32 to vector<4x1xf32>
    %629 = arith.addf %626, %628 : vector<4x1xf32>
    %630 = math.rsqrt %629 : vector<4x1xf32>
    %631 = arith.mulf %627, %630 : vector<4x1xf32>
    %c0_50 = arith.constant 0 : index
    %c0_51 = arith.constant 0 : index
    %632 = vector.load %arg4[%c0_50, %c0_51] : memref<4x1xf32, #tpu.memory_space<vmem>>, vector<4x1xf32>
    %633 = arith.mulf %622, %631 : vector<4x1xf32>
    %634 = arith.subf %632, %633 : vector<4x1xf32>
    %635 = vector.broadcast %631 : vector<4x1xf32> to vector<4x768xf32>
    %636 = arith.mulf %613, %635 : vector<4x768xf32>
    %637 = vector.broadcast %634 : vector<4x1xf32> to vector<4x768xf32>
    %638 = arith.addf %636, %637 : vector<4x768xf32>
    %639 = vector.broadcast %0 : vector<1x768xf32> to vector<4x768xf32>
    %640 = arith.mulf %639, %638 : vector<4x768xf32>
    %cst_52 = arith.constant 0.000000e+00 : f32
    %641 = vector.broadcast %cst_52 : f32 to vector<4x768xf32>
    %642 = arith.maximumf %640, %641 : vector<4x768xf32>
    %c0_53 = arith.constant 0 : index
    %c0_54 = arith.constant 0 : index
    %643 = vector.load %arg10[%c0_53, %c0_54] : memref<4x768xf32, #tpu.memory_space<vmem>>, vector<4x768xf32>
    tpu.vector_store %arg10[%c0_53, %c0_54], %642 {strides = array<i32>} : memref<4x768xf32, #tpu.memory_space<vmem>>, vector<4x768xf32>,
    %c0_55 = arith.constant 0 : index
    %c0_56 = arith.constant 0 : index
    %644 = vector.load %arg10[%c0_55, %c0_56] : memref<4x768xf32, #tpu.memory_space<vmem>>, vector<1x768xf32>
    %c19_i32_57 = arith.constant 19 : i32
    %645 = tpu.dynamic_rotate %644 by %c19_i32_57 dim 1 : vector<1x768xf32>, i32 -> vector<1x768xf32>
    %c0_58 = arith.constant 0 : index
    %646 = memref.load %arg5[%c0_58] : memref<144xf32, #tpu.memory_space<smem>>
    %647 = vector.broadcast %646 : f32 to vector<1x768xf32>
    %648 = arith.mulf %647, %645 : vector<1x768xf32>
    %c1_59 = arith.constant 1 : index
    %649 = memref.load %arg5[%c1_59] : memref<144xf32, #tpu.memory_space<smem>>
    %650 = vector.broadcast %649 : f32 to vector<1x768xf32>
    %651 = arith.mulf %650, %645 : vector<1x768xf32>
    %c2_60 = arith.constant 2 : index
    %652 = memref.load %arg5[%c2_60] : memref<144xf32, #tpu.memory_space<smem>>
    %653 = vector.broadcast %652 : f32 to vector<1x768xf32>
    %654 = arith.mulf %653, %645 : vector<1x768xf32>
    %c3_61 = arith.constant 3 : index
    %655 = memref.load %arg5[%c3_61] : memref<144xf32, #tpu.memory_space<smem>>
    %656 = vector.broadcast %655 : f32 to vector<1x768xf32>
    %657 = arith.mulf %656, %645 : vector<1x768xf32>
    %c18_i32_62 = arith.constant 18 : i32
    %658 = tpu.dynamic_rotate %644 by %c18_i32_62 dim 1 : vector<1x768xf32>, i32 -> vector<1x768xf32>
    %c16_63 = arith.constant 16 : index
    %659 = memref.load %arg5[%c16_63] : memref<144xf32, #tpu.memory_space<smem>>
    %660 = vector.broadcast %659 : f32 to vector<1x768xf32>
    %661 = arith.mulf %660, %658 : vector<1x768xf32>
    %662 = arith.addf %648, %661 : vector<1x768xf32>
    %c17_64 = arith.constant 17 : index
    %663 = memref.load %arg5[%c17_64] : memref<144xf32, #tpu.memory_space<smem>>
    %664 = vector.broadcast %663 : f32 to vector<1x768xf32>
    %665 = arith.mulf %664, %658 : vector<1x768xf32>
    %666 = arith.addf %651, %665 : vector<1x768xf32>
    %c18_65 = arith.constant 18 : index
    %667 = memref.load %arg5[%c18_65] : memref<144xf32, #tpu.memory_space<smem>>
    %668 = vector.broadcast %667 : f32 to vector<1x768xf32>
    %669 = arith.mulf %668, %658 : vector<1x768xf32>
    %670 = arith.addf %654, %669 : vector<1x768xf32>
    %c19_66 = arith.constant 19 : index
    %671 = memref.load %arg5[%c19_66] : memref<144xf32, #tpu.memory_space<smem>>
    %672 = vector.broadcast %671 : f32 to vector<1x768xf32>
    %673 = arith.mulf %672, %658 : vector<1x768xf32>
    %674 = arith.addf %657, %673 : vector<1x768xf32>
    %c17_i32_67 = arith.constant 17 : i32
    %675 = tpu.dynamic_rotate %644 by %c17_i32_67 dim 1 : vector<1x768xf32>, i32 -> vector<1x768xf32>
    %c32_68 = arith.constant 32 : index
    %676 = memref.load %arg5[%c32_68] : memref<144xf32, #tpu.memory_space<smem>>
    %677 = vector.broadcast %676 : f32 to vector<1x768xf32>
    %678 = arith.mulf %677, %675 : vector<1x768xf32>
    %679 = arith.addf %662, %678 : vector<1x768xf32>
    %c33_69 = arith.constant 33 : index
    %680 = memref.load %arg5[%c33_69] : memref<144xf32, #tpu.memory_space<smem>>
    %681 = vector.broadcast %680 : f32 to vector<1x768xf32>
    %682 = arith.mulf %681, %675 : vector<1x768xf32>
    %683 = arith.addf %666, %682 : vector<1x768xf32>
    %c34_70 = arith.constant 34 : index
    %684 = memref.load %arg5[%c34_70] : memref<144xf32, #tpu.memory_space<smem>>
    %685 = vector.broadcast %684 : f32 to vector<1x768xf32>
    %686 = arith.mulf %685, %675 : vector<1x768xf32>
    %687 = arith.addf %670, %686 : vector<1x768xf32>
    %c35_71 = arith.constant 35 : index
    %688 = memref.load %arg5[%c35_71] : memref<144xf32, #tpu.memory_space<smem>>
    %689 = vector.broadcast %688 : f32 to vector<1x768xf32>
    %690 = arith.mulf %689, %675 : vector<1x768xf32>
    %691 = arith.addf %674, %690 : vector<1x768xf32>
    %c1_i32_72 = arith.constant 1 : i32
    %692 = tpu.dynamic_rotate %644 by %c1_i32_72 dim 1 : vector<1x768xf32>, i32 -> vector<1x768xf32>
    %c48_73 = arith.constant 48 : index
    %693 = memref.load %arg5[%c48_73] : memref<144xf32, #tpu.memory_space<smem>>
    %694 = vector.broadcast %693 : f32 to vector<1x768xf32>
    %695 = arith.mulf %694, %692 : vector<1x768xf32>
    %696 = arith.addf %679, %695 : vector<1x768xf32>
    %c49_74 = arith.constant 49 : index
    %697 = memref.load %arg5[%c49_74] : memref<144xf32, #tpu.memory_space<smem>>
    %698 = vector.broadcast %697 : f32 to vector<1x768xf32>
    %699 = arith.mulf %698, %692 : vector<1x768xf32>
    %700 = arith.addf %683, %699 : vector<1x768xf32>
    %c50_75 = arith.constant 50 : index
    %701 = memref.load %arg5[%c50_75] : memref<144xf32, #tpu.memory_space<smem>>
    %702 = vector.broadcast %701 : f32 to vector<1x768xf32>
    %703 = arith.mulf %702, %692 : vector<1x768xf32>
    %704 = arith.addf %687, %703 : vector<1x768xf32>
    %c51_76 = arith.constant 51 : index
    %705 = memref.load %arg5[%c51_76] : memref<144xf32, #tpu.memory_space<smem>>
    %706 = vector.broadcast %705 : f32 to vector<1x768xf32>
    %707 = arith.mulf %706, %692 : vector<1x768xf32>
    %708 = arith.addf %691, %707 : vector<1x768xf32>
    %c64_77 = arith.constant 64 : index
    %709 = memref.load %arg5[%c64_77] : memref<144xf32, #tpu.memory_space<smem>>
    %710 = vector.broadcast %709 : f32 to vector<1x768xf32>
    %711 = arith.mulf %710, %644 : vector<1x768xf32>
    %712 = arith.addf %696, %711 : vector<1x768xf32>
    %c65_78 = arith.constant 65 : index
    %713 = memref.load %arg5[%c65_78] : memref<144xf32, #tpu.memory_space<smem>>
    %714 = vector.broadcast %713 : f32 to vector<1x768xf32>
    %715 = arith.mulf %714, %644 : vector<1x768xf32>
    %716 = arith.addf %700, %715 : vector<1x768xf32>
    %c66_79 = arith.constant 66 : index
    %717 = memref.load %arg5[%c66_79] : memref<144xf32, #tpu.memory_space<smem>>
    %718 = vector.broadcast %717 : f32 to vector<1x768xf32>
    %719 = arith.mulf %718, %644 : vector<1x768xf32>
    %720 = arith.addf %704, %719 : vector<1x768xf32>
    %c67_80 = arith.constant 67 : index
    %721 = memref.load %arg5[%c67_80] : memref<144xf32, #tpu.memory_space<smem>>
    %722 = vector.broadcast %721 : f32 to vector<1x768xf32>
    %723 = arith.mulf %722, %644 : vector<1x768xf32>
    %724 = arith.addf %708, %723 : vector<1x768xf32>
    %c767_i32_81 = arith.constant 767 : i32
    %725 = tpu.dynamic_rotate %644 by %c767_i32_81 dim 1 : vector<1x768xf32>, i32 -> vector<1x768xf32>
    %c80_82 = arith.constant 80 : index
    %726 = memref.load %arg5[%c80_82] : memref<144xf32, #tpu.memory_space<smem>>
    %727 = vector.broadcast %726 : f32 to vector<1x768xf32>
    %728 = arith.mulf %727, %725 : vector<1x768xf32>
    %729 = arith.addf %712, %728 : vector<1x768xf32>
    %c81_83 = arith.constant 81 : index
    %730 = memref.load %arg5[%c81_83] : memref<144xf32, #tpu.memory_space<smem>>
    %731 = vector.broadcast %730 : f32 to vector<1x768xf32>
    %732 = arith.mulf %731, %725 : vector<1x768xf32>
    %733 = arith.addf %716, %732 : vector<1x768xf32>
    %c82_84 = arith.constant 82 : index
    %734 = memref.load %arg5[%c82_84] : memref<144xf32, #tpu.memory_space<smem>>
    %735 = vector.broadcast %734 : f32 to vector<1x768xf32>
    %736 = arith.mulf %735, %725 : vector<1x768xf32>
    %737 = arith.addf %720, %736 : vector<1x768xf32>
    %c83_85 = arith.constant 83 : index
    %738 = memref.load %arg5[%c83_85] : memref<144xf32, #tpu.memory_space<smem>>
    %739 = vector.broadcast %738 : f32 to vector<1x768xf32>
    %740 = arith.mulf %739, %725 : vector<1x768xf32>
    %741 = arith.addf %724, %740 : vector<1x768xf32>
    %c751_i32_86 = arith.constant 751 : i32
    %742 = tpu.dynamic_rotate %644 by %c751_i32_86 dim 1 : vector<1x768xf32>, i32 -> vector<1x768xf32>
    %c96_87 = arith.constant 96 : index
    %743 = memref.load %arg5[%c96_87] : memref<144xf32, #tpu.memory_space<smem>>
    %744 = vector.broadcast %743 : f32 to vector<1x768xf32>
    %745 = arith.mulf %744, %742 : vector<1x768xf32>
    %746 = arith.addf %729, %745 : vector<1x768xf32>
    %c97_88 = arith.constant 97 : index
    %747 = memref.load %arg5[%c97_88] : memref<144xf32, #tpu.memory_space<smem>>
    %748 = vector.broadcast %747 : f32 to vector<1x768xf32>
    %749 = arith.mulf %748, %742 : vector<1x768xf32>
    %750 = arith.addf %733, %749 : vector<1x768xf32>
    %c98_89 = arith.constant 98 : index
    %751 = memref.load %arg5[%c98_89] : memref<144xf32, #tpu.memory_space<smem>>
    %752 = vector.broadcast %751 : f32 to vector<1x768xf32>
    %753 = arith.mulf %752, %742 : vector<1x768xf32>
    %754 = arith.addf %737, %753 : vector<1x768xf32>
    %c99_90 = arith.constant 99 : index
    %755 = memref.load %arg5[%c99_90] : memref<144xf32, #tpu.memory_space<smem>>
    %756 = vector.broadcast %755 : f32 to vector<1x768xf32>
    %757 = arith.mulf %756, %742 : vector<1x768xf32>
    %758 = arith.addf %741, %757 : vector<1x768xf32>
    %c750_i32_91 = arith.constant 750 : i32
    %759 = tpu.dynamic_rotate %644 by %c750_i32_91 dim 1 : vector<1x768xf32>, i32 -> vector<1x768xf32>
    %c112_92 = arith.constant 112 : index
    %760 = memref.load %arg5[%c112_92] : memref<144xf32, #tpu.memory_space<smem>>
    %761 = vector.broadcast %760 : f32 to vector<1x768xf32>
    %762 = arith.mulf %761, %759 : vector<1x768xf32>
    %763 = arith.addf %746, %762 : vector<1x768xf32>
    %c113_93 = arith.constant 113 : index
    %764 = memref.load %arg5[%c113_93] : memref<144xf32, #tpu.memory_space<smem>>
    %765 = vector.broadcast %764 : f32 to vector<1x768xf32>
    %766 = arith.mulf %765, %759 : vector<1x768xf32>
    %767 = arith.addf %750, %766 : vector<1x768xf32>
    %c114_94 = arith.constant 114 : index
    %768 = memref.load %arg5[%c114_94] : memref<144xf32, #tpu.memory_space<smem>>
    %769 = vector.broadcast %768 : f32 to vector<1x768xf32>
    %770 = arith.mulf %769, %759 : vector<1x768xf32>
    %771 = arith.addf %754, %770 : vector<1x768xf32>
    %c115_95 = arith.constant 115 : index
    %772 = memref.load %arg5[%c115_95] : memref<144xf32, #tpu.memory_space<smem>>
    %773 = vector.broadcast %772 : f32 to vector<1x768xf32>
    %774 = arith.mulf %773, %759 : vector<1x768xf32>
    %775 = arith.addf %758, %774 : vector<1x768xf32>
    %c749_i32_96 = arith.constant 749 : i32
    %776 = tpu.dynamic_rotate %644 by %c749_i32_96 dim 1 : vector<1x768xf32>, i32 -> vector<1x768xf32>
    %c128_97 = arith.constant 128 : index
    %777 = memref.load %arg5[%c128_97] : memref<144xf32, #tpu.memory_space<smem>>
    %778 = vector.broadcast %777 : f32 to vector<1x768xf32>
    %779 = arith.mulf %778, %776 : vector<1x768xf32>
    %780 = arith.addf %763, %779 : vector<1x768xf32>
    %c129_98 = arith.constant 129 : index
    %781 = memref.load %arg5[%c129_98] : memref<144xf32, #tpu.memory_space<smem>>
    %782 = vector.broadcast %781 : f32 to vector<1x768xf32>
    %783 = arith.mulf %782, %776 : vector<1x768xf32>
    %784 = arith.addf %767, %783 : vector<1x768xf32>
    %c130_99 = arith.constant 130 : index
    %785 = memref.load %arg5[%c130_99] : memref<144xf32, #tpu.memory_space<smem>>
    %786 = vector.broadcast %785 : f32 to vector<1x768xf32>
    %787 = arith.mulf %786, %776 : vector<1x768xf32>
    %788 = arith.addf %771, %787 : vector<1x768xf32>
    %c131_100 = arith.constant 131 : index
    %789 = memref.load %arg5[%c131_100] : memref<144xf32, #tpu.memory_space<smem>>
    %790 = vector.broadcast %789 : f32 to vector<1x768xf32>
    %791 = arith.mulf %790, %776 : vector<1x768xf32>
    %792 = arith.addf %775, %791 : vector<1x768xf32>
    %c1_101 = arith.constant 1 : index
    %c0_102 = arith.constant 0 : index
    %793 = vector.load %arg10[%c1_101, %c0_102] : memref<4x768xf32, #tpu.memory_space<vmem>>, vector<1x768xf32>
    %c19_i32_103 = arith.constant 19 : i32
    %794 = tpu.dynamic_rotate %793 by %c19_i32_103 dim 1 : vector<1x768xf32>, i32 -> vector<1x768xf32>
    %c4_104 = arith.constant 4 : index
    %795 = memref.load %arg5[%c4_104] : memref<144xf32, #tpu.memory_space<smem>>
    %796 = vector.broadcast %795 : f32 to vector<1x768xf32>
    %797 = arith.mulf %796, %794 : vector<1x768xf32>
    %798 = arith.addf %780, %797 : vector<1x768xf32>
    %c5_105 = arith.constant 5 : index
    %799 = memref.load %arg5[%c5_105] : memref<144xf32, #tpu.memory_space<smem>>
    %800 = vector.broadcast %799 : f32 to vector<1x768xf32>
    %801 = arith.mulf %800, %794 : vector<1x768xf32>
    %802 = arith.addf %784, %801 : vector<1x768xf32>
    %c6_106 = arith.constant 6 : index
    %803 = memref.load %arg5[%c6_106] : memref<144xf32, #tpu.memory_space<smem>>
    %804 = vector.broadcast %803 : f32 to vector<1x768xf32>
    %805 = arith.mulf %804, %794 : vector<1x768xf32>
    %806 = arith.addf %788, %805 : vector<1x768xf32>
    %c7_107 = arith.constant 7 : index
    %807 = memref.load %arg5[%c7_107] : memref<144xf32, #tpu.memory_space<smem>>
    %808 = vector.broadcast %807 : f32 to vector<1x768xf32>
    %809 = arith.mulf %808, %794 : vector<1x768xf32>
    %810 = arith.addf %792, %809 : vector<1x768xf32>
    %c18_i32_108 = arith.constant 18 : i32
    %811 = tpu.dynamic_rotate %793 by %c18_i32_108 dim 1 : vector<1x768xf32>, i32 -> vector<1x768xf32>
    %c20_109 = arith.constant 20 : index
    %812 = memref.load %arg5[%c20_109] : memref<144xf32, #tpu.memory_space<smem>>
    %813 = vector.broadcast %812 : f32 to vector<1x768xf32>
    %814 = arith.mulf %813, %811 : vector<1x768xf32>
    %815 = arith.addf %798, %814 : vector<1x768xf32>
    %c21_110 = arith.constant 21 : index
    %816 = memref.load %arg5[%c21_110] : memref<144xf32, #tpu.memory_space<smem>>
    %817 = vector.broadcast %816 : f32 to vector<1x768xf32>
    %818 = arith.mulf %817, %811 : vector<1x768xf32>
    %819 = arith.addf %802, %818 : vector<1x768xf32>
    %c22_111 = arith.constant 22 : index
    %820 = memref.load %arg5[%c22_111] : memref<144xf32, #tpu.memory_space<smem>>
    %821 = vector.broadcast %820 : f32 to vector<1x768xf32>
    %822 = arith.mulf %821, %811 : vector<1x768xf32>
    %823 = arith.addf %806, %822 : vector<1x768xf32>
    %c23_112 = arith.constant 23 : index
    %824 = memref.load %arg5[%c23_112] : memref<144xf32, #tpu.memory_space<smem>>
    %825 = vector.broadcast %824 : f32 to vector<1x768xf32>
    %826 = arith.mulf %825, %811 : vector<1x768xf32>
    %827 = arith.addf %810, %826 : vector<1x768xf32>
    %c17_i32_113 = arith.constant 17 : i32
    %828 = tpu.dynamic_rotate %793 by %c17_i32_113 dim 1 : vector<1x768xf32>, i32 -> vector<1x768xf32>
    %c36_114 = arith.constant 36 : index
    %829 = memref.load %arg5[%c36_114] : memref<144xf32, #tpu.memory_space<smem>>
    %830 = vector.broadcast %829 : f32 to vector<1x768xf32>
    %831 = arith.mulf %830, %828 : vector<1x768xf32>
    %832 = arith.addf %815, %831 : vector<1x768xf32>
    %c37_115 = arith.constant 37 : index
    %833 = memref.load %arg5[%c37_115] : memref<144xf32, #tpu.memory_space<smem>>
    %834 = vector.broadcast %833 : f32 to vector<1x768xf32>
    %835 = arith.mulf %834, %828 : vector<1x768xf32>
    %836 = arith.addf %819, %835 : vector<1x768xf32>
    %c38_116 = arith.constant 38 : index
    %837 = memref.load %arg5[%c38_116] : memref<144xf32, #tpu.memory_space<smem>>
    %838 = vector.broadcast %837 : f32 to vector<1x768xf32>
    %839 = arith.mulf %838, %828 : vector<1x768xf32>
    %840 = arith.addf %823, %839 : vector<1x768xf32>
    %c39_117 = arith.constant 39 : index
    %841 = memref.load %arg5[%c39_117] : memref<144xf32, #tpu.memory_space<smem>>
    %842 = vector.broadcast %841 : f32 to vector<1x768xf32>
    %843 = arith.mulf %842, %828 : vector<1x768xf32>
    %844 = arith.addf %827, %843 : vector<1x768xf32>
    %c1_i32_118 = arith.constant 1 : i32
    %845 = tpu.dynamic_rotate %793 by %c1_i32_118 dim 1 : vector<1x768xf32>, i32 -> vector<1x768xf32>
    %c52_119 = arith.constant 52 : index
    %846 = memref.load %arg5[%c52_119] : memref<144xf32, #tpu.memory_space<smem>>
    %847 = vector.broadcast %846 : f32 to vector<1x768xf32>
    %848 = arith.mulf %847, %845 : vector<1x768xf32>
    %849 = arith.addf %832, %848 : vector<1x768xf32>
    %c53_120 = arith.constant 53 : index
    %850 = memref.load %arg5[%c53_120] : memref<144xf32, #tpu.memory_space<smem>>
    %851 = vector.broadcast %850 : f32 to vector<1x768xf32>
    %852 = arith.mulf %851, %845 : vector<1x768xf32>
    %853 = arith.addf %836, %852 : vector<1x768xf32>
    %c54_121 = arith.constant 54 : index
    %854 = memref.load %arg5[%c54_121] : memref<144xf32, #tpu.memory_space<smem>>
    %855 = vector.broadcast %854 : f32 to vector<1x768xf32>
    %856 = arith.mulf %855, %845 : vector<1x768xf32>
    %857 = arith.addf %840, %856 : vector<1x768xf32>
    %c55_122 = arith.constant 55 : index
    %858 = memref.load %arg5[%c55_122] : memref<144xf32, #tpu.memory_space<smem>>
    %859 = vector.broadcast %858 : f32 to vector<1x768xf32>
    %860 = arith.mulf %859, %845 : vector<1x768xf32>
    %861 = arith.addf %844, %860 : vector<1x768xf32>
    %c68_123 = arith.constant 68 : index
    %862 = memref.load %arg5[%c68_123] : memref<144xf32, #tpu.memory_space<smem>>
    %863 = vector.broadcast %862 : f32 to vector<1x768xf32>
    %864 = arith.mulf %863, %793 : vector<1x768xf32>
    %865 = arith.addf %849, %864 : vector<1x768xf32>
    %c69_124 = arith.constant 69 : index
    %866 = memref.load %arg5[%c69_124] : memref<144xf32, #tpu.memory_space<smem>>
    %867 = vector.broadcast %866 : f32 to vector<1x768xf32>
    %868 = arith.mulf %867, %793 : vector<1x768xf32>
    %869 = arith.addf %853, %868 : vector<1x768xf32>
    %c70_125 = arith.constant 70 : index
    %870 = memref.load %arg5[%c70_125] : memref<144xf32, #tpu.memory_space<smem>>
    %871 = vector.broadcast %870 : f32 to vector<1x768xf32>
    %872 = arith.mulf %871, %793 : vector<1x768xf32>
    %873 = arith.addf %857, %872 : vector<1x768xf32>
    %c71_126 = arith.constant 71 : index
    %874 = memref.load %arg5[%c71_126] : memref<144xf32, #tpu.memory_space<smem>>
    %875 = vector.broadcast %874 : f32 to vector<1x768xf32>
    %876 = arith.mulf %875, %793 : vector<1x768xf32>
    %877 = arith.addf %861, %876 : vector<1x768xf32>
    %c767_i32_127 = arith.constant 767 : i32
    %878 = tpu.dynamic_rotate %793 by %c767_i32_127 dim 1 : vector<1x768xf32>, i32 -> vector<1x768xf32>
    %c84_128 = arith.constant 84 : index
    %879 = memref.load %arg5[%c84_128] : memref<144xf32, #tpu.memory_space<smem>>
    %880 = vector.broadcast %879 : f32 to vector<1x768xf32>
    %881 = arith.mulf %880, %878 : vector<1x768xf32>
    %882 = arith.addf %865, %881 : vector<1x768xf32>
    %c85_129 = arith.constant 85 : index
    %883 = memref.load %arg5[%c85_129] : memref<144xf32, #tpu.memory_space<smem>>
    %884 = vector.broadcast %883 : f32 to vector<1x768xf32>
    %885 = arith.mulf %884, %878 : vector<1x768xf32>
    %886 = arith.addf %869, %885 : vector<1x768xf32>
    %c86_130 = arith.constant 86 : index
    %887 = memref.load %arg5[%c86_130] : memref<144xf32, #tpu.memory_space<smem>>
    %888 = vector.broadcast %887 : f32 to vector<1x768xf32>
    %889 = arith.mulf %888, %878 : vector<1x768xf32>
    %890 = arith.addf %873, %889 : vector<1x768xf32>
    %c87_131 = arith.constant 87 : index
    %891 = memref.load %arg5[%c87_131] : memref<144xf32, #tpu.memory_space<smem>>
    %892 = vector.broadcast %891 : f32 to vector<1x768xf32>
    %893 = arith.mulf %892, %878 : vector<1x768xf32>
    %894 = arith.addf %877, %893 : vector<1x768xf32>
    %c751_i32_132 = arith.constant 751 : i32
    %895 = tpu.dynamic_rotate %793 by %c751_i32_132 dim 1 : vector<1x768xf32>, i32 -> vector<1x768xf32>
    %c100_133 = arith.constant 100 : index
    %896 = memref.load %arg5[%c100_133] : memref<144xf32, #tpu.memory_space<smem>>
    %897 = vector.broadcast %896 : f32 to vector<1x768xf32>
    %898 = arith.mulf %897, %895 : vector<1x768xf32>
    %899 = arith.addf %882, %898 : vector<1x768xf32>
    %c101_134 = arith.constant 101 : index
    %900 = memref.load %arg5[%c101_134] : memref<144xf32, #tpu.memory_space<smem>>
    %901 = vector.broadcast %900 : f32 to vector<1x768xf32>
    %902 = arith.mulf %901, %895 : vector<1x768xf32>
    %903 = arith.addf %886, %902 : vector<1x768xf32>
    %c102_135 = arith.constant 102 : index
    %904 = memref.load %arg5[%c102_135] : memref<144xf32, #tpu.memory_space<smem>>
    %905 = vector.broadcast %904 : f32 to vector<1x768xf32>
    %906 = arith.mulf %905, %895 : vector<1x768xf32>
    %907 = arith.addf %890, %906 : vector<1x768xf32>
    %c103_136 = arith.constant 103 : index
    %908 = memref.load %arg5[%c103_136] : memref<144xf32, #tpu.memory_space<smem>>
    %909 = vector.broadcast %908 : f32 to vector<1x768xf32>
    %910 = arith.mulf %909, %895 : vector<1x768xf32>
    %911 = arith.addf %894, %910 : vector<1x768xf32>
    %c750_i32_137 = arith.constant 750 : i32
    %912 = tpu.dynamic_rotate %793 by %c750_i32_137 dim 1 : vector<1x768xf32>, i32 -> vector<1x768xf32>
    %c116_138 = arith.constant 116 : index
    %913 = memref.load %arg5[%c116_138] : memref<144xf32, #tpu.memory_space<smem>>
    %914 = vector.broadcast %913 : f32 to vector<1x768xf32>
    %915 = arith.mulf %914, %912 : vector<1x768xf32>
    %916 = arith.addf %899, %915 : vector<1x768xf32>
    %c117_139 = arith.constant 117 : index
    %917 = memref.load %arg5[%c117_139] : memref<144xf32, #tpu.memory_space<smem>>
    %918 = vector.broadcast %917 : f32 to vector<1x768xf32>
    %919 = arith.mulf %918, %912 : vector<1x768xf32>
    %920 = arith.addf %903, %919 : vector<1x768xf32>
    %c118_140 = arith.constant 118 : index
    %921 = memref.load %arg5[%c118_140] : memref<144xf32, #tpu.memory_space<smem>>
    %922 = vector.broadcast %921 : f32 to vector<1x768xf32>
    %923 = arith.mulf %922, %912 : vector<1x768xf32>
    %924 = arith.addf %907, %923 : vector<1x768xf32>
    %c119_141 = arith.constant 119 : index
    %925 = memref.load %arg5[%c119_141] : memref<144xf32, #tpu.memory_space<smem>>
    %926 = vector.broadcast %925 : f32 to vector<1x768xf32>
    %927 = arith.mulf %926, %912 : vector<1x768xf32>
    %928 = arith.addf %911, %927 : vector<1x768xf32>
    %c749_i32_142 = arith.constant 749 : i32
    %929 = tpu.dynamic_rotate %793 by %c749_i32_142 dim 1 : vector<1x768xf32>, i32 -> vector<1x768xf32>
    %c132_143 = arith.constant 132 : index
    %930 = memref.load %arg5[%c132_143] : memref<144xf32, #tpu.memory_space<smem>>
    %931 = vector.broadcast %930 : f32 to vector<1x768xf32>
    %932 = arith.mulf %931, %929 : vector<1x768xf32>
    %933 = arith.addf %916, %932 : vector<1x768xf32>
    %c133_144 = arith.constant 133 : index
    %934 = memref.load %arg5[%c133_144] : memref<144xf32, #tpu.memory_space<smem>>
    %935 = vector.broadcast %934 : f32 to vector<1x768xf32>
    %936 = arith.mulf %935, %929 : vector<1x768xf32>
    %937 = arith.addf %920, %936 : vector<1x768xf32>
    %c134_145 = arith.constant 134 : index
    %938 = memref.load %arg5[%c134_145] : memref<144xf32, #tpu.memory_space<smem>>
    %939 = vector.broadcast %938 : f32 to vector<1x768xf32>
    %940 = arith.mulf %939, %929 : vector<1x768xf32>
    %941 = arith.addf %924, %940 : vector<1x768xf32>
    %c135_146 = arith.constant 135 : index
    %942 = memref.load %arg5[%c135_146] : memref<144xf32, #tpu.memory_space<smem>>
    %943 = vector.broadcast %942 : f32 to vector<1x768xf32>
    %944 = arith.mulf %943, %929 : vector<1x768xf32>
    %945 = arith.addf %928, %944 : vector<1x768xf32>
    %c2_147 = arith.constant 2 : index
    %c0_148 = arith.constant 0 : index
    %946 = vector.load %arg10[%c2_147, %c0_148] : memref<4x768xf32, #tpu.memory_space<vmem>>, vector<1x768xf32>
    %c19_i32_149 = arith.constant 19 : i32
    %947 = tpu.dynamic_rotate %946 by %c19_i32_149 dim 1 : vector<1x768xf32>, i32 -> vector<1x768xf32>
    %c8_150 = arith.constant 8 : index
    %948 = memref.load %arg5[%c8_150] : memref<144xf32, #tpu.memory_space<smem>>
    %949 = vector.broadcast %948 : f32 to vector<1x768xf32>
    %950 = arith.mulf %949, %947 : vector<1x768xf32>
    %951 = arith.addf %933, %950 : vector<1x768xf32>
    %c9_151 = arith.constant 9 : index
    %952 = memref.load %arg5[%c9_151] : memref<144xf32, #tpu.memory_space<smem>>
    %953 = vector.broadcast %952 : f32 to vector<1x768xf32>
    %954 = arith.mulf %953, %947 : vector<1x768xf32>
    %955 = arith.addf %937, %954 : vector<1x768xf32>
    %c10_152 = arith.constant 10 : index
    %956 = memref.load %arg5[%c10_152] : memref<144xf32, #tpu.memory_space<smem>>
    %957 = vector.broadcast %956 : f32 to vector<1x768xf32>
    %958 = arith.mulf %957, %947 : vector<1x768xf32>
    %959 = arith.addf %941, %958 : vector<1x768xf32>
    %c11_153 = arith.constant 11 : index
    %960 = memref.load %arg5[%c11_153] : memref<144xf32, #tpu.memory_space<smem>>
    %961 = vector.broadcast %960 : f32 to vector<1x768xf32>
    %962 = arith.mulf %961, %947 : vector<1x768xf32>
    %963 = arith.addf %945, %962 : vector<1x768xf32>
    %c18_i32_154 = arith.constant 18 : i32
    %964 = tpu.dynamic_rotate %946 by %c18_i32_154 dim 1 : vector<1x768xf32>, i32 -> vector<1x768xf32>
    %c24_155 = arith.constant 24 : index
    %965 = memref.load %arg5[%c24_155] : memref<144xf32, #tpu.memory_space<smem>>
    %966 = vector.broadcast %965 : f32 to vector<1x768xf32>
    %967 = arith.mulf %966, %964 : vector<1x768xf32>
    %968 = arith.addf %951, %967 : vector<1x768xf32>
    %c25_156 = arith.constant 25 : index
    %969 = memref.load %arg5[%c25_156] : memref<144xf32, #tpu.memory_space<smem>>
    %970 = vector.broadcast %969 : f32 to vector<1x768xf32>
    %971 = arith.mulf %970, %964 : vector<1x768xf32>
    %972 = arith.addf %955, %971 : vector<1x768xf32>
    %c26_157 = arith.constant 26 : index
    %973 = memref.load %arg5[%c26_157] : memref<144xf32, #tpu.memory_space<smem>>
    %974 = vector.broadcast %973 : f32 to vector<1x768xf32>
    %975 = arith.mulf %974, %964 : vector<1x768xf32>
    %976 = arith.addf %959, %975 : vector<1x768xf32>
    %c27_158 = arith.constant 27 : index
    %977 = memref.load %arg5[%c27_158] : memref<144xf32, #tpu.memory_space<smem>>
    %978 = vector.broadcast %977 : f32 to vector<1x768xf32>
    %979 = arith.mulf %978, %964 : vector<1x768xf32>
    %980 = arith.addf %963, %979 : vector<1x768xf32>
    %c17_i32_159 = arith.constant 17 : i32
    %981 = tpu.dynamic_rotate %946 by %c17_i32_159 dim 1 : vector<1x768xf32>, i32 -> vector<1x768xf32>
    %c40_160 = arith.constant 40 : index
    %982 = memref.load %arg5[%c40_160] : memref<144xf32, #tpu.memory_space<smem>>
    %983 = vector.broadcast %982 : f32 to vector<1x768xf32>
    %984 = arith.mulf %983, %981 : vector<1x768xf32>
    %985 = arith.addf %968, %984 : vector<1x768xf32>
    %c41_161 = arith.constant 41 : index
    %986 = memref.load %arg5[%c41_161] : memref<144xf32, #tpu.memory_space<smem>>
    %987 = vector.broadcast %986 : f32 to vector<1x768xf32>
    %988 = arith.mulf %987, %981 : vector<1x768xf32>
    %989 = arith.addf %972, %988 : vector<1x768xf32>
    %c42_162 = arith.constant 42 : index
    %990 = memref.load %arg5[%c42_162] : memref<144xf32, #tpu.memory_space<smem>>
    %991 = vector.broadcast %990 : f32 to vector<1x768xf32>
    %992 = arith.mulf %991, %981 : vector<1x768xf32>
    %993 = arith.addf %976, %992 : vector<1x768xf32>
    %c43_163 = arith.constant 43 : index
    %994 = memref.load %arg5[%c43_163] : memref<144xf32, #tpu.memory_space<smem>>
    %995 = vector.broadcast %994 : f32 to vector<1x768xf32>
    %996 = arith.mulf %995, %981 : vector<1x768xf32>
    %997 = arith.addf %980, %996 : vector<1x768xf32>
    %c1_i32_164 = arith.constant 1 : i32
    %998 = tpu.dynamic_rotate %946 by %c1_i32_164 dim 1 : vector<1x768xf32>, i32 -> vector<1x768xf32>
    %c56_165 = arith.constant 56 : index
    %999 = memref.load %arg5[%c56_165] : memref<144xf32, #tpu.memory_space<smem>>
    %1000 = vector.broadcast %999 : f32 to vector<1x768xf32>
    %1001 = arith.mulf %1000, %998 : vector<1x768xf32>
    %1002 = arith.addf %985, %1001 : vector<1x768xf32>
    %c57_166 = arith.constant 57 : index
    %1003 = memref.load %arg5[%c57_166] : memref<144xf32, #tpu.memory_space<smem>>
    %1004 = vector.broadcast %1003 : f32 to vector<1x768xf32>
    %1005 = arith.mulf %1004, %998 : vector<1x768xf32>
    %1006 = arith.addf %989, %1005 : vector<1x768xf32>
    %c58_167 = arith.constant 58 : index
    %1007 = memref.load %arg5[%c58_167] : memref<144xf32, #tpu.memory_space<smem>>
    %1008 = vector.broadcast %1007 : f32 to vector<1x768xf32>
    %1009 = arith.mulf %1008, %998 : vector<1x768xf32>
    %1010 = arith.addf %993, %1009 : vector<1x768xf32>
    %c59_168 = arith.constant 59 : index
    %1011 = memref.load %arg5[%c59_168] : memref<144xf32, #tpu.memory_space<smem>>
    %1012 = vector.broadcast %1011 : f32 to vector<1x768xf32>
    %1013 = arith.mulf %1012, %998 : vector<1x768xf32>
    %1014 = arith.addf %997, %1013 : vector<1x768xf32>
    %c72_169 = arith.constant 72 : index
    %1015 = memref.load %arg5[%c72_169] : memref<144xf32, #tpu.memory_space<smem>>
    %1016 = vector.broadcast %1015 : f32 to vector<1x768xf32>
    %1017 = arith.mulf %1016, %946 : vector<1x768xf32>
    %1018 = arith.addf %1002, %1017 : vector<1x768xf32>
    %c73_170 = arith.constant 73 : index
    %1019 = memref.load %arg5[%c73_170] : memref<144xf32, #tpu.memory_space<smem>>
    %1020 = vector.broadcast %1019 : f32 to vector<1x768xf32>
    %1021 = arith.mulf %1020, %946 : vector<1x768xf32>
    %1022 = arith.addf %1006, %1021 : vector<1x768xf32>
    %c74_171 = arith.constant 74 : index
    %1023 = memref.load %arg5[%c74_171] : memref<144xf32, #tpu.memory_space<smem>>
    %1024 = vector.broadcast %1023 : f32 to vector<1x768xf32>
    %1025 = arith.mulf %1024, %946 : vector<1x768xf32>
    %1026 = arith.addf %1010, %1025 : vector<1x768xf32>
    %c75_172 = arith.constant 75 : index
    %1027 = memref.load %arg5[%c75_172] : memref<144xf32, #tpu.memory_space<smem>>
    %1028 = vector.broadcast %1027 : f32 to vector<1x768xf32>
    %1029 = arith.mulf %1028, %946 : vector<1x768xf32>
    %1030 = arith.addf %1014, %1029 : vector<1x768xf32>
    %c767_i32_173 = arith.constant 767 : i32
    %1031 = tpu.dynamic_rotate %946 by %c767_i32_173 dim 1 : vector<1x768xf32>, i32 -> vector<1x768xf32>
    %c88_174 = arith.constant 88 : index
    %1032 = memref.load %arg5[%c88_174] : memref<144xf32, #tpu.memory_space<smem>>
    %1033 = vector.broadcast %1032 : f32 to vector<1x768xf32>
    %1034 = arith.mulf %1033, %1031 : vector<1x768xf32>
    %1035 = arith.addf %1018, %1034 : vector<1x768xf32>
    %c89_175 = arith.constant 89 : index
    %1036 = memref.load %arg5[%c89_175] : memref<144xf32, #tpu.memory_space<smem>>
    %1037 = vector.broadcast %1036 : f32 to vector<1x768xf32>
    %1038 = arith.mulf %1037, %1031 : vector<1x768xf32>
    %1039 = arith.addf %1022, %1038 : vector<1x768xf32>
    %c90_176 = arith.constant 90 : index
    %1040 = memref.load %arg5[%c90_176] : memref<144xf32, #tpu.memory_space<smem>>
    %1041 = vector.broadcast %1040 : f32 to vector<1x768xf32>
    %1042 = arith.mulf %1041, %1031 : vector<1x768xf32>
    %1043 = arith.addf %1026, %1042 : vector<1x768xf32>
    %c91_177 = arith.constant 91 : index
    %1044 = memref.load %arg5[%c91_177] : memref<144xf32, #tpu.memory_space<smem>>
    %1045 = vector.broadcast %1044 : f32 to vector<1x768xf32>
    %1046 = arith.mulf %1045, %1031 : vector<1x768xf32>
    %1047 = arith.addf %1030, %1046 : vector<1x768xf32>
    %c751_i32_178 = arith.constant 751 : i32
    %1048 = tpu.dynamic_rotate %946 by %c751_i32_178 dim 1 : vector<1x768xf32>, i32 -> vector<1x768xf32>
    %c104_179 = arith.constant 104 : index
    %1049 = memref.load %arg5[%c104_179] : memref<144xf32, #tpu.memory_space<smem>>
    %1050 = vector.broadcast %1049 : f32 to vector<1x768xf32>
    %1051 = arith.mulf %1050, %1048 : vector<1x768xf32>
    %1052 = arith.addf %1035, %1051 : vector<1x768xf32>
    %c105_180 = arith.constant 105 : index
    %1053 = memref.load %arg5[%c105_180] : memref<144xf32, #tpu.memory_space<smem>>
    %1054 = vector.broadcast %1053 : f32 to vector<1x768xf32>
    %1055 = arith.mulf %1054, %1048 : vector<1x768xf32>
    %1056 = arith.addf %1039, %1055 : vector<1x768xf32>
    %c106_181 = arith.constant 106 : index
    %1057 = memref.load %arg5[%c106_181] : memref<144xf32, #tpu.memory_space<smem>>
    %1058 = vector.broadcast %1057 : f32 to vector<1x768xf32>
    %1059 = arith.mulf %1058, %1048 : vector<1x768xf32>
    %1060 = arith.addf %1043, %1059 : vector<1x768xf32>
    %c107_182 = arith.constant 107 : index
    %1061 = memref.load %arg5[%c107_182] : memref<144xf32, #tpu.memory_space<smem>>
    %1062 = vector.broadcast %1061 : f32 to vector<1x768xf32>
    %1063 = arith.mulf %1062, %1048 : vector<1x768xf32>
    %1064 = arith.addf %1047, %1063 : vector<1x768xf32>
    %c750_i32_183 = arith.constant 750 : i32
    %1065 = tpu.dynamic_rotate %946 by %c750_i32_183 dim 1 : vector<1x768xf32>, i32 -> vector<1x768xf32>
    %c120_184 = arith.constant 120 : index
    %1066 = memref.load %arg5[%c120_184] : memref<144xf32, #tpu.memory_space<smem>>
    %1067 = vector.broadcast %1066 : f32 to vector<1x768xf32>
    %1068 = arith.mulf %1067, %1065 : vector<1x768xf32>
    %1069 = arith.addf %1052, %1068 : vector<1x768xf32>
    %c121_185 = arith.constant 121 : index
    %1070 = memref.load %arg5[%c121_185] : memref<144xf32, #tpu.memory_space<smem>>
    %1071 = vector.broadcast %1070 : f32 to vector<1x768xf32>
    %1072 = arith.mulf %1071, %1065 : vector<1x768xf32>
    %1073 = arith.addf %1056, %1072 : vector<1x768xf32>
    %c122_186 = arith.constant 122 : index
    %1074 = memref.load %arg5[%c122_186] : memref<144xf32, #tpu.memory_space<smem>>
    %1075 = vector.broadcast %1074 : f32 to vector<1x768xf32>
    %1076 = arith.mulf %1075, %1065 : vector<1x768xf32>
    %1077 = arith.addf %1060, %1076 : vector<1x768xf32>
    %c123_187 = arith.constant 123 : index
    %1078 = memref.load %arg5[%c123_187] : memref<144xf32, #tpu.memory_space<smem>>
    %1079 = vector.broadcast %1078 : f32 to vector<1x768xf32>
    %1080 = arith.mulf %1079, %1065 : vector<1x768xf32>
    %1081 = arith.addf %1064, %1080 : vector<1x768xf32>
    %c749_i32_188 = arith.constant 749 : i32
    %1082 = tpu.dynamic_rotate %946 by %c749_i32_188 dim 1 : vector<1x768xf32>, i32 -> vector<1x768xf32>
    %c136_189 = arith.constant 136 : index
    %1083 = memref.load %arg5[%c136_189] : memref<144xf32, #tpu.memory_space<smem>>
    %1084 = vector.broadcast %1083 : f32 to vector<1x768xf32>
    %1085 = arith.mulf %1084, %1082 : vector<1x768xf32>
    %1086 = arith.addf %1069, %1085 : vector<1x768xf32>
    %c137_190 = arith.constant 137 : index
    %1087 = memref.load %arg5[%c137_190] : memref<144xf32, #tpu.memory_space<smem>>
    %1088 = vector.broadcast %1087 : f32 to vector<1x768xf32>
    %1089 = arith.mulf %1088, %1082 : vector<1x768xf32>
    %1090 = arith.addf %1073, %1089 : vector<1x768xf32>
    %c138_191 = arith.constant 138 : index
    %1091 = memref.load %arg5[%c138_191] : memref<144xf32, #tpu.memory_space<smem>>
    %1092 = vector.broadcast %1091 : f32 to vector<1x768xf32>
    %1093 = arith.mulf %1092, %1082 : vector<1x768xf32>
    %1094 = arith.addf %1077, %1093 : vector<1x768xf32>
    %c139_192 = arith.constant 139 : index
    %1095 = memref.load %arg5[%c139_192] : memref<144xf32, #tpu.memory_space<smem>>
    %1096 = vector.broadcast %1095 : f32 to vector<1x768xf32>
    %1097 = arith.mulf %1096, %1082 : vector<1x768xf32>
    %1098 = arith.addf %1081, %1097 : vector<1x768xf32>
    %c3_193 = arith.constant 3 : index
    %c0_194 = arith.constant 0 : index
    %1099 = vector.load %arg10[%c3_193, %c0_194] : memref<4x768xf32, #tpu.memory_space<vmem>>, vector<1x768xf32>
    %c19_i32_195 = arith.constant 19 : i32
    %1100 = tpu.dynamic_rotate %1099 by %c19_i32_195 dim 1 : vector<1x768xf32>, i32 -> vector<1x768xf32>
    %c12_196 = arith.constant 12 : index
    %1101 = memref.load %arg5[%c12_196] : memref<144xf32, #tpu.memory_space<smem>>
    %1102 = vector.broadcast %1101 : f32 to vector<1x768xf32>
    %1103 = arith.mulf %1102, %1100 : vector<1x768xf32>
    %1104 = arith.addf %1086, %1103 : vector<1x768xf32>
    %c13_197 = arith.constant 13 : index
    %1105 = memref.load %arg5[%c13_197] : memref<144xf32, #tpu.memory_space<smem>>
    %1106 = vector.broadcast %1105 : f32 to vector<1x768xf32>
    %1107 = arith.mulf %1106, %1100 : vector<1x768xf32>
    %1108 = arith.addf %1090, %1107 : vector<1x768xf32>
    %c14_198 = arith.constant 14 : index
    %1109 = memref.load %arg5[%c14_198] : memref<144xf32, #tpu.memory_space<smem>>
    %1110 = vector.broadcast %1109 : f32 to vector<1x768xf32>
    %1111 = arith.mulf %1110, %1100 : vector<1x768xf32>
    %1112 = arith.addf %1094, %1111 : vector<1x768xf32>
    %c15_199 = arith.constant 15 : index
    %1113 = memref.load %arg5[%c15_199] : memref<144xf32, #tpu.memory_space<smem>>
    %1114 = vector.broadcast %1113 : f32 to vector<1x768xf32>
    %1115 = arith.mulf %1114, %1100 : vector<1x768xf32>
    %1116 = arith.addf %1098, %1115 : vector<1x768xf32>
    %c18_i32_200 = arith.constant 18 : i32
    %1117 = tpu.dynamic_rotate %1099 by %c18_i32_200 dim 1 : vector<1x768xf32>, i32 -> vector<1x768xf32>
    %c28_201 = arith.constant 28 : index
    %1118 = memref.load %arg5[%c28_201] : memref<144xf32, #tpu.memory_space<smem>>
    %1119 = vector.broadcast %1118 : f32 to vector<1x768xf32>
    %1120 = arith.mulf %1119, %1117 : vector<1x768xf32>
    %1121 = arith.addf %1104, %1120 : vector<1x768xf32>
    %c29_202 = arith.constant 29 : index
    %1122 = memref.load %arg5[%c29_202] : memref<144xf32, #tpu.memory_space<smem>>
    %1123 = vector.broadcast %1122 : f32 to vector<1x768xf32>
    %1124 = arith.mulf %1123, %1117 : vector<1x768xf32>
    %1125 = arith.addf %1108, %1124 : vector<1x768xf32>
    %c30_203 = arith.constant 30 : index
    %1126 = memref.load %arg5[%c30_203] : memref<144xf32, #tpu.memory_space<smem>>
    %1127 = vector.broadcast %1126 : f32 to vector<1x768xf32>
    %1128 = arith.mulf %1127, %1117 : vector<1x768xf32>
    %1129 = arith.addf %1112, %1128 : vector<1x768xf32>
    %c31_204 = arith.constant 31 : index
    %1130 = memref.load %arg5[%c31_204] : memref<144xf32, #tpu.memory_space<smem>>
    %1131 = vector.broadcast %1130 : f32 to vector<1x768xf32>
    %1132 = arith.mulf %1131, %1117 : vector<1x768xf32>
    %1133 = arith.addf %1116, %1132 : vector<1x768xf32>
    %c17_i32_205 = arith.constant 17 : i32
    %1134 = tpu.dynamic_rotate %1099 by %c17_i32_205 dim 1 : vector<1x768xf32>, i32 -> vector<1x768xf32>
    %c44_206 = arith.constant 44 : index
    %1135 = memref.load %arg5[%c44_206] : memref<144xf32, #tpu.memory_space<smem>>
    %1136 = vector.broadcast %1135 : f32 to vector<1x768xf32>
    %1137 = arith.mulf %1136, %1134 : vector<1x768xf32>
    %1138 = arith.addf %1121, %1137 : vector<1x768xf32>
    %c45_207 = arith.constant 45 : index
    %1139 = memref.load %arg5[%c45_207] : memref<144xf32, #tpu.memory_space<smem>>
    %1140 = vector.broadcast %1139 : f32 to vector<1x768xf32>
    %1141 = arith.mulf %1140, %1134 : vector<1x768xf32>
    %1142 = arith.addf %1125, %1141 : vector<1x768xf32>
    %c46_208 = arith.constant 46 : index
    %1143 = memref.load %arg5[%c46_208] : memref<144xf32, #tpu.memory_space<smem>>
    %1144 = vector.broadcast %1143 : f32 to vector<1x768xf32>
    %1145 = arith.mulf %1144, %1134 : vector<1x768xf32>
    %1146 = arith.addf %1129, %1145 : vector<1x768xf32>
    %c47_209 = arith.constant 47 : index
    %1147 = memref.load %arg5[%c47_209] : memref<144xf32, #tpu.memory_space<smem>>
    %1148 = vector.broadcast %1147 : f32 to vector<1x768xf32>
    %1149 = arith.mulf %1148, %1134 : vector<1x768xf32>
    %1150 = arith.addf %1133, %1149 : vector<1x768xf32>
    %c1_i32_210 = arith.constant 1 : i32
    %1151 = tpu.dynamic_rotate %1099 by %c1_i32_210 dim 1 : vector<1x768xf32>, i32 -> vector<1x768xf32>
    %c60_211 = arith.constant 60 : index
    %1152 = memref.load %arg5[%c60_211] : memref<144xf32, #tpu.memory_space<smem>>
    %1153 = vector.broadcast %1152 : f32 to vector<1x768xf32>
    %1154 = arith.mulf %1153, %1151 : vector<1x768xf32>
    %1155 = arith.addf %1138, %1154 : vector<1x768xf32>
    %c61_212 = arith.constant 61 : index
    %1156 = memref.load %arg5[%c61_212] : memref<144xf32, #tpu.memory_space<smem>>
    %1157 = vector.broadcast %1156 : f32 to vector<1x768xf32>
    %1158 = arith.mulf %1157, %1151 : vector<1x768xf32>
    %1159 = arith.addf %1142, %1158 : vector<1x768xf32>
    %c62_213 = arith.constant 62 : index
    %1160 = memref.load %arg5[%c62_213] : memref<144xf32, #tpu.memory_space<smem>>
    %1161 = vector.broadcast %1160 : f32 to vector<1x768xf32>
    %1162 = arith.mulf %1161, %1151 : vector<1x768xf32>
    %1163 = arith.addf %1146, %1162 : vector<1x768xf32>
    %c63_214 = arith.constant 63 : index
    %1164 = memref.load %arg5[%c63_214] : memref<144xf32, #tpu.memory_space<smem>>
    %1165 = vector.broadcast %1164 : f32 to vector<1x768xf32>
    %1166 = arith.mulf %1165, %1151 : vector<1x768xf32>
    %1167 = arith.addf %1150, %1166 : vector<1x768xf32>
    %c76_215 = arith.constant 76 : index
    %1168 = memref.load %arg5[%c76_215] : memref<144xf32, #tpu.memory_space<smem>>
    %1169 = vector.broadcast %1168 : f32 to vector<1x768xf32>
    %1170 = arith.mulf %1169, %1099 : vector<1x768xf32>
    %1171 = arith.addf %1155, %1170 : vector<1x768xf32>
    %c77_216 = arith.constant 77 : index
    %1172 = memref.load %arg5[%c77_216] : memref<144xf32, #tpu.memory_space<smem>>
    %1173 = vector.broadcast %1172 : f32 to vector<1x768xf32>
    %1174 = arith.mulf %1173, %1099 : vector<1x768xf32>
    %1175 = arith.addf %1159, %1174 : vector<1x768xf32>
    %c78_217 = arith.constant 78 : index
    %1176 = memref.load %arg5[%c78_217] : memref<144xf32, #tpu.memory_space<smem>>
    %1177 = vector.broadcast %1176 : f32 to vector<1x768xf32>
    %1178 = arith.mulf %1177, %1099 : vector<1x768xf32>
    %1179 = arith.addf %1163, %1178 : vector<1x768xf32>
    %c79_218 = arith.constant 79 : index
    %1180 = memref.load %arg5[%c79_218] : memref<144xf32, #tpu.memory_space<smem>>
    %1181 = vector.broadcast %1180 : f32 to vector<1x768xf32>
    %1182 = arith.mulf %1181, %1099 : vector<1x768xf32>
    %1183 = arith.addf %1167, %1182 : vector<1x768xf32>
    %c767_i32_219 = arith.constant 767 : i32
    %1184 = tpu.dynamic_rotate %1099 by %c767_i32_219 dim 1 : vector<1x768xf32>, i32 -> vector<1x768xf32>
    %c92_220 = arith.constant 92 : index
    %1185 = memref.load %arg5[%c92_220] : memref<144xf32, #tpu.memory_space<smem>>
    %1186 = vector.broadcast %1185 : f32 to vector<1x768xf32>
    %1187 = arith.mulf %1186, %1184 : vector<1x768xf32>
    %1188 = arith.addf %1171, %1187 : vector<1x768xf32>
    %c93_221 = arith.constant 93 : index
    %1189 = memref.load %arg5[%c93_221] : memref<144xf32, #tpu.memory_space<smem>>
    %1190 = vector.broadcast %1189 : f32 to vector<1x768xf32>
    %1191 = arith.mulf %1190, %1184 : vector<1x768xf32>
    %1192 = arith.addf %1175, %1191 : vector<1x768xf32>
    %c94_222 = arith.constant 94 : index
    %1193 = memref.load %arg5[%c94_222] : memref<144xf32, #tpu.memory_space<smem>>
    %1194 = vector.broadcast %1193 : f32 to vector<1x768xf32>
    %1195 = arith.mulf %1194, %1184 : vector<1x768xf32>
    %1196 = arith.addf %1179, %1195 : vector<1x768xf32>
    %c95_223 = arith.constant 95 : index
    %1197 = memref.load %arg5[%c95_223] : memref<144xf32, #tpu.memory_space<smem>>
    %1198 = vector.broadcast %1197 : f32 to vector<1x768xf32>
    %1199 = arith.mulf %1198, %1184 : vector<1x768xf32>
    %1200 = arith.addf %1183, %1199 : vector<1x768xf32>
    %c751_i32_224 = arith.constant 751 : i32
    %1201 = tpu.dynamic_rotate %1099 by %c751_i32_224 dim 1 : vector<1x768xf32>, i32 -> vector<1x768xf32>
    %c108_225 = arith.constant 108 : index
    %1202 = memref.load %arg5[%c108_225] : memref<144xf32, #tpu.memory_space<smem>>
    %1203 = vector.broadcast %1202 : f32 to vector<1x768xf32>
    %1204 = arith.mulf %1203, %1201 : vector<1x768xf32>
    %1205 = arith.addf %1188, %1204 : vector<1x768xf32>
    %c109_226 = arith.constant 109 : index
    %1206 = memref.load %arg5[%c109_226] : memref<144xf32, #tpu.memory_space<smem>>
    %1207 = vector.broadcast %1206 : f32 to vector<1x768xf32>
    %1208 = arith.mulf %1207, %1201 : vector<1x768xf32>
    %1209 = arith.addf %1192, %1208 : vector<1x768xf32>
    %c110_227 = arith.constant 110 : index
    %1210 = memref.load %arg5[%c110_227] : memref<144xf32, #tpu.memory_space<smem>>
    %1211 = vector.broadcast %1210 : f32 to vector<1x768xf32>
    %1212 = arith.mulf %1211, %1201 : vector<1x768xf32>
    %1213 = arith.addf %1196, %1212 : vector<1x768xf32>
    %c111_228 = arith.constant 111 : index
    %1214 = memref.load %arg5[%c111_228] : memref<144xf32, #tpu.memory_space<smem>>
    %1215 = vector.broadcast %1214 : f32 to vector<1x768xf32>
    %1216 = arith.mulf %1215, %1201 : vector<1x768xf32>
    %1217 = arith.addf %1200, %1216 : vector<1x768xf32>
    %c750_i32_229 = arith.constant 750 : i32
    %1218 = tpu.dynamic_rotate %1099 by %c750_i32_229 dim 1 : vector<1x768xf32>, i32 -> vector<1x768xf32>
    %c124_230 = arith.constant 124 : index
    %1219 = memref.load %arg5[%c124_230] : memref<144xf32, #tpu.memory_space<smem>>
    %1220 = vector.broadcast %1219 : f32 to vector<1x768xf32>
    %1221 = arith.mulf %1220, %1218 : vector<1x768xf32>
    %1222 = arith.addf %1205, %1221 : vector<1x768xf32>
    %c125_231 = arith.constant 125 : index
    %1223 = memref.load %arg5[%c125_231] : memref<144xf32, #tpu.memory_space<smem>>
    %1224 = vector.broadcast %1223 : f32 to vector<1x768xf32>
    %1225 = arith.mulf %1224, %1218 : vector<1x768xf32>
    %1226 = arith.addf %1209, %1225 : vector<1x768xf32>
    %c126_232 = arith.constant 126 : index
    %1227 = memref.load %arg5[%c126_232] : memref<144xf32, #tpu.memory_space<smem>>
    %1228 = vector.broadcast %1227 : f32 to vector<1x768xf32>
    %1229 = arith.mulf %1228, %1218 : vector<1x768xf32>
    %1230 = arith.addf %1213, %1229 : vector<1x768xf32>
    %c127_233 = arith.constant 127 : index
    %1231 = memref.load %arg5[%c127_233] : memref<144xf32, #tpu.memory_space<smem>>
    %1232 = vector.broadcast %1231 : f32 to vector<1x768xf32>
    %1233 = arith.mulf %1232, %1218 : vector<1x768xf32>
    %1234 = arith.addf %1217, %1233 : vector<1x768xf32>
    %c749_i32_234 = arith.constant 749 : i32
    %1235 = tpu.dynamic_rotate %1099 by %c749_i32_234 dim 1 : vector<1x768xf32>, i32 -> vector<1x768xf32>
    %c140_235 = arith.constant 140 : index
    %1236 = memref.load %arg5[%c140_235] : memref<144xf32, #tpu.memory_space<smem>>
    %1237 = vector.broadcast %1236 : f32 to vector<1x768xf32>
    %1238 = arith.mulf %1237, %1235 : vector<1x768xf32>
    %1239 = arith.addf %1222, %1238 : vector<1x768xf32>
    %c141_236 = arith.constant 141 : index
    %1240 = memref.load %arg5[%c141_236] : memref<144xf32, #tpu.memory_space<smem>>
    %1241 = vector.broadcast %1240 : f32 to vector<1x768xf32>
    %1242 = arith.mulf %1241, %1235 : vector<1x768xf32>
    %1243 = arith.addf %1226, %1242 : vector<1x768xf32>
    %c142_237 = arith.constant 142 : index
    %1244 = memref.load %arg5[%c142_237] : memref<144xf32, #tpu.memory_space<smem>>
    %1245 = vector.broadcast %1244 : f32 to vector<1x768xf32>
    %1246 = arith.mulf %1245, %1235 : vector<1x768xf32>
    %1247 = arith.addf %1230, %1246 : vector<1x768xf32>
    %c143_238 = arith.constant 143 : index
    %1248 = memref.load %arg5[%c143_238] : memref<144xf32, #tpu.memory_space<smem>>
    %1249 = vector.broadcast %1248 : f32 to vector<1x768xf32>
    %1250 = arith.mulf %1249, %1235 : vector<1x768xf32>
    %1251 = arith.addf %1234, %1250 : vector<1x768xf32>
    %c0_239 = arith.constant 0 : index
    %c0_240 = arith.constant 0 : index
    %1252 = vector.load %arg9[%c0_239, %c0_240] : memref<4x768xf32, #tpu.memory_space<vmem>>, vector<1x768xf32>
    tpu.vector_store %arg9[%c0_239, %c0_240], %1239 {strides = array<i32>} : memref<4x768xf32, #tpu.memory_space<vmem>>, vector<1x768xf32>,
    %c1_241 = arith.constant 1 : index
    %c0_242 = arith.constant 0 : index
    %1253 = vector.load %arg9[%c1_241, %c0_242] : memref<4x768xf32, #tpu.memory_space<vmem>>, vector<1x768xf32>
    tpu.vector_store %arg9[%c1_241, %c0_242], %1243 {strides = array<i32>} : memref<4x768xf32, #tpu.memory_space<vmem>>, vector<1x768xf32>,
    %c2_243 = arith.constant 2 : index
    %c0_244 = arith.constant 0 : index
    %1254 = vector.load %arg9[%c2_243, %c0_244] : memref<4x768xf32, #tpu.memory_space<vmem>>, vector<1x768xf32>
    tpu.vector_store %arg9[%c2_243, %c0_244], %1247 {strides = array<i32>} : memref<4x768xf32, #tpu.memory_space<vmem>>, vector<1x768xf32>,
    %c3_245 = arith.constant 3 : index
    %c0_246 = arith.constant 0 : index
    %1255 = vector.load %arg9[%c3_245, %c0_246] : memref<4x768xf32, #tpu.memory_space<vmem>>, vector<1x768xf32>
    tpu.vector_store %arg9[%c3_245, %c0_246], %1251 {strides = array<i32>} : memref<4x768xf32, #tpu.memory_space<vmem>>, vector<1x768xf32>,
    %c0_247 = arith.constant 0 : index
    %c0_248 = arith.constant 0 : index
    %1256 = vector.load %arg9[%c0_247, %c0_248] : memref<4x768xf32, #tpu.memory_space<vmem>>, vector<4x768xf32>
    %1257 = vector.broadcast %0 : vector<1x768xf32> to vector<4x768xf32>
    %1258 = arith.mulf %1256, %1257 : vector<4x768xf32>
    %cst_249 = arith.constant dense<0.000000e+00> : vector<4xf32>
    %1259 = vector.multi_reduction <add>, %1258, %cst_249 [1] : vector<4x768xf32> to vector<4xf32>
    %1260 = vector.shape_cast %1259 : vector<4xf32> to vector<4x1xf32>
    %1261 = arith.mulf %1258, %1258 : vector<4x768xf32>
    %cst_250 = arith.constant dense<0.000000e+00> : vector<4xf32>
    %1262 = vector.multi_reduction <add>, %1261, %cst_250 [1] : vector<4x768xf32> to vector<4xf32>
    %1263 = vector.shape_cast %1262 : vector<4xf32> to vector<4x1xf32>
    %cst_251 = arith.constant 0.001953125 : f32
    %1264 = vector.broadcast %cst_251 : f32 to vector<4x1xf32>
    %1265 = arith.mulf %1260, %1264 : vector<4x1xf32>
    %cst_252 = arith.constant 0.001953125 : f32
    %1266 = vector.broadcast %cst_252 : f32 to vector<4x1xf32>
    %1267 = arith.mulf %1263, %1266 : vector<4x1xf32>
    %1268 = arith.mulf %1265, %1265 : vector<4x1xf32>
    %1269 = arith.subf %1267, %1268 : vector<4x1xf32>
    %c0_253 = arith.constant 0 : index
    %c0_254 = arith.constant 0 : index
    %1270 = vector.load %arg6[%c0_253, %c0_254] : memref<4x1xf32, #tpu.memory_space<vmem>>, vector<4x1xf32>
    %cst_255 = arith.constant 9.99999974E-6 : f32
    %1271 = vector.broadcast %cst_255 : f32 to vector<4x1xf32>
    %1272 = arith.addf %1269, %1271 : vector<4x1xf32>
    %1273 = math.rsqrt %1272 : vector<4x1xf32>
    %1274 = arith.mulf %1270, %1273 : vector<4x1xf32>
    %c0_256 = arith.constant 0 : index
    %c0_257 = arith.constant 0 : index
    %1275 = vector.load %arg7[%c0_256, %c0_257] : memref<4x1xf32, #tpu.memory_space<vmem>>, vector<4x1xf32>
    %1276 = arith.mulf %1265, %1274 : vector<4x1xf32>
    %1277 = arith.subf %1275, %1276 : vector<4x1xf32>
    %c0_258 = arith.constant 0 : index
    %c0_259 = arith.constant 0 : index
    %1278 = vector.load %arg0[%c0_258, %c0_259] : memref<4x768xf32, #tpu.memory_space<vmem>>, vector<4x768xf32>
    %1279 = vector.broadcast %1274 : vector<4x1xf32> to vector<4x768xf32>
    %1280 = arith.mulf %1256, %1279 : vector<4x768xf32>
    %1281 = vector.broadcast %1277 : vector<4x1xf32> to vector<4x768xf32>
    %1282 = arith.addf %1280, %1281 : vector<4x768xf32>
    %1283 = arith.addf %1282, %1278 : vector<4x768xf32>
    %cst_260 = arith.constant 0.000000e+00 : f32
    %1284 = vector.broadcast %cst_260 : f32 to vector<4x768xf32>
    %1285 = arith.maximumf %1283, %1284 : vector<4x768xf32>
    %c0_261 = arith.constant 0 : index
    %c0_262 = arith.constant 0 : index
    %1286 = vector.load %arg8[%c0_261, %c0_262] : memref<4x768xf32, #tpu.memory_space<vmem>>, vector<4x768xf32>
    tpu.vector_store %arg8[%c0_261, %c0_262], %1285 {strides = array<i32>} : memref<4x768xf32, #tpu.memory_space<vmem>>, vector<4x768xf32>,
    return
  }
}

</mosaic_0001>

<bundles_post_ra>
// kernel: tpu_custom_call.1
= control target key start
LH: loop header
LB: loop body
LE: loop exit
PB: predicated region body
PF: predicated region fallthrough
CT: control target
= control target key end

     0   :  { %s17384_s0 = inlined_call_operand.hbm [shape: f32[4,768], index: 0, kind: input, shape index: {}]   ;;  %s17385_s1 = inlined_call_operand.vmem [shape: f32[1,768], index: 1, kind: input, shape index: {}]   ;;  %s17386_s2 = inlined_call_operand.vmem [shape: f32[144], index: 2, kind: input, shape index: {}]   ;;  %s17387_s3 = inlined_call_operand.vmem [shape: f32[4,1], index: 3, kind: input, shape index: {}]   ;;  %s17388_s4 = inlined_call_operand.vmem [shape: f32[4,1], index: 4, kind: input, shape index: {}]   ;;  %s17389_s5 = inlined_call_operand.vmem [shape: f32[144], index: 5, kind: input, shape index: {}]   ;;  %s17390_s6 = inlined_call_operand.vmem [shape: f32[4,1], index: 6, kind: input, shape index: {}]   ;;  %s17391_s7 = inlined_call_operand.vmem [shape: f32[4,1], index: 7, kind: input, shape index: {}]   ;;  %s17392_s8 = inlined_call_operand.hbm [shape: f32[4,768], index: 8, kind: output, shape index: {}]  }
   0x1   :  { %17677 = sst [smem:[#allocation94_spill]] %s17390_s6 }
   0x2   :  { %17678 = sst [smem:[#allocation95_spill]] %s17391_s7 }
   0x3   :  { %17679 = sst [smem:[#allocation96_spill]] %s17392_s8 }
   0x4   :  { %13 = vsyncpa [#allocation5], 0 }
   0x5   :  { %14 = vsyncpa [#allocation7], 0 }
   0x6   :  { %15 = vsyncpa [#allocation10], 0 }
   0x7   :  { %16 = vsyncpa [#allocation6], 0  ;;  %s35_s29 = sshll.u32 %s17386_s2, 4  ;;  %s7376_s30 = smov [#allocation4]   ;;  %s36_s29 = int_to_ptr.vmem [resolvable:$true] %s35_s29 }
   0x8   :  { %s23_s9 = sshll.u32 %s7376_s30, 4  ;;  %s7300_s12 = scalar_lea.hbm %s17384_s0, 384  ;;  %s24_s9 = int_to_ptr.vmem [resolvable:$true] %s23_s9 }
   0x9   :  { %p7301_p0 = scmp.ne.s32.totalorder %s17384_s0, %s7300_s12  ;;  %p7304_p1 = scmp.lt.u32.totalorder %s7300_s12, %s17384_s0 }
   0xb   :  { %p7306_p2 = pnand %p7304_p1, %p7301_p0 }
   0xd   :  { %7309 = shalt.err (!%p7306_p2)
}
   0xe   :  { %s7310_s17 = scalar_lea.vmem %s24_s9, 384  ;;  %p7315_p4 = scmp.lt.s32.totalorder %s24_s9, %s24_s9 }
   0xf   :  { %p7311_p3 = scmp.ne.s32.totalorder %s24_s9, %s7310_s17  ;;  %p7316_p5 = scmp.lt.s32.totalorder %s7310_s17, %s7310_s17 }
  0x11   :  { %p7317_p6 = por %p7316_p5, %p7315_p4 }
  0x13   :  { %p7318_p7 = pnand %p7317_p6, %p7311_p3 }
  0x15   :  { %7321 = shalt.err (!%p7318_p7)
}
  0x16   :  { %26 = dma.hbm_to_vmem [thread:$0]  %s17384_s0, 384, %s24_s9, [#allocation5]  }
  0x17   :  { %s7322_s19 = scalar_lea.vmem %s36_s29, 32  ;;  %p7327_p9 = scmp.lt.s32.totalorder %s36_s29, %s36_s29 }
  0x18   :  { %p7323_p8 = scmp.ne.s32.totalorder %s36_s29, %s7322_s19  ;;  %p7328_p10 = scmp.lt.s32.totalorder %s7322_s19, %s7322_s19 }
  0x1a   :  { %p7329_p11 = por %p7328_p10, %p7327_p9 }
  0x1c   :  { %p7330_p12 = pnand %p7329_p11, %p7323_p8 }
  0x1e   :  { %7333 = shalt.err (!%p7330_p12)
}
  0x1f   :  { %s7377_s20 = smov [#allocation8]   ;;  %s49_s23 = sshll.u32 %s17389_s5, 4  ;;  %s50_s23 = int_to_ptr.vmem [resolvable:$true] %s49_s23 }
  0x20   :  { %38 = dma.vmem_to_smem %s36_s29, 32, %s7377_s20, [#allocation7]  }
  0x21   :  { %s7334_s24 = scalar_lea.vmem %s50_s23, 32  ;;  %p7339_p0 = scmp.lt.s32.totalorder %s50_s23, %s50_s23 }
  0x22   :  { %p7335_p13 = scmp.ne.s32.totalorder %s50_s23, %s7334_s24  ;;  %p7340_p1 = scmp.lt.s32.totalorder %s7334_s24, %s7334_s24 }
  0x24   :  { %p7341_p2 = por %p7340_p1, %p7339_p0 }
  0x26   :  { %p7342_p3 = pnand %p7341_p2, %p7335_p13 }
  0x28   :  { %7345 = shalt.err (!%p7342_p3)
}
  0x29   :  { %s7378_s0 = smov [#allocation9]  }
  0x2a   :  { %52 = dma.vmem_to_smem %s50_s23, 32, %s7378_s0, [#allocation10]  }
  0x2b   :  { %7368 = dma.done.wait [#allocation5], 384  }
  0x2c   :  { %7369 = vsyncadd [#allocation5], 4294966912 }
  0x2d   :  { %7370 = dma.done.wait [#allocation7], 32  }
  0x2e   :  { %7371 = vsyncadd [#allocation7], 4294967264 }
  0x2f   :  { %7372 = dma.done.wait [#allocation10], 32  }
  0x30   :  { %7373 = vsyncadd [#allocation10], 4294967264 }
  0x31   :  { %66 = sfence }
  0x32   :  { %v17403_v0 = vlaneseq  ;;  %v7457_v2 = vld [vmem:[#allocation4] ss:$4 sm:$0x3f]  ;;  %s17490_s5 = smov 19   ;;  %s17494_s25 = smov 18   ;;  %vm3444_vm9 = vcmask 1043456  }
  0x33   :  { %s17492_s26 = smov 17   ;;  %s17401_s27 = smov 1   ;;  %v839_v15 = vld [vmem:[#allocation4 + $0x1] ss:$4 sm:$0x3f] }
  0x34   :  { %v7455_v1 = vshrl.u32 %v17403_v0, 7  ;;  %s17399_s28 = smov 127   ;;  %s17397_s29 = smov 111   ;;  %v7631_v29 = vand.u32 127, %v17403_v0 }
  0x35   :  { %s17395_s30 = smov 110   ;;  %s17393_s9 = smov 109  }
  0x36   :  { %17680 = vst [vmem:[#allocation16_spill] sm:$0xff] %v7455_v1  ;;  %v7460_v3 = vsub.s32 2, %v7455_v1  ;;  %v7463_v4 = vsub.s32 0, %v7455_v1  ;;  %v7466_v5 = vsub.s32 3, %v7455_v1  ;;  %v7469_v6 = vsub.s32 1, %v7455_v1  ;;  %s7535_s10 = sld [smem:[#allocation8]] }
  0x37   :  { %v7482_v11 = vsub.s32 5, %v7455_v1  ;;  %v7485_v12 = vsub.s32 4, %v7455_v1  ;;  %s7537_s11 = sld [smem:[#allocation8 + $0x1]]  ;;  %s7547_s12 = sld [smem:[#allocation8 + $0x2]]  ;;  %vm114_vm0 = vcmp.lt.s32.totalorder %v7631_v29, 19  ;;  %vm165_vm1 = vcmp.lt.s32.totalorder %v7631_v29, 18 }
  0x38   :  { %17681 = vst [vmem:[#allocation17_spill] sm:$0xff] %v7460_v3  ;;  %17682 = vst [vmem:[#allocation18_spill] sm:$0xff] %v7463_v4  ;;  %v81_v7 = vrot.slane %v7457_v2, %v7460_v3  ;;  %v73_v8 = vrot.slane %v7457_v2, %v7463_v4  ;;  %v85_v9 = vrot.slane %v7457_v2, %v7466_v5  ;;  %s7549_s13 = sld [smem:[#allocation8 + $0x3]]  ;;  %s7551_s14 = sld [smem:[#allocation8 + $0x10]]  ;;  %vm240_vm2 = vcmp.lt.s32.totalorder %v7631_v29, 17 }
  0x39   :  { %17683 = vst [vmem:[#allocation19_spill] sm:$0xff] %v7466_v5  ;;  %17684 = vst [vmem:[#allocation20_spill] sm:$0xff] %v7469_v6  ;;  %v77_v10 = vrot.slane %v7457_v2, %v7469_v6  ;;  %v93_v13 = vrot.slane %v7457_v2, %v7482_v11  ;;  %v89_v14 = vrot.slane %v7457_v2, %v7485_v12  ;;  %s7553_s15 = sld [smem:[#allocation8 + $0x40]]  ;;  %s7555_s16 = sld [smem:[#allocation8 + $0x11]]  ;;  %vm315_vm3 = vcmp.lt.s32.totalorder %v7631_v29, 1 }
  0x3a   :  { %104 = vrot.lane.b32.xlu1 %v81_v7, %s17490_s5  ;;  %100 = vrot.lane.b32.xlu0 %v73_v8, %s17490_s5  ;;  %17685 = vst [vmem:[#allocation21_spill] sm:$0xff] %v7482_v11  ;;  %17686 = vst [vmem:[#allocation22_spill] sm:$0xff] %v7485_v12  ;;  %v7542_v16 = vrot.slane %v839_v15, %v7469_v6  ;;  %v7545_v17 = vrot.slane %v839_v15, %v7463_v4  ;;  %s7557_s17 = sld [smem:[#allocation8 + $0x41]]  ;;  %s7559_s2 = sld [smem:[#allocation8 + $0x12]]  ;;  %vm550_vm4 = vcmp.lt.s32.totalorder %v7631_v29, 127 }
  0x3b   :  { %s7561_s18 = sld [smem:[#allocation8 + $0x13]]  ;;  %v7568_v18 = vrot.slane %v839_v15, %v7466_v5  ;;  %v7571_v19 = vrot.slane %v839_v15, %v7460_v3  ;;  %s7573_s19 = sld [smem:[#allocation8 + $0x42]]  ;;  %v7594_v20 = vrot.slane %v839_v15, %v7482_v11  ;;  %v7597_v21 = vrot.slane %v839_v15, %v7485_v12 }
  0x3c   :  { %s7575_s20 = sld [smem:[#allocation8 + $0x43]]  ;;  %s7577_s21 = sld [smem:[#allocation8 + $0x20]]  ;;  %v7605_v23 = vstv %s7535_s10  ;;  %vm625_vm5 = vcmp.lt.s32.totalorder %v7631_v29, 111  ;;  %vm700_vm6 = vcmp.lt.s32.totalorder %v7631_v29, 110  ;;  %vm775_vm7 = vcmp.lt.s32.totalorder %v7631_v29, 109 }
  0x3d   :  { %s7579_s22 = sld [smem:[#allocation8 + $0x21]]  ;;  %s7581_s23 = sld [smem:[#allocation8 + $0x22]]  ;;  %v7613_v25 = vstv %s7537_s11  ;;  %v7616_v26 = vstv %s7547_s12 }
  0x3e   :  { %106 = vrot.lane.b32.xlu1 %v85_v9, %s17490_s5  ;;  %102 = vrot.lane.b32.xlu0 %v77_v10, %s17490_s5  ;;  %s7583_s24 = sld [smem:[#allocation8 + $0x23]]  ;;  %s7585_s0 = sld [smem:[#allocation8 + $0x30]]  ;;  %v7619_v27 = vstv %s7549_s13  ;;  %v7622_v28 = vstv %s7551_s14 }
  0x3f   :  { %v379_v22 = vstv %s7553_s15  ;;  %s7624_s10 = sld [smem:[#allocation8 + $0x52]]  ;;  %s7638_s11 = sld [smem:[#allocation8 + $0x53]]  ;;  %v7641_v33 = vstv %s7555_s16 }
  0x40   :  { %v419_v24 = vstv %s7557_s17  ;;  %v7634_v30 = vmul.f32 %v379_v22, %v7457_v2  ;;  %v7644_v34 = vstv %s7559_s2  ;;  %s7664_s12 = sld [smem:[#allocation8 + $0x60]]  ;;  %s7666_s13 = sld [smem:[#allocation8 + $0x61]] }
  0x41   :  { %v459_v31 = vstv %s7573_s19  ;;  %v7647_v35 = vstv %s7561_s18  ;;  %v7650_v36 = vmul.f32 %v419_v24, %v7457_v2  ;;  %s7680_s14 = sld [smem:[#allocation8 + $0x62]]  ;;  %s7682_s15 = sld [smem:[#allocation8 + $0x63]] }
  0x42   :  { %110 = vrot.lane.b32.xlu1 %v93_v13, %s17490_s5  ;;  %108 = vrot.lane.b32.xlu0 %v89_v14, %s17490_s5  ;;  %v499_v32 = vstv %s7575_s20  ;;  %v7653_v37 = vstv %s7577_s21  ;;  %v7675_v43 = vmul.f32 %v459_v31, %v7457_v2  ;;  %s7699_s16 = sld [smem:[#allocation8 + $0x71]]  ;;  %s7723_s17 = sld [smem:[#allocation8 + $0x80]]  ;;  %v1624_v31 = vld [vmem:[#allocation4 + $0x2] ss:$4 sm:$0x3f] }
  0x43   :  { %17687 = vst [vmem:[#allocation23_spill] sm:$0xff] %v7650_v36  ;;  %v7656_v38 = vstv %s7579_s22  ;;  %v7659_v39 = vstv %s7581_s23  ;;  %v7678_v44 = vmul.f32 %v499_v32, %v7457_v2  ;;  %s7725_s2 = sld [smem:[#allocation8 + $0x81]]  ;;  %s7736_s18 = sld [smem:[#allocation8 + $0x82]]  ;;  %v7815_v2 = vrot.slane %v1624_v31, %v7469_v6 }
  0x44   :  { %v7662_v40 = vstv %s7583_s24  ;;  %v7669_v41 = vstv %s7585_s0  ;;  %17688 = vst [vmem:[#allocation24_spill] sm:$0xff] %v7675_v43  ;;  %s7755_s19 = sld [smem:[#allocation8 + $0x5]]  ;;  %s7765_s20 = sld [smem:[#allocation8 + $0x6]]  ;;  %v7818_v22 = vrot.slane %v1624_v31, %v7463_v4  ;;  %v7821_v59 = vrot.slane %v1624_v31, %v7466_v5 }
  0x45   :  { %17689 = vst [vmem:[#allocation25_spill] sm:$0xff] %v7678_v44  ;;  %v7728_v56 = vstv %s7624_s10  ;;  %v7745_v60 = vstv %s7638_s11  ;;  %s7767_s21 = sld [smem:[#allocation8 + $0x7]]  ;;  %s7777_s22 = sld [smem:[#allocation8 + $0x14]]  ;;  %17702 = vst [vmem:[#allocation38_spill] sm:$0xff] %v7815_v2  ;;  %v7824_v61 = vrot.slane %v1624_v31, %v7460_v3  ;;  %v7827_v58 = vrot.slane %v1624_v31, %v7482_v11 }
  0x46   :  { %155 = vrot.lane.b32.xlu1 %v77_v10, %s17494_s25  ;;  %153 = vrot.lane.b32.xlu0 %v73_v8, %s17494_s25  ;;  %17692 = vst [vmem:[#allocation28_spill] sm:$0xff] %v7728_v56  ;;  %17693 = vst [vmem:[#allocation29_spill] sm:$0xff] %v7745_v60  ;;  %v7782_v0 = vstv %s7664_s12  ;;  %s7829_s23 = sld [smem:[#allocation8 + $0x15]]  ;;  %v7857_v1 = vrot.slane %v1624_v31, %v7485_v12  ;;  %s7880_s24 = sld [smem:[#allocation8 + $0x16]] }
  0x47   :  { %17694 = vst [vmem:[#allocation30_spill] sm:$0xff] %v7782_v0  ;;  %v7788_v15 = vstv %s7680_s14  ;;  %v7800_v32 = vstv %s7682_s15  ;;  %17703 = vst [vmem:[#allocation39_spill] sm:$0xff] %v7818_v22  ;;  %s7882_s0 = sld [smem:[#allocation8 + $0x17]]  ;;  %s7907_s10 = sld [smem:[#allocation8 + $0x24]] }
  0x48   :  { %17696 = vst [vmem:[#allocation32_spill] sm:$0xff] %v7788_v15  ;;  %17697 = vst [vmem:[#allocation33_spill] sm:$0xff] %v7800_v32  ;;  %v7834_v51 = vstv %s7723_s17  ;;  %s7921_s11 = sld [smem:[#allocation8 + $0x25]]  ;;  %s7975_s12 = sld [smem:[#allocation8 + $0x26]] }
  0x49   :  { %17704 = vst [vmem:[#allocation40_spill] sm:$0xff] %v7821_v59  ;;  %17705 = vst [vmem:[#allocation41_spill] sm:$0xff] %v7824_v61  ;;  %v7837_v50 = vstv %s7725_s2  ;;  %v7840_v47 = vstv %s7736_s18  ;;  %s8009_s14 = sld [smem:[#allocation8 + $0x27]]  ;;  %s8045_s15 = sld [smem:[#allocation8 + $0x34]] }
  0x4a   :  { %159 = vrot.lane.b32.xlu1 %v85_v9, %s17494_s25  ;;  %157 = vrot.lane.b32.xlu0 %v81_v7, %s17494_s25  ;;  %17706 = vst [vmem:[#allocation42_spill] sm:$0xff] %v7827_v58  ;;  %17707 = vst [vmem:[#allocation43_spill] sm:$0xff] %v7834_v51  ;;  %s17755_s17 = smov 109   ;;  %s9241_s2 = sld [smem:[#allocation8 + $0x36]] }
  0x4b   :  { %17708 = vst [vmem:[#allocation44_spill] sm:$0xff] %v7837_v50  ;;  %17709 = vst [vmem:[#allocation45_spill] sm:$0xff] %v7840_v47  ;;  %v7860_v47 = vstv %s7755_s19  ;;  %v7863_v50 = vstv %s7765_s20  ;;  %s9251_s18 = sld [smem:[#allocation8 + $0x37]]  ;;  %s9411_s19 = sld [smem:[#allocation8 + $0x46]] }
  0x4c   :  { %17712 = vst [vmem:[#allocation48_spill] sm:$0xff] %v7857_v1  ;;  %17713 = vst [vmem:[#allocation49_spill] sm:$0xff] %v7860_v47  ;;  %v7961_v56 = vstv %s7880_s24  ;;  %s9438_s20 = sld [smem:[#allocation8 + $0x47]]  ;;  %s12911_s7 = sld [smem:[#allocation9 + $0x4]] }
  0x4d   :  { %17714 = vst [vmem:[#allocation50_spill] sm:$0xff] %v7863_v50  ;;  %17718 = vst [vmem:[#allocation54_spill] sm:$0xff] %v7961_v56  ;;  %s9458_s24 = sld [smem:[#allocation8 + $0x57]]  ;;  %s12913_s6 = sld [smem:[#allocation9 + $0x5]] }
  0x4e   :  { %163 = vrot.lane.b32.xlu1 %v93_v13, %s17494_s25  ;;  %161 = vrot.lane.b32.xlu0 %v89_v14, %s17494_s25  ;;  %v7997_v4 = vstv %s7921_s11  ;;  %s9659_s11 = sld [smem:[#allocation8 + $0x66]]  ;;  %s12898_s8 = sld [smem:[#allocation9 + $0x17]] }
  0x4f   :  { %17722 = vst [vmem:[#allocation57_spill] sm:$0xff] %v7997_v4 }
  0x52   :  { %230 = vrot.lane.b32.xlu1 %v77_v10, %s17492_s26  ;;  %228 = vrot.lane.b32.xlu0 %v73_v8, %s17492_s26 }
  0x56   :  { %234 = vrot.lane.b32.xlu1 %v85_v9, %s17492_s26  ;;  %232 = vrot.lane.b32.xlu0 %v81_v7, %s17492_s26 }
  0x5a   :  { %238 = vrot.lane.b32.xlu1 %v93_v13, %s17492_s26  ;;  %236 = vrot.lane.b32.xlu0 %v89_v14, %s17492_s26 }
  0x5e   :  { %305 = vrot.lane.b32.xlu1 %v77_v10, %s17401_s27  ;;  %303 = vrot.lane.b32.xlu0 %v73_v8, %s17401_s27 }
  0x62   :  { %309 = vrot.lane.b32.xlu1 %v85_v9, %s17401_s27  ;;  %307 = vrot.lane.b32.xlu0 %v81_v7, %s17401_s27 }
  0x66   :  { %313 = vrot.lane.b32.xlu1 %v93_v13, %s17401_s27  ;;  %311 = vrot.lane.b32.xlu0 %v89_v14, %s17401_s27  ;;  %s7610_s27 = sld [smem:[#allocation8 + $0x51]] }
  0x6a   :  { %540 = vrot.lane.b32.xlu1 %v77_v10, %s17399_s28  ;;  %538 = vrot.lane.b32.xlu0 %v73_v8, %s17399_s28 }
  0x6c   :  { %v7721_v55 = vstv %s7610_s27  ;;  %s7753_s27 = sld [smem:[#allocation8 + $0x4]] }
  0x6d   :  { %17691 = vst [vmem:[#allocation27_spill] sm:$0xff] %v7721_v55  ;;  %v7964_v55 = vstv %s7882_s0  ;;  %s9644_s0 = sld [smem:[#allocation8 + $0x64]] }
  0x6e   :  { %544 = vrot.lane.b32.xlu1 %v85_v9, %s17399_s28  ;;  %542 = vrot.lane.b32.xlu0 %v81_v7, %s17399_s28  ;;  %17719 = vst [vmem:[#allocation55_spill] sm:$0xff] %v7964_v55 }
  0x72   :  { %548 = vrot.lane.b32.xlu1 %v93_v13, %s17399_s28  ;;  %546 = vrot.lane.b32.xlu0 %v89_v14, %s17399_s28  ;;  %s7608_s28 = sld [smem:[#allocation8 + $0x50]]  ;;  %v7852_v48 = vstv %s7753_s27  ;;  %s9409_s27 = sld [smem:[#allocation8 + $0x45]] }
  0x73   :  { %17711 = vst [vmem:[#allocation47_spill] sm:$0xff] %v7852_v48 }
  0x76   :  { %615 = vrot.lane.b32.xlu1 %v77_v10, %s17397_s29  ;;  %613 = vrot.lane.b32.xlu0 %v73_v8, %s17397_s29 }
  0x78   :  { %v7718_v54 = vstv %s7608_s28  ;;  %s7738_s28 = sld [smem:[#allocation8 + $0x83]] }
  0x79   :  { %17690 = vst [vmem:[#allocation26_spill] sm:$0xff] %v7718_v54 }
  0x7a   :  { %619 = vrot.lane.b32.xlu1 %v85_v9, %s17397_s29  ;;  %617 = vrot.lane.b32.xlu0 %v81_v7, %s17397_s29 }
  0x7e   :  { %623 = vrot.lane.b32.xlu1 %v93_v13, %s17397_s29  ;;  %621 = vrot.lane.b32.xlu0 %v89_v14, %s17397_s29  ;;  %s7601_s29 = sld [smem:[#allocation8 + $0x33]]  ;;  %v7849_v49 = vstv %s7738_s28  ;;  %s9397_s28 = sld [smem:[#allocation8 + $0x44]] }
  0x7f   :  { %17710 = vst [vmem:[#allocation46_spill] sm:$0xff] %v7849_v49 }
  0x82   :  { %690 = vrot.lane.b32.xlu1 %v77_v10, %s17395_s30  ;;  %688 = vrot.lane.b32.xlu0 %v73_v8, %s17395_s30 }
  0x84   :  { %v7693_v46 = vstv %s7601_s29  ;;  %s7709_s29 = sld [smem:[#allocation8 + $0x72]] }
  0x86   :  { %694 = vrot.lane.b32.xlu1 %v85_v9, %s17395_s30  ;;  %692 = vrot.lane.b32.xlu0 %v81_v7, %s17395_s30 }
  0x8a   :  { %698 = vrot.lane.b32.xlu1 %v93_v13, %s17395_s30  ;;  %696 = vrot.lane.b32.xlu0 %v89_v14, %s17395_s30  ;;  %s7599_s30 = sld [smem:[#allocation8 + $0x32]] }
  0x8e   :  { %765 = vrot.lane.b32.xlu1 %v77_v10, %s17393_s9  ;;  %763 = vrot.lane.b32.xlu0 %v73_v8, %s17393_s9  ;;  %v7809_v8 = vstv %s7709_s29  ;;  %s17728_s29 = smov 111  }
  0x8f   :  { %17700 = vst [vmem:[#allocation36_spill] sm:$0xff] %v7809_v8  ;;  %v7878_v8 = vstv %s7777_s22  ;;  %s9446_s22 = sld [smem:[#allocation8 + $0x55]] }
  0x90   :  { %v7690_v45 = vstv %s7599_s30  ;;  %s7711_s30 = sld [smem:[#allocation8 + $0x73]]  ;;  %17716 = vst [vmem:[#allocation52_spill] sm:$0xff] %v7878_v8 }
  0x92   :  { %769 = vrot.lane.b32.xlu1 %v85_v9, %s17393_s9  ;;  %767 = vrot.lane.b32.xlu0 %v81_v7, %s17393_s9  ;;  %v7806_v9 = vstv %s7699_s16  ;;  %s17725_s16 = smov 127  }
  0x93   :  { %17699 = vst [vmem:[#allocation35_spill] sm:$0xff] %v7806_v9 }
  0x96   :  { %773 = vrot.lane.b32.xlu1 %v93_v13, %s17393_s9  ;;  %771 = vrot.lane.b32.xlu0 %v89_v14, %s17393_s9  ;;  %s7587_s9 = sld [smem:[#allocation8 + $0x31]]  ;;  %v7785_v14 = vstv %s7666_s13  ;;  %v7812_v7 = vstv %s7711_s30  ;;  %s17720_s13 = smov 1  }
  0x97   :  { %17695 = vst [vmem:[#allocation31_spill] sm:$0xff] %v7785_v14  ;;  %17701 = vst [vmem:[#allocation37_spill] sm:$0xff] %v7812_v7  ;;  %s17729_s30 = smov 110  }
  0x9a   :  { %873 = vrot.lane.b32.xlu1 %v7542_v16, %s17490_s5  ;;  %871 = vrot.lane.b32.xlu0 %v7545_v17, %s17490_s5 }
  0x9c   :  { %v7672_v42 = vstv %s7587_s9  ;;  %s7697_s9 = sld [smem:[#allocation8 + $0x70]] }
  0x9e   :  { %877 = vrot.lane.b32.xlu1 %v7568_v18, %s17490_s5  ;;  %875 = vrot.lane.b32.xlu0 %v7571_v19, %s17490_s5 }
  0xa2   :  { %881 = vrot.lane.b32.xlu1 %v7594_v20, %s17490_s5  ;;  %879 = vrot.lane.b32.xlu0 %v7597_v21, %s17490_s5  ;;  %v7803_v63 = vstv %s7697_s9  ;;  %s8047_s9 = sld [smem:[#allocation8 + $0x35]] }
  0xa3   :  { %17698 = vst [vmem:[#allocation34_spill] sm:$0xff] %v7803_v63 }
  0xa6   :  { %947 = vrot.lane.b32.xlu1 %v7542_v16, %s17494_s25  ;;  %945 = vrot.lane.b32.xlu0 %v7545_v17, %s17494_s25 }
  0xaa   :  { %951 = vrot.lane.b32.xlu1 %v7568_v18, %s17494_s25  ;;  %949 = vrot.lane.b32.xlu0 %v7571_v19, %s17494_s25 }
  0xac   :  { %v105_v10 = vpop.permute.xlu1 %104  ;;  %v101_v13 = vpop.permute.xlu0 %100 }
  0xae   :  { %955 = vrot.lane.b32.xlu1 %v7594_v20, %s17494_s25  ;;  %953 = vrot.lane.b32.xlu0 %v7597_v21, %s17494_s25 }
  0xb0   :  { %v107_v24 = vpop.permute.xlu1 %106  ;;  %v103_v62 = vpop.permute.xlu0 %102 }
  0xb1   :  { %v117_v57 = vsel %vm114_vm0, %v105_v10, %v107_v24  ;;  %v118_v53 = vsel %vm114_vm0, %v103_v62, %v105_v10  ;;  %v119_v52 = vsel %vm114_vm0, %v101_v13, %v103_v62  ;;  %v7866_v10 = vstv %s7767_s21  ;;  %s9440_s21 = sld [smem:[#allocation8 + $0x54]] }
  0xb2   :  { %1021 = vrot.lane.b32.xlu1 %v7542_v16, %s17492_s26  ;;  %1019 = vrot.lane.b32.xlu0 %v7545_v17, %s17492_s26  ;;  %17715 = vst [vmem:[#allocation51_spill] sm:$0xff] %v7866_v10  ;;  %v7869_v62 = vmul.f32 %v7605_v23, %v117_v57  ;;  %v7872_v51 = vmul.f32 %v7613_v25, %v117_v57 }
  0xb3   :  { %v7875_v48 = vmul.f32 %v7616_v26, %v117_v57  ;;  %v7885_v31 = vmul.f32 %v7619_v27, %v117_v57  ;;  %v124_v10 = vmul.f32 %v7605_v23, %v119_v52  ;;  %v125_v50 = vmul.f32 %v7605_v23, %v118_v53 }
  0xb4   :  { %v111_v49 = vpop.permute.xlu1 %110  ;;  %v109_v7 = vpop.permute.xlu0 %108  ;;  %v132_v9 = vmul.f32 %v7613_v25, %v119_v52  ;;  %v133_v63 = vmul.f32 %v7613_v25, %v118_v53  ;;  %v140_v57 = vmul.f32 %v7616_v26, %v119_v52  ;;  %v141_v58 = vmul.f32 %v7616_v26, %v118_v53 }
  0xb5   :  { %v120_v47 = vsel %vm114_vm0, %v111_v49, %v101_v13  ;;  %v115_v8 = vsel %vm114_vm0, %v109_v7, %v111_v49  ;;  %v116_v1 = vsel %vm114_vm0, %v107_v24, %v109_v7  ;;  %v148_v13 = vmul.f32 %v7619_v27, %v119_v52 }
  0xb6   :  { %1025 = vrot.lane.b32.xlu1 %v7568_v18, %s17492_s26  ;;  %v7903_v61 = vmul.f32 %v7619_v27, %v118_v53  ;;  %1023 = vrot.lane.b32.xlu0 %v7571_v19, %s17492_s26  ;;  %v7910_v49 = vmul.f32 %v7605_v23, %v120_v47  ;;  %v7913_v7 = vmul.f32 %v7613_v25, %v120_v47  ;;  %v7919_v52 = vstv %s7829_s23  ;;  %s9448_s23 = sld [smem:[#allocation8 + $0x56]] }
  0xb7   :  { %v7916_v24 = vmul.f32 %v7616_v26, %v120_v47  ;;  %17717 = vst [vmem:[#allocation53_spill] sm:$0xff] %v7919_v52  ;;  %v7924_v53 = vmul.f32 %v7619_v27, %v120_v47  ;;  %v7927_v2 = vmul.f32 %v7605_v23, %v116_v1  ;;  %v7930_v32 = vmul.f32 %v7605_v23, %v115_v8 }
  0xb8   :  { %v156_v59 = vpop.permute.xlu1 %155  ;;  %v154_v22 = vpop.permute.xlu0 %153  ;;  %v7935_v14 = vmul.f32 %v7613_v25, %v116_v1  ;;  %v7938_v52 = vmul.f32 %v7613_v25, %v115_v8  ;;  %v7945_v23 = vmul.f32 %v7616_v26, %v116_v1  ;;  %v7948_v12 = vmul.f32 %v7616_v26, %v115_v8 }
  0xb9   :  { %v170_v15 = vsel %vm165_vm1, %v154_v22, %v156_v59  ;;  %v7955_v25 = vmul.f32 %v7619_v27, %v116_v1  ;;  %v7958_v3 = vmul.f32 %v7619_v27, %v115_v8 }
  0xba   :  { %v175_v47 = vmul.f32 %v7622_v28, %v170_v15  ;;  %v189_v0 = vmul.f32 %v7641_v33, %v170_v15  ;;  %1029 = vrot.lane.b32.xlu1 %v7594_v20, %s17492_s26  ;;  %v203_v5 = vmul.f32 %v7644_v34, %v170_v15  ;;  %v217_v11 = vmul.f32 %v7647_v35, %v170_v15 }
  0xbb   :  { %1027 = vrot.lane.b32.xlu0 %v7597_v21, %s17492_s26 }
  0xbc   :  { %v160_v6 = vpop.permute.xlu1 %159  ;;  %v158_v60 = vpop.permute.xlu0 %157  ;;  %v7966_v26 = vadd.f32 %v175_v47, %v124_v10  ;;  %v7968_v54 = vadd.f32 %v189_v0, %v132_v9  ;;  %v7983_v9 = vadd.f32 %v203_v5, %v140_v57  ;;  %v7985_v47 = vadd.f32 %v217_v11, %v148_v13 }
  0xbd   :  { %v168_v15 = vsel %vm165_vm1, %v158_v60, %v160_v6  ;;  %v169_v1 = vsel %vm165_vm1, %v156_v59, %v158_v60  ;;  %v7991_v60 = vstv %s7907_s10  ;;  %s9657_s10 = sld [smem:[#allocation8 + $0x65]] }
  0xbe   :  { %v176_v27 = vmul.f32 %v7622_v28, %v169_v1  ;;  %v177_v8 = vmul.f32 %v7622_v28, %v168_v15  ;;  %v190_v10 = vmul.f32 %v7641_v33, %v169_v1  ;;  %v191_v0 = vmul.f32 %v7641_v33, %v168_v15  ;;  %1095 = vrot.lane.b32.xlu1 %v7542_v16, %s17720_s13 }
  0xbf   :  { %v204_v59 = vmul.f32 %v7644_v34, %v169_v1  ;;  %1093 = vrot.lane.b32.xlu0 %v7545_v17, %s17720_s13  ;;  %17721 = vst [vmem:[#allocation56_spill] sm:$0xff] %v7991_v60  ;;  %v205_v55 = vmul.f32 %v7644_v34, %v168_v15  ;;  %v218_v56 = vmul.f32 %v7647_v35, %v169_v1 }
  0xc0   :  { %v219_v44 = vmul.f32 %v7647_v35, %v168_v15  ;;  %v164_v43 = vpop.permute.xlu1 %163  ;;  %v162_v36 = vpop.permute.xlu0 %161  ;;  %v7999_v5 = vadd.f32 %v176_v27, %v125_v50  ;;  %v8002_v11 = vadd.f32 %v177_v8, %v7869_v62  ;;  %v8004_v57 = vadd.f32 %v190_v10, %v133_v63 }
  0xc1   :  { %v8007_v13 = vadd.f32 %v191_v0, %v7872_v51  ;;  %v8011_v60 = vadd.f32 %v204_v59, %v141_v58  ;;  %v171_v15 = vsel %vm165_vm1, %v164_v43, %v154_v22  ;;  %v166_v1 = vsel %vm165_vm1, %v162_v36, %v164_v43 }
  0xc2   :  { %v167_v50 = vsel %vm165_vm1, %v160_v6, %v162_v36  ;;  %1099 = vrot.lane.b32.xlu1 %v7568_v18, %s17720_s13  ;;  %v174_v51 = vmul.f32 %v7622_v28, %v171_v15  ;;  %v188_v63 = vmul.f32 %v7641_v33, %v171_v15  ;;  %v202_v58 = vmul.f32 %v7644_v34, %v171_v15 }
  0xc3   :  { %v216_v62 = vmul.f32 %v7647_v35, %v171_v15  ;;  %1097 = vrot.lane.b32.xlu0 %v7571_v19, %s17720_s13  ;;  %v8028_v43 = vadd.f32 %v205_v55, %v7875_v48  ;;  %v178_v6 = vmul.f32 %v7622_v28, %v167_v50  ;;  %v179_v36 = vmul.f32 %v7622_v28, %v166_v1 }
  0xc4   :  { %v192_v22 = vmul.f32 %v7641_v33, %v167_v50  ;;  %v231_v27 = vpop.permute.xlu1 %230  ;;  %v8033_v8 = vpop.permute.xlu0 %228  ;;  %v8036_v10 = vadd.f32 %v218_v56, %v7903_v61  ;;  %v8039_v0 = vadd.f32 %v219_v44, %v7885_v31  ;;  %v193_v59 = vmul.f32 %v7641_v33, %v166_v1 }
  0xc5   :  { %v8043_v15 = vstv %s7975_s12  ;;  %v8050_v28 = vadd.f32 %v174_v51, %v7910_v49  ;;  %v8053_v48 = vadd.f32 %v188_v63, %v7913_v7  ;;  %v8056_v55 = vadd.f32 %v202_v58, %v7916_v24  ;;  %s9669_s12 = sld [smem:[#allocation8 + $0x67]] }
  0xc6   :  { %17723 = vst [vmem:[#allocation58_spill] sm:$0xff] %v8043_v15  ;;  %v8059_v44 = vadd.f32 %v216_v62, %v7924_v53  ;;  %1103 = vrot.lane.b32.xlu1 %v7594_v20, %s17720_s13  ;;  %v206_v33 = vmul.f32 %v7644_v34, %v167_v50  ;;  %v207_v56 = vmul.f32 %v7644_v34, %v166_v1 }
  0xc7   :  { %v220_v61 = vmul.f32 %v7647_v35, %v167_v50  ;;  %v221_v31 = vmul.f32 %v7647_v35, %v166_v1  ;;  %1101 = vrot.lane.b32.xlu0 %v7597_v21, %s17720_s13  ;;  %v8070_v49 = vadd.f32 %v178_v6, %v7927_v2  ;;  %v8073_v7 = vadd.f32 %v179_v36, %v7930_v32 }
  0xc8   :  { %v8076_v24 = vadd.f32 %v192_v22, %v7935_v14  ;;  %v245_v34 = vsel %vm240_vm2, %v8033_v8, %v231_v27  ;;  %v235_v53 = vpop.permute.xlu1 %234  ;;  %v233_v50 = vpop.permute.xlu0 %232  ;;  %v8083_v35 = vadd.f32 %v193_v59, %v7938_v52  ;;  %v8086_v2 = vadd.f32 %v206_v33, %v7945_v23 }
  0xc9   :  { %v8089_v32 = vadd.f32 %v207_v56, %v7948_v12  ;;  %v8092_v14 = vstv %s8009_s14  ;;  %v8095_v1 = vadd.f32 %v220_v61, %v7955_v25  ;;  %v250_v51 = vmul.f32 %v7653_v37, %v245_v34  ;;  %s9717_s14 = sld [smem:[#allocation8 + $0x74]] }
  0xca   :  { %17724 = vst [vmem:[#allocation59_spill] sm:$0xff] %v8092_v14  ;;  %v264_v63 = vmul.f32 %v7656_v38, %v245_v34  ;;  %v278_v52 = vmul.f32 %v7659_v39, %v245_v34  ;;  %1329 = vrot.lane.b32.xlu1 %v7542_v16, %s17725_s16  ;;  %v8103_v23 = vadd.f32 %v221_v31, %v7958_v3  ;;  %v8119_v22 = vstv %s8045_s15  ;;  %s9758_s15 = sld [smem:[#allocation8 + $0x75]] }
  0xcb   :  { %v292_v12 = vmul.f32 %v7662_v40, %v245_v34  ;;  %v243_v58 = vsel %vm240_vm2, %v233_v50, %v235_v53  ;;  %v244_v25 = vsel %vm240_vm2, %v231_v27, %v233_v50  ;;  %1327 = vrot.lane.b32.xlu0 %v7545_v17, %s17725_s16  ;;  %v8113_v62 = vadd.f32 %v250_v51, %v7966_v26 }
  0xcc   :  { %v8116_v6 = vadd.f32 %v264_v63, %v7968_v54  ;;  %v239_v36 = vpop.permute.xlu1 %238  ;;  %v237_v3 = vpop.permute.xlu0 %236  ;;  %17726 = vst [vmem:[#allocation60_spill] sm:$0xff] %v8119_v22  ;;  %v8122_v59 = vstv %s8047_s9  ;;  %v251_v33 = vmul.f32 %v7653_v37, %v244_v25  ;;  %v252_v56 = vmul.f32 %v7653_v37, %v243_v58  ;;  %s9760_s9 = sld [smem:[#allocation8 + $0x76]] }
  0xcd   :  { %17727 = vst [vmem:[#allocation61_spill] sm:$0xff] %v8122_v59  ;;  %v265_v27 = vmul.f32 %v7656_v38, %v244_v25  ;;  %v266_v61 = vmul.f32 %v7656_v38, %v243_v58  ;;  %v284_v26 = vadd.f32 %v278_v52, %v7983_v9  ;;  %v279_v31 = vmul.f32 %v7659_v39, %v244_v25 }
  0xce   :  { %v280_v54 = vmul.f32 %v7659_v39, %v243_v58  ;;  %v293_v34 = vmul.f32 %v7662_v40, %v244_v25  ;;  %1333 = vrot.lane.b32.xlu1 %v7568_v18, %s17725_s16  ;;  %v298_v50 = vadd.f32 %v292_v12, %v7985_v47  ;;  %v8136_v51 = vadd.f32 %v251_v33, %v7999_v5 }
  0xcf   :  { %v8139_v63 = vadd.f32 %v252_v56, %v8002_v11  ;;  %v294_v59 = vmul.f32 %v7662_v40, %v243_v58  ;;  %1331 = vrot.lane.b32.xlu0 %v7571_v19, %s17725_s16  ;;  %v8145_v9 = vadd.f32 %v265_v27, %v8004_v57  ;;  %v8148_v52 = vadd.f32 %v266_v61, %v8007_v13 }
  0xd0   :  { %v8151_v25 = vadd.f32 %v279_v31, %v8011_v60  ;;  %v8154_v47 = vadd.f32 %v280_v54, %v8028_v43  ;;  %v306_v5 = vpop.permute.xlu1 %305  ;;  %v304_v11 = vpop.permute.xlu0 %303  ;;  %v8157_v12 = vadd.f32 %v293_v34, %v8036_v10  ;;  %v246_v58 = vsel %vm240_vm2, %v239_v36, %v8033_v8 }
  0xd1   :  { %v241_v57 = vsel %vm240_vm2, %v237_v3, %v239_v36  ;;  %v242_v13 = vsel %vm240_vm2, %v235_v53, %v237_v3  ;;  %v249_v60 = vmul.f32 %v7653_v37, %v246_v58  ;;  %v263_v43 = vmul.f32 %v7656_v38, %v246_v58 }
  0xd2   :  { %v277_v33 = vmul.f32 %v7659_v39, %v246_v58  ;;  %v291_v56 = vmul.f32 %v7662_v40, %v246_v58  ;;  %1337 = vrot.lane.b32.xlu1 %v7594_v20, %s17725_s16  ;;  %v8173_v10 = vadd.f32 %v294_v59, %v8039_v0  ;;  %v253_v8 = vmul.f32 %v7653_v37, %v242_v13 }
  0xd3   :  { %v254_v36 = vmul.f32 %v7653_v37, %v241_v57  ;;  %v320_v53 = vsel %vm315_vm3, %v304_v11, %v306_v5  ;;  %1335 = vrot.lane.b32.xlu0 %v7597_v21, %s17725_s16  ;;  %v8182_v3 = vadd.f32 %v249_v60, %v8050_v28  ;;  %v8185_v27 = vadd.f32 %v263_v43, %v8053_v48 }
  0xd4   :  { %v267_v61 = vmul.f32 %v7656_v38, %v242_v13  ;;  %v268_v0 = vmul.f32 %v7656_v38, %v241_v57  ;;  %v310_v59 = vpop.permute.xlu1 %309  ;;  %v308_v31 = vpop.permute.xlu0 %307  ;;  %v8190_v37 = vadd.f32 %v277_v33, %v8056_v55  ;;  %v8193_v54 = vadd.f32 %v291_v56, %v8059_v44 }
  0xd5   :  { %v8196_v34 = vadd.f32 %v253_v8, %v8070_v49  ;;  %v8199_v28 = vadd.f32 %v254_v36, %v8073_v7  ;;  %v281_v48 = vmul.f32 %v7659_v39, %v242_v13  ;;  %v282_v58 = vmul.f32 %v7659_v39, %v241_v57 }
  0xd6   :  { %v295_v38 = vmul.f32 %v7662_v40, %v242_v13  ;;  %v296_v60 = vmul.f32 %v7662_v40, %v241_v57  ;;  %1403 = vrot.lane.b32.xlu1 %v7542_v16, %s17728_s29  ;;  %v325_v55 = vmul.f32 %v7669_v41, %v320_v53  ;;  %v339_v44 = vmul.f32 %v7672_v42, %v320_v53 }
  0xd7   :  { %v353_v49 = vmul.f32 %v7690_v45, %v320_v53  ;;  %v367_v7 = vmul.f32 %v7693_v46, %v320_v53  ;;  %1401 = vrot.lane.b32.xlu0 %v7545_v17, %s17728_s29  ;;  %v273_v39 = vadd.f32 %v267_v61, %v8076_v24  ;;  %v274_v13 = vadd.f32 %v268_v0, %v8083_v35 }
  0xd8   :  { %v8216_v40 = vadd.f32 %v281_v48, %v8086_v2  ;;  %v288_v57 = vadd.f32 %v282_v58, %v8089_v32  ;;  %v314_v43 = vpop.permute.xlu1 %313  ;;  %v312_v33 = vpop.permute.xlu0 %311  ;;  %v301_v56 = vadd.f32 %v295_v38, %v8095_v1  ;;  %v8221_v8 = vadd.f32 %v296_v60, %v8103_v23 }
  0xd9   :  { %v8224_v36 = vadd.f32 %v325_v55, %v8113_v62  ;;  %v8227_v53 = vadd.f32 %v339_v44, %v8116_v6  ;;  %v8229_v24 = vadd.f32 %v353_v49, %v284_v26  ;;  %v8231_v35 = vadd.f32 %v367_v7, %v298_v50 }
  0xda   :  { %v318_v2 = vsel %vm315_vm3, %v308_v31, %v310_v59  ;;  %v319_v32 = vsel %vm315_vm3, %v306_v5, %v308_v31  ;;  %1407 = vrot.lane.b32.xlu1 %v7568_v18, %s17728_s29  ;;  %v321_v5 = vsel %vm315_vm3, %v314_v43, %v304_v11  ;;  %v316_v61 = vsel %vm315_vm3, %v312_v33, %v314_v43 }
  0xdb   :  { %v326_v1 = vmul.f32 %v7669_v41, %v319_v32  ;;  %v327_v23 = vmul.f32 %v7669_v41, %v318_v2  ;;  %v340_v62 = vmul.f32 %v7672_v42, %v319_v32  ;;  %v341_v6 = vmul.f32 %v7672_v42, %v318_v2  ;;  %1405 = vrot.lane.b32.xlu0 %v7571_v19, %s17728_s29 }
  0xdc   :  { %v354_v26 = vmul.f32 %v7690_v45, %v319_v32  ;;  %v355_v50 = vmul.f32 %v7690_v45, %v318_v2  ;;  %v8252_v0 = vpop.permute.xlu1 %540  ;;  %v8254_v31 = vpop.permute.xlu0 %538  ;;  %v368_v38 = vmul.f32 %v7693_v46, %v319_v32  ;;  %v369_v60 = vmul.f32 %v7693_v46, %v318_v2 }
  0xdd   :  { %v332_v48 = vadd.f32 %v326_v1, %v8136_v51  ;;  %v8258_v58 = vadd.f32 %v327_v23, %v8139_v63  ;;  %v346_v55 = vadd.f32 %v340_v62, %v8145_v9  ;;  %v8264_v11 = vadd.f32 %v341_v6, %v8148_v52 }
  0xde   :  { %v360_v44 = vadd.f32 %v354_v26, %v8151_v25  ;;  %v8268_v49 = vadd.f32 %v355_v50, %v8154_v47  ;;  %1411 = vrot.lane.b32.xlu1 %v7594_v20, %s17728_s29  ;;  %v324_v51 = vmul.f32 %v7669_v41, %v321_v5  ;;  %v338_v63 = vmul.f32 %v7672_v42, %v321_v5 }
  0xdf   :  { %v352_v7 = vmul.f32 %v7690_v45, %v321_v5  ;;  %v366_v43 = vmul.f32 %v7693_v46, %v321_v5  ;;  %1409 = vrot.lane.b32.xlu0 %v7597_v21, %s17728_s29  ;;  %v317_v9 = vsel %vm315_vm3, %v310_v59, %v312_v33  ;;  %v329_v52 = vmul.f32 %v7669_v41, %v316_v61 }
  0xe0   :  { %v343_v25 = vmul.f32 %v7672_v42, %v316_v61  ;;  %v357_v47 = vmul.f32 %v7690_v45, %v316_v61  ;;  %v8283_v2 = vpop.permute.xlu1 %544  ;;  %v543_v32 = vpop.permute.xlu0 %542  ;;  %v374_v1 = vadd.f32 %v368_v38, %v8157_v12  ;;  %v8287_v23 = vadd.f32 %v369_v60, %v8173_v10 }
  0xe1   :  { %v330_v62 = vadd.f32 %v324_v51, %v8182_v3  ;;  %v344_v6 = vadd.f32 %v338_v63, %v8185_v27  ;;  %v358_v59 = vadd.f32 %v352_v7, %v8190_v37  ;;  %v372_v33 = vadd.f32 %v366_v43, %v8193_v54  ;;  %v17732_v51 = vld [vmem:[#allocation23_spill] sm:$0xff]  ;;  %v17736_v43 = vld [vmem:[#allocation25_spill] sm:$0xff] }
  0xe2   :  { %v328_v26 = vmul.f32 %v7669_v41, %v317_v9  ;;  %v342_v50 = vmul.f32 %v7672_v42, %v317_v9  ;;  %1477 = vrot.lane.b32.xlu1 %v7542_v16, %s17729_s30  ;;  %v8298_v12 = vadd.f32 %v329_v52, %v8199_v28  ;;  %v356_v10 = vmul.f32 %v7690_v45, %v317_v9  ;;  %v17738_v52 = vld [vmem:[#allocation26_spill] sm:$0xff] }
  0xe3   :  { %v370_v3 = vmul.f32 %v7693_v46, %v317_v9  ;;  %v371_v27 = vmul.f32 %v7693_v46, %v316_v61  ;;  %1475 = vrot.lane.b32.xlu0 %v7545_v17, %s17729_s30  ;;  %v349_v42 = vadd.f32 %v343_v25, %v274_v13  ;;  %v363_v54 = vadd.f32 %v357_v47, %v288_v57  ;;  %v17730_v46 = vld [vmem:[#allocation18_spill] sm:$0xff]  ;;  %v17734_v57 = vld [vmem:[#allocation24_spill] sm:$0xff]  ;;  %v17739_v47 = vld [vmem:[#allocation27_spill] sm:$0xff] }
  0xe4   :  { %v8306_v37 = vadd.f32 %v328_v26, %v8196_v34  ;;  %v8308_v41 = vadd.f32 %v342_v50, %v273_v39  ;;  %v8310_v5 = vpop.permute.xlu1 %548  ;;  %v8312_v28 = vpop.permute.xlu0 %546  ;;  %v8315_v45 = vadd.f32 %v356_v10, %v8216_v40  ;;  %v17731_v61 = vrot.slane %v7634_v30, %v17730_v46  ;;  %v17741_v26 = vld [vmem:[#allocation29_spill] sm:$0xff] }
  0xe5   :  { %v8317_v38 = vadd.f32 %v370_v3, %v301_v56  ;;  %v17733_v34 = vrot.slane %v17732_v51, %v17730_v46  ;;  %v377_v13 = vadd.f32 %v371_v27, %v8221_v8  ;;  %v17735_v63 = vrot.slane %v17734_v57, %v17730_v46  ;;  %v17744_v3 = vld [vmem:[#allocation17_spill] sm:$0xff] }
  0xe6   :  { %v412_v60 = vadd.f32 %v17731_v61, %v330_v62  ;;  %v17737_v40 = vrot.slane %v17736_v43, %v17730_v46  ;;  %v555_v56 = vsel %vm550_vm4, %v8254_v31, %v8252_v0  ;;  %1481 = vrot.lane.b32.xlu1 %v7568_v18, %s17729_s30  ;;  %v17740_v62 = vld [vmem:[#allocation28_spill] sm:$0xff]  ;;  %v17745_v27 = vrot.slane %v7634_v30, %v17744_v3 }
  0xe7   :  { %v452_v39 = vadd.f32 %v17733_v34, %v344_v6  ;;  %v492_v7 = vadd.f32 %v17735_v63, %v358_v59  ;;  %v559_v25 = vmul.f32 %v17738_v52, %v555_v56  ;;  %v573_v8 = vmul.f32 %v17739_v47, %v555_v56  ;;  %1479 = vrot.lane.b32.xlu0 %v7571_v19, %s17729_s30 }
  0xe8   :  { %v532_v9 = vadd.f32 %v17737_v40, %v372_v33  ;;  %v587_v6 = vmul.f32 %v17740_v62, %v555_v56  ;;  %v601_v59 = vmul.f32 %v17741_v26, %v555_v56  ;;  %v17742_v33 = vld [vmem:[#allocation20_spill] sm:$0xff]  ;;  %v414_v61 = vadd.f32 %v17745_v27, %v332_v48  ;;  %v8358_v46 = vpop.permute.xlu1 %615  ;;  %v8360_v22 = vpop.permute.xlu0 %613 }
  0xe9   :  { %v17743_v50 = vrot.slane %v7634_v30, %v17742_v33  ;;  %v17746_v34 = vrot.slane %v17732_v51, %v17742_v33  ;;  %v17747_v40 = vrot.slane %v17732_v51, %v17744_v3  ;;  %v8362_v14 = vadd.f32 %v559_v25, %v412_v60 }
  0xea   :  { %v17749_v48 = vrot.slane %v17734_v57, %v17742_v33  ;;  %v553_v60 = vsel %vm550_vm4, %v543_v32, %v8283_v2  ;;  %1485 = vrot.lane.b32.xlu1 %v7594_v20, %s17729_s30 }
  0xeb   :  { %v413_v10 = vadd.f32 %v17743_v50, %v8224_v36  ;;  %v453_v63 = vadd.f32 %v17746_v34, %v8227_v53  ;;  %v454_v56 = vadd.f32 %v17747_v40, %v346_v55  ;;  %v8364_v36 = vadd.f32 %v573_v8, %v452_v39  ;;  %1483 = vrot.lane.b32.xlu0 %v7597_v21, %s17729_s30 }
  0xec   :  { %v493_v50 = vadd.f32 %v17749_v48, %v8229_v24  ;;  %v17750_v53 = vrot.slane %v17734_v57, %v17744_v3  ;;  %v8374_v55 = vadd.f32 %v587_v6, %v492_v7  ;;  %v8376_v34 = vadd.f32 %v601_v59, %v532_v9  ;;  %v8396_v6 = vpop.permute.xlu1 %619  ;;  %v8398_v59 = vpop.permute.xlu0 %617 }
  0xed   :  { %17748 = vst [vmem:[#allocation23_spill] sm:$0xff] %v8364_v36  ;;  %v554_v39 = vsel %vm550_vm4, %v8252_v0, %v543_v32  ;;  %v575_v9 = vmul.f32 %v17739_v47, %v553_v60  ;;  %v589_v8 = vmul.f32 %v17740_v62, %v553_v60  ;;  %v603_v32 = vmul.f32 %v17741_v26, %v553_v60 }
  0xee   :  { %v494_v27 = vadd.f32 %v17750_v53, %v360_v44  ;;  %17751 = vst [vmem:[#allocation24_spill] sm:$0xff] %v8374_v55  ;;  %17752 = vst [vmem:[#allocation25_spill] sm:$0xff] %v8376_v34  ;;  %v560_v24 = vmul.f32 %v17738_v52, %v554_v39  ;;  %v561_v44 = vmul.f32 %v17738_v52, %v553_v60  ;;  %1551 = vrot.lane.b32.xlu1 %v7542_v16, %s17755_s17 }
  0xef   :  { %v574_v7 = vmul.f32 %v17739_v47, %v554_v39  ;;  %v588_v25 = vmul.f32 %v17740_v62, %v554_v39  ;;  %v602_v0 = vmul.f32 %v17741_v26, %v554_v39  ;;  %v17753_v40 = vrot.slane %v17736_v43, %v17742_v33  ;;  %1549 = vrot.lane.b32.xlu0 %v7545_v17, %s17755_s17 }
  0xf0   :  { %v17754_v53 = vrot.slane %v17736_v43, %v17744_v3  ;;  %v8407_v4 = vadd.f32 %v560_v24, %v413_v10  ;;  %v8409_v34 = vadd.f32 %v561_v44, %v414_v61  ;;  %v8413_v60 = vadd.f32 %v575_v9, %v454_v56  ;;  %v17761_v24 = vld [vmem:[#allocation19_spill] sm:$0xff]  ;;  %v8448_v17 = vpop.permute.xlu0 %621 }
  0xf1   :  { %v533_v48 = vadd.f32 %v17753_v40, %v8231_v35  ;;  %v8411_v39 = vadd.f32 %v574_v7, %v453_v63  ;;  %v8415_v55 = vadd.f32 %v588_v25, %v493_v50  ;;  %v8417_v36 = vadd.f32 %v589_v8, %v494_v27  ;;  %v624_v7 = vpop.permute.xlu1 %623 }
  0xf2   :  { %v534_v15 = vadd.f32 %v17754_v53, %v374_v1  ;;  %v17756_v1 = vld [vmem:[#allocation21_spill] sm:$0xff]  ;;  %1555 = vrot.lane.b32.xlu1 %v7568_v18, %s17755_s17  ;;  %v551_v18 = vsel %vm550_vm4, %v8312_v28, %v8310_v5 }
  0xf3   :  { %v8421_v35 = vadd.f32 %v602_v0, %v533_v48  ;;  %v17757_v10 = vrot.slane %v7634_v30, %v17756_v1  ;;  %v17758_v63 = vrot.slane %v17732_v51, %v17756_v1  ;;  %v17759_v50 = vrot.slane %v17734_v57, %v17756_v1  ;;  %1553 = vrot.lane.b32.xlu0 %v7571_v19, %s17755_s17 }
  0xf4   :  { %v8423_v40 = vadd.f32 %v603_v32, %v534_v15  ;;  %v17760_v15 = vrot.slane %v17736_v43, %v17756_v1  ;;  %v8502_v19 = vpop.permute.xlu0 %688 }
  0xf5   :  { %v417_v61 = vadd.f32 %v17757_v10, %v8298_v12  ;;  %v457_v56 = vadd.f32 %v17758_v63, %v349_v42  ;;  %v497_v16 = vadd.f32 %v17759_v50, %v363_v54  ;;  %v556_v12 = vsel %vm550_vm4, %v8310_v5, %v8254_v31 }
  0xf6   :  { %v537_v27 = vadd.f32 %v17760_v15, %v377_v13  ;;  %v17762_v42 = vrot.slane %v7634_v30, %v17761_v24  ;;  %v564_v9 = vmul.f32 %v17738_v52, %v556_v12  ;;  %v578_v54 = vmul.f32 %v17739_v47, %v556_v12  ;;  %v17763_v13 = vld [vmem:[#allocation22_spill] sm:$0xff]  ;;  %1559 = vrot.lane.b32.xlu1 %v7594_v20, %s17755_s17 }
  0xf7   :  { %v592_v25 = vmul.f32 %v17740_v62, %v556_v12  ;;  %v17764_v8 = vrot.slane %v7634_v30, %v17763_v13  ;;  %v606_v31 = vmul.f32 %v17741_v26, %v556_v12  ;;  %v17766_v48 = vrot.slane %v17732_v51, %v17763_v13  ;;  %1557 = vrot.lane.b32.xlu0 %v7597_v21, %s17755_s17 }
  0xf8   :  { %v415_v44 = vadd.f32 %v17762_v42, %v8258_v58  ;;  %v17765_v58 = vrot.slane %v17732_v51, %v17761_v24  ;;  %v17767_v10 = vrot.slane %v17734_v57, %v17761_v24  ;;  %v8472_v30 = vadd.f32 %v564_v9, %v417_v61 }
  0xf9   :  { %v416_v0 = vadd.f32 %v17764_v8, %v8306_v37  ;;  %v456_v53 = vadd.f32 %v17766_v48, %v8308_v41  ;;  %v8474_v37 = vadd.f32 %v578_v54, %v457_v56  ;;  %v17769_v41 = vrot.slane %v17736_v43, %v17761_v24  ;;  %v17774_v48 = vld [vmem:[#allocation33_spill] sm:$0xff] }
  0xfa   :  { %v455_v32 = vadd.f32 %v17765_v58, %v8264_v11  ;;  %v495_v63 = vadd.f32 %v17767_v10, %v8268_v49  ;;  %v17768_v11 = vrot.slane %v17734_v57, %v17763_v13  ;;  %v8486_v49 = vadd.f32 %v592_v25, %v497_v16  ;;  %v8500_v57 = vpop.permute.xlu1 %690 }
  0xfb   :  { %v535_v51 = vadd.f32 %v17769_v41, %v8287_v23  ;;  %v630_v23 = vsel %vm625_vm5, %v8360_v22, %v8358_v46  ;;  %v563_v56 = vmul.f32 %v17738_v52, %v551_v18  ;;  %v577_v16 = vmul.f32 %v17739_v47, %v551_v18  ;;  %v17776_v41 = vld [vmem:[#allocation23_spill] sm:$0xff] }
  0xfc   :  { %v496_v50 = vadd.f32 %v17768_v11, %v8315_v45  ;;  %v552_v45 = vsel %vm550_vm4, %v8283_v2, %v8312_v28  ;;  %v591_v2 = vmul.f32 %v17740_v62, %v551_v18  ;;  %v605_v12 = vmul.f32 %v17741_v26, %v551_v18  ;;  %v17775_v11 = vld [vmem:[#allocation38_spill] sm:$0xff] }
  0xfd   :  { %v562_v61 = vmul.f32 %v17738_v52, %v552_v45  ;;  %v576_v5 = vmul.f32 %v17739_v47, %v552_v45  ;;  %v590_v15 = vmul.f32 %v17740_v62, %v552_v45  ;;  %v604_v28 = vmul.f32 %v17741_v26, %v552_v45  ;;  %1658 = vrot.lane.b32.xlu1 %v17775_v11, %s17490_s5 }
  0xfe   :  { %v612_v42 = vadd.f32 %v606_v31, %v537_v27  ;;  %v17770_v52 = vrot.slane %v17736_v43, %v17763_v13  ;;  %v8520_v47 = vadd.f32 %v563_v56, %v416_v0  ;;  %v583_v25 = vadd.f32 %v577_v16, %v456_v53  ;;  %v8530_v20 = vpop.permute.xlu1 %694  ;;  %v8532_v27 = vpop.permute.xlu0 %692  ;;  %v17771_v43 = vld [vmem:[#allocation30_spill] sm:$0xff]  ;;  %v17773_v0 = vld [vmem:[#allocation32_spill] sm:$0xff] }
  0xff   :  { %v8518_v54 = vadd.f32 %v562_v61, %v415_v44  ;;  %v8524_v62 = vadd.f32 %v576_v5, %v455_v32  ;;  %v8526_v26 = vadd.f32 %v590_v15, %v495_v63  ;;  %v8528_v8 = vadd.f32 %v591_v2, %v496_v50  ;;  %v17772_v44 = vld [vmem:[#allocation31_spill] sm:$0xff]  ;;  %v17779_v15 = vld [vmem:[#allocation25_spill] sm:$0xff] }
 0x100   :  { %v536_v9 = vadd.f32 %v17770_v52, %v8317_v38  ;;  %v634_v38 = vmul.f32 %v17771_v43, %v630_v23  ;;  %v648_v31 = vmul.f32 %v17772_v44, %v630_v23  ;;  %v662_v58 = vmul.f32 %v17773_v0, %v630_v23 }
 0x101   :  { %v676_v10 = vmul.f32 %v17774_v48, %v630_v23  ;;  %v8538_v21 = vadd.f32 %v604_v28, %v535_v51  ;;  %v628_v53 = vsel %vm625_vm5, %v8398_v59, %v8396_v6  ;;  %v629_v63 = vsel %vm625_vm5, %v8358_v46, %v8398_v59  ;;  %v17777_v46 = vld [vmem:[#allocation39_spill] sm:$0xff] }
 0x102   :  { %v8540_v32 = vadd.f32 %v605_v12, %v536_v9  ;;  %v8554_v50 = vadd.f32 %v634_v38, %v8362_v14  ;;  %v8557_v51 = vadd.f32 %v648_v31, %v17776_v41  ;;  %v631_v18 = vsel %vm625_vm5, %v624_v7, %v8360_v22  ;;  %1656 = vrot.lane.b32.xlu0 %v17777_v46, %s17490_s5  ;;  %v8571_v56 = vpop.permute.xlu1 %698  ;;  %v8573_v5 = vpop.permute.xlu0 %696  ;;  %v17778_v22 = vld [vmem:[#allocation24_spill] sm:$0xff] }
 0x103   :  { %v626_v45 = vsel %vm625_vm5, %v8448_v17, %v624_v7  ;;  %v635_v59 = vmul.f32 %v17771_v43, %v629_v63  ;;  %v636_v23 = vmul.f32 %v17771_v43, %v628_v53  ;;  %v649_v14 = vmul.f32 %v17772_v44, %v629_v63  ;;  %v17780_v31 = vld [vmem:[#allocation40_spill] sm:$0xff] }
 0x104   :  { %v650_v61 = vmul.f32 %v17772_v44, %v628_v53  ;;  %v8576_v16 = vadd.f32 %v662_v58, %v17778_v22  ;;  %v8579_v7 = vadd.f32 %v676_v10, %v17779_v15  ;;  %v663_v2 = vmul.f32 %v17773_v0, %v629_v63  ;;  %1662 = vrot.lane.b32.xlu1 %v17780_v31, %s17490_s5 }
 0x105   :  { %v664_v28 = vmul.f32 %v17773_v0, %v628_v53  ;;  %v8584_v12 = vadd.f32 %v635_v59, %v8407_v4  ;;  %v8587_v52 = vadd.f32 %v636_v23, %v8409_v34  ;;  %v677_v9 = vmul.f32 %v17774_v48, %v629_v63  ;;  %v17781_v34 = vld [vmem:[#allocation41_spill] sm:$0xff] }
 0x106   :  { %v678_v38 = vmul.f32 %v17774_v48, %v628_v53  ;;  %v655_v58 = vadd.f32 %v649_v14, %v8411_v39  ;;  %v8595_v10 = vadd.f32 %v650_v61, %v8413_v60  ;;  %v8598_v41 = vadd.f32 %v663_v2, %v8415_v55  ;;  %1660 = vrot.lane.b32.xlu0 %v17781_v34, %s17490_s5  ;;  %v8609_v23 = vpop.permute.xlu1 %765  ;;  %v8611_v60 = vpop.permute.xlu0 %763 }
 0x107   :  { %v8601_v4 = vadd.f32 %v664_v28, %v8417_v36  ;;  %v639_v63 = vmul.f32 %v17771_v43, %v631_v18  ;;  %v653_v53 = vmul.f32 %v17772_v44, %v631_v18  ;;  %v667_v59 = vmul.f32 %v17773_v0, %v631_v18 }
 0x108   :  { %v681_v39 = vmul.f32 %v17774_v48, %v631_v18  ;;  %v627_v36 = vsel %vm625_vm5, %v8396_v6, %v8448_v17  ;;  %v638_v55 = vmul.f32 %v17771_v43, %v626_v45  ;;  %v652_v14 = vmul.f32 %v17772_v44, %v626_v45  ;;  %v17782_v6 = vld [vmem:[#allocation42_spill] sm:$0xff] }
 0x109   :  { %v666_v61 = vmul.f32 %v17773_v0, %v626_v45  ;;  %v8621_v22 = vadd.f32 %v677_v9, %v8421_v35  ;;  %v8624_v18 = vadd.f32 %v678_v38, %v8423_v40  ;;  %v8627_v15 = vadd.f32 %v639_v63, %v8472_v30  ;;  %1666 = vrot.lane.b32.xlu1 %v17782_v6, %s17490_s5  ;;  %v17783_v40 = vld [vmem:[#allocation48_spill] sm:$0xff] }
 0x10a   :  { %v8630_v2 = vadd.f32 %v653_v53, %v8474_v37  ;;  %v8635_v17 = vadd.f32 %v667_v59, %v8486_v49  ;;  %v8637_v28 = vadd.f32 %v681_v39, %v612_v42  ;;  %v637_v35 = vmul.f32 %v17771_v43, %v627_v36  ;;  %1664 = vrot.lane.b32.xlu0 %v17783_v40, %s17490_s5  ;;  %v8650_v49 = vpop.permute.xlu1 %769  ;;  %v8652_v42 = vpop.permute.xlu0 %767  ;;  %v17784_v59 = vld [vmem:[#allocation34_spill] sm:$0xff] }
 0x10b   :  { %v651_v9 = vmul.f32 %v17772_v44, %v627_v36  ;;  %v8644_v30 = vadd.f32 %v638_v55, %v8520_v47  ;;  %v8646_v37 = vadd.f32 %v652_v14, %v583_v25  ;;  %v665_v38 = vmul.f32 %v17773_v0, %v627_v36  ;;  %v17787_v14 = vld [vmem:[#allocation37_spill] sm:$0xff] }
 0x10c   :  { %v679_v63 = vmul.f32 %v17774_v48, %v627_v36  ;;  %v8655_v43 = vadd.f32 %v666_v61, %v8528_v8  ;;  %v680_v44 = vmul.f32 %v17774_v48, %v626_v45  ;;  %v705_v47 = vsel %vm700_vm6, %v8502_v19, %v8500_v57  ;;  %v17785_v45 = vld [vmem:[#allocation35_spill] sm:$0xff]  ;;  %v17786_v36 = vld [vmem:[#allocation36_spill] sm:$0xff] }
 0x10d   :  { %v703_v25 = vsel %vm700_vm6, %v8532_v27, %v8530_v20  ;;  %v643_v0 = vadd.f32 %v637_v35, %v8518_v54  ;;  %v8668_v53 = vadd.f32 %v651_v9, %v8524_v62  ;;  %v8671_v8 = vadd.f32 %v665_v38, %v8526_v26  ;;  %1732 = vrot.lane.b32.xlu1 %v17775_v11, %s17494_s25 }
 0x10e   :  { %v709_v48 = vmul.f32 %v17784_v59, %v705_v47  ;;  %v723_v39 = vmul.f32 %v17785_v45, %v705_v47  ;;  %v737_v55 = vmul.f32 %v17786_v36, %v705_v47  ;;  %v751_v61 = vmul.f32 %v17787_v14, %v705_v47  ;;  %1730 = vrot.lane.b32.xlu0 %v17777_v46, %s17494_s25  ;;  %v8692_v38 = vpop.permute.xlu1 %773  ;;  %v8694_v47 = vpop.permute.xlu0 %771 }
 0x10f   :  { %v704_v54 = vsel %vm700_vm6, %v8500_v57, %v8532_v27  ;;  %v8687_v62 = vadd.f32 %v679_v63, %v8538_v21  ;;  %v711_v35 = vmul.f32 %v17784_v59, %v703_v25  ;;  %v686_v57 = vadd.f32 %v680_v44, %v8540_v32 }
 0x110   :  { %v710_v26 = vmul.f32 %v17784_v59, %v704_v54  ;;  %v724_v9 = vmul.f32 %v17785_v45, %v704_v54  ;;  %v715_v27 = vadd.f32 %v709_v48, %v8554_v50  ;;  %v8699_v13 = vadd.f32 %v723_v39, %v8557_v51 }
 0x111   :  { %v725_v21 = vmul.f32 %v17785_v45, %v703_v25  ;;  %v8703_v63 = vadd.f32 %v737_v55, %v8576_v16  ;;  %v8706_v24 = vadd.f32 %v751_v61, %v8579_v7  ;;  %v738_v3 = vmul.f32 %v17786_v36, %v704_v54  ;;  %1736 = vrot.lane.b32.xlu1 %v17780_v31, %s17494_s25 }
 0x112   :  { %v8709_v1 = vadd.f32 %v710_v26, %v8584_v12  ;;  %v8715_v32 = vadd.f32 %v711_v35, %v8587_v52  ;;  %v8717_v50 = vadd.f32 %v724_v9, %v655_v58  ;;  %v739_v51 = vmul.f32 %v17786_v36, %v703_v25  ;;  %1734 = vrot.lane.b32.xlu0 %v17781_v34, %s17494_s25  ;;  %v8736_v44 = vpop.permute.xlu1 %873  ;;  %v8738_v48 = vpop.permute.xlu0 %871 }
 0x113   :  { %v752_v16 = vmul.f32 %v17787_v14, %v704_v54  ;;  %v753_v7 = vmul.f32 %v17787_v14, %v703_v25  ;;  %v706_v12 = vsel %vm700_vm6, %v8571_v56, %v8502_v19  ;;  %v701_v52 = vsel %vm700_vm6, %v8573_v5, %v8571_v56 }
 0x114   :  { %v702_v58 = vsel %vm700_vm6, %v8530_v20, %v8573_v5  ;;  %v731_v25 = vadd.f32 %v725_v21, %v8595_v10  ;;  %v8742_v39 = vadd.f32 %v738_v3, %v8598_v41  ;;  %v8745_v19 = vadd.f32 %v739_v51, %v8601_v4 }
 0x115   :  { %v714_v55 = vmul.f32 %v17784_v59, %v706_v12  ;;  %v728_v56 = vmul.f32 %v17785_v45, %v706_v12  ;;  %v742_v61 = vmul.f32 %v17786_v36, %v706_v12  ;;  %v756_v20 = vmul.f32 %v17787_v14, %v706_v12  ;;  %1738 = vrot.lane.b32.xlu1 %v17783_v40, %s17494_s25 }
 0x116   :  { %v712_v5 = vmul.f32 %v17784_v59, %v702_v58  ;;  %v8755_v10 = vadd.f32 %v752_v16, %v8621_v22  ;;  %v713_v3 = vmul.f32 %v17784_v59, %v701_v52  ;;  %v726_v41 = vmul.f32 %v17785_v45, %v702_v58  ;;  %1740 = vrot.lane.b32.xlu0 %v17782_v6, %s17494_s25  ;;  %v8774_v59 = vpop.permute.xlu1 %877  ;;  %v8776_v9 = vpop.permute.xlu0 %875 }
 0x117   :  { %v727_v4 = vmul.f32 %v17785_v45, %v701_v52  ;;  %v8763_v54 = vadd.f32 %v753_v7, %v8624_v18  ;;  %v8766_v26 = vadd.f32 %v714_v55, %v8627_v15  ;;  %v8769_v35 = vadd.f32 %v728_v56, %v8630_v2  ;;  %v17791_v56 = vld [vmem:[#allocation46_spill] sm:$0xff] }
 0x118   :  { %v8772_v22 = vadd.f32 %v742_v61, %v8635_v17  ;;  %v8779_v45 = vadd.f32 %v756_v20, %v8637_v28  ;;  %v8781_v21 = vadd.f32 %v712_v5, %v643_v0  ;;  %v8784_v18 = vadd.f32 %v713_v3, %v8644_v30  ;;  %v17788_v0 = vld [vmem:[#allocation43_spill] sm:$0xff] }
 0x119   :  { %v740_v15 = vmul.f32 %v17786_v36, %v702_v58  ;;  %v741_v2 = vmul.f32 %v17786_v36, %v701_v52  ;;  %v754_v51 = vmul.f32 %v17787_v14, %v702_v58  ;;  %v755_v17 = vmul.f32 %v17787_v14, %v701_v52  ;;  %1806 = vrot.lane.b32.xlu1 %v17775_v11, %s17492_s26  ;;  %v17789_v36 = vld [vmem:[#allocation44_spill] sm:$0xff]  ;;  %v17790_v58 = vld [vmem:[#allocation45_spill] sm:$0xff] }
 0x11a   :  { %v780_v16 = vsel %vm775_vm7, %v8611_v60, %v8609_v23  ;;  %v8797_v28 = vadd.f32 %v726_v41, %v8668_v53  ;;  %v733_v30 = vadd.f32 %v727_v4, %v8646_v37  ;;  %1804 = vrot.lane.b32.xlu0 %v17777_v46, %s17492_s26  ;;  %v8810_v53 = vpop.permute.xlu1 %881  ;;  %v8812_v20 = vpop.permute.xlu0 %879  ;;  %v779_v41 = vsel %vm775_vm7, %v8609_v23, %v8652_v42 }
 0x11b   :  { %v784_v7 = vmul.f32 %v17788_v0, %v780_v16  ;;  %v798_v12 = vmul.f32 %v17789_v36, %v780_v16  ;;  %v8805_v14 = vadd.f32 %v740_v15, %v8671_v8  ;;  %v747_v52 = vadd.f32 %v741_v2, %v8655_v43 }
 0x11c   :  { %v812_v55 = vmul.f32 %v17790_v58, %v780_v16  ;;  %v826_v61 = vmul.f32 %v17791_v56, %v780_v16  ;;  %v8815_v37 = vadd.f32 %v754_v51, %v8687_v62  ;;  %v8817_v5 = vadd.f32 %v755_v17, %v686_v57 }
 0x11d   :  { %v8819_v3 = vadd.f32 %v784_v7, %v715_v27  ;;  %v778_v43 = vsel %vm775_vm7, %v8652_v42, %v8650_v49  ;;  %v8826_v8 = vadd.f32 %v798_v12, %v8699_v13  ;;  %1810 = vrot.lane.b32.xlu1 %v17780_v31, %s17492_s26  ;;  %v785_v27 = vmul.f32 %v17788_v0, %v779_v41 }
 0x11e   :  { %v786_v62 = vmul.f32 %v17788_v0, %v778_v43  ;;  %v800_v57 = vmul.f32 %v17789_v36, %v778_v43  ;;  %v799_v4 = vmul.f32 %v17789_v36, %v779_v41  ;;  %v813_v15 = vmul.f32 %v17790_v58, %v779_v41  ;;  %1808 = vrot.lane.b32.xlu0 %v17781_v34, %s17492_s26  ;;  %v8853_v17 = vpop.permute.xlu1 %947  ;;  %v8855_v16 = vpop.permute.xlu0 %945 }
 0x11f   :  { %v814_v13 = vmul.f32 %v17790_v58, %v778_v43  ;;  %v8843_v23 = vadd.f32 %v812_v55, %v8703_v63  ;;  %v8846_v42 = vadd.f32 %v826_v61, %v8706_v24  ;;  %v791_v7 = vadd.f32 %v785_v27, %v8709_v1 }
 0x120   :  { %v8849_v2 = vadd.f32 %v786_v62, %v8715_v32  ;;  %v8851_v51 = vadd.f32 %v800_v57, %v731_v25  ;;  %v805_v12 = vadd.f32 %v799_v4, %v8717_v50  ;;  %v827_v33 = vmul.f32 %v17791_v56, %v779_v41 }
 0x121   :  { %v828_v63 = vmul.f32 %v17791_v56, %v778_v43  ;;  %v819_v24 = vadd.f32 %v813_v15, %v8742_v39  ;;  %v8863_v55 = vadd.f32 %v814_v13, %v8745_v19  ;;  %v781_v32 = vsel %vm775_vm7, %v8692_v38, %v8611_v60  ;;  %1812 = vrot.lane.b32.xlu1 %v17783_v40, %s17492_s26 }
 0x122   :  { %v776_v1 = vsel %vm775_vm7, %v8694_v47, %v8692_v38  ;;  %v789_v50 = vmul.f32 %v17788_v0, %v781_v32  ;;  %v803_v25 = vmul.f32 %v17789_v36, %v781_v32  ;;  %v817_v39 = vmul.f32 %v17790_v58, %v781_v32  ;;  %1814 = vrot.lane.b32.xlu0 %v17782_v6, %s17492_s26  ;;  %v8888_v41 = vpop.permute.xlu1 %951  ;;  %v8890_v62 = vpop.permute.xlu0 %949 }
 0x123   :  { %v831_v19 = vmul.f32 %v17791_v56, %v781_v32  ;;  %v777_v60 = vsel %vm775_vm7, %v8650_v49, %v8694_v47  ;;  %v788_v38 = vmul.f32 %v17788_v0, %v776_v1  ;;  %v802_v61 = vmul.f32 %v17789_v36, %v776_v1 }
 0x124   :  { %v816_v43 = vmul.f32 %v17790_v58, %v776_v1  ;;  %v833_v57 = vadd.f32 %v827_v33, %v8755_v10  ;;  %v8894_v27 = vadd.f32 %v828_v63, %v8763_v54  ;;  %v8897_v4 = vadd.f32 %v789_v50, %v8766_v26 }
 0x125   :  { %v8900_v49 = vadd.f32 %v803_v25, %v8769_v35  ;;  %v8903_v47 = vadd.f32 %v817_v39, %v8772_v22  ;;  %v8906_v15 = vadd.f32 %v831_v19, %v8779_v45  ;;  %v787_v13 = vmul.f32 %v17788_v0, %v777_v60  ;;  %1880 = vrot.lane.b32.xlu1 %v17775_v11, %s17720_s13  ;;  %v17796_v25 = vld [vmem:[#allocation50_spill] sm:$0xff]  ;;  %v17797_v19 = vld [vmem:[#allocation51_spill] sm:$0xff] }
 0x126   :  { %v801_v32 = vmul.f32 %v17789_v36, %v777_v60  ;;  %v8913_v33 = vadd.f32 %v788_v38, %v8784_v18  ;;  %v8915_v10 = vadd.f32 %v802_v61, %v733_v30  ;;  %v815_v54 = vmul.f32 %v17790_v58, %v777_v60  ;;  %1878 = vrot.lane.b32.xlu0 %v17777_v46, %s17720_s13  ;;  %v8932_v30 = vpop.permute.xlu1 %955  ;;  %v8934_v0 = vpop.permute.xlu0 %953 }
 0x127   :  { %v829_v26 = vmul.f32 %v17791_v56, %v777_v60  ;;  %v8921_v35 = vadd.f32 %v816_v43, %v747_v52  ;;  %v830_v22 = vmul.f32 %v17791_v56, %v776_v1  ;;  %v887_v45 = vsel %vm114_vm0, %v8738_v48, %v8736_v44  ;;  %17792 = vst [vmem:[#allocation26_spill] sm:$0xff] %v8932_v30  ;;  %v17794_v56 = vld [vmem:[#allocation47_spill] sm:$0xff]  ;;  %v17795_v1 = vld [vmem:[#allocation49_spill] sm:$0xff] }
 0x128   :  { %v885_v18 = vsel %vm114_vm0, %v8776_v9, %v8774_v59  ;;  %17793 = vst [vmem:[#allocation27_spill] sm:$0xff] %v8934_v0  ;;  %v793_v36 = vadd.f32 %v787_v13, %v8781_v21  ;;  %v807_v52 = vadd.f32 %v801_v32, %v8797_v28  ;;  %v821_v58 = vadd.f32 %v815_v54, %v8805_v14 }
 0x129   :  { %v892_v63 = vmul.f32 %v17794_v56, %v887_v45  ;;  %v906_v50 = vmul.f32 %v17795_v1, %v887_v45  ;;  %v920_v39 = vmul.f32 %v17796_v25, %v887_v45  ;;  %v934_v60 = vmul.f32 %v17797_v19, %v887_v45  ;;  %1884 = vrot.lane.b32.xlu1 %v17780_v31, %s17720_s13 }
 0x12a   :  { %v886_v38 = vsel %vm114_vm0, %v8736_v44, %v8776_v9  ;;  %v835_v21 = vadd.f32 %v829_v26, %v8815_v37  ;;  %v894_v14 = vmul.f32 %v17794_v56, %v885_v18  ;;  %1882 = vrot.lane.b32.xlu0 %v17781_v34, %s17720_s13  ;;  %v836_v43 = vadd.f32 %v830_v22, %v8817_v5  ;;  %v8959_v9 = vpop.permute.xlu1 %1021  ;;  %v8969_v0 = vpop.permute.xlu0 %1019 }
 0x12b   :  { %v893_v28 = vmul.f32 %v17794_v56, %v886_v38  ;;  %v907_v61 = vmul.f32 %v17795_v1, %v886_v38  ;;  %v898_v13 = vadd.f32 %v892_v63, %v791_v7  ;;  %v8956_v32 = vadd.f32 %v906_v50, %v805_v12 }
 0x12c   :  { %v908_v44 = vmul.f32 %v17795_v1, %v885_v18  ;;  %v8961_v54 = vadd.f32 %v920_v39, %v819_v24  ;;  %v8963_v37 = vadd.f32 %v934_v60, %v833_v57  ;;  %v921_v45 = vmul.f32 %v17796_v25, %v886_v38 }
 0x12d   :  { %v8966_v26 = vadd.f32 %v893_v28, %v8849_v2  ;;  %v8971_v30 = vadd.f32 %v894_v14, %v793_v36  ;;  %v8974_v5 = vadd.f32 %v907_v61, %v8851_v51  ;;  %v922_v7 = vmul.f32 %v17796_v25, %v885_v18  ;;  %1886 = vrot.lane.b32.xlu1 %v17783_v40, %s17720_s13 }
 0x12e   :  { %v935_v12 = vmul.f32 %v17797_v19, %v886_v38  ;;  %v936_v24 = vmul.f32 %v17797_v19, %v885_v18  ;;  %v888_v2 = vsel %vm114_vm0, %v8810_v53, %v8738_v48  ;;  %v883_v51 = vsel %vm114_vm0, %v8812_v20, %v8810_v53  ;;  %1888 = vrot.lane.b32.xlu0 %v17782_v6, %s17720_s13  ;;  %v9001_v63 = vpop.permute.xlu1 %1025 }
 0x12f   :  { %v884_v57 = vsel %vm114_vm0, %v8774_v59, %v8812_v20  ;;  %v914_v22 = vadd.f32 %v908_v44, %v807_v52  ;;  %v8996_v18 = vadd.f32 %v921_v45, %v8863_v55  ;;  %v8998_v36 = vadd.f32 %v922_v7, %v821_v58  ;;  %v9007_v20 = vpop.permute.xlu0 %1023  ;;  %v17798_v7 = vld [vmem:[#allocation52_spill] sm:$0xff] }
 0x130   :  { %v891_v48 = vmul.f32 %v17794_v56, %v888_v2  ;;  %v905_v53 = vmul.f32 %v17795_v1, %v888_v2  ;;  %v919_v50 = vmul.f32 %v17796_v25, %v888_v2  ;;  %v933_v39 = vmul.f32 %v17797_v19, %v888_v2 }
 0x131   :  { %v895_v59 = vmul.f32 %v17794_v56, %v884_v57  ;;  %v9010_v52 = vadd.f32 %v935_v12, %v8894_v27  ;;  %v896_v55 = vmul.f32 %v17794_v56, %v883_v51  ;;  %v909_v58 = vmul.f32 %v17795_v1, %v884_v57  ;;  %2114 = vrot.lane.b32.xlu1 %v17775_v11, %s17725_s16 }
 0x132   :  { %v910_v60 = vmul.f32 %v17795_v1, %v883_v51  ;;  %v9017_v38 = vadd.f32 %v936_v24, %v835_v21  ;;  %v9020_v28 = vadd.f32 %v891_v48, %v8819_v3  ;;  %v9023_v14 = vadd.f32 %v905_v53, %v8826_v8  ;;  %2112 = vrot.lane.b32.xlu0 %v17777_v46, %s17725_s16  ;;  %v9040_v61 = vpop.permute.xlu1 %1029  ;;  %v17799_v24 = vld [vmem:[#allocation53_spill] sm:$0xff]  ;;  %v17801_v48 = vld [vmem:[#allocation55_spill] sm:$0xff] }
 0x133   :  { %v9026_v27 = vadd.f32 %v919_v50, %v8843_v23  ;;  %v9031_v56 = vadd.f32 %v933_v39, %v8846_v42  ;;  %v9034_v1 = vadd.f32 %v895_v59, %v8913_v33  ;;  %v9037_v21 = vadd.f32 %v896_v55, %v8897_v4  ;;  %v9049_v33 = vpop.permute.xlu0 %1027 }
 0x134   :  { %v923_v3 = vmul.f32 %v17796_v25, %v884_v57  ;;  %v924_v8 = vmul.f32 %v17796_v25, %v883_v51  ;;  %v937_v23 = vmul.f32 %v17797_v19, %v884_v57  ;;  %v938_v44 = vmul.f32 %v17797_v19, %v883_v51  ;;  %v17800_v51 = vld [vmem:[#allocation54_spill] sm:$0xff] }
 0x135   :  { %v961_v42 = vsel %vm165_vm1, %v8855_v16, %v8853_v17  ;;  %v9052_v4 = vadd.f32 %v909_v58, %v8915_v10  ;;  %v916_v45 = vadd.f32 %v910_v60, %v8900_v49  ;;  %2118 = vrot.lane.b32.xlu1 %v17780_v31, %s17725_s16 }
 0x136   :  { %v966_v12 = vmul.f32 %v17798_v7, %v961_v42  ;;  %v980_v25 = vmul.f32 %v17799_v24, %v961_v42  ;;  %v9060_v19 = vadd.f32 %v923_v3, %v8921_v35  ;;  %v930_v2 = vadd.f32 %v924_v8, %v8903_v47  ;;  %2116 = vrot.lane.b32.xlu0 %v17781_v34, %s17725_s16  ;;  %v9078_v47 = vpop.permute.xlu1 %1095 }
 0x137   :  { %v994_v57 = vmul.f32 %v17800_v51, %v961_v42  ;;  %v1008_v53 = vmul.f32 %v17801_v48, %v961_v42  ;;  %v9067_v49 = vadd.f32 %v937_v23, %v836_v43  ;;  %v9070_v10 = vadd.f32 %v938_v44, %v8906_v15  ;;  %v9089_v59 = vpop.permute.xlu0 %1093 }
 0x138   :  { %v9072_v50 = vadd.f32 %v966_v12, %v898_v13  ;;  %v959_v35 = vsel %vm165_vm1, %v8890_v62, %v8888_v41  ;;  %v9081_v39 = vadd.f32 %v980_v25, %v8956_v32  ;;  %v960_v43 = vsel %vm165_vm1, %v8853_v17, %v8890_v62 }
 0x139   :  { %v968_v15 = vmul.f32 %v17798_v7, %v959_v35  ;;  %v982_v13 = vmul.f32 %v17799_v24, %v959_v35  ;;  %v967_v55 = vmul.f32 %v17798_v7, %v960_v43  ;;  %v981_v58 = vmul.f32 %v17799_v24, %v960_v43  ;;  %2122 = vrot.lane.b32.xlu1 %v17782_v6, %s17725_s16 }
 0x13a   :  { %v995_v60 = vmul.f32 %v17800_v51, %v960_v43  ;;  %v996_v32 = vmul.f32 %v17800_v51, %v959_v35  ;;  %v9098_v3 = vadd.f32 %v994_v57, %v8961_v54  ;;  %v9101_v17 = vadd.f32 %v1008_v53, %v8963_v37  ;;  %2120 = vrot.lane.b32.xlu0 %v17783_v40, %s17725_s16  ;;  %v9116_v12 = vpop.permute.xlu1 %1099 }
 0x13b   :  { %v9104_v62 = vadd.f32 %v968_v15, %v8971_v30  ;;  %v9106_v8 = vadd.f32 %v982_v13, %v914_v22  ;;  %v973_v23 = vadd.f32 %v967_v55, %v8966_v26  ;;  %v9112_v44 = vadd.f32 %v981_v58, %v8974_v5  ;;  %v17802_v22 = vld [vmem:[#allocation26_spill] sm:$0xff]  ;;  %v17803_v5 = vld [vmem:[#allocation27_spill] sm:$0xff]  ;;  %v9132_v57 = vpop.permute.xlu0 %1097 }
 0x13c   :  { %v1009_v42 = vmul.f32 %v17801_v48, %v960_v43  ;;  %v1010_v54 = vmul.f32 %v17801_v48, %v959_v35  ;;  %v9119_v37 = vadd.f32 %v995_v60, %v8996_v18  ;;  %v9122_v30 = vadd.f32 %v996_v32, %v8998_v36 }
 0x13d   :  { %v962_v26 = vsel %vm165_vm1, %v17802_v22, %v8855_v16  ;;  %v957_v25 = vsel %vm165_vm1, %v17803_v5, %v17802_v22  ;;  %2188 = vrot.lane.b32.xlu1 %v17775_v11, %s17728_s29  ;;  %v958_v16 = vsel %vm165_vm1, %v8888_v41, %v17803_v5 }
 0x13e   :  { %v965_v53 = vmul.f32 %v17798_v7, %v962_v26  ;;  %v979_v18 = vmul.f32 %v17799_v24, %v962_v26  ;;  %v993_v35 = vmul.f32 %v17800_v51, %v962_v26  ;;  %v1007_v36 = vmul.f32 %v17801_v48, %v962_v26  ;;  %2186 = vrot.lane.b32.xlu0 %v17777_v46, %s17728_s29  ;;  %v9161_v32 = vpop.permute.xlu1 %1103 }
 0x13f   :  { %v970_v43 = vmul.f32 %v17798_v7, %v957_v25  ;;  %v984_v15 = vmul.f32 %v17799_v24, %v957_v25  ;;  %v998_v13 = vmul.f32 %v17800_v51, %v957_v25  ;;  %v9150_v55 = vadd.f32 %v1009_v42, %v9010_v52 }
 0x140   :  { %v9153_v58 = vadd.f32 %v1010_v54, %v9017_v38  ;;  %v9156_v60 = vadd.f32 %v965_v53, %v9020_v28  ;;  %v9159_v41 = vadd.f32 %v979_v18, %v9023_v14  ;;  %v9164_v22 = vadd.f32 %v993_v35, %v9026_v27  ;;  %v9171_v38 = vpop.permute.xlu0 %1101  ;;  %v17805_v53 = vld [vmem:[#allocation57_spill] sm:$0xff]  ;;  %v17806_v35 = vld [vmem:[#allocation58_spill] sm:$0xff] }
 0x141   :  { %v9167_v26 = vadd.f32 %v1007_v36, %v9031_v56  ;;  %v969_v52 = vmul.f32 %v17798_v7, %v958_v16  ;;  %v983_v42 = vmul.f32 %v17799_v24, %v958_v16  ;;  %v9174_v28 = vadd.f32 %v970_v43, %v9037_v21  ;;  %2192 = vrot.lane.b32.xlu1 %v17780_v31, %s17728_s29 }
 0x142   :  { %v9176_v54 = vadd.f32 %v984_v15, %v916_v45  ;;  %v997_v14 = vmul.f32 %v17800_v51, %v958_v16  ;;  %v1011_v5 = vmul.f32 %v17801_v48, %v958_v16  ;;  %v9182_v27 = vadd.f32 %v998_v13, %v930_v2  ;;  %2190 = vrot.lane.b32.xlu0 %v17781_v34, %s17728_s29  ;;  %v17804_v51 = vld [vmem:[#allocation56_spill] sm:$0xff]  ;;  %v17807_v16 = vld [vmem:[#allocation59_spill] sm:$0xff] }
 0x143   :  { %v1012_v56 = vmul.f32 %v17801_v48, %v957_v25  ;;  %v1035_v7 = vsel %vm240_vm2, %v8969_v0, %v8959_v9  ;;  %v1033_v21 = vsel %vm240_vm2, %v9007_v20, %v9001_v63  ;;  %v975_v45 = vadd.f32 %v969_v52, %v9034_v1  ;;  %v9201_v25 = vpop.permute.xlu1 %1329 }
 0x144   :  { %v989_v24 = vadd.f32 %v983_v42, %v9052_v4  ;;  %v9198_v2 = vadd.f32 %v997_v14, %v9060_v19  ;;  %v1040_v48 = vmul.f32 %v17804_v51, %v1035_v7  ;;  %v1054_v18 = vmul.f32 %v17805_v53, %v1035_v7  ;;  %v9210_v15 = vpop.permute.xlu0 %1327 }
 0x145   :  { %v1068_v36 = vmul.f32 %v17806_v35, %v1035_v7  ;;  %v1082_v43 = vmul.f32 %v17807_v16, %v1035_v7  ;;  %v1034_v1 = vsel %vm240_vm2, %v8959_v9, %v9007_v20  ;;  %v9213_v4 = vadd.f32 %v1011_v5, %v9067_v49  ;;  %2196 = vrot.lane.b32.xlu1 %v17782_v6, %s17728_s29 }
 0x146   :  { %v1041_v19 = vmul.f32 %v17804_v51, %v1034_v1  ;;  %v1042_v13 = vmul.f32 %v17804_v51, %v1033_v21  ;;  %v1055_v52 = vmul.f32 %v17805_v53, %v1034_v1  ;;  %v9221_v42 = vadd.f32 %v1012_v56, %v9070_v10  ;;  %2194 = vrot.lane.b32.xlu0 %v17783_v40, %s17728_s29 }
 0x147   :  { %v9224_v14 = vadd.f32 %v1040_v48, %v9072_v50  ;;  %v9227_v9 = vadd.f32 %v1054_v18, %v9081_v39  ;;  %v1056_v20 = vmul.f32 %v17805_v53, %v1033_v21  ;;  %v9233_v49 = vadd.f32 %v1068_v36, %v9098_v3  ;;  %v9243_v50 = vpop.permute.xlu1 %1333 }
 0x148   :  { %v9236_v5 = vadd.f32 %v1082_v43, %v9101_v17  ;;  %v9238_v7 = vadd.f32 %v1041_v19, %v973_v23  ;;  %v1069_v10 = vmul.f32 %v17806_v35, %v1034_v1  ;;  %v9246_v39 = vadd.f32 %v1042_v13, %v9104_v62  ;;  %v9253_v17 = vpop.permute.xlu0 %1331 }
 0x149   :  { %v1070_v56 = vmul.f32 %v17806_v35, %v1033_v21  ;;  %v1083_v48 = vmul.f32 %v17807_v16, %v1034_v1  ;;  %v1084_v3 = vmul.f32 %v17807_v16, %v1033_v21  ;;  %v9256_v23 = vadd.f32 %v1055_v52, %v9112_v44  ;;  %2262 = vrot.lane.b32.xlu1 %v17775_v11, %s17729_s30 }
 0x14a   :  { %v1036_v18 = vsel %vm240_vm2, %v9040_v61, %v8969_v0  ;;  %v1031_v62 = vsel %vm240_vm2, %v9049_v33, %v9040_v61  ;;  %v1032_v21 = vsel %vm240_vm2, %v9001_v63, %v9049_v33  ;;  %v9273_v44 = vadd.f32 %v1056_v20, %v9106_v8  ;;  %2260 = vrot.lane.b32.xlu0 %v17777_v46, %s17729_s30 }
 0x14b   :  { %v9276_v36 = vadd.f32 %v1069_v10, %v9119_v37  ;;  %v9279_v0 = vadd.f32 %v1070_v56, %v9122_v30  ;;  %v1039_v43 = vmul.f32 %v17804_v51, %v1036_v18  ;;  %v1053_v61 = vmul.f32 %v17805_v53, %v1036_v18  ;;  %v9288_v1 = vpop.permute.xlu1 %1337 }
 0x14c   :  { %v1067_v63 = vmul.f32 %v17806_v35, %v1036_v18  ;;  %v1081_v33 = vmul.f32 %v17807_v16, %v1036_v18  ;;  %v1043_v8 = vmul.f32 %v17804_v51, %v1032_v21  ;;  %v9291_v37 = vadd.f32 %v1083_v48, %v9150_v55  ;;  %v9298_v52 = vpop.permute.xlu0 %1335 }
 0x14d   :  { %v9294_v30 = vadd.f32 %v1084_v3, %v9153_v58  ;;  %v1044_v19 = vmul.f32 %v17804_v51, %v1031_v62  ;;  %v1057_v13 = vmul.f32 %v17805_v53, %v1032_v21  ;;  %v9301_v20 = vadd.f32 %v1039_v43, %v9156_v60  ;;  %2266 = vrot.lane.b32.xlu1 %v17780_v31, %s17729_s30 }
 0x14e   :  { %v9304_v10 = vadd.f32 %v1053_v61, %v9159_v41  ;;  %v9307_v55 = vadd.f32 %v1067_v63, %v9164_v22  ;;  %v1058_v58 = vmul.f32 %v17805_v53, %v1031_v62  ;;  %v9313_v51 = vadd.f32 %v1081_v33, %v9167_v26  ;;  %2264 = vrot.lane.b32.xlu0 %v17781_v34, %s17729_s30  ;;  %v17810_v63 = vld [vmem:[#allocation61_spill] sm:$0xff] }
 0x14f   :  { %v9315_v56 = vadd.f32 %v1043_v8, %v975_v45  ;;  %v9318_v60 = vadd.f32 %v1044_v19, %v9174_v28  ;;  %v1071_v48 = vmul.f32 %v17806_v35, %v1032_v21  ;;  %v9323_v41 = vadd.f32 %v1057_v13, %v989_v24  ;;  %v9330_v26 = vpop.permute.xlu1 %1403 }
 0x150   :  { %v1072_v22 = vmul.f32 %v17806_v35, %v1031_v62  ;;  %v1085_v53 = vmul.f32 %v17807_v16, %v1032_v21  ;;  %v9328_v3 = vstv %s9241_s2  ;;  %v1086_v45 = vmul.f32 %v17807_v16, %v1031_v62  ;;  %v9344_v35 = vpop.permute.xlu0 %1401  ;;  %v17809_v62 = vld [vmem:[#allocation60_spill] sm:$0xff]  ;;  %s9762_s2 = sld [smem:[#allocation8 + $0x77]] }
 0x151   :  { %v9334_v18 = vstv %s9251_s18  ;;  %v1109_v28 = vsel %vm315_vm3, %v9089_v59, %v9078_v47  ;;  %v1107_v24 = vsel %vm315_vm3, %v9132_v57, %v9116_v12  ;;  %17808 = vst [vmem:[#allocation28_spill] sm:$0xff] %v9344_v35  ;;  %v9347_v21 = vadd.f32 %v1058_v58, %v9176_v54  ;;  %2270 = vrot.lane.b32.xlu1 %v17782_v6, %s17729_s30  ;;  %s9898_s18 = sld [smem:[#allocation8 + $0x84]] }
 0x152   :  { %v9350_v43 = vadd.f32 %v1071_v48, %v9198_v2  ;;  %v9353_v16 = vadd.f32 %v1072_v22, %v9182_v27  ;;  %v1114_v61 = vmul.f32 %v17809_v62, %v1109_v28  ;;  %v1128_v33 = vmul.f32 %v17810_v63, %v1109_v28  ;;  %2268 = vrot.lane.b32.xlu0 %v17783_v40, %s17729_s30 }
 0x153   :  { %v1142_v8 = vmul.f32 %v9328_v3, %v1109_v28  ;;  %v1156_v19 = vmul.f32 %v9334_v18, %v1109_v28  ;;  %v1108_v54 = vsel %vm315_vm3, %v9078_v47, %v9132_v57  ;;  %v9368_v27 = vadd.f32 %v1085_v53, %v9213_v4  ;;  %v9383_v28 = vpop.permute.xlu1 %1407 }
 0x154   :  { %v1115_v2 = vmul.f32 %v17809_v62, %v1108_v54  ;;  %v1116_v13 = vmul.f32 %v17809_v62, %v1107_v24  ;;  %v1129_v58 = vmul.f32 %v17810_v63, %v1108_v54  ;;  %v9374_v48 = vadd.f32 %v1086_v45, %v9221_v42  ;;  %v9385_v4 = vpop.permute.xlu0 %1405 }
 0x155   :  { %v9377_v22 = vadd.f32 %v1114_v61, %v9224_v14  ;;  %v9380_v47 = vadd.f32 %v1128_v33, %v9227_v9  ;;  %v1130_v57 = vmul.f32 %v17810_v63, %v1107_v24  ;;  %v9388_v53 = vadd.f32 %v1142_v8, %v9233_v49  ;;  %2336 = vrot.lane.b32.xlu1 %v17775_v11, %s17755_s17 }
 0x156   :  { %v9391_v35 = vadd.f32 %v1156_v19, %v9236_v5  ;;  %v9394_v42 = vadd.f32 %v1115_v2, %v9238_v7  ;;  %v1143_v14 = vmul.f32 %v9328_v3, %v1108_v54  ;;  %v9402_v9 = vadd.f32 %v1116_v13, %v9246_v39  ;;  %2334 = vrot.lane.b32.xlu0 %v17777_v46, %s17755_s17 }
 0x157   :  { %v9405_v45 = vadd.f32 %v1129_v58, %v9256_v23  ;;  %v1144_v49 = vmul.f32 %v9328_v3, %v1107_v24  ;;  %v1157_v5 = vmul.f32 %v9334_v18, %v1108_v54  ;;  %v1158_v7 = vmul.f32 %v9334_v18, %v1107_v24  ;;  %v9460_v19 = vpop.permute.xlu1 %1411 }
 0x158   :  { %v1110_v11 = vsel %vm315_vm3, %v9161_v32, %v9089_v59  ;;  %v1105_v39 = vsel %vm315_vm3, %v9171_v38, %v9161_v32  ;;  %v1106_v23 = vsel %vm315_vm3, %v9116_v12, %v9171_v38  ;;  %v9429_v61 = vadd.f32 %v1130_v57, %v9273_v44  ;;  %v9462_v54 = vpop.permute.xlu0 %1409 }
 0x159   :  { %v9432_v46 = vadd.f32 %v1143_v14, %v9276_v36  ;;  %v9435_v24 = vadd.f32 %v1144_v49, %v9279_v0  ;;  %v1113_v59 = vmul.f32 %v17809_v62, %v1110_v11  ;;  %v1127_v32 = vmul.f32 %v17810_v63, %v1110_v11  ;;  %2340 = vrot.lane.b32.xlu1 %v17780_v31, %s17755_s17  ;;  %v17811_v49 = vld [vmem:[#allocation18_spill] sm:$0xff] }
 0x15a   :  { %v1141_v33 = vmul.f32 %v9328_v3, %v1110_v11  ;;  %v1155_v12 = vmul.f32 %v9334_v18, %v1110_v11  ;;  %v1117_v38 = vmul.f32 %v17809_v62, %v1106_v23  ;;  %v9453_v44 = vadd.f32 %v1157_v5, %v9291_v37  ;;  %2338 = vrot.lane.b32.xlu0 %v17781_v34, %s17755_s17 }
 0x15b   :  { %v1118_v36 = vmul.f32 %v17809_v62, %v1105_v39  ;;  %v1131_v0 = vmul.f32 %v17810_v63, %v1106_v23  ;;  %v1132_v8 = vmul.f32 %v17810_v63, %v1105_v39  ;;  %v9467_v31 = vadd.f32 %v1158_v7, %v9294_v30 }
 0x15c   :  { %v1119_v37 = vadd.f32 %v1113_v59, %v9301_v20  ;;  %v1133_v62 = vadd.f32 %v1127_v32, %v9304_v10  ;;  %v1147_v63 = vadd.f32 %v1141_v33, %v9307_v55  ;;  %v1161_v2 = vadd.f32 %v1155_v12, %v9313_v51 }
 0x15d   :  { %v9474_v13 = vadd.f32 %v1117_v38, %v9315_v56  ;;  %v9477_v58 = vadd.f32 %v1118_v36, %v9318_v60  ;;  %v1145_v34 = vmul.f32 %v9328_v3, %v1106_v23  ;;  %v9481_v30 = vadd.f32 %v1131_v0, %v9323_v41  ;;  %2344 = vrot.lane.b32.xlu1 %v17782_v6, %s17755_s17  ;;  %v7297_v56 = vld [vmem:[#allocation4 + $0x1] ss:$4 sm:$0x3f] }
 0x15e   :  { %v9484_v20 = vadd.f32 %v1132_v8, %v9347_v21  ;;  %v1146_v10 = vmul.f32 %v9328_v3, %v1105_v39  ;;  %v1168_v55 = vstv %s9397_s28  ;;  %v1159_v51 = vmul.f32 %v9334_v18, %v1106_v23  ;;  %2342 = vrot.lane.b32.xlu0 %v17783_v40, %s17755_s17  ;;  %v9514_v40 = vpop.permute.xlu1 %1477  ;;  %s9908_s28 = sld [smem:[#allocation8 + $0x85]] }
 0x15f   :  { %v9491_v60 = vmul.f32 %v7297_v56, %v1168_v55  ;;  %v1208_v57 = vstv %s9409_s27  ;;  %v1248_v41 = vstv %s9411_s19  ;;  %v9498_v21 = vadd.f32 %v1145_v34, %v9350_v43  ;;  %v9516_v43 = vpop.permute.xlu0 %1475  ;;  %s9910_s27 = sld [smem:[#allocation8 + $0x86]]  ;;  %s9944_s19 = sld [smem:[#allocation8 + $0x87]] }
 0x160   :  { %v9501_v3 = vadd.f32 %v1146_v10, %v9353_v16  ;;  %v1160_v6 = vmul.f32 %v9334_v18, %v1105_v39  ;;  %v9504_v14 = vmul.f32 %v7297_v56, %v1208_v57  ;;  %v9508_v7 = vmul.f32 %v7297_v56, %v1248_v41  ;;  %17812 = vst [vmem:[#allocation29_spill] sm:$0xff] %v9516_v43 }
 0x161   :  { %v1174_v5 = vrot.slane %v9491_v60, %v17811_v49  ;;  %v1288_v11 = vstv %s9438_s20  ;;  %v9512_v23 = vstv %s9440_s21  ;;  %v9523_v18 = vstv %s9446_s22  ;;  %s10082_s20 = sld [smem:[#allocation8 + $0x8]]  ;;  %s10084_s21 = sld [smem:[#allocation8 + $0x9]] }
 0x162   :  { %v1214_v16 = vrot.slane %v9504_v14, %v17811_v49  ;;  %v9520_v59 = vmul.f32 %v7297_v56, %v1288_v11  ;;  %v9526_v39 = vstv %s9448_s23  ;;  %v1254_v33 = vrot.slane %v9508_v7, %v17811_v49  ;;  %v17813_v56 = vld [vmem:[#allocation20_spill] sm:$0xff]  ;;  %v17814_v11 = vld [vmem:[#allocation17_spill] sm:$0xff]  ;;  %s10094_s22 = sld [smem:[#allocation8 + $0xa]]  ;;  %s10104_s23 = sld [smem:[#allocation8 + $0xb]] }
 0x163   :  { %v1201_v32 = vadd.f32 %v1174_v5, %v1119_v37  ;;  %v9531_v12 = vstv %s9458_s24  ;;  %v1343_v38 = vsel %vm550_vm4, %v9210_v15, %v9201_v25  ;;  %v1178_v57 = vrot.slane %v9491_v60, %v17813_v56  ;;  %s10167_s24 = sld [smem:[#allocation8 + $0x18]] }
 0x164   :  { %v1241_v36 = vadd.f32 %v1214_v16, %v1133_v62  ;;  %v1294_v0 = vrot.slane %v9520_v59, %v17811_v49  ;;  %v1347_v8 = vmul.f32 %v9512_v23, %v1343_v38  ;;  %v1361_v34 = vmul.f32 %v9523_v18, %v1343_v38 }
 0x165   :  { %v1281_v10 = vadd.f32 %v1254_v33, %v1147_v63  ;;  %v1375_v37 = vmul.f32 %v9526_v39, %v1343_v38  ;;  %v1389_v55 = vmul.f32 %v9531_v12, %v1343_v38  ;;  %v9546_v41 = vadd.f32 %v1159_v51, %v9368_v27  ;;  %v9559_v38 = vpop.permute.xlu1 %1481  ;;  %v9561_v27 = vpop.permute.xlu0 %1479 }
 0x166   :  { %v1166_v62 = vadd.f32 %v1160_v6, %v9374_v48  ;;  %v1321_v5 = vadd.f32 %v1294_v0, %v1161_v2  ;;  %v1182_v16 = vrot.slane %v9491_v60, %v17814_v11  ;;  %v9551_v49 = vadd.f32 %v1347_v8, %v1201_v32  ;;  %17815 = vst [vmem:[#allocation30_spill] sm:$0xff] %v9559_v38 }
 0x167   :  { %v9553_v43 = vadd.f32 %v1361_v34, %v1241_v36  ;;  %v1218_v63 = vrot.slane %v9504_v14, %v17813_v56  ;;  %v1222_v33 = vrot.slane %v9504_v14, %v17814_v11  ;;  %17816 = vst [vmem:[#allocation31_spill] sm:$0xff] %v9561_v27  ;;  %v9563_v51 = vadd.f32 %v1375_v37, %v1281_v10 }
 0x168   :  { %v1202_v48 = vadd.f32 %v1178_v57, %v9377_v22  ;;  %v1258_v2 = vrot.slane %v9508_v7, %v17813_v56  ;;  %v1262_v6 = vrot.slane %v9508_v7, %v17814_v11  ;;  %v9570_v32 = vadd.f32 %v1389_v55, %v1321_v5 }
 0x169   :  { %v1203_v36 = vadd.f32 %v1182_v16, %v9394_v42  ;;  %v1298_v0 = vrot.slane %v9520_v59, %v17813_v56  ;;  %v1302_v8 = vrot.slane %v9520_v59, %v17814_v11  ;;  %v1242_v34 = vadd.f32 %v1218_v63, %v9380_v47 }
 0x16a   :  { %v1243_v22 = vadd.f32 %v1222_v33, %v9405_v45  ;;  %v1341_v10 = vsel %vm550_vm4, %v9253_v17, %v9243_v50  ;;  %v1342_v42 = vsel %vm550_vm4, %v9201_v25, %v9253_v17  ;;  %v1282_v37 = vadd.f32 %v1258_v2, %v9388_v53  ;;  %v9602_v2 = vpop.permute.xlu0 %1483 }
 0x16b   :  { %v1283_v55 = vadd.f32 %v1262_v6, %v9432_v46  ;;  %v1348_v57 = vmul.f32 %v9512_v23, %v1342_v42  ;;  %v1349_v47 = vmul.f32 %v9512_v23, %v1341_v10  ;;  %v1362_v45 = vmul.f32 %v9523_v18, %v1342_v42  ;;  %v9600_v46 = vpop.permute.xlu1 %1485 }
 0x16c   :  { %v1363_v5 = vmul.f32 %v9523_v18, %v1341_v10  ;;  %v1376_v16 = vmul.f32 %v9526_v39, %v1342_v42  ;;  %v1377_v63 = vmul.f32 %v9526_v39, %v1341_v10  ;;  %v1322_v33 = vadd.f32 %v1298_v0, %v9391_v35 }
 0x16d   :  { %v1323_v25 = vadd.f32 %v1302_v8, %v9453_v44  ;;  %v9597_v17 = vadd.f32 %v1348_v57, %v1202_v48  ;;  %v1390_v53 = vmul.f32 %v9531_v12, %v1342_v42  ;;  %v9604_v6 = vadd.f32 %v1349_v47, %v1203_v36  ;;  %v17817_v44 = vld [vmem:[#allocation21_spill] sm:$0xff] }
 0x16e   :  { %v9606_v11 = vadd.f32 %v1362_v45, %v1242_v34  ;;  %v9608_v56 = vadd.f32 %v1363_v5, %v1243_v22  ;;  %v1391_v27 = vmul.f32 %v9531_v12, %v1341_v10  ;;  %v9611_v38 = vadd.f32 %v1376_v16, %v1282_v37  ;;  %v17818_v22 = vld [vmem:[#allocation19_spill] sm:$0xff] }
 0x16f   :  { %v9613_v35 = vadd.f32 %v1377_v63, %v1283_v55  ;;  %v1194_v48 = vrot.slane %v9491_v60, %v17817_v44  ;;  %v1234_v0 = vrot.slane %v9504_v14, %v17817_v44  ;;  %v1274_v36 = vrot.slane %v9508_v7, %v17817_v44 }
 0x170   :  { %v1314_v8 = vrot.slane %v9520_v59, %v17817_v44  ;;  %v1344_v34 = vsel %vm550_vm4, %v9288_v1, %v9210_v15  ;;  %v1186_v10 = vrot.slane %v9491_v60, %v17818_v22  ;;  %v9629_v42 = vadd.f32 %v1390_v53, %v1322_v33  ;;  %v17819_v33 = vld [vmem:[#allocation22_spill] sm:$0xff]  ;;  %v9646_v53 = vpop.permute.xlu1 %1551 }
 0x171   :  { %v1206_v37 = vadd.f32 %v1194_v48, %v9477_v58  ;;  %v1352_v55 = vmul.f32 %v9512_v23, %v1344_v34  ;;  %v1366_v57 = vmul.f32 %v9523_v18, %v1344_v34  ;;  %v9634_v47 = vadd.f32 %v1391_v27, %v1323_v25  ;;  %v9648_v27 = vpop.permute.xlu0 %1549 }
 0x172   :  { %v1246_v45 = vadd.f32 %v1234_v0, %v9484_v20  ;;  %v1380_v5 = vmul.f32 %v9526_v39, %v1344_v34  ;;  %v1394_v16 = vmul.f32 %v9531_v12, %v1344_v34  ;;  %v1286_v15 = vadd.f32 %v1274_v36, %v9501_v3 }
 0x173   :  { %v1326_v63 = vadd.f32 %v1314_v8, %v1166_v62  ;;  %v9640_v44 = vadd.f32 %v1352_v55, %v1206_v37  ;;  %v1190_v58 = vrot.slane %v9491_v60, %v17819_v33  ;;  %v1204_v20 = vadd.f32 %v1186_v10, %v9402_v9 }
 0x174   :  { %v9650_v25 = vadd.f32 %v1366_v57, %v1246_v45  ;;  %v1226_v48 = vrot.slane %v9504_v14, %v17818_v22  ;;  %v1230_v3 = vrot.slane %v9504_v14, %v17819_v33  ;;  %v9661_v60 = vadd.f32 %v1380_v5, %v1286_v15 }
 0x175   :  { %v1266_v62 = vrot.slane %v9508_v7, %v17818_v22  ;;  %v1270_v0 = vrot.slane %v9508_v7, %v17819_v33  ;;  %v1306_v9 = vrot.slane %v9520_v59, %v17818_v22  ;;  %v9671_v36 = vadd.f32 %v1394_v16, %v1326_v63 }
 0x176   :  { %v1205_v14 = vadd.f32 %v1190_v58, %v9474_v13  ;;  %v1310_v8 = vrot.slane %v9520_v59, %v17819_v33  ;;  %v1339_v34 = vsel %vm550_vm4, %v9298_v52, %v9288_v1  ;;  %v1244_v10 = vadd.f32 %v1226_v48, %v9429_v61 }
 0x177   :  { %v1245_v7 = vadd.f32 %v1230_v3, %v9481_v30  ;;  %v1284_v37 = vadd.f32 %v1266_v62, %v9435_v24  ;;  %v1340_v55 = vsel %vm550_vm4, %v9243_v50, %v9298_v52  ;;  %v1285_v13 = vadd.f32 %v1270_v0, %v9498_v21  ;;  %v9695_v50 = vpop.permute.xlu1 %1555  ;;  %v9697_v52 = vpop.permute.xlu0 %1553 }
 0x178   :  { %v1350_v59 = vmul.f32 %v9512_v23, %v1340_v55  ;;  %v1351_v57 = vmul.f32 %v9512_v23, %v1339_v34  ;;  %v1364_v45 = vmul.f32 %v9523_v18, %v1340_v55  ;;  %v1324_v1 = vadd.f32 %v1306_v9, %v9467_v31 }
 0x179   :  { %v1365_v61 = vmul.f32 %v9523_v18, %v1339_v34  ;;  %v1378_v24 = vmul.f32 %v9526_v39, %v1340_v55  ;;  %v1379_v30 = vmul.f32 %v9526_v39, %v1339_v34  ;;  %v1325_v21 = vadd.f32 %v1310_v8, %v9546_v41 }
 0x17a   :  { %v9700_v23 = vadd.f32 %v1350_v59, %v1204_v20  ;;  %v9702_v5 = vadd.f32 %v1351_v57, %v1205_v14  ;;  %v1392_v31 = vmul.f32 %v9531_v12, %v1340_v55  ;;  %v9705_v16 = vadd.f32 %v1364_v45, %v1244_v10  ;;  %v17820_v20 = vld [vmem:[#allocation28_spill] sm:$0xff] }
 0x17b   :  { %v9707_v18 = vadd.f32 %v1365_v61, %v1245_v7  ;;  %v9709_v15 = vadd.f32 %v1378_v24, %v1284_v37  ;;  %v1393_v39 = vmul.f32 %v9531_v12, %v1339_v34  ;;  %v9712_v63 = vadd.f32 %v1379_v30, %v1285_v13  ;;  %v9734_v13 = vpop.permute.xlu1 %1559  ;;  %v9736_v59 = vpop.permute.xlu0 %1557 }
 0x17c   :  { %v1420_v58 = vstv %s9644_s0  ;;  %v1434_v48 = vstv %s9657_s10  ;;  %v1448_v3 = vstv %s9659_s11  ;;  %v1462_v41 = vstv %s9669_s12  ;;  %s10211_s0 = sld [smem:[#allocation8 + $0x19]]  ;;  %s10219_s10 = sld [smem:[#allocation8 + $0x1a]] }
 0x17d   :  { %v1417_v62 = vsel %vm625_vm5, %v17820_v20, %v9330_v26  ;;  %v1415_v0 = vsel %vm625_vm5, %v9385_v4, %v9383_v28  ;;  %v1416_v12 = vsel %vm625_vm5, %v9330_v26, %v9385_v4  ;;  %v9732_v10 = vadd.f32 %v1392_v31, %v1324_v1  ;;  %s10221_s11 = sld [smem:[#allocation8 + $0x1b]]  ;;  %s10362_s12 = sld [smem:[#allocation8 + $0x28]] }
 0x17e   :  { %v1421_v9 = vmul.f32 %v1420_v58, %v1417_v62  ;;  %v1435_v14 = vmul.f32 %v1434_v48, %v1417_v62  ;;  %v1449_v8 = vmul.f32 %v1448_v3, %v1417_v62  ;;  %v1463_v34 = vmul.f32 %v1462_v41, %v1417_v62 }
 0x17f   :  { %v1422_v7 = vmul.f32 %v1420_v58, %v1416_v12  ;;  %v1423_v37 = vmul.f32 %v1420_v58, %v1415_v0  ;;  %v1436_v55 = vmul.f32 %v1434_v48, %v1416_v12  ;;  %v9738_v57 = vadd.f32 %v1393_v39, %v1325_v21 }
 0x180   :  { %v9741_v45 = vadd.f32 %v1421_v9, %v9551_v49  ;;  %v9744_v26 = vadd.f32 %v1435_v14, %v9553_v43  ;;  %v1437_v4 = vmul.f32 %v1434_v48, %v1415_v0  ;;  %v9747_v61 = vadd.f32 %v1449_v8, %v9563_v51  ;;  %v9791_v14 = vpop.permute.xlu1 %1658  ;;  %v9793_v8 = vpop.permute.xlu0 %1656 }
 0x181   :  { %v9750_v1 = vadd.f32 %v1463_v34, %v9570_v32  ;;  %v9753_v24 = vadd.f32 %v1422_v7, %v9597_v17  ;;  %v9756_v30 = vadd.f32 %v1423_v37, %v9604_v6  ;;  %v1450_v49 = vmul.f32 %v1448_v3, %v1416_v12 }
 0x182   :  { %v1451_v21 = vmul.f32 %v1448_v3, %v1415_v0  ;;  %v1464_v43 = vmul.f32 %v1462_v41, %v1416_v12  ;;  %v1465_v31 = vmul.f32 %v1462_v41, %v1415_v0  ;;  %v9765_v51 = vadd.f32 %v1436_v55, %v9606_v11 }
 0x183   :  { %v1418_v32 = vsel %vm625_vm5, %v9460_v19, %v17820_v20  ;;  %v1413_v17 = vsel %vm625_vm5, %v9462_v54, %v9460_v19  ;;  %v1414_v6 = vsel %vm625_vm5, %v9383_v28, %v9462_v54  ;;  %v9780_v39 = vadd.f32 %v1437_v4, %v9608_v56 }
 0x184   :  { %v9783_v11 = vadd.f32 %v1450_v49, %v9611_v38  ;;  %v9786_v62 = vadd.f32 %v1451_v21, %v9613_v35  ;;  %v9789_v20 = vstv %s9717_s14  ;;  %v1426_v0 = vmul.f32 %v1420_v58, %v1418_v32  ;;  %s10364_s14 = sld [smem:[#allocation8 + $0x29]] }
 0x185   :  { %v1440_v12 = vmul.f32 %v1434_v48, %v1418_v32  ;;  %v1454_v9 = vmul.f32 %v1448_v3, %v1418_v32  ;;  %v1468_v19 = vmul.f32 %v1462_v41, %v1418_v32  ;;  %v9796_v28 = vadd.f32 %v1464_v43, %v9629_v42  ;;  %v9846_v32 = vpop.permute.xlu1 %1662 }
 0x186   :  { %v9799_v54 = vadd.f32 %v1465_v31, %v9634_v47  ;;  %v1424_v56 = vmul.f32 %v1420_v58, %v1414_v6  ;;  %v1425_v38 = vmul.f32 %v1420_v58, %v1413_v17  ;;  %v9802_v35 = vadd.f32 %v1426_v0, %v9640_v44 }
 0x187   :  { %v9805_v34 = vadd.f32 %v1440_v12, %v9650_v25  ;;  %v1438_v7 = vmul.f32 %v1434_v48, %v1414_v6  ;;  %v1439_v37 = vmul.f32 %v1434_v48, %v1413_v17  ;;  %v9808_v55 = vadd.f32 %v1454_v9, %v9661_v60  ;;  %v17821_v60 = vld [vmem:[#allocation29_spill] sm:$0xff]  ;;  %v17823_v9 = vld [vmem:[#allocation31_spill] sm:$0xff] }
 0x188   :  { %v9811_v42 = vadd.f32 %v1468_v19, %v9671_v36  ;;  %v9814_v47 = vadd.f32 %v1424_v56, %v9700_v23  ;;  %v9817_v4 = vadd.f32 %v1425_v38, %v9702_v5  ;;  %v1452_v58 = vmul.f32 %v1448_v3, %v1414_v6  ;;  %v9832_v23 = vld [vmem:[#allocation4 + $0x3] ss:$4 sm:$0x3f] }
 0x189   :  { %v1453_v44 = vmul.f32 %v1448_v3, %v1413_v17  ;;  %v1466_v49 = vmul.f32 %v1462_v41, %v1414_v6  ;;  %v1467_v21 = vmul.f32 %v1462_v41, %v1413_v17  ;;  %v9820_v25 = vstv %s9758_s15  ;;  %v9848_v17 = vpop.permute.xlu0 %1660  ;;  %v17824_v19 = vld [vmem:[#allocation20_spill] sm:$0xff]  ;;  %v17825_v38 = vld [vmem:[#allocation18_spill] sm:$0xff]  ;;  %s10374_s15 = sld [smem:[#allocation8 + $0x2a]] }
 0x18a   :  { %v9823_v43 = vstv %s9760_s9  ;;  %v9826_v48 = vstv %s9762_s2  ;;  %v1491_v36 = vsel %vm700_vm6, %v17821_v60, %v9514_v40  ;;  %v9835_v5 = vadd.f32 %v1438_v7, %v9705_v16  ;;  %s10390_s9 = sld [smem:[#allocation8 + $0x2b]]  ;;  %s10454_s2 = sld [smem:[#allocation8 + $0x38]] }
 0x18b   :  { %v9838_v3 = vadd.f32 %v1439_v37, %v9707_v18  ;;  %v9841_v41 = vadd.f32 %v1452_v58, %v9709_v15  ;;  %v9844_v31 = vadd.f32 %v1453_v44, %v9712_v63  ;;  %v1495_v6 = vmul.f32 %v9789_v20, %v1491_v36  ;;  %v17822_v18 = vld [vmem:[#allocation30_spill] sm:$0xff] }
 0x18c   :  { %v1509_v0 = vmul.f32 %v9820_v25, %v1491_v36  ;;  %v1523_v16 = vmul.f32 %v9823_v43, %v1491_v36  ;;  %v1537_v12 = vmul.f32 %v9826_v48, %v1491_v36  ;;  %v1489_v15 = vsel %vm700_vm6, %v17823_v9, %v17822_v18 }
 0x18d   :  { %v1490_v63 = vsel %vm700_vm6, %v9514_v40, %v17823_v9  ;;  %v9864_v56 = vrot.slane %v9832_v23, %v17824_v19  ;;  %v9868_v7 = vrot.slane %v9832_v23, %v17825_v38  ;;  %v9871_v37 = vadd.f32 %v1466_v49, %v9732_v10 }
 0x18e   :  { %v9874_v58 = vadd.f32 %v1467_v21, %v9738_v57  ;;  %v9877_v44 = vadd.f32 %v1495_v6, %v9741_v45  ;;  %v9880_v36 = vadd.f32 %v1509_v0, %v9744_v26  ;;  %v1496_v40 = vmul.f32 %v9789_v20, %v1490_v63  ;;  %v9912_v6 = vpop.permute.xlu1 %1666  ;;  %v9914_v0 = vpop.permute.xlu0 %1664 }
 0x18f   :  { %v1497_v9 = vmul.f32 %v9789_v20, %v1489_v15  ;;  %v1510_v19 = vmul.f32 %v9820_v25, %v1490_v63  ;;  %v1511_v38 = vmul.f32 %v9820_v25, %v1489_v15  ;;  %2443 = vrot.lane.b32.xlu1 %v9864_v56, %s17490_s5  ;;  %v9889_v10 = vadd.f32 %v1523_v16, %v9747_v61 }
 0x190   :  { %v9892_v57 = vadd.f32 %v1537_v12, %v9750_v1  ;;  %v1524_v45 = vmul.f32 %v9823_v43, %v1490_v63  ;;  %v1525_v26 = vmul.f32 %v9823_v43, %v1489_v15  ;;  %2441 = vrot.lane.b32.xlu0 %v9868_v7, %s17490_s5  ;;  %v9901_v49 = vadd.f32 %v1496_v40, %v9753_v24 }
 0x191   :  { %v9904_v21 = vadd.f32 %v1497_v9, %v9756_v30  ;;  %v1538_v61 = vmul.f32 %v9826_v48, %v1490_v63  ;;  %v1539_v1 = vmul.f32 %v9826_v48, %v1489_v15  ;;  %v9917_v16 = vadd.f32 %v1510_v19, %v9765_v51 }
 0x192   :  { %v9920_v24 = vadd.f32 %v1511_v38, %v9780_v39  ;;  %v9923_v30 = vadd.f32 %v1524_v45, %v9783_v11  ;;  %v9926_v12 = vadd.f32 %v1525_v26, %v9786_v62  ;;  %v1492_v15 = vsel %vm700_vm6, %v9600_v46, %v17821_v60 }
 0x193   :  { %v1487_v51 = vsel %vm700_vm6, %v9602_v2, %v9600_v46  ;;  %v1488_v39 = vsel %vm700_vm6, %v17822_v18, %v9602_v2  ;;  %v9942_v11 = vrot.slane %v9832_v23, %v17818_v22  ;;  %v1500_v62 = vmul.f32 %v9789_v20, %v1492_v15 }
 0x194   :  { %v1514_v60 = vmul.f32 %v9820_v25, %v1492_v15  ;;  %v1528_v63 = vmul.f32 %v9823_v43, %v1492_v15  ;;  %v1542_v19 = vmul.f32 %v9826_v48, %v1492_v15  ;;  %v9951_v46 = vadd.f32 %v1538_v61, %v9796_v28  ;;  %v9982_v61 = vpop.permute.xlu0 %1730  ;;  %v17826_v15 = vld [vmem:[#allocation17_spill] sm:$0xff] }
 0x195   :  { %v9954_v38 = vadd.f32 %v1539_v1, %v9799_v54  ;;  %v1498_v2 = vmul.f32 %v9789_v20, %v1488_v39  ;;  %v1499_v18 = vmul.f32 %v9789_v20, %v1487_v51  ;;  %2447 = vrot.lane.b32.xlu1 %v9942_v11, %s17490_s5  ;;  %v9961_v40 = vadd.f32 %v1500_v62, %v9802_v35 }
 0x196   :  { %v9964_v9 = vadd.f32 %v1514_v60, %v9805_v34  ;;  %v1512_v28 = vmul.f32 %v9820_v25, %v1488_v39  ;;  %v1513_v54 = vmul.f32 %v9820_v25, %v1487_v51  ;;  %v9969_v45 = vadd.f32 %v1528_v63, %v9808_v55  ;;  %v9980_v34 = vpop.permute.xlu1 %1732 }
 0x197   :  { %v9972_v20 = vadd.f32 %v1542_v19, %v9811_v42  ;;  %v9975_v26 = vadd.f32 %v1498_v2, %v9814_v47  ;;  %v9978_v35 = vadd.f32 %v1499_v18, %v9817_v4  ;;  %v1526_v1 = vmul.f32 %v9823_v43, %v1488_v39 }
 0x198   :  { %v1527_v25 = vmul.f32 %v9823_v43, %v1487_v51  ;;  %v1540_v55 = vmul.f32 %v9826_v48, %v1488_v39  ;;  %v1541_v42 = vmul.f32 %v9826_v48, %v1487_v51  ;;  %v9990_v47 = vrot.slane %v9832_v23, %v17826_v15  ;;  %v17827_v39 = vld [vmem:[#allocation21_spill] sm:$0xff] }
 0x199   :  { %v9993_v62 = vstv %s9898_s18  ;;  %v9996_v4 = vstv %s9908_s28  ;;  %v9999_v60 = vstv %s9910_s27  ;;  %v10002_v63 = vadd.f32 %v1512_v28, %v9835_v5  ;;  %s10507_s18 = sld [smem:[#allocation8 + $0x39]]  ;;  %s10513_s28 = sld [smem:[#allocation8 + $0x3a]] }
 0x19a   :  { %v10005_v19 = vadd.f32 %v1513_v54, %v9838_v3  ;;  %v10008_v43 = vadd.f32 %v1526_v1, %v9841_v41  ;;  %v10011_v48 = vadd.f32 %v1527_v25, %v9844_v31  ;;  %2445 = vrot.lane.b32.xlu0 %v9990_v47, %s17490_s5  ;;  %v10016_v51 = vstv %s9944_s19  ;;  %s10515_s27 = sld [smem:[#allocation8 + $0x3b]]  ;;  %s10667_s19 = sld [smem:[#allocation8 + $0x48]] }
 0x19b   :  { %v1565_v5 = vsel %vm775_vm7, %v9648_v27, %v9646_v53  ;;  %v10024_v3 = vrot.slane %v9832_v23, %v17819_v33  ;;  %v10028_v41 = vrot.slane %v9832_v23, %v17827_v39  ;;  %v10035_v54 = vadd.f32 %v1540_v55, %v9871_v37  ;;  %v10052_v37 = vpop.permute.xlu0 %1734 }
 0x19c   :  { %v1569_v31 = vmul.f32 %v9993_v62, %v1565_v5  ;;  %v1583_v2 = vmul.f32 %v9996_v4, %v1565_v5  ;;  %v1597_v18 = vmul.f32 %v9999_v60, %v1565_v5  ;;  %v1611_v28 = vmul.f32 %v10016_v51, %v1565_v5  ;;  %v10050_v5 = vpop.permute.xlu1 %1736 }
 0x19d   :  { %v10038_v1 = vadd.f32 %v1541_v42, %v9874_v58  ;;  %2449 = vrot.lane.b32.xlu1 %v10024_v3, %s17490_s5  ;;  %v1563_v23 = vsel %vm775_vm7, %v9697_v52, %v9695_v50  ;;  %v1564_v25 = vsel %vm775_vm7, %v9646_v53, %v9697_v52  ;;  %v1566_v42 = vsel %vm775_vm7, %v9734_v13, %v9648_v27 }
 0x19e   :  { %v10055_v58 = vadd.f32 %v1569_v31, %v9877_v44  ;;  %v10058_v55 = vadd.f32 %v1583_v2, %v9880_v36  ;;  %v1561_v53 = vsel %vm775_vm7, %v9736_v59, %v9734_v13  ;;  %2451 = vrot.lane.b32.xlu0 %v10028_v41, %s17490_s5  ;;  %v1570_v52 = vmul.f32 %v9993_v62, %v1564_v25 }
 0x19f   :  { %v1571_v44 = vmul.f32 %v9993_v62, %v1563_v23  ;;  %v1584_v36 = vmul.f32 %v9996_v4, %v1564_v25  ;;  %v1585_v31 = vmul.f32 %v9996_v4, %v1563_v23  ;;  %v10075_v2 = vadd.f32 %v1597_v18, %v9889_v10 }
 0x1a0   :  { %v10078_v27 = vadd.f32 %v1611_v28, %v9892_v57  ;;  %v1598_v33 = vmul.f32 %v9999_v60, %v1564_v25  ;;  %v1599_v13 = vmul.f32 %v9999_v60, %v1563_v23  ;;  %v1576_v22 = vadd.f32 %v1570_v52, %v9901_v49  ;;  %v10114_v52 = vpop.permute.xlu0 %1740 }
 0x1a1   :  { %v10088_v39 = vadd.f32 %v1571_v44, %v9904_v21  ;;  %v1612_v15 = vmul.f32 %v10016_v51, %v1564_v25  ;;  %v1613_v10 = vmul.f32 %v10016_v51, %v1563_v23  ;;  %2517 = vrot.lane.b32.xlu1 %v9864_v56, %s17494_s25  ;;  %v1590_v57 = vadd.f32 %v1584_v36, %v9917_v16 }
 0x1a2   :  { %v10098_v18 = vadd.f32 %v1585_v31, %v9920_v24  ;;  %v1604_v28 = vadd.f32 %v1598_v33, %v9923_v30  ;;  %v10102_v49 = vadd.f32 %v1599_v13, %v9926_v12  ;;  %2515 = vrot.lane.b32.xlu0 %v9868_v7, %s17494_s25  ;;  %v1574_v21 = vmul.f32 %v9993_v62, %v1566_v42  ;;  %v10112_v24 = vpop.permute.xlu1 %1738 }
 0x1a3   :  { %v1588_v23 = vmul.f32 %v9996_v4, %v1566_v42  ;;  %v1602_v25 = vmul.f32 %v9999_v60, %v1566_v42  ;;  %v1616_v16 = vmul.f32 %v10016_v51, %v1566_v42  ;;  %v1562_v33 = vsel %vm775_vm7, %v9695_v50, %v9736_v59 }
 0x1a4   :  { %v1573_v30 = vmul.f32 %v9993_v62, %v1561_v53  ;;  %v1587_v12 = vmul.f32 %v9996_v4, %v1561_v53  ;;  %v1601_v44 = vmul.f32 %v9999_v60, %v1561_v53  ;;  %v1618_v36 = vadd.f32 %v1612_v15, %v9951_v46 }
 0x1a5   :  { %v10125_v42 = vadd.f32 %v1613_v10, %v9954_v38  ;;  %v10128_v31 = vadd.f32 %v1574_v21, %v9961_v40  ;;  %v10131_v13 = vadd.f32 %v1588_v23, %v9964_v9  ;;  %2521 = vrot.lane.b32.xlu1 %v9942_v11, %s17494_s25  ;;  %v10136_v50 = vadd.f32 %v1602_v25, %v9969_v45 }
 0x1a6   :  { %v10139_v59 = vadd.f32 %v1616_v16, %v9972_v20  ;;  %v1572_v46 = vmul.f32 %v9993_v62, %v1562_v33  ;;  %v1586_v38 = vmul.f32 %v9996_v4, %v1562_v33  ;;  %v10144_v40 = vadd.f32 %v1573_v30, %v9978_v35  ;;  %2519 = vrot.lane.b32.xlu0 %v9990_v47, %s17494_s25 }
 0x1a7   :  { %v10147_v9 = vadd.f32 %v1587_v12, %v10005_v19  ;;  %v1600_v15 = vmul.f32 %v9999_v60, %v1562_v33  ;;  %v10151_v45 = vadd.f32 %v1601_v44, %v10011_v48  ;;  %v1614_v20 = vmul.f32 %v10016_v51, %v1562_v33  ;;  %v10169_v60 = vpop.permute.xlu1 %1806  ;;  %v10171_v48 = vpop.permute.xlu0 %1804 }
 0x1a8   :  { %v1615_v62 = vmul.f32 %v10016_v51, %v1561_v53  ;;  %v1675_v4 = vstv %s10082_s20  ;;  %v1689_v10 = vstv %s10084_s21  ;;  %v1578_v35 = vadd.f32 %v1572_v46, %v9975_v26  ;;  %17828 = vst [vmem:[#allocation32_spill] sm:$0xff] %v10171_v48  ;;  %s10669_s20 = sld [smem:[#allocation8 + $0x49]]  ;;  %s10681_s21 = sld [smem:[#allocation8 + $0x4a]] }
 0x1a9   :  { %v1592_v19 = vadd.f32 %v1586_v38, %v10002_v63  ;;  %v1606_v21 = vadd.f32 %v1600_v15, %v10008_v43  ;;  %v10163_v23 = vstv %s10094_s22  ;;  %2523 = vrot.lane.b32.xlu1 %v10024_v3, %s17494_s25  ;;  %v10174_v51 = vstv %s10104_s23  ;;  %s10697_s22 = sld [smem:[#allocation8 + $0x4b]]  ;;  %s10699_s23 = sld [smem:[#allocation8 + $0x58]] }
 0x1aa   :  { %v1672_v26 = vsel %vm114_vm0, %v9793_v8, %v9791_v14  ;;  %v1670_v63 = vsel %vm114_vm0, %v9848_v17, %v9846_v32  ;;  %v1671_v43 = vsel %vm114_vm0, %v9791_v14, %v9848_v17  ;;  %2525 = vrot.lane.b32.xlu0 %v10028_v41, %s17494_s25  ;;  %v1620_v30 = vadd.f32 %v1614_v20, %v10035_v54 }
 0x1ab   :  { %v1677_v53 = vmul.f32 %v1675_v4, %v1672_v26  ;;  %v1691_v25 = vmul.f32 %v1689_v10, %v1672_v26  ;;  %v1705_v16 = vmul.f32 %v10163_v23, %v1672_v26  ;;  %v1719_v33 = vmul.f32 %v10174_v51, %v1672_v26 }
 0x1ac   :  { %v1678_v12 = vmul.f32 %v1675_v4, %v1671_v43  ;;  %v1679_v44 = vmul.f32 %v1675_v4, %v1670_v63  ;;  %v1692_v46 = vmul.f32 %v1689_v10, %v1671_v43  ;;  %v10194_v38 = vadd.f32 %v1615_v62, %v10038_v1 }
 0x1ad   :  { %v10196_v15 = vadd.f32 %v1677_v53, %v1576_v22  ;;  %v10198_v14 = vadd.f32 %v1691_v25, %v1590_v57  ;;  %v1693_v17 = vmul.f32 %v1689_v10, %v1670_v63  ;;  %2591 = vrot.lane.b32.xlu1 %v9864_v56, %s17492_s26  ;;  %v10202_v26 = vadd.f32 %v1705_v16, %v1604_v28  ;;  %v10225_v28 = vpop.permute.xlu0 %1808 }
 0x1ae   :  { %v10204_v48 = vadd.f32 %v1719_v33, %v1618_v36  ;;  %v10207_v54 = vadd.f32 %v1678_v12, %v10088_v39  ;;  %v10209_v20 = vadd.f32 %v1679_v44, %v1578_v35  ;;  %v1706_v22 = vmul.f32 %v10163_v23, %v1671_v43  ;;  %2589 = vrot.lane.b32.xlu0 %v9868_v7, %s17492_s26  ;;  %v10223_v39 = vpop.permute.xlu1 %1810 }
 0x1af   :  { %v1707_v1 = vmul.f32 %v10163_v23, %v1670_v63  ;;  %v1720_v57 = vmul.f32 %v10174_v51, %v1671_v43  ;;  %v1721_v62 = vmul.f32 %v10174_v51, %v1670_v63  ;;  %v10228_v36 = vadd.f32 %v1692_v46, %v10098_v18 }
 0x1b0   :  { %v1673_v35 = vsel %vm114_vm0, %v9912_v6, %v9793_v8  ;;  %v1668_v63 = vsel %vm114_vm0, %v9914_v0, %v9912_v6  ;;  %v1669_v43 = vsel %vm114_vm0, %v9846_v32, %v9914_v0  ;;  %v10242_v53 = vadd.f32 %v1693_v17, %v1592_v19 }
 0x1b1   :  { %v10245_v18 = vadd.f32 %v1706_v22, %v10102_v49  ;;  %v10247_v25 = vadd.f32 %v1707_v1, %v1606_v21  ;;  %2595 = vrot.lane.b32.xlu1 %v9942_v11, %s17492_s26  ;;  %v10252_v8 = vstv %s10167_s24  ;;  %v1676_v16 = vmul.f32 %v1675_v4, %v1673_v35  ;;  %s10705_s24 = sld [smem:[#allocation8 + $0x59]] }
 0x1b2   :  { %v1690_v33 = vmul.f32 %v1689_v10, %v1673_v35  ;;  %v1704_v6 = vmul.f32 %v10163_v23, %v1673_v35  ;;  %v1718_v12 = vmul.f32 %v10174_v51, %v1673_v35  ;;  %v10257_v32 = vadd.f32 %v1720_v57, %v10125_v42  ;;  %2593 = vrot.lane.b32.xlu0 %v9990_v47, %s17492_s26 }
 0x1b3   :  { %v10259_v0 = vadd.f32 %v1721_v62, %v1620_v30  ;;  %v1680_v49 = vmul.f32 %v1675_v4, %v1669_v43  ;;  %v1681_v19 = vmul.f32 %v1675_v4, %v1668_v63  ;;  %v10264_v21 = vadd.f32 %v1676_v16, %v10055_v58  ;;  %v10283_v58 = vpop.permute.xlu1 %1812 }
 0x1b4   :  { %v10267_v44 = vadd.f32 %v1690_v33, %v10058_v55  ;;  %v1694_v46 = vmul.f32 %v1689_v10, %v1669_v43  ;;  %v1695_v17 = vmul.f32 %v1689_v10, %v1668_v63  ;;  %v10270_v42 = vadd.f32 %v1704_v6, %v10075_v2  ;;  %v10285_v55 = vpop.permute.xlu0 %1814 }
 0x1b5   :  { %v10273_v30 = vadd.f32 %v1718_v12, %v10078_v27  ;;  %v10276_v4 = vadd.f32 %v1680_v49, %v10144_v40  ;;  %v10279_v22 = vadd.f32 %v1681_v19, %v10128_v31  ;;  %2597 = vrot.lane.b32.xlu1 %v10024_v3, %s17492_s26  ;;  %v1708_v10 = vmul.f32 %v10163_v23, %v1669_v43 }
 0x1b6   :  { %v1709_v2 = vmul.f32 %v10163_v23, %v1668_v63  ;;  %v1722_v27 = vmul.f32 %v10174_v51, %v1669_v43  ;;  %v1723_v1 = vmul.f32 %v10174_v51, %v1668_v63  ;;  %v10292_v40 = vstv %s10211_s0  ;;  %2599 = vrot.lane.b32.xlu0 %v10028_v41, %s17492_s26  ;;  %s10718_s0 = sld [smem:[#allocation8 + $0x5a]] }
 0x1b7   :  { %v10295_v57 = vstv %s10219_s10  ;;  %v10298_v31 = vstv %s10221_s11  ;;  %v1746_v62 = vsel %vm165_vm1, %v9982_v61, %v9980_v34  ;;  %v1700_v23 = vadd.f32 %v1694_v46, %v10147_v9  ;;  %s10720_s10 = sld [smem:[#allocation8 + $0x5b]]  ;;  %s10924_s11 = sld [smem:[#allocation8 + $0x68]] }
 0x1b8   :  { %v1701_v35 = vadd.f32 %v1695_v17, %v10131_v13  ;;  %v1714_v51 = vadd.f32 %v1708_v10, %v10151_v45  ;;  %v1715_v63 = vadd.f32 %v1709_v2, %v10136_v50  ;;  %v1751_v43 = vmul.f32 %v10252_v8, %v1746_v62 }
 0x1b9   :  { %v1765_v16 = vmul.f32 %v10292_v40, %v1746_v62  ;;  %v1779_v33 = vmul.f32 %v10295_v57, %v1746_v62  ;;  %v1793_v6 = vmul.f32 %v10298_v31, %v1746_v62  ;;  %2665 = vrot.lane.b32.xlu1 %v9864_v56, %s17720_s13  ;;  %v1728_v12 = vadd.f32 %v1722_v27, %v10194_v38 }
 0x1ba   :  { %v10318_v9 = vadd.f32 %v1723_v1, %v10139_v59  ;;  %v1744_v13 = vsel %vm165_vm1, %v10052_v37, %v10050_v5  ;;  %v1745_v50 = vsel %vm165_vm1, %v9980_v34, %v10052_v37  ;;  %v10329_v45 = vadd.f32 %v1751_v43, %v10196_v15  ;;  %2663 = vrot.lane.b32.xlu0 %v9868_v7, %s17720_s13  ;;  %v10344_v34 = vpop.permute.xlu1 %1880  ;;  %v10346_v37 = vpop.permute.xlu0 %1878 }
 0x1bb   :  { %v10332_v49 = vadd.f32 %v1765_v16, %v10198_v14  ;;  %v1743_v59 = vsel %vm165_vm1, %v10050_v5, %v10112_v24  ;;  %v1742_v38 = vsel %vm165_vm1, %v10112_v24, %v10114_v52  ;;  %v1752_v15 = vmul.f32 %v10252_v8, %v1745_v50 }
 0x1bc   :  { %v1753_v14 = vmul.f32 %v10252_v8, %v1744_v13  ;;  %v1766_v19 = vmul.f32 %v10292_v40, %v1745_v50  ;;  %v1767_v46 = vmul.f32 %v10292_v40, %v1744_v13  ;;  %v10353_v17 = vadd.f32 %v1779_v33, %v10202_v26 }
 0x1bd   :  { %v10356_v5 = vadd.f32 %v1793_v6, %v10204_v48  ;;  %v1780_v24 = vmul.f32 %v10295_v57, %v1745_v50  ;;  %v1781_v10 = vmul.f32 %v10295_v57, %v1744_v13  ;;  %2669 = vrot.lane.b32.xlu1 %v9942_v11, %s17720_s13  ;;  %v10367_v2 = vadd.f32 %v1752_v15, %v10207_v54 }
 0x1be   :  { %v10370_v26 = vadd.f32 %v1753_v14, %v10209_v20  ;;  %v1794_v48 = vmul.f32 %v10298_v31, %v1745_v50  ;;  %v1795_v27 = vmul.f32 %v10298_v31, %v1744_v13  ;;  %v10377_v1 = vadd.f32 %v1766_v19, %v10228_v36  ;;  %2667 = vrot.lane.b32.xlu0 %v9990_v47, %s17720_s13  ;;  %v10405_v13 = vpop.permute.xlu1 %1884  ;;  %v10407_v50 = vpop.permute.xlu0 %1882 }
 0x1bf   :  { %v10380_v62 = vadd.f32 %v1767_v46, %v10242_v53  ;;  %v10383_v43 = vadd.f32 %v1780_v24, %v10245_v18  ;;  %v10386_v54 = vadd.f32 %v1781_v10, %v10247_v25  ;;  %v1754_v20 = vmul.f32 %v10252_v8, %v1743_v59 }
 0x1c0   :  { %v1768_v16 = vmul.f32 %v10292_v40, %v1743_v59  ;;  %v1782_v36 = vmul.f32 %v10295_v57, %v1743_v59  ;;  %v1796_v53 = vmul.f32 %v10298_v31, %v1743_v59  ;;  %v1747_v18 = vsel %vm165_vm1, %v10114_v52, %v9982_v61 }
 0x1c1   :  { %v1755_v25 = vmul.f32 %v10252_v8, %v1742_v38  ;;  %v1769_v33 = vmul.f32 %v10292_v40, %v1742_v38  ;;  %v1783_v6 = vmul.f32 %v10295_v57, %v1742_v38  ;;  %2671 = vrot.lane.b32.xlu1 %v10024_v3, %s17720_s13  ;;  %v10410_v59 = vadd.f32 %v1794_v48, %v10257_v32 }
 0x1c2   :  { %v10413_v61 = vadd.f32 %v1795_v27, %v10259_v0  ;;  %v10416_v52 = vadd.f32 %v1754_v20, %v10276_v4  ;;  %v10418_v15 = vadd.f32 %v1768_v16, %v1700_v23  ;;  %v10420_v14 = vadd.f32 %v1782_v36, %v1714_v51  ;;  %2673 = vrot.lane.b32.xlu0 %v10028_v41, %s17720_s13  ;;  %v10475_v48 = vpop.permute.xlu0 %1888 }
 0x1c3   :  { %v10422_v19 = vadd.f32 %v1796_v53, %v1728_v12  ;;  %v1750_v46 = vmul.f32 %v10252_v8, %v1747_v18  ;;  %v1764_v24 = vmul.f32 %v10292_v40, %v1747_v18  ;;  %v10429_v32 = vadd.f32 %v1755_v25, %v10279_v22 }
 0x1c4   :  { %v10431_v0 = vadd.f32 %v1769_v33, %v1701_v35  ;;  %v1778_v4 = vmul.f32 %v10295_v57, %v1747_v18  ;;  %v10434_v23 = vadd.f32 %v1783_v6, %v1715_v63  ;;  %v1792_v51 = vmul.f32 %v10298_v31, %v1747_v18 }
 0x1c5   :  { %v1797_v12 = vmul.f32 %v10298_v31, %v1742_v38  ;;  %v1823_v8 = vstv %s10362_s12  ;;  %v1837_v10 = vstv %s10364_s14  ;;  %2899 = vrot.lane.b32.xlu1 %v9864_v56, %s17725_s16  ;;  %v10443_v40 = vadd.f32 %v1750_v46, %v10264_v21  ;;  %v17829_v31 = vld [vmem:[#allocation32_spill] sm:$0xff]  ;;  %s10926_s12 = sld [smem:[#allocation8 + $0x69]]  ;;  %s10940_s14 = sld [smem:[#allocation8 + $0x6a]] }
 0x1c6   :  { %v10446_v22 = vadd.f32 %v1764_v24, %v10267_v44  ;;  %v10449_v35 = vadd.f32 %v1778_v4, %v10270_v42  ;;  %v10452_v57 = vstv %s10374_s15  ;;  %v10457_v63 = vstv %s10390_s9  ;;  %2897 = vrot.lane.b32.xlu0 %v9868_v7, %s17725_s16  ;;  %v10473_v42 = vpop.permute.xlu1 %1886  ;;  %s10942_s15 = sld [smem:[#allocation8 + $0x6b]]  ;;  %s11031_s9 = sld [smem:[#allocation8 + $0x78]] }
 0x1c7   :  { %v1820_v38 = vsel %vm240_vm2, %v17829_v31, %v10169_v60  ;;  %v1818_v21 = vsel %vm240_vm2, %v10225_v28, %v10223_v39  ;;  %v1819_v44 = vsel %vm240_vm2, %v10169_v60, %v10225_v28  ;;  %v10480_v53 = vadd.f32 %v1792_v51, %v10273_v30 }
 0x1c8   :  { %v1825_v27 = vmul.f32 %v1823_v8, %v1820_v38  ;;  %v1839_v20 = vmul.f32 %v1837_v10, %v1820_v38  ;;  %v1853_v16 = vmul.f32 %v10452_v57, %v1820_v38  ;;  %v1867_v36 = vmul.f32 %v10457_v63, %v1820_v38  ;;  %v10536_v38 = vpop.permute.xlu0 %2112 }
 0x1c9   :  { %v1826_v18 = vmul.f32 %v1823_v8, %v1819_v44  ;;  %v1827_v25 = vmul.f32 %v1823_v8, %v1818_v21  ;;  %v1840_v33 = vmul.f32 %v1837_v10, %v1819_v44  ;;  %2903 = vrot.lane.b32.xlu1 %v9942_v11, %s17725_s16  ;;  %v10485_v60 = vadd.f32 %v1797_v12, %v10318_v9 }
 0x1ca   :  { %v10488_v28 = vadd.f32 %v1825_v27, %v10329_v45  ;;  %v10491_v6 = vadd.f32 %v1839_v20, %v10332_v49  ;;  %v1841_v46 = vmul.f32 %v1837_v10, %v1818_v21  ;;  %v10494_v24 = vadd.f32 %v1853_v16, %v10353_v17  ;;  %2901 = vrot.lane.b32.xlu0 %v9990_v47, %s17725_s16 }
 0x1cb   :  { %v10497_v30 = vadd.f32 %v1867_v36, %v10356_v5  ;;  %v10500_v4 = vadd.f32 %v1826_v18, %v10367_v2  ;;  %v10503_v51 = vadd.f32 %v1827_v25, %v10370_v26  ;;  %v1854_v9 = vmul.f32 %v10452_v57, %v1819_v44 }
 0x1cc   :  { %v1855_v45 = vmul.f32 %v10452_v57, %v1818_v21  ;;  %v1868_v49 = vmul.f32 %v10457_v63, %v1819_v44  ;;  %v1869_v17 = vmul.f32 %v10457_v63, %v1818_v21  ;;  %v10518_v5 = vadd.f32 %v1840_v33, %v10377_v1  ;;  %v10534_v1 = vpop.permute.xlu1 %2114 }
 0x1cd   :  { %v1817_v2 = vsel %vm240_vm2, %v10223_v39, %v10283_v58  ;;  %v1816_v26 = vsel %vm240_vm2, %v10283_v58, %v10285_v55  ;;  %v1821_v12 = vsel %vm240_vm2, %v10285_v55, %v17829_v31  ;;  %2907 = vrot.lane.b32.xlu1 %v10028_v41, %s17725_s16  ;;  %v10539_v21 = vadd.f32 %v1841_v46, %v10380_v62 }
 0x1ce   :  { %v10542_v39 = vadd.f32 %v1854_v9, %v10383_v43  ;;  %v10545_v58 = vadd.f32 %v1855_v45, %v10386_v54  ;;  %v10548_v44 = vstv %s10454_s2  ;;  %v1828_v27 = vmul.f32 %v1823_v8, %v1817_v2  ;;  %2905 = vrot.lane.b32.xlu0 %v10024_v3, %s17725_s16  ;;  %s11033_s2 = sld [smem:[#allocation8 + $0x79]] }
 0x1cf   :  { %v1842_v55 = vmul.f32 %v1837_v10, %v1817_v2  ;;  %v1856_v31 = vmul.f32 %v10452_v57, %v1817_v2  ;;  %v1870_v20 = vmul.f32 %v10457_v63, %v1817_v2  ;;  %v10555_v62 = vadd.f32 %v1868_v49, %v10410_v59 }
 0x1d0   :  { %v10558_v43 = vadd.f32 %v1869_v17, %v10413_v61  ;;  %v1824_v16 = vmul.f32 %v1823_v8, %v1821_v12  ;;  %v1829_v54 = vmul.f32 %v1823_v8, %v1816_v26  ;;  %v10561_v36 = vadd.f32 %v1828_v27, %v10416_v52 }
 0x1d1   :  { %v10564_v18 = vadd.f32 %v1842_v55, %v10418_v15  ;;  %v1838_v25 = vmul.f32 %v1837_v10, %v1821_v12  ;;  %v1843_v33 = vmul.f32 %v1837_v10, %v1816_v26  ;;  %2973 = vrot.lane.b32.xlu1 %v9864_v56, %s17728_s29  ;;  %v10569_v59 = vadd.f32 %v1856_v31, %v10420_v14  ;;  %v10586_v14 = vpop.permute.xlu1 %2118 }
 0x1d2   :  { %v10572_v61 = vadd.f32 %v1870_v20, %v10422_v19  ;;  %v10575_v52 = vadd.f32 %v1824_v16, %v10443_v40  ;;  %v10578_v8 = vadd.f32 %v1829_v54, %v10429_v32  ;;  %v1852_v15 = vmul.f32 %v10452_v57, %v1821_v12  ;;  %2971 = vrot.lane.b32.xlu0 %v9868_v7, %s17728_s29  ;;  %v10588_v19 = vpop.permute.xlu0 %2116 }
 0x1d3   :  { %v1857_v46 = vmul.f32 %v10452_v57, %v1816_v26  ;;  %v1866_v10 = vmul.f32 %v10457_v63, %v1821_v12  ;;  %v1871_v9 = vmul.f32 %v10457_v63, %v1816_v26  ;;  %v10591_v40 = vstv %s10507_s18  ;;  %s11037_s18 = sld [smem:[#allocation8 + $0x7a]] }
 0x1d4   :  { %v10594_v45 = vstv %s10513_s28  ;;  %v10597_v32 = vstv %s10515_s27  ;;  %v1894_v57 = vsel %vm315_vm3, %v10346_v37, %v10344_v34  ;;  %v10604_v63 = vadd.f32 %v1838_v25, %v10446_v22  ;;  %s11051_s28 = sld [smem:[#allocation8 + $0x7b]]  ;;  %s11096_s27 = sld [smem:[#allocation8 + $0x88]] }
 0x1d5   :  { %v10607_v49 = vadd.f32 %v1843_v33, %v10431_v0  ;;  %v10610_v17 = vadd.f32 %v1852_v15, %v10449_v35  ;;  %v10613_v2 = vadd.f32 %v1857_v46, %v10434_v23  ;;  %2977 = vrot.lane.b32.xlu1 %v9942_v11, %s17728_s29  ;;  %v10618_v26 = vadd.f32 %v1866_v10, %v10480_v53 }
 0x1d6   :  { %v1899_v12 = vmul.f32 %v10548_v44, %v1894_v57  ;;  %v1913_v22 = vmul.f32 %v10591_v40, %v1894_v57  ;;  %v1927_v27 = vmul.f32 %v10594_v45, %v1894_v57  ;;  %v10624_v0 = vadd.f32 %v1871_v9, %v10485_v60  ;;  %2975 = vrot.lane.b32.xlu0 %v9990_v47, %s17728_s29  ;;  %v10659_v54 = vpop.permute.xlu0 %2120 }
 0x1d7   :  { %v1941_v35 = vmul.f32 %v10597_v32, %v1894_v57  ;;  %v1892_v23 = vsel %vm315_vm3, %v10407_v50, %v10405_v13  ;;  %v1893_v53 = vsel %vm315_vm3, %v10344_v34, %v10407_v50  ;;  %v1891_v31 = vsel %vm315_vm3, %v10405_v13, %v10473_v42 }
 0x1d8   :  { %v10638_v55 = vadd.f32 %v1899_v12, %v10488_v28  ;;  %v10641_v60 = vadd.f32 %v1913_v22, %v10491_v6  ;;  %v1890_v20 = vsel %vm315_vm3, %v10473_v42, %v10475_v48  ;;  %v1900_v34 = vmul.f32 %v10548_v44, %v1893_v53  ;;  %v10657_v6 = vpop.permute.xlu1 %2122 }
 0x1d9   :  { %v1901_v50 = vmul.f32 %v10548_v44, %v1892_v23  ;;  %v1914_v28 = vmul.f32 %v10591_v40, %v1893_v53  ;;  %v1915_v16 = vmul.f32 %v10591_v40, %v1892_v23  ;;  %2981 = vrot.lane.b32.xlu1 %v10028_v41, %s17728_s29  ;;  %v10662_v13 = vadd.f32 %v1927_v27, %v10494_v24 }
 0x1da   :  { %v1928_v42 = vmul.f32 %v10594_v45, %v1893_v53  ;;  %v1929_v25 = vmul.f32 %v10594_v45, %v1892_v23  ;;  %v1942_v33 = vmul.f32 %v10597_v32, %v1893_v53  ;;  %v10672_v15 = vadd.f32 %v1941_v35, %v10497_v30  ;;  %2979 = vrot.lane.b32.xlu0 %v10024_v3, %s17728_s29  ;;  %v10736_v53 = vpop.permute.xlu0 %2186 }
 0x1db   :  { %v10675_v46 = vadd.f32 %v1900_v34, %v10500_v4  ;;  %v10678_v10 = vadd.f32 %v1901_v50, %v10503_v51  ;;  %v1943_v24 = vmul.f32 %v10597_v32, %v1892_v23  ;;  %v10686_v9 = vadd.f32 %v1914_v28, %v10518_v5  ;;  %17830 = vst [vmem:[#allocation33_spill] sm:$0xff] %v10736_v53  ;;  %v17835_v53 = vld [vmem:[#allocation17_spill] sm:$0xff] }
 0x1dc   :  { %v10689_v57 = vadd.f32 %v1915_v16, %v10539_v21  ;;  %v10692_v30 = vadd.f32 %v1928_v42, %v10542_v39  ;;  %v10695_v4 = vadd.f32 %v1929_v25, %v10545_v58  ;;  %v1902_v51 = vmul.f32 %v10548_v44, %v1891_v31 }
 0x1dd   :  { %v1916_v12 = vmul.f32 %v10591_v40, %v1891_v31  ;;  %v1930_v5 = vmul.f32 %v10594_v45, %v1891_v31  ;;  %v1944_v22 = vmul.f32 %v10597_v32, %v1891_v31  ;;  %3047 = vrot.lane.b32.xlu1 %v9864_v56, %s17729_s30  ;;  %v10710_v21 = vadd.f32 %v1942_v33, %v10555_v62 }
 0x1de   :  { %v1895_v39 = vsel %vm315_vm3, %v10475_v48, %v10346_v37  ;;  %v1903_v58 = vmul.f32 %v10548_v44, %v1890_v20  ;;  %v1917_v27 = vmul.f32 %v10591_v40, %v1890_v20  ;;  %v10723_v35 = vadd.f32 %v1943_v24, %v10558_v43  ;;  %3045 = vrot.lane.b32.xlu0 %v9868_v7, %s17729_s30  ;;  %v10734_v48 = vpop.permute.xlu1 %2188  ;;  %v17831_v24 = vld [vmem:[#allocation18_spill] sm:$0xff] }
 0x1df   :  { %v10726_v23 = vadd.f32 %v1902_v51, %v10561_v36  ;;  %v10729_v62 = vadd.f32 %v1916_v12, %v10564_v18  ;;  %v1931_v37 = vmul.f32 %v10594_v45, %v1890_v20  ;;  %v10739_v43 = vadd.f32 %v1930_v5, %v10569_v59  ;;  %v10787_v5 = vpop.permute.xlu0 %2190 }
 0x1e0   :  { %v10742_v36 = vadd.f32 %v1944_v22, %v10572_v61  ;;  %v1898_v18 = vmul.f32 %v10548_v44, %v1895_v39  ;;  %v1912_v31 = vmul.f32 %v10591_v40, %v1895_v39  ;;  %v10747_v34 = vadd.f32 %v1903_v58, %v10578_v8  ;;  %17833 = vst [vmem:[#allocation23_spill] sm:$0xff] %v10787_v5  ;;  %v17834_v5 = vld [vmem:[#allocation20_spill] sm:$0xff] }
 0x1e1   :  { %v10750_v50 = vadd.f32 %v1917_v27, %v10607_v49  ;;  %v1926_v28 = vmul.f32 %v10594_v45, %v1895_v39  ;;  %v1940_v59 = vmul.f32 %v10597_v32, %v1895_v39  ;;  %3051 = vrot.lane.b32.xlu1 %v9942_v11, %s17729_s30  ;;  %v1945_v61 = vmul.f32 %v10597_v32, %v1890_v20  ;;  %v7298_v45 = vld [vmem:[#allocation4 + $0x2] ss:$4 sm:$0x3f] }
 0x1e2   :  { %v1904_v44 = vadd.f32 %v1898_v18, %v10575_v52  ;;  %v1953_v8 = vstv %s10667_s19  ;;  %v1993_v40 = vstv %s10669_s20  ;;  %v1918_v16 = vadd.f32 %v1912_v31, %v10604_v63  ;;  %3049 = vrot.lane.b32.xlu0 %v9990_v47, %s17729_s30  ;;  %v10785_v12 = vpop.permute.xlu1 %2192  ;;  %s11133_s19 = sld [smem:[#allocation8 + $0x89]]  ;;  %s11135_s20 = sld [smem:[#allocation8 + $0x8a]] }
 0x1e3   :  { %v1932_v49 = vadd.f32 %v1926_v28, %v10610_v17  ;;  %v1946_v42 = vadd.f32 %v1940_v59, %v10618_v26  ;;  %v10763_v25 = vmul.f32 %v7298_v45, %v1953_v8  ;;  %v10767_v52 = vmul.f32 %v7298_v45, %v1993_v40  ;;  %17832 = vst [vmem:[#allocation38_spill] sm:$0xff] %v10785_v12 }
 0x1e4   :  { %v2033_v32 = vstv %s10681_s21  ;;  %v2073_v20 = vstv %s10697_s22  ;;  %v10772_v33 = vstv %s10699_s23  ;;  %v10781_v51 = vstv %s10705_s24  ;;  %s11137_s21 = sld [smem:[#allocation8 + $0x8b]]  ;;  %s11254_s22 = sld [smem:[#allocation8 + $0xc]] }
 0x1e5   :  { %v1959_v63 = vrot.slane %v10763_v25, %v17831_v24  ;;  %v10776_v17 = vmul.f32 %v7298_v45, %v2033_v32  ;;  %v10778_v26 = vmul.f32 %v7298_v45, %v2073_v20  ;;  %3055 = vrot.lane.b32.xlu1 %v10028_v41, %s17729_s30  ;;  %v1999_v22 = vrot.slane %v10767_v52, %v17831_v24  ;;  %s11256_s23 = sld [smem:[#allocation8 + $0xd]]  ;;  %s11262_s24 = sld [smem:[#allocation8 + $0xe]] }
 0x1e6   :  { %v10792_v39 = vstv %s10718_s0  ;;  %v10795_v58 = vstv %s10720_s10  ;;  %v2128_v27 = vsel %vm550_vm4, %v10536_v38, %v10534_v1  ;;  %3053 = vrot.lane.b32.xlu0 %v10024_v3, %s17729_s30  ;;  %v1963_v12 = vrot.slane %v10763_v25, %v17834_v5  ;;  %s11272_s0 = sld [smem:[#allocation8 + $0xf]]  ;;  %s11311_s10 = sld [smem:[#allocation8 + $0x1c]] }
 0x1e7   :  { %v1986_v18 = vadd.f32 %v1959_v63, %v1904_v44  ;;  %v2039_v31 = vrot.slane %v10776_v17, %v17831_v24  ;;  %v2079_v28 = vrot.slane %v10778_v26, %v17831_v24  ;;  %v2132_v59 = vmul.f32 %v10772_v33, %v2128_v27 }
 0x1e8   :  { %v2026_v8 = vadd.f32 %v1999_v22, %v1918_v16  ;;  %v2146_v40 = vmul.f32 %v10781_v51, %v2128_v27  ;;  %v2160_v45 = vmul.f32 %v10792_v39, %v2128_v27  ;;  %v2174_v32 = vmul.f32 %v10795_v58, %v2128_v27 }
 0x1e9   :  { %v1937_v44 = vadd.f32 %v1931_v37, %v10613_v2  ;;  %v2066_v20 = vadd.f32 %v2039_v31, %v1932_v49  ;;  %v2106_v63 = vadd.f32 %v2079_v28, %v1946_v42  ;;  %3121 = vrot.lane.b32.xlu1 %v9864_v56, %s17755_s17  ;;  %v1951_v24 = vadd.f32 %v1945_v61, %v10624_v0  ;;  %v10833_v0 = vpop.permute.xlu1 %2196  ;;  %v10835_v61 = vpop.permute.xlu0 %2194 }
 0x1ea   :  { %v1967_v16 = vrot.slane %v10763_v25, %v17835_v53  ;;  %v2003_v22 = vrot.slane %v10767_v52, %v17834_v5  ;;  %v2007_v27 = vrot.slane %v10767_v52, %v17835_v53  ;;  %v10823_v2 = vadd.f32 %v2132_v59, %v1986_v18  ;;  %3119 = vrot.lane.b32.xlu0 %v9868_v7, %s17755_s17 }
 0x1eb   :  { %v10825_v37 = vadd.f32 %v2146_v40, %v2026_v8  ;;  %v10827_v49 = vadd.f32 %v2160_v45, %v2066_v20  ;;  %v2043_v56 = vrot.slane %v10776_v17, %v17834_v5  ;;  %v10837_v42 = vadd.f32 %v2174_v32, %v2106_v63 }
 0x1ec   :  { %v1987_v31 = vadd.f32 %v1963_v12, %v10638_v55  ;;  %v1988_v18 = vadd.f32 %v1967_v16, %v10675_v46  ;;  %v2047_v28 = vrot.slane %v10776_v17, %v17835_v53  ;;  %v2027_v59 = vadd.f32 %v2003_v22, %v10641_v60 }
 0x1ed   :  { %v2083_v8 = vrot.slane %v10778_v26, %v17834_v5  ;;  %v2087_v7 = vrot.slane %v10778_v26, %v17835_v53  ;;  %v2126_v40 = vsel %vm550_vm4, %v10588_v19, %v10586_v14  ;;  %3125 = vrot.lane.b32.xlu1 %v9942_v11, %s17755_s17  ;;  %v2028_v55 = vadd.f32 %v2007_v27, %v10686_v9  ;;  %v10877_v27 = vpop.permute.xlu1 %2262 }
 0x1ee   :  { %v2127_v60 = vsel %vm550_vm4, %v10534_v1, %v10588_v19  ;;  %v2134_v46 = vmul.f32 %v10772_v33, %v2126_v40  ;;  %v2148_v12 = vmul.f32 %v10781_v51, %v2126_v40  ;;  %v2067_v45 = vadd.f32 %v2043_v56, %v10662_v13  ;;  %3123 = vrot.lane.b32.xlu0 %v9990_v47, %s17755_s17  ;;  %v10879_v56 = vpop.permute.xlu0 %2260 }
 0x1ef   :  { %v2068_v32 = vadd.f32 %v2047_v28, %v10692_v30  ;;  %v2133_v20 = vmul.f32 %v10772_v33, %v2127_v60  ;;  %v2147_v63 = vmul.f32 %v10781_v51, %v2127_v60  ;;  %v2107_v11 = vadd.f32 %v2083_v8, %v10672_v15 }
 0x1f0   :  { %v2108_v9 = vadd.f32 %v2087_v7, %v10710_v21  ;;  %v2161_v1 = vmul.f32 %v10792_v39, %v2127_v60  ;;  %v2162_v19 = vmul.f32 %v10792_v39, %v2126_v40  ;;  %v10871_v16 = vadd.f32 %v2134_v46, %v1988_v18  ;;  %v17836_v21 = vld [vmem:[#allocation21_spill] sm:$0xff] }
 0x1f1   :  { %v10873_v13 = vadd.f32 %v2148_v12, %v2028_v55  ;;  %v2175_v30 = vmul.f32 %v10795_v58, %v2127_v60  ;;  %v2176_v22 = vmul.f32 %v10795_v58, %v2126_v40  ;;  %3129 = vrot.lane.b32.xlu1 %v10028_v41, %s17755_s17  ;;  %v10883_v47 = vadd.f32 %v2133_v20, %v1987_v31  ;;  %v17837_v60 = vld [vmem:[#allocation19_spill] sm:$0xff] }
 0x1f2   :  { %v10885_v15 = vadd.f32 %v2147_v63, %v2027_v59  ;;  %v1979_v18 = vrot.slane %v10763_v25, %v17836_v21  ;;  %v2019_v28 = vrot.slane %v10767_v52, %v17836_v21  ;;  %v10891_v8 = vadd.f32 %v2161_v1, %v2067_v45  ;;  %3127 = vrot.lane.b32.xlu0 %v10024_v3, %s17755_s17 }
 0x1f3   :  { %v10893_v7 = vadd.f32 %v2162_v19, %v2068_v32  ;;  %v2059_v40 = vrot.slane %v10776_v17, %v17836_v21  ;;  %v2099_v41 = vrot.slane %v10778_v26, %v17836_v21  ;;  %v10901_v31 = vadd.f32 %v2175_v30, %v2107_v11  ;;  %v10930_v30 = vpop.permute.xlu0 %2264 }
 0x1f4   :  { %v10903_v59 = vadd.f32 %v2176_v22, %v2108_v9  ;;  %v2129_v55 = vsel %vm550_vm4, %v10657_v6, %v10536_v38  ;;  %v1971_v46 = vrot.slane %v10763_v25, %v17837_v60  ;;  %v1991_v12 = vadd.f32 %v1979_v18, %v10747_v34  ;;  %v17838_v9 = vld [vmem:[#allocation22_spill] sm:$0xff] }
 0x1f5   :  { %v2031_v45 = vadd.f32 %v2019_v28, %v10750_v50  ;;  %v2137_v32 = vmul.f32 %v10772_v33, %v2129_v55  ;;  %v2151_v3 = vmul.f32 %v10781_v51, %v2129_v55  ;;  %v2071_v20 = vadd.f32 %v2059_v40, %v1937_v44  ;;  %v10928_v44 = vpop.permute.xlu1 %2266 }
 0x1f6   :  { %v2165_v63 = vmul.f32 %v10792_v39, %v2129_v55  ;;  %v2179_v11 = vmul.f32 %v10795_v58, %v2129_v55  ;;  %v1975_v1 = vrot.slane %v10763_v25, %v17838_v9  ;;  %v2111_v38 = vadd.f32 %v2099_v41, %v1951_v24 }
 0x1f7   :  { %v1989_v19 = vadd.f32 %v1971_v46, %v10678_v10  ;;  %v2011_v34 = vrot.slane %v10767_v52, %v17837_v60  ;;  %v2015_v50 = vrot.slane %v10767_v52, %v17838_v9  ;;  %v10932_v22 = vadd.f32 %v2137_v32, %v1991_v12 }
 0x1f8   :  { %v10934_v25 = vadd.f32 %v2151_v3, %v2031_v45  ;;  %v10936_v24 = vadd.f32 %v2165_v63, %v2071_v20  ;;  %v2051_v10 = vrot.slane %v10776_v17, %v17837_v60  ;;  %v10944_v52 = vadd.f32 %v2179_v11, %v2111_v38 }
 0x1f9   :  { %v1990_v18 = vadd.f32 %v1975_v1, %v10726_v23  ;;  %v2055_v28 = vrot.slane %v10776_v17, %v17838_v9  ;;  %v2091_v40 = vrot.slane %v10778_v26, %v17837_v60  ;;  %v2029_v41 = vadd.f32 %v2011_v34, %v10689_v57 }
 0x1fa   :  { %v2095_v55 = vrot.slane %v10778_v26, %v17838_v9  ;;  %v2124_v46 = vsel %vm550_vm4, %v10659_v54, %v10657_v6  ;;  %v2125_v23 = vsel %vm550_vm4, %v10586_v14, %v10659_v54  ;;  %v2030_v17 = vadd.f32 %v2015_v50, %v10729_v62  ;;  %v17839_v50 = vld [vmem:[#allocation33_spill] sm:$0xff] }
 0x1fb   :  { %v2069_v12 = vadd.f32 %v2051_v10, %v10695_v4  ;;  %v2135_v45 = vmul.f32 %v10772_v33, %v2125_v23  ;;  %v2136_v57 = vmul.f32 %v10772_v33, %v2124_v46  ;;  %v2070_v26 = vadd.f32 %v2055_v28, %v10739_v43  ;;  %v10975_v33 = vpop.permute.xlu1 %2270  ;;  %v10977_v43 = vpop.permute.xlu0 %2268 }
 0x1fc   :  { %v2149_v32 = vmul.f32 %v10781_v51, %v2125_v23  ;;  %v2150_v6 = vmul.f32 %v10781_v51, %v2124_v46  ;;  %v2163_v3 = vmul.f32 %v10792_v39, %v2125_v23  ;;  %v2109_v14 = vadd.f32 %v2091_v40, %v10723_v35 }
 0x1fd   :  { %v2110_v54 = vadd.f32 %v2095_v55, %v10742_v36  ;;  %v10972_v4 = vadd.f32 %v2135_v45, %v1989_v19  ;;  %v2164_v62 = vmul.f32 %v10792_v39, %v2124_v46  ;;  %v10979_v20 = vadd.f32 %v2136_v57, %v1990_v18 }
 0x1fe   :  { %v10981_v63 = vadd.f32 %v2149_v32, %v2029_v41  ;;  %v2177_v51 = vmul.f32 %v10795_v58, %v2125_v23  ;;  %v2178_v11 = vmul.f32 %v10795_v58, %v2124_v46  ;;  %v2156_v35 = vadd.f32 %v2150_v6, %v2030_v17  ;;  %v17840_v46 = vld [vmem:[#allocation38_spill] sm:$0xff]  ;;  %v17841_v23 = vld [vmem:[#allocation23_spill] sm:$0xff] }
 0x1ff   :  { %v10985_v1 = vadd.f32 %v2163_v3, %v2069_v12  ;;  %v2205_v36 = vstv %s10924_s11  ;;  %v2219_v38 = vstv %s10926_s12  ;;  %v2170_v19 = vadd.f32 %v2164_v62, %v2070_v26  ;;  %v11021_v6 = vpop.permute.xlu1 %2336  ;;  %v11023_v3 = vpop.permute.xlu0 %2334  ;;  %s11342_s11 = sld [smem:[#allocation8 + $0x1d]]  ;;  %s11344_s12 = sld [smem:[#allocation8 + $0x1e]] }
 0x200   :  { %v2233_v34 = vstv %s10940_s14  ;;  %v2247_v39 = vstv %s10942_s15  ;;  %v2202_v10 = vsel %vm625_vm5, %v17839_v50, %v10734_v48  ;;  %v10995_v55 = vadd.f32 %v2177_v51, %v2109_v14  ;;  %s11346_s14 = sld [smem:[#allocation8 + $0x1f]]  ;;  %s11455_s15 = sld [smem:[#allocation8 + $0x2c]] }
 0x201   :  { %v2206_v18 = vmul.f32 %v2205_v36, %v2202_v10  ;;  %v2220_v28 = vmul.f32 %v2219_v38, %v2202_v10  ;;  %v2234_v40 = vmul.f32 %v2233_v34, %v2202_v10  ;;  %v2248_v41 = vmul.f32 %v2247_v39, %v2202_v10 }
 0x202   :  { %v10997_v58 = vadd.f32 %v2178_v11, %v2110_v54  ;;  %v2200_v17 = vsel %vm625_vm5, %v17841_v23, %v17840_v46  ;;  %v2201_v12 = vsel %vm625_vm5, %v10734_v48, %v17841_v23  ;;  %v2203_v26 = vsel %vm625_vm5, %v10833_v0, %v17839_v50 }
 0x203   :  { %v11008_v45 = vadd.f32 %v2206_v18, %v10823_v2  ;;  %v11011_v57 = vadd.f32 %v2220_v28, %v10825_v37  ;;  %v2198_v32 = vsel %vm625_vm5, %v10835_v61, %v10833_v0  ;;  %v2207_v48 = vmul.f32 %v2205_v36, %v2201_v12 }
 0x204   :  { %v2208_v2 = vmul.f32 %v2205_v36, %v2200_v17  ;;  %v2221_v14 = vmul.f32 %v2219_v38, %v2201_v12  ;;  %v2222_v54 = vmul.f32 %v2219_v38, %v2200_v17  ;;  %v11026_v37 = vadd.f32 %v2234_v40, %v10827_v49 }
 0x205   :  { %v11029_v62 = vadd.f32 %v2248_v41, %v10837_v42  ;;  %v2235_v51 = vmul.f32 %v2233_v34, %v2201_v12  ;;  %v2236_v11 = vmul.f32 %v2233_v34, %v2200_v17  ;;  %v2213_v0 = vadd.f32 %v2207_v48, %v10883_v47  ;;  %v11057_v48 = vpop.permute.xlu1 %2340 }
 0x206   :  { %v2214_v50 = vadd.f32 %v2208_v2, %v10871_v16  ;;  %v2249_v10 = vmul.f32 %v2247_v39, %v2201_v12  ;;  %v2250_v18 = vmul.f32 %v2247_v39, %v2200_v17  ;;  %v11040_v49 = vadd.f32 %v2221_v14, %v10885_v15 }
 0x207   :  { %v11043_v42 = vadd.f32 %v2222_v54, %v10873_v13  ;;  %v11046_v28 = vadd.f32 %v2235_v51, %v10891_v8  ;;  %v11049_v40 = vadd.f32 %v2236_v11, %v10893_v7  ;;  %v2211_v47 = vmul.f32 %v2205_v36, %v2203_v26  ;;  %v11059_v8 = vpop.permute.xlu0 %2338 }
 0x208   :  { %v2225_v16 = vmul.f32 %v2219_v38, %v2203_v26  ;;  %v2239_v41 = vmul.f32 %v2233_v34, %v2203_v26  ;;  %v2253_v23 = vmul.f32 %v2247_v39, %v2203_v26  ;;  %v2199_v15 = vsel %vm625_vm5, %v17840_v46, %v10835_v61 }
 0x209   :  { %v2210_v17 = vmul.f32 %v2205_v36, %v2198_v32  ;;  %v2224_v13 = vmul.f32 %v2219_v38, %v2198_v32  ;;  %v2238_v12 = vmul.f32 %v2233_v34, %v2198_v32  ;;  %v11062_v7 = vadd.f32 %v2249_v10, %v10901_v31 }
 0x20a   :  { %v11065_v2 = vadd.f32 %v2250_v18, %v10903_v59  ;;  %v11068_v26 = vadd.f32 %v2211_v47, %v10932_v22  ;;  %v11071_v61 = vadd.f32 %v2225_v16, %v10934_v25  ;;  %v11074_v46 = vadd.f32 %v2239_v41, %v10936_v24 }
 0x20b   :  { %v11077_v14 = vadd.f32 %v2253_v23, %v10944_v52  ;;  %v2209_v54 = vmul.f32 %v2205_v36, %v2199_v15  ;;  %v2223_v31 = vmul.f32 %v2219_v38, %v2199_v15  ;;  %v11080_v51 = vadd.f32 %v2210_v17, %v10979_v20 }
 0x20c   :  { %v11082_v59 = vadd.f32 %v2224_v13, %v2156_v35  ;;  %v2237_v22 = vmul.f32 %v2233_v34, %v2199_v15  ;;  %v11084_v11 = vadd.f32 %v2238_v12, %v2170_v19  ;;  %v2251_v25 = vmul.f32 %v2247_v39, %v2199_v15  ;;  %v11113_v19 = vpop.permute.xlu0 %2342 }
 0x20d   :  { %v2252_v10 = vmul.f32 %v2247_v39, %v2198_v32  ;;  %v2279_v18 = vstv %s11031_s9  ;;  %v2293_v47 = vstv %s11033_s2  ;;  %v2215_v24 = vadd.f32 %v2209_v54, %v10972_v4  ;;  %s11457_s9 = sld [smem:[#allocation8 + $0x2d]]  ;;  %s11465_s2 = sld [smem:[#allocation8 + $0x2e]] }
 0x20e   :  { %v11090_v52 = vadd.f32 %v2223_v31, %v10981_v63  ;;  %v11093_v36 = vadd.f32 %v2237_v22, %v10985_v1  ;;  %v2307_v38 = vstv %s11037_s18  ;;  %v2321_v20 = vstv %s11051_s28  ;;  %v11111_v1 = vpop.permute.xlu1 %2344  ;;  %s11479_s18 = sld [smem:[#allocation8 + $0x2f]]  ;;  %s11529_s28 = sld [smem:[#allocation8 + $0x3c]] }
 0x20f   :  { %v2276_v35 = vsel %vm700_vm6, %v10879_v56, %v10877_v27  ;;  %v2274_v4 = vsel %vm700_vm6, %v10930_v30, %v10928_v44  ;;  %v2275_v63 = vsel %vm700_vm6, %v10877_v27, %v10930_v30  ;;  %v11116_v41 = vadd.f32 %v2251_v25, %v10995_v55 }
 0x210   :  { %v2280_v34 = vmul.f32 %v2279_v18, %v2276_v35  ;;  %v2294_v39 = vmul.f32 %v2293_v47, %v2276_v35  ;;  %v2308_v32 = vmul.f32 %v2307_v38, %v2276_v35  ;;  %v2322_v16 = vmul.f32 %v2321_v20, %v2276_v35  ;;  %v11156_v35 = vpop.permute.xlu0 %2441 }
 0x211   :  { %v2281_v23 = vmul.f32 %v2279_v18, %v2275_v63  ;;  %v2282_v15 = vmul.f32 %v2279_v18, %v2274_v4  ;;  %v2295_v17 = vmul.f32 %v2293_v47, %v2275_v63  ;;  %v2258_v13 = vadd.f32 %v2252_v10, %v10997_v58 }
 0x212   :  { %v11120_v12 = vadd.f32 %v2280_v34, %v11008_v45  ;;  %v2300_v27 = vadd.f32 %v2294_v39, %v11011_v57  ;;  %v2296_v30 = vmul.f32 %v2293_v47, %v2274_v4  ;;  %v11124_v54 = vadd.f32 %v2308_v32, %v11026_v37 }
 0x213   :  { %v11127_v31 = vadd.f32 %v2322_v16, %v11029_v62  ;;  %v11129_v22 = vadd.f32 %v2281_v23, %v2213_v0  ;;  %v11131_v55 = vadd.f32 %v2282_v15, %v2214_v50  ;;  %v2309_v58 = vmul.f32 %v2307_v38, %v2275_v63  ;;  %v11154_v50 = vpop.permute.xlu1 %2443 }
 0x214   :  { %v2310_v25 = vmul.f32 %v2307_v38, %v2274_v4  ;;  %v2323_v45 = vmul.f32 %v2321_v20, %v2275_v63  ;;  %v2324_v10 = vmul.f32 %v2321_v20, %v2274_v4  ;;  %v11140_v57 = vadd.f32 %v2295_v17, %v11040_v49 }
 0x215   :  { %v2277_v37 = vsel %vm700_vm6, %v10975_v33, %v10879_v56  ;;  %v2272_v62 = vsel %vm700_vm6, %v10977_v43, %v10975_v33  ;;  %v2273_v0 = vsel %vm700_vm6, %v10928_v44, %v10977_v43  ;;  %v11159_v49 = vadd.f32 %v2296_v30, %v11043_v42 }
 0x216   :  { %v11162_v4 = vadd.f32 %v2309_v58, %v11046_v28  ;;  %v11165_v56 = vadd.f32 %v2310_v25, %v11049_v40  ;;  %v11168_v63 = vstv %s11096_s27  ;;  %v2285_v33 = vmul.f32 %v2279_v18, %v2277_v37  ;;  %s11562_s27 = sld [smem:[#allocation8 + $0x3d]] }
 0x217   :  { %v2299_v34 = vmul.f32 %v2293_v47, %v2277_v37  ;;  %v2313_v39 = vmul.f32 %v2307_v38, %v2277_v37  ;;  %v2327_v32 = vmul.f32 %v2321_v20, %v2277_v37  ;;  %v11171_v44 = vadd.f32 %v2323_v45, %v11062_v7  ;;  %v11193_v45 = vpop.permute.xlu1 %2447 }
 0x218   :  { %v11174_v43 = vadd.f32 %v2324_v10, %v11065_v2  ;;  %v2283_v42 = vmul.f32 %v2279_v18, %v2273_v0  ;;  %v2284_v16 = vmul.f32 %v2279_v18, %v2272_v62  ;;  %v11177_v28 = vadd.f32 %v2285_v33, %v11068_v26 }
 0x219   :  { %v11180_v40 = vadd.f32 %v2299_v34, %v11071_v61  ;;  %v2297_v23 = vmul.f32 %v2293_v47, %v2273_v0  ;;  %v2298_v15 = vmul.f32 %v2293_v47, %v2272_v62  ;;  %v11183_v17 = vadd.f32 %v2313_v39, %v11074_v46  ;;  %v11195_v61 = vpop.permute.xlu0 %2445 }
 0x21a   :  { %v11186_v7 = vadd.f32 %v2327_v32, %v11077_v14  ;;  %v11188_v2 = vadd.f32 %v2283_v42, %v2215_v24  ;;  %v11191_v18 = vadd.f32 %v2284_v16, %v11080_v51  ;;  %v2311_v30 = vmul.f32 %v2307_v38, %v2273_v0 }
 0x21b   :  { %v2312_v26 = vmul.f32 %v2307_v38, %v2272_v62  ;;  %v2325_v58 = vmul.f32 %v2321_v20, %v2273_v0  ;;  %v2326_v25 = vmul.f32 %v2321_v20, %v2272_v62  ;;  %v2367_v47 = vstv %s11133_s19  ;;  %s11564_s19 = sld [smem:[#allocation8 + $0x3e]] }
 0x21c   :  { %v2381_v10 = vstv %s11135_s20  ;;  %v11200_v46 = vstv %s11137_s21  ;;  %v2350_v14 = vsel %vm775_vm7, %v11023_v3, %v11021_v6  ;;  %v11207_v51 = vadd.f32 %v2297_v23, %v11090_v52  ;;  %s11566_s20 = sld [smem:[#allocation8 + $0x3f]]  ;;  %s11664_s21 = sld [smem:[#allocation8 + $0x4c]] }
 0x21d   :  { %v2304_v24 = vadd.f32 %v2298_v15, %v11082_v59  ;;  %v11211_v38 = vadd.f32 %v2311_v30, %v11093_v36  ;;  %v2318_v20 = vadd.f32 %v2312_v26, %v11084_v11  ;;  %v2354_v37 = vmul.f32 %v11168_v63, %v2350_v14 }
 0x21e   :  { %v2368_v62 = vmul.f32 %v2367_v47, %v2350_v14  ;;  %v2382_v0 = vmul.f32 %v2381_v10, %v2350_v14  ;;  %v2396_v33 = vmul.f32 %v11200_v46, %v2350_v14  ;;  %v11217_v34 = vadd.f32 %v2325_v58, %v11116_v41 }
 0x21f   :  { %v11219_v39 = vadd.f32 %v2326_v25, %v2258_v13  ;;  %v2348_v59 = vsel %vm775_vm7, %v11059_v8, %v11057_v48  ;;  %v2349_v11 = vsel %vm775_vm7, %v11021_v6, %v11059_v8  ;;  %v11230_v52 = vadd.f32 %v2354_v37, %v11120_v12  ;;  %v11244_v12 = vpop.permute.xlu1 %2449 }
 0x220   :  { %v11232_v36 = vadd.f32 %v2368_v62, %v2300_v27  ;;  %v2351_v41 = vsel %vm775_vm7, %v11111_v1, %v11023_v3  ;;  %v2346_v13 = vsel %vm775_vm7, %v11113_v19, %v11111_v1  ;;  %v2355_v32 = vmul.f32 %v11168_v63, %v2349_v11  ;;  %v11246_v27 = vpop.permute.xlu0 %2451 }
 0x221   :  { %v2356_v42 = vmul.f32 %v11168_v63, %v2348_v59  ;;  %v2369_v6 = vmul.f32 %v2367_v47, %v2349_v11  ;;  %v2370_v8 = vmul.f32 %v2367_v47, %v2348_v59  ;;  %v11249_v16 = vadd.f32 %v2382_v0, %v11124_v54 }
 0x222   :  { %v11252_v3 = vadd.f32 %v2396_v33, %v11127_v31  ;;  %v2383_v23 = vmul.f32 %v2381_v10, %v2349_v11  ;;  %v2384_v15 = vmul.f32 %v2381_v10, %v2348_v59  ;;  %v2361_v1 = vadd.f32 %v2355_v32, %v11129_v22 }
 0x223   :  { %v2362_v30 = vadd.f32 %v2356_v42, %v11131_v55  ;;  %v2397_v26 = vmul.f32 %v11200_v46, %v2349_v11  ;;  %v2398_v58 = vmul.f32 %v11200_v46, %v2348_v59  ;;  %v2375_v54 = vadd.f32 %v2369_v6, %v11140_v57 }
 0x224   :  { %v11266_v31 = vadd.f32 %v2370_v8, %v11159_v49  ;;  %v2389_v25 = vadd.f32 %v2383_v23, %v11162_v4  ;;  %v11270_v14 = vadd.f32 %v2384_v15, %v11165_v56  ;;  %v2359_v22 = vmul.f32 %v11168_v63, %v2351_v41 }
 0x225   :  { %v2373_v55 = vmul.f32 %v2367_v47, %v2351_v41  ;;  %v2387_v37 = vmul.f32 %v2381_v10, %v2351_v41  ;;  %v2401_v62 = vmul.f32 %v11200_v46, %v2351_v41  ;;  %v2347_v57 = vsel %vm775_vm7, %v11057_v48, %v11113_v19  ;;  %v11291_v41 = vpop.permute.xlu1 %2517  ;;  %v11293_v48 = vpop.permute.xlu0 %2515 }
 0x226   :  { %v2358_v49 = vmul.f32 %v11168_v63, %v2346_v13  ;;  %v2372_v0 = vmul.f32 %v2367_v47, %v2346_v13  ;;  %v2386_v4 = vmul.f32 %v2381_v10, %v2346_v13  ;;  %v2403_v56 = vadd.f32 %v2397_v26, %v11171_v44 }
 0x227   :  { %v11283_v33 = vadd.f32 %v2398_v58, %v11174_v43  ;;  %v11286_v59 = vadd.f32 %v2359_v22, %v11177_v28  ;;  %v11289_v11 = vadd.f32 %v2373_v55, %v11180_v40  ;;  %v11296_v19 = vadd.f32 %v2387_v37, %v11183_v17 }
 0x228   :  { %v11299_v44 = vadd.f32 %v2401_v62, %v11186_v7  ;;  %v2357_v43 = vmul.f32 %v11168_v63, %v2347_v57  ;;  %v2371_v32 = vmul.f32 %v2367_v47, %v2347_v57  ;;  %v2364_v28 = vadd.f32 %v2358_v49, %v11191_v18 }
 0x229   :  { %v2378_v42 = vadd.f32 %v2372_v0, %v2304_v24  ;;  %v2385_v40 = vmul.f32 %v2381_v10, %v2347_v57  ;;  %v2392_v6 = vadd.f32 %v2386_v4, %v2318_v20  ;;  %v2399_v8 = vmul.f32 %v11200_v46, %v2347_v57  ;;  %v11328_v20 = vpop.permute.xlu0 %2519 }
 0x22a   :  { %v2400_v23 = vmul.f32 %v11200_v46, %v2346_v13  ;;  %v2460_v15 = vstv %s11254_s22  ;;  %v2474_v26 = vstv %s11256_s23  ;;  %v2363_v17 = vadd.f32 %v2357_v43, %v11188_v2  ;;  %s11666_s22 = sld [smem:[#allocation8 + $0x4d]]  ;;  %s11680_s23 = sld [smem:[#allocation8 + $0x4e]] }
 0x22b   :  { %v2377_v7 = vadd.f32 %v2371_v32, %v11207_v51  ;;  %v2391_v58 = vadd.f32 %v2385_v40, %v11211_v38  ;;  %v2488_v22 = vstv %s11262_s24  ;;  %v2502_v63 = vstv %s11272_s0  ;;  %v11326_v38 = vpop.permute.xlu1 %2521  ;;  %s11694_s24 = sld [smem:[#allocation8 + $0x4f]]  ;;  %s11696_s0 = sld [smem:[#allocation8 + $0x5c]] }
 0x22c   :  { %v2457_v18 = vsel %vm114_vm0, %v11156_v35, %v11154_v50  ;;  %v2455_v47 = vsel %vm114_vm0, %v11195_v61, %v11193_v45  ;;  %v2456_v2 = vsel %vm114_vm0, %v11154_v50, %v11195_v61  ;;  %v2405_v13 = vadd.f32 %v2399_v8, %v11217_v34 }
 0x22d   :  { %v2462_v10 = vmul.f32 %v2460_v15, %v2457_v18  ;;  %v2476_v46 = vmul.f32 %v2474_v26, %v2457_v18  ;;  %v2490_v51 = vmul.f32 %v2488_v22, %v2457_v18  ;;  %v2504_v24 = vmul.f32 %v2502_v63, %v2457_v18 }
 0x22e   :  { %v2463_v55 = vmul.f32 %v2460_v15, %v2456_v2  ;;  %v2464_v37 = vmul.f32 %v2460_v15, %v2455_v47  ;;  %v2477_v62 = vmul.f32 %v2474_v26, %v2456_v2  ;;  %v2406_v57 = vadd.f32 %v2400_v23, %v11219_v39 }
 0x22f   :  { %v11332_v49 = vadd.f32 %v2462_v10, %v2361_v1  ;;  %v2482_v0 = vadd.f32 %v2476_v46, %v2375_v54  ;;  %v2478_v4 = vmul.f32 %v2474_v26, %v2455_v47  ;;  %v11334_v50 = vadd.f32 %v2490_v51, %v2389_v25 }
 0x230   :  { %v11336_v61 = vadd.f32 %v2504_v24, %v2403_v56  ;;  %v11338_v43 = vadd.f32 %v2463_v55, %v2362_v30  ;;  %v11340_v32 = vadd.f32 %v2464_v37, %v2363_v17  ;;  %v2491_v34 = vmul.f32 %v2488_v22, %v2456_v2  ;;  %v11373_v17 = vpop.permute.xlu0 %2525 }
 0x231   :  { %v2492_v40 = vmul.f32 %v2488_v22, %v2455_v47  ;;  %v2505_v8 = vmul.f32 %v2502_v63, %v2456_v2  ;;  %v2506_v18 = vmul.f32 %v2502_v63, %v2455_v47  ;;  %v11349_v39 = vadd.f32 %v2477_v62, %v11266_v31 }
 0x232   :  { %v2454_v1 = vsel %vm114_vm0, %v11193_v45, %v11244_v12  ;;  %v2453_v30 = vsel %vm114_vm0, %v11244_v12, %v11246_v27  ;;  %v2458_v54 = vsel %vm114_vm0, %v11246_v27, %v11156_v35  ;;  %v11363_v25 = vadd.f32 %v2478_v4, %v2377_v7  ;;  %v2524_v45 = vpop.permute.xlu1 %2523 }
 0x233   :  { %v11366_v31 = vadd.f32 %v2491_v34, %v11270_v14  ;;  %v11368_v56 = vadd.f32 %v2492_v40, %v2391_v58  ;;  %v11371_v23 = vstv %s11311_s10  ;;  %v2465_v47 = vmul.f32 %v2460_v15, %v2454_v1  ;;  %s11701_s10 = sld [smem:[#allocation8 + $0x5d]] }
 0x234   :  { %v2479_v2 = vmul.f32 %v2474_v26, %v2454_v1  ;;  %v2493_v12 = vmul.f32 %v2488_v22, %v2454_v1  ;;  %v2507_v10 = vmul.f32 %v2502_v63, %v2454_v1  ;;  %v11376_v46 = vadd.f32 %v2505_v8, %v11283_v33 }
 0x235   :  { %v11378_v35 = vadd.f32 %v2506_v18, %v2405_v13  ;;  %v2461_v27 = vmul.f32 %v2460_v15, %v2458_v54  ;;  %v2466_v14 = vmul.f32 %v2460_v15, %v2453_v30  ;;  %v11380_v7 = vadd.f32 %v2465_v47, %v2364_v28 }
 0x236   :  { %v11382_v58 = vadd.f32 %v2479_v2, %v2378_v42  ;;  %v2475_v51 = vmul.f32 %v2474_v26, %v2458_v54  ;;  %v2480_v24 = vmul.f32 %v2474_v26, %v2453_v30  ;;  %v11384_v55 = vadd.f32 %v2493_v12, %v2392_v6  ;;  %v11405_v26 = vpop.permute.xlu1 %2591 }
 0x237   :  { %v11386_v37 = vadd.f32 %v2507_v10, %v2406_v57  ;;  %v11389_v33 = vadd.f32 %v2461_v27, %v11230_v52  ;;  %v11392_v13 = vadd.f32 %v2466_v14, %v11286_v59  ;;  %v2489_v62 = vmul.f32 %v2488_v22, %v2458_v54  ;;  %v11407_v52 = vpop.permute.xlu0 %2589 }
 0x238   :  { %v2494_v4 = vmul.f32 %v2488_v22, %v2453_v30  ;;  %v2503_v34 = vmul.f32 %v2502_v63, %v2458_v54  ;;  %v2508_v15 = vmul.f32 %v2502_v63, %v2453_v30  ;;  %v2548_v28 = vstv %s11342_s11  ;;  %s11710_s11 = sld [smem:[#allocation8 + $0x5e]] }
 0x239   :  { %v11396_v40 = vstv %s11344_s12  ;;  %v11399_v42 = vstv %s11346_s14  ;;  %v2531_v6 = vsel %vm165_vm1, %v11293_v48, %v11291_v41  ;;  %v11410_v59 = vadd.f32 %v2475_v51, %v11232_v36  ;;  %s11712_s12 = sld [smem:[#allocation8 + $0x5f]]  ;;  %s11888_s14 = sld [smem:[#allocation8 + $0x6c]] }
 0x23a   :  { %v2486_v22 = vadd.f32 %v2480_v24, %v11289_v11  ;;  %v11414_v63 = vadd.f32 %v2489_v62, %v11249_v16  ;;  %v2500_v57 = vadd.f32 %v2494_v4, %v11296_v19  ;;  %v2536_v8 = vmul.f32 %v11371_v23, %v2531_v6 }
 0x23b   :  { %v2550_v18 = vmul.f32 %v2548_v28, %v2531_v6  ;;  %v2564_v1 = vmul.f32 %v11396_v40, %v2531_v6  ;;  %v2578_v30 = vmul.f32 %v11399_v42, %v2531_v6  ;;  %v11421_v54 = vadd.f32 %v2503_v34, %v11252_v3 }
 0x23c   :  { %v11424_v36 = vadd.f32 %v2508_v15, %v11299_v44  ;;  %v2529_v16 = vsel %vm165_vm1, %v11328_v20, %v11326_v38  ;;  %v2530_v11 = vsel %vm165_vm1, %v11291_v41, %v11328_v20  ;;  %v11435_v19 = vadd.f32 %v2536_v8, %v11332_v49 }
 0x23d   :  { %v11437_v47 = vadd.f32 %v2550_v18, %v2482_v0  ;;  %v2528_v3 = vsel %vm165_vm1, %v11326_v38, %v2524_v45  ;;  %v2527_v44 = vsel %vm165_vm1, %v2524_v45, %v11373_v17  ;;  %v2537_v2 = vmul.f32 %v11371_v23, %v2530_v11  ;;  %v11459_v0 = vpop.permute.xlu1 %2595  ;;  %v2594_v45 = vpop.permute.xlu0 %2593 }
 0x23e   :  { %v2538_v12 = vmul.f32 %v11371_v23, %v2529_v16  ;;  %v2551_v10 = vmul.f32 %v2548_v28, %v2530_v11  ;;  %v2552_v27 = vmul.f32 %v2548_v28, %v2529_v16  ;;  %v11448_v41 = vadd.f32 %v2564_v1, %v11334_v50 }
 0x23f   :  { %v11451_v20 = vadd.f32 %v2578_v30, %v11336_v61  ;;  %v2565_v49 = vmul.f32 %v11396_v40, %v2530_v11  ;;  %v2566_v38 = vmul.f32 %v11396_v40, %v2529_v16  ;;  %v2543_v14 = vadd.f32 %v2537_v2, %v11338_v43 }
 0x240   :  { %v2544_v51 = vadd.f32 %v2538_v12, %v11340_v32  ;;  %v2579_v50 = vmul.f32 %v11399_v42, %v2530_v11  ;;  %v2580_v61 = vmul.f32 %v11399_v42, %v2529_v16  ;;  %v11468_v24 = vadd.f32 %v2551_v10, %v11349_v39 }
 0x241   :  { %v11471_v62 = vadd.f32 %v2552_v27, %v11363_v25  ;;  %v11474_v4 = vadd.f32 %v2565_v49, %v11366_v31  ;;  %v11477_v34 = vadd.f32 %v2566_v38, %v11368_v56  ;;  %v2539_v43 = vmul.f32 %v11371_v23, %v2528_v3  ;;  %v2600_v11 = vpop.permute.xlu0 %2599 }
 0x242   :  { %v2553_v32 = vmul.f32 %v2548_v28, %v2528_v3  ;;  %v2567_v15 = vmul.f32 %v11396_v40, %v2528_v3  ;;  %v2581_v6 = vmul.f32 %v11399_v42, %v2528_v3  ;;  %v2532_v39 = vsel %vm165_vm1, %v11373_v17, %v11293_v48 }
 0x243   :  { %v2540_v25 = vmul.f32 %v11371_v23, %v2527_v44  ;;  %v2554_v31 = vmul.f32 %v2548_v28, %v2527_v44  ;;  %v2568_v56 = vmul.f32 %v11396_v40, %v2527_v44  ;;  %v11491_v8 = vadd.f32 %v2579_v50, %v11376_v46 }
 0x244   :  { %v11494_v18 = vadd.f32 %v2580_v61, %v11378_v35  ;;  %v11497_v1 = vadd.f32 %v2539_v43, %v11380_v7  ;;  %v11500_v30 = vadd.f32 %v2553_v32, %v11382_v58  ;;  %v11503_v48 = vadd.f32 %v2567_v15, %v11384_v55  ;;  %v2598_v35 = vpop.permute.xlu1 %2597 }
 0x245   :  { %v11506_v17 = vadd.f32 %v2581_v6, %v11386_v37  ;;  %v2535_v46 = vmul.f32 %v11371_v23, %v2532_v39  ;;  %v2549_v16 = vmul.f32 %v2548_v28, %v2532_v39  ;;  %v11510_v3 = vadd.f32 %v2540_v25, %v11392_v13  ;;  %v11545_v32 = vpop.permute.xlu0 %2663 }
 0x246   :  { %v11512_v7 = vadd.f32 %v2554_v31, %v2486_v22  ;;  %v2563_v58 = vmul.f32 %v11396_v40, %v2532_v39  ;;  %v11515_v2 = vadd.f32 %v2568_v56, %v2500_v57  ;;  %v2577_v55 = vmul.f32 %v11399_v42, %v2532_v39 }
 0x247   :  { %v2582_v37 = vmul.f32 %v11399_v42, %v2527_v44  ;;  %v2608_v12 = vstv %s11455_s15  ;;  %v2622_v10 = vstv %s11457_s9  ;;  %v2541_v23 = vadd.f32 %v2535_v46, %v11389_v33  ;;  %s11890_s15 = sld [smem:[#allocation8 + $0x6d]]  ;;  %s11900_s9 = sld [smem:[#allocation8 + $0x6e]] }
 0x248   :  { %v11523_v28 = vadd.f32 %v2549_v16, %v11410_v59  ;;  %v11526_v13 = vadd.f32 %v2563_v58, %v11414_v63  ;;  %v2636_v22 = vstv %s11465_s2  ;;  %v2650_v40 = vstv %s11479_s18  ;;  %v11543_v43 = vpop.permute.xlu1 %2665  ;;  %s11902_s2 = sld [smem:[#allocation8 + $0x6f]]  ;;  %s11982_s18 = sld [smem:[#allocation8 + $0x7c]] }
 0x249   :  { %v2605_v57 = vsel %vm240_vm2, %v11407_v52, %v11405_v26  ;;  %v2603_v42 = vsel %vm240_vm2, %v2594_v45, %v11459_v0  ;;  %v2604_v33 = vsel %vm240_vm2, %v11405_v26, %v2594_v45  ;;  %v2583_v49 = vadd.f32 %v2577_v55, %v11421_v54 }
 0x24a   :  { %v2610_v59 = vmul.f32 %v2608_v12, %v2605_v57  ;;  %v2624_v63 = vmul.f32 %v2622_v10, %v2605_v57  ;;  %v2638_v44 = vmul.f32 %v2636_v22, %v2605_v57  ;;  %v2652_v27 = vmul.f32 %v2650_v40, %v2605_v57 }
 0x24b   :  { %v2611_v38 = vmul.f32 %v2608_v12, %v2604_v33  ;;  %v2612_v50 = vmul.f32 %v2608_v12, %v2603_v42  ;;  %v2625_v61 = vmul.f32 %v2622_v10, %v2604_v33  ;;  %v2588_v15 = vadd.f32 %v2582_v37, %v11424_v36 }
 0x24c   :  { %v11549_v6 = vadd.f32 %v2610_v59, %v11435_v19  ;;  %v2630_v26 = vadd.f32 %v2624_v63, %v11437_v47  ;;  %v2626_v45 = vmul.f32 %v2622_v10, %v2603_v42  ;;  %v11553_v39 = vadd.f32 %v2638_v44, %v11448_v41 }
 0x24d   :  { %v11556_v54 = vadd.f32 %v2652_v27, %v11451_v20  ;;  %v11558_v25 = vadd.f32 %v2611_v38, %v2543_v14  ;;  %v11560_v31 = vadd.f32 %v2612_v50, %v2544_v51  ;;  %v2639_v36 = vmul.f32 %v2636_v22, %v2604_v33 }
 0x24e   :  { %v2640_v56 = vmul.f32 %v2636_v22, %v2603_v42  ;;  %v2653_v19 = vmul.f32 %v2650_v40, %v2604_v33  ;;  %v2654_v46 = vmul.f32 %v2650_v40, %v2603_v42  ;;  %v11569_v47 = vadd.f32 %v2625_v61, %v11468_v24  ;;  %v2668_v42 = vpop.permute.xlu0 %2667 }
 0x24f   :  { %v2602_v41 = vsel %vm240_vm2, %v11459_v0, %v2598_v35  ;;  %v2601_v20 = vsel %vm240_vm2, %v2598_v35, %v2600_v11  ;;  %v2606_v14 = vsel %vm240_vm2, %v2600_v11, %v11407_v52  ;;  %v11580_v51 = vadd.f32 %v2626_v45, %v11471_v62  ;;  %v2670_v35 = vpop.permute.xlu1 %2669 }
 0x250   :  { %v11583_v16 = vadd.f32 %v2639_v36, %v11474_v4  ;;  %v11586_v24 = vadd.f32 %v2640_v56, %v11477_v34  ;;  %v11589_v58 = vstv %s11529_s28  ;;  %v2613_v55 = vmul.f32 %v2608_v12, %v2602_v41  ;;  %s11984_s28 = sld [smem:[#allocation8 + $0x7d]] }
 0x251   :  { %v2627_v0 = vmul.f32 %v2622_v10, %v2602_v41  ;;  %v2641_v37 = vmul.f32 %v2636_v22, %v2602_v41  ;;  %v2655_v57 = vmul.f32 %v2650_v40, %v2602_v41  ;;  %v11592_v33 = vadd.f32 %v2653_v19, %v11491_v8 }
 0x252   :  { %v11595_v52 = vadd.f32 %v2654_v46, %v11494_v18  ;;  %v2609_v62 = vmul.f32 %v2608_v12, %v2606_v14  ;;  %v2614_v4 = vmul.f32 %v2608_v12, %v2601_v20  ;;  %v11598_v34 = vadd.f32 %v2613_v55, %v11497_v1 }
 0x253   :  { %v11601_v11 = vadd.f32 %v2627_v0, %v11500_v30  ;;  %v2623_v59 = vmul.f32 %v2622_v10, %v2606_v14  ;;  %v2628_v63 = vmul.f32 %v2622_v10, %v2601_v20  ;;  %v11604_v44 = vadd.f32 %v2641_v37, %v11503_v48 }
 0x254   :  { %v11607_v8 = vadd.f32 %v2655_v57, %v11506_v17  ;;  %v11609_v18 = vadd.f32 %v2609_v62, %v2541_v23  ;;  %v11612_v27 = vadd.f32 %v2614_v4, %v11510_v3  ;;  %v2637_v12 = vmul.f32 %v2636_v22, %v2606_v14 }
 0x255   :  { %v2642_v38 = vmul.f32 %v2636_v22, %v2601_v20  ;;  %v2651_v1 = vmul.f32 %v2650_v40, %v2606_v14  ;;  %v2656_v50 = vmul.f32 %v2650_v40, %v2601_v20  ;;  %v2696_v61 = vstv %s11562_s27  ;;  %v2672_v22 = vpop.permute.xlu1 %2671  ;;  %v2674_v40 = vpop.permute.xlu0 %2673  ;;  %s11990_s27 = sld [smem:[#allocation8 + $0x7e]] }
 0x256   :  { %v11616_v30 = vstv %s11564_s19  ;;  %v11619_v45 = vstv %s11566_s20  ;;  %v2679_v48 = vsel %vm315_vm3, %v11545_v32, %v11543_v43  ;;  %v11626_v17 = vadd.f32 %v2623_v59, %v11523_v28  ;;  %s12002_s19 = sld [smem:[#allocation8 + $0x7f]]  ;;  %s12042_s20 = sld [smem:[#allocation8 + $0x8c]] }
 0x257   :  { %v2634_v3 = vadd.f32 %v2628_v63, %v11512_v7  ;;  %v11630_v10 = vadd.f32 %v2637_v12, %v11526_v13  ;;  %v11633_v23 = vadd.f32 %v2642_v38, %v11515_v2  ;;  %v11635_v36 = vadd.f32 %v2651_v1, %v2583_v49 }
 0x258   :  { %v2684_v56 = vmul.f32 %v11589_v58, %v2679_v48  ;;  %v2698_v19 = vmul.f32 %v2696_v61, %v2679_v48  ;;  %v2712_v46 = vmul.f32 %v11616_v30, %v2679_v48  ;;  %v11639_v41 = vadd.f32 %v2656_v50, %v2588_v15 }
 0x259   :  { %v2726_v28 = vmul.f32 %v11619_v45, %v2679_v48  ;;  %v2677_v7 = vsel %vm315_vm3, %v2668_v42, %v2670_v35  ;;  %v2678_v2 = vsel %vm315_vm3, %v11543_v43, %v2668_v42  ;;  %v2676_v20 = vsel %vm315_vm3, %v2670_v35, %v2672_v22  ;;  %v11678_v4 = vpop.permute.xlu1 %2899 }
 0x25a   :  { %v11648_v13 = vadd.f32 %v2684_v56, %v11549_v6  ;;  %v11650_v49 = vadd.f32 %v2698_v19, %v2630_v26  ;;  %v2675_v15 = vsel %vm315_vm3, %v2672_v22, %v2674_v40  ;;  %v2685_v14 = vmul.f32 %v11589_v58, %v2678_v2  ;;  %v11731_v19 = vpop.permute.xlu0 %2897 }
 0x25b   :  { %v2686_v55 = vmul.f32 %v11589_v58, %v2677_v7  ;;  %v2699_v0 = vmul.f32 %v2696_v61, %v2678_v2  ;;  %v2700_v37 = vmul.f32 %v2696_v61, %v2677_v7  ;;  %v11659_v57 = vadd.f32 %v2712_v46, %v11553_v39 }
 0x25c   :  { %v2713_v43 = vmul.f32 %v11616_v30, %v2678_v2  ;;  %v2714_v6 = vmul.f32 %v11616_v30, %v2677_v7  ;;  %v2727_v26 = vmul.f32 %v11619_v45, %v2678_v2  ;;  %v11669_v35 = vadd.f32 %v2726_v28, %v11556_v54 }
 0x25d   :  { %v11672_v42 = vadd.f32 %v2685_v14, %v11558_v25  ;;  %v11675_v62 = vadd.f32 %v2686_v55, %v11560_v31  ;;  %v2728_v39 = vmul.f32 %v11619_v45, %v2677_v7  ;;  %v11683_v59 = vadd.f32 %v2699_v0, %v11569_v47  ;;  %v11740_v28 = vpop.permute.xlu1 %2903 }
 0x25e   :  { %v11686_v63 = vadd.f32 %v2700_v37, %v11580_v51  ;;  %v11689_v54 = vadd.f32 %v2713_v43, %v11583_v16  ;;  %v11692_v25 = vadd.f32 %v2714_v6, %v11586_v24  ;;  %v2687_v31 = vmul.f32 %v11589_v58, %v2676_v20 }
 0x25f   :  { %v2701_v12 = vmul.f32 %v2696_v61, %v2676_v20  ;;  %v2715_v38 = vmul.f32 %v11616_v30, %v2676_v20  ;;  %v2729_v47 = vmul.f32 %v11619_v45, %v2676_v20  ;;  %v11704_v51 = vadd.f32 %v2727_v26, %v11592_v33 }
 0x260   :  { %v2680_v16 = vsel %vm315_vm3, %v2674_v40, %v11545_v32  ;;  %v2688_v24 = vmul.f32 %v11589_v58, %v2675_v15  ;;  %v2702_v1 = vmul.f32 %v2696_v61, %v2675_v15  ;;  %v11715_v50 = vadd.f32 %v2728_v39, %v11595_v52  ;;  %v2902_v39 = vpop.permute.xlu0 %2901 }
 0x261   :  { %v11718_v48 = vadd.f32 %v2687_v31, %v11598_v34  ;;  %v11721_v33 = vadd.f32 %v2701_v12, %v11601_v11  ;;  %v2716_v32 = vmul.f32 %v11616_v30, %v2675_v15  ;;  %v11725_v22 = vadd.f32 %v2715_v38, %v11604_v44 }
 0x262   :  { %v11728_v40 = vadd.f32 %v2729_v47, %v11607_v8  ;;  %v2683_v56 = vmul.f32 %v11589_v58, %v2680_v16  ;;  %v2697_v52 = vmul.f32 %v2696_v61, %v2680_v16  ;;  %v11734_v34 = vadd.f32 %v2688_v24, %v11612_v27 }
 0x263   :  { %v11736_v11 = vadd.f32 %v2702_v1, %v2634_v3  ;;  %v2711_v46 = vmul.f32 %v11616_v30, %v2680_v16  ;;  %v2725_v44 = vmul.f32 %v11619_v45, %v2680_v16  ;;  %v2730_v58 = vmul.f32 %v11619_v45, %v2675_v15  ;;  %v7299_v30 = vld [vmem:[#allocation4 + $0x3] ss:$4 sm:$0x3f]  ;;  %v11784_v16 = vpop.permute.xlu1 %2907 }
 0x264   :  { %v2689_v8 = vadd.f32 %v2683_v56, %v11609_v18  ;;  %v2738_v61 = vstv %s11664_s21  ;;  %v2778_v7 = vstv %s11666_s22  ;;  %v2703_v27 = vadd.f32 %v2697_v52, %v11626_v17  ;;  %v17842_v45 = vld [vmem:[#allocation18_spill] sm:$0xff]  ;;  %s12073_s21 = sld [smem:[#allocation8 + $0x8d]]  ;;  %s12075_s22 = sld [smem:[#allocation8 + $0x8e]] }
 0x265   :  { %v2717_v3 = vadd.f32 %v2711_v46, %v11630_v10  ;;  %v2731_v2 = vadd.f32 %v2725_v44, %v11635_v36  ;;  %v11749_v20 = vmul.f32 %v7299_v30, %v2738_v61  ;;  %v11751_v14 = vmul.f32 %v7299_v30, %v2778_v7 }
 0x266   :  { %v2818_v55 = vstv %s11680_s23  ;;  %v2858_v18 = vstv %s11694_s24  ;;  %v11756_v0 = vstv %s11696_s0  ;;  %v11765_v17 = vstv %s11701_s10  ;;  %s12085_s23 = sld [smem:[#allocation8 + $0x8f]]  ;;  %s12418_s24 = sld [smem:[#allocation9 + $0x4e]] }
 0x267   :  { %v2744_v15 = vrot.slane %v11749_v20, %v17842_v45  ;;  %v11760_v37 = vmul.f32 %v7299_v30, %v2818_v55  ;;  %v11762_v43 = vmul.f32 %v7299_v30, %v2858_v18  ;;  %v2784_v10 = vrot.slane %v11751_v14, %v17842_v45  ;;  %s12420_s0 = sld [smem:[#allocation9]]  ;;  %s12428_s10 = sld [smem:[#allocation9 + $0x1]] }
 0x268   :  { %v11770_v36 = vstv %s11710_s11  ;;  %v11773_v6 = vstv %s11712_s12  ;;  %v2913_v26 = vsel %vm550_vm4, %v11731_v19, %v11678_v4  ;;  %v2722_v46 = vadd.f32 %v2716_v32, %v11633_v23  ;;  %s12448_s11 = sld [smem:[#allocation9 + $0x2]]  ;;  %s12496_s12 = sld [smem:[#allocation9 + $0x3]] }
 0x269   :  { %v2771_v31 = vadd.f32 %v2744_v15, %v2689_v8  ;;  %v2824_v12 = vrot.slane %v11760_v37, %v17842_v45  ;;  %v2864_v38 = vrot.slane %v11762_v43, %v17842_v45  ;;  %v2917_v47 = vmul.f32 %v11756_v0, %v2913_v26 }
 0x26a   :  { %v2811_v24 = vadd.f32 %v2784_v10, %v2703_v27  ;;  %v2931_v1 = vmul.f32 %v11765_v17, %v2913_v26  ;;  %v2945_v56 = vmul.f32 %v11770_v36, %v2913_v26  ;;  %v2959_v52 = vmul.f32 %v11773_v6, %v2913_v26  ;;  %v11813_v10 = vpop.permute.xlu0 %2905 }
 0x26b   :  { %v2851_v44 = vadd.f32 %v2824_v12, %v2717_v3  ;;  %v2891_v8 = vadd.f32 %v2864_v38, %v2731_v2  ;;  %v2748_v61 = vrot.slane %v11749_v20, %v17834_v5  ;;  %v2736_v7 = vadd.f32 %v2730_v58, %v11639_v41 }
 0x26c   :  { %v2752_v30 = vrot.slane %v11749_v20, %v17835_v53  ;;  %v2788_v27 = vrot.slane %v11751_v14, %v17834_v5  ;;  %v2792_v55 = vrot.slane %v11751_v14, %v17835_v53  ;;  %v11799_v18 = vadd.f32 %v2917_v47, %v2771_v31 }
 0x26d   :  { %v11801_v15 = vadd.f32 %v2931_v1, %v2811_v24  ;;  %v11803_v23 = vadd.f32 %v2945_v56, %v2851_v44  ;;  %v2828_v32 = vrot.slane %v11760_v37, %v17834_v5  ;;  %v11807_v3 = vadd.f32 %v2959_v52, %v2891_v8 }
 0x26e   :  { %v2772_v41 = vadd.f32 %v2748_v61, %v11648_v13  ;;  %v2773_v58 = vadd.f32 %v2752_v30, %v11672_v42  ;;  %v2832_v2 = vrot.slane %v11760_v37, %v17835_v53  ;;  %v2812_v26 = vadd.f32 %v2788_v27, %v11650_v49  ;;  %v11823_v13 = vpop.permute.xlu1 %2973 }
 0x26f   :  { %v2868_v31 = vrot.slane %v11762_v43, %v17834_v5  ;;  %v2872_v12 = vrot.slane %v11762_v43, %v17835_v53  ;;  %v2911_v38 = vsel %vm550_vm4, %v2902_v39, %v11740_v28  ;;  %v2813_v42 = vadd.f32 %v2792_v55, %v11683_v59 }
 0x270   :  { %v2912_v47 = vsel %vm550_vm4, %v11678_v4, %v2902_v39  ;;  %v2919_v49 = vmul.f32 %v11756_v0, %v2911_v38  ;;  %v2933_v24 = vmul.f32 %v11765_v17, %v2911_v38  ;;  %v2852_v1 = vadd.f32 %v2828_v32, %v11659_v57  ;;  %v11853_v32 = vpop.permute.xlu0 %2971 }
 0x271   :  { %v2853_v56 = vadd.f32 %v2832_v2, %v11689_v54  ;;  %v2918_v52 = vmul.f32 %v11756_v0, %v2912_v47  ;;  %v2932_v44 = vmul.f32 %v11765_v17, %v2912_v47  ;;  %v2892_v8 = vadd.f32 %v2868_v31, %v11669_v35 }
 0x272   :  { %v2893_v59 = vadd.f32 %v2872_v12, %v11704_v51  ;;  %v2946_v61 = vmul.f32 %v11770_v36, %v2912_v47  ;;  %v2947_v4 = vmul.f32 %v11770_v36, %v2911_v38  ;;  %v11839_v39 = vadd.f32 %v2919_v49, %v2773_v58 }
 0x273   :  { %v11841_v30 = vadd.f32 %v2933_v24, %v2813_v42  ;;  %v2960_v57 = vmul.f32 %v11773_v6, %v2912_v47  ;;  %v2961_v54 = vmul.f32 %v11773_v6, %v2911_v38  ;;  %v11845_v27 = vadd.f32 %v2918_v52, %v2772_v41 }
 0x274   :  { %v11847_v55 = vadd.f32 %v2932_v44, %v2812_v26  ;;  %v2764_v35 = vrot.slane %v11749_v20, %v17836_v21  ;;  %v2804_v51 = vrot.slane %v11751_v14, %v17836_v21  ;;  %v11855_v58 = vadd.f32 %v2946_v61, %v2852_v1  ;;  %v11863_v26 = vpop.permute.xlu1 %2977 }
 0x275   :  { %v11857_v2 = vadd.f32 %v2947_v4, %v2853_v56  ;;  %v2844_v31 = vrot.slane %v11760_v37, %v17836_v21  ;;  %v2884_v41 = vrot.slane %v11762_v43, %v17836_v21  ;;  %v11865_v12 = vadd.f32 %v2960_v57, %v2892_v8 }
 0x276   :  { %v11867_v38 = vadd.f32 %v2961_v54, %v2893_v59  ;;  %v2914_v42 = vsel %vm550_vm4, %v11784_v16, %v11731_v19  ;;  %v2756_v47 = vrot.slane %v11749_v20, %v17837_v60  ;;  %v2776_v49 = vadd.f32 %v2764_v35, %v11734_v34 }
 0x277   :  { %v2816_v24 = vadd.f32 %v2804_v51, %v11736_v11  ;;  %v2922_v1 = vmul.f32 %v11756_v0, %v2914_v42  ;;  %v2936_v56 = vmul.f32 %v11765_v17, %v2914_v42  ;;  %v2856_v52 = vadd.f32 %v2844_v31, %v2722_v46 }
 0x278   :  { %v2950_v44 = vmul.f32 %v11770_v36, %v2914_v42  ;;  %v2964_v8 = vmul.f32 %v11773_v6, %v2914_v42  ;;  %v2760_v59 = vrot.slane %v11749_v20, %v17838_v9  ;;  %v2896_v19 = vadd.f32 %v2884_v41, %v2736_v7  ;;  %v2982_v51 = vpop.permute.xlu1 %2981 }
 0x279   :  { %v2774_v61 = vadd.f32 %v2756_v47, %v11675_v62  ;;  %v2796_v34 = vrot.slane %v11751_v14, %v17837_v60  ;;  %v2800_v11 = vrot.slane %v11751_v14, %v17838_v9  ;;  %v11892_v46 = vadd.f32 %v2922_v1, %v2776_v49  ;;  %v2976_v62 = vpop.permute.xlu0 %2975 }
 0x27a   :  { %v11894_v4 = vadd.f32 %v2936_v56, %v2816_v24  ;;  %v11896_v57 = vadd.f32 %v2950_v44, %v2856_v52  ;;  %v2836_v20 = vrot.slane %v11760_v37, %v17837_v60  ;;  %v11904_v7 = vadd.f32 %v2964_v8, %v2896_v19 }
 0x27b   :  { %v2775_v14 = vadd.f32 %v2760_v59, %v11718_v48  ;;  %v2840_v54 = vrot.slane %v11760_v37, %v17838_v9  ;;  %v2876_v35 = vrot.slane %v11762_v43, %v17837_v60  ;;  %v2814_v31 = vadd.f32 %v2796_v34, %v11686_v63 }
 0x27c   :  { %v2880_v41 = vrot.slane %v11762_v43, %v17838_v9  ;;  %v2909_v42 = vsel %vm550_vm4, %v11813_v10, %v11784_v16  ;;  %v2910_v48 = vsel %vm550_vm4, %v11740_v28, %v11813_v10  ;;  %v2815_v37 = vadd.f32 %v2800_v11, %v11721_v33  ;;  %v11945_v19 = vpop.permute.xlu1 %3047 }
 0x27d   :  { %v2854_v47 = vadd.f32 %v2836_v20, %v11692_v25  ;;  %v2920_v49 = vmul.f32 %v11756_v0, %v2910_v48  ;;  %v2921_v63 = vmul.f32 %v11756_v0, %v2909_v42  ;;  %v2855_v43 = vadd.f32 %v2840_v54, %v11725_v22  ;;  %v2980_v52 = vpop.permute.xlu0 %2979 }
 0x27e   :  { %v2934_v24 = vmul.f32 %v11765_v17, %v2910_v48  ;;  %v2935_v16 = vmul.f32 %v11765_v17, %v2909_v42  ;;  %v2948_v1 = vmul.f32 %v11770_v36, %v2910_v48  ;;  %v2894_v28 = vadd.f32 %v2876_v35, %v11715_v50 }
 0x27f   :  { %v2895_v25 = vadd.f32 %v2880_v41, %v11728_v40  ;;  %v11932_v33 = vadd.f32 %v2920_v49, %v2774_v61  ;;  %v2949_v0 = vmul.f32 %v11770_v36, %v2909_v42  ;;  %v11935_v10 = vadd.f32 %v2921_v63, %v2775_v14 }
 0x280   :  { %v11937_v22 = vadd.f32 %v2934_v24, %v2814_v31  ;;  %v2962_v56 = vmul.f32 %v11773_v6, %v2910_v48  ;;  %v2963_v17 = vmul.f32 %v11773_v6, %v2909_v42  ;;  %v2941_v44 = vadd.f32 %v2935_v16, %v2815_v37 }
 0x281   :  { %v11941_v8 = vadd.f32 %v2948_v1, %v2854_v47  ;;  %v2990_v50 = vstv %s11888_s14  ;;  %v3004_v59 = vstv %s11890_s15  ;;  %v2955_v40 = vadd.f32 %v2949_v0, %v2855_v43  ;;  %v11974_v16 = vpop.permute.xlu0 %3045  ;;  %s12382_s14 = sld [smem:[#allocation9 + $0x42]]  ;;  %s12387_s15 = sld [smem:[#allocation9 + $0x43]] }
 0x282   :  { %v3018_v61 = vstv %s11900_s9  ;;  %v3032_v34 = vstv %s11902_s2  ;;  %v2987_v36 = vsel %vm625_vm5, %v11853_v32, %v11823_v13  ;;  %v11953_v54 = vadd.f32 %v2962_v56, %v2894_v28  ;;  %s12389_s9 = sld [smem:[#allocation9 + $0x44]]  ;;  %s12391_s2 = sld [smem:[#allocation9 + $0x45]] }
 0x283   :  { %v2991_v11 = vmul.f32 %v2990_v50, %v2987_v36  ;;  %v3005_v20 = vmul.f32 %v3004_v59, %v2987_v36  ;;  %v3019_v14 = vmul.f32 %v3018_v61, %v2987_v36  ;;  %v3033_v6 = vmul.f32 %v3032_v34, %v2987_v36 }
 0x284   :  { %v11955_v35 = vadd.f32 %v2963_v17, %v2895_v25  ;;  %v2985_v31 = vsel %vm625_vm5, %v2976_v62, %v11863_v26  ;;  %v2986_v41 = vsel %vm625_vm5, %v11823_v13, %v2976_v62  ;;  %v2988_v37 = vsel %vm625_vm5, %v2982_v51, %v11853_v32  ;;  %v11986_v32 = vpop.permute.xlu1 %3051 }
 0x285   :  { %v11964_v42 = vadd.f32 %v2991_v11, %v11799_v18  ;;  %v11967_v48 = vadd.f32 %v3005_v20, %v11801_v15  ;;  %v2983_v47 = vsel %vm625_vm5, %v2980_v52, %v2982_v51  ;;  %v2992_v49 = vmul.f32 %v2990_v50, %v2986_v41 }
 0x286   :  { %v2993_v63 = vmul.f32 %v2990_v50, %v2985_v31  ;;  %v3006_v43 = vmul.f32 %v3004_v59, %v2986_v41  ;;  %v3007_v24 = vmul.f32 %v3004_v59, %v2985_v31  ;;  %v11977_v13 = vadd.f32 %v3019_v14, %v11803_v23 }
 0x287   :  { %v11980_v18 = vadd.f32 %v3033_v6, %v11807_v3  ;;  %v3020_v15 = vmul.f32 %v3018_v61, %v2986_v41  ;;  %v3021_v62 = vmul.f32 %v3018_v61, %v2985_v31  ;;  %v2998_v51 = vadd.f32 %v2992_v49, %v11845_v27 }
 0x288   :  { %v2999_v1 = vadd.f32 %v2993_v63, %v11839_v39  ;;  %v3034_v28 = vmul.f32 %v3032_v34, %v2986_v41  ;;  %v3035_v25 = vmul.f32 %v3032_v34, %v2985_v31  ;;  %v3012_v23 = vadd.f32 %v3006_v43, %v11847_v55  ;;  %v3050_v31 = vpop.permute.xlu0 %3049 }
 0x289   :  { %v11994_v3 = vadd.f32 %v3007_v24, %v11841_v30  ;;  %v11997_v0 = vadd.f32 %v3020_v15, %v11855_v58  ;;  %v12000_v56 = vadd.f32 %v3021_v62, %v11857_v2  ;;  %v2996_v27 = vmul.f32 %v2990_v50, %v2988_v37 }
 0x28a   :  { %v3010_v17 = vmul.f32 %v3004_v59, %v2988_v37  ;;  %v3024_v39 = vmul.f32 %v3018_v61, %v2988_v37  ;;  %v3038_v36 = vmul.f32 %v3032_v34, %v2988_v37  ;;  %v2984_v11 = vsel %vm625_vm5, %v11863_v26, %v2980_v52 }
 0x28b   :  { %v2995_v55 = vmul.f32 %v2990_v50, %v2983_v47  ;;  %v3009_v20 = vmul.f32 %v3004_v59, %v2983_v47  ;;  %v3023_v30 = vmul.f32 %v3018_v61, %v2983_v47  ;;  %v12008_v14 = vadd.f32 %v3034_v28, %v11865_v12 }
 0x28c   :  { %v12011_v58 = vadd.f32 %v3035_v25, %v11867_v38  ;;  %v12014_v2 = vadd.f32 %v2996_v27, %v11892_v46  ;;  %v12017_v6 = vadd.f32 %v3010_v17, %v11894_v4  ;;  %v12020_v26 = vadd.f32 %v3024_v39, %v11896_v57  ;;  %v3056_v38 = vpop.permute.xlu1 %3055 }
 0x28d   :  { %v12023_v52 = vadd.f32 %v3038_v36, %v11904_v7  ;;  %v2994_v12 = vmul.f32 %v2990_v50, %v2984_v11  ;;  %v3008_v41 = vmul.f32 %v3004_v59, %v2984_v11  ;;  %v12026_v37 = vadd.f32 %v2995_v55, %v11935_v10 }
 0x28e   :  { %v12028_v46 = vadd.f32 %v3009_v20, %v2941_v44  ;;  %v3022_v49 = vmul.f32 %v3018_v61, %v2984_v11  ;;  %v12030_v4 = vadd.f32 %v3023_v30, %v2955_v40  ;;  %v3036_v63 = vmul.f32 %v3032_v34, %v2984_v11 }
 0x28f   :  { %v3037_v43 = vmul.f32 %v3032_v34, %v2983_v47  ;;  %v3064_v57 = vstv %s11982_s18  ;;  %v3078_v24 = vstv %s11984_s28  ;;  %v3000_v15 = vadd.f32 %v2994_v12, %v11932_v33  ;;  %v3054_v47 = vpop.permute.xlu0 %3053  ;;  %s12393_s18 = sld [smem:[#allocation9 + $0x46]]  ;;  %s12395_s28 = sld [smem:[#allocation9 + $0x47]] }
 0x290   :  { %v12036_v7 = vadd.f32 %v3008_v41, %v11937_v22  ;;  %v12039_v50 = vadd.f32 %v3022_v49, %v11941_v8  ;;  %v3092_v59 = vstv %s11990_s27  ;;  %v3106_v10 = vstv %s12002_s19  ;;  %v12056_v17 = vpop.permute.xlu1 %3121  ;;  %s12397_s27 = sld [smem:[#allocation9 + $0x48]]  ;;  %s12401_s19 = sld [smem:[#allocation9 + $0x49]] }
 0x291   :  { %v3061_v44 = vsel %vm700_vm6, %v11974_v16, %v11945_v19  ;;  %v3059_v40 = vsel %vm700_vm6, %v3050_v31, %v11986_v32  ;;  %v3060_v33 = vsel %vm700_vm6, %v11945_v19, %v3050_v31  ;;  %v3042_v62 = vadd.f32 %v3036_v63, %v11953_v54 }
 0x292   :  { %v3065_v22 = vmul.f32 %v3064_v57, %v3061_v44  ;;  %v3079_v8 = vmul.f32 %v3078_v24, %v3061_v44  ;;  %v3093_v61 = vmul.f32 %v3092_v59, %v3061_v44  ;;  %v3107_v34 = vmul.f32 %v3106_v10, %v3061_v44 }
 0x293   :  { %v3066_v28 = vmul.f32 %v3064_v57, %v3060_v33  ;;  %v3067_v25 = vmul.f32 %v3064_v57, %v3059_v40  ;;  %v3080_v27 = vmul.f32 %v3078_v24, %v3060_v33  ;;  %v3043_v39 = vadd.f32 %v3037_v43, %v11955_v35 }
 0x294   :  { %v3071_v36 = vadd.f32 %v3065_v22, %v11964_v42  ;;  %v3085_v11 = vadd.f32 %v3079_v8, %v11967_v48  ;;  %v3081_v55 = vmul.f32 %v3078_v24, %v3059_v40  ;;  %v12062_v19 = vadd.f32 %v3093_v61, %v11977_v13 }
 0x295   :  { %v12065_v20 = vadd.f32 %v3107_v34, %v11980_v18  ;;  %v12067_v30 = vadd.f32 %v3066_v28, %v2998_v51  ;;  %v12069_v54 = vadd.f32 %v3067_v25, %v2999_v1  ;;  %v12071_v31 = vadd.f32 %v3080_v27, %v3012_v23 }
 0x296   :  { %v3094_v12 = vmul.f32 %v3092_v59, %v3060_v33  ;;  %v3095_v35 = vmul.f32 %v3092_v59, %v3059_v40  ;;  %v3108_v41 = vmul.f32 %v3106_v10, %v3060_v33  ;;  %v3109_v42 = vmul.f32 %v3106_v10, %v3059_v40  ;;  %v12097_v40 = vpop.permute.xlu1 %3125 }
 0x297   :  { %v3062_v48 = vsel %vm700_vm6, %v3056_v38, %v11974_v16  ;;  %v3057_v13 = vsel %vm700_vm6, %v3054_v47, %v3056_v38  ;;  %v3058_v18 = vsel %vm700_vm6, %v11986_v32, %v3054_v47  ;;  %v12088_v51 = vadd.f32 %v3081_v55, %v11994_v3  ;;  %v3120_v16 = vpop.permute.xlu0 %3119 }
 0x298   :  { %v3100_v1 = vadd.f32 %v3094_v12, %v11997_v0  ;;  %v12092_v23 = vadd.f32 %v3095_v35, %v12000_v56  ;;  %v12095_v49 = vstv %s12042_s20  ;;  %v3070_v63 = vmul.f32 %v3064_v57, %v3062_v48  ;;  %s12406_s20 = sld [smem:[#allocation9 + $0x4a]] }
 0x299   :  { %v3084_v43 = vmul.f32 %v3078_v24, %v3062_v48  ;;  %v3098_v38 = vmul.f32 %v3092_v59, %v3062_v48  ;;  %v3112_v44 = vmul.f32 %v3106_v10, %v3062_v48  ;;  %v3114_v32 = vadd.f32 %v3108_v41, %v12008_v14 }
 0x29a   :  { %v3068_v33 = vmul.f32 %v3064_v57, %v3058_v18  ;;  %v3069_v3 = vmul.f32 %v3064_v57, %v3057_v13  ;;  %v3082_v22 = vmul.f32 %v3078_v24, %v3058_v18  ;;  %v3115_v0 = vadd.f32 %v3109_v42, %v12011_v58 }
 0x29b   :  { %v12102_v56 = vadd.f32 %v3070_v63, %v12014_v2  ;;  %v12105_v8 = vadd.f32 %v3084_v43, %v12017_v6  ;;  %v3083_v61 = vmul.f32 %v3078_v24, %v3057_v13  ;;  %v12108_v34 = vadd.f32 %v3098_v38, %v12020_v26 }
 0x29c   :  { %v12111_v14 = vadd.f32 %v3112_v44, %v12023_v52  ;;  %v12113_v47 = vadd.f32 %v3068_v33, %v3000_v15  ;;  %v12116_v57 = vadd.f32 %v3069_v3, %v12026_v37  ;;  %v3096_v58 = vmul.f32 %v3092_v59, %v3058_v18  ;;  %v3124_v15 = vpop.permute.xlu0 %3123 }
 0x29d   :  { %v3097_v28 = vmul.f32 %v3092_v59, %v3057_v13  ;;  %v3110_v2 = vmul.f32 %v3106_v10, %v3058_v18  ;;  %v3111_v25 = vmul.f32 %v3106_v10, %v3057_v13  ;;  %v12119_v6 = vadd.f32 %v3082_v22, %v12036_v7  ;;  %v3130_v10 = vpop.permute.xlu1 %3129 }
 0x29e   :  { %v12122_v24 = vstv %s12073_s21  ;;  %v12125_v26 = vstv %s12075_s22  ;;  %v3135_v52 = vsel %vm775_vm7, %v3120_v16, %v12056_v17  ;;  %v12131_v27 = vadd.f32 %v3083_v61, %v12028_v46  ;;  %s12408_s21 = sld [smem:[#allocation9 + $0x4b]]  ;;  %s12410_s22 = sld [smem:[#allocation9 + $0x4c]] }
 0x29f   :  { %v12134_v37 = vadd.f32 %v3096_v58, %v12039_v50  ;;  %v12137_v59 = vadd.f32 %v3097_v28, %v12030_v4  ;;  %v3180_v7 = vstv %s12085_s23  ;;  %v12140_v55 = vadd.f32 %v3110_v2, %v3042_v62  ;;  %s12412_s23 = sld [smem:[#allocation9 + $0x4d]] }
 0x2a0   :  { %v3139_v12 = vmul.f32 %v12095_v49, %v3135_v52  ;;  %v3153_v35 = vmul.f32 %v12122_v24, %v3135_v52  ;;  %v3167_v41 = vmul.f32 %v12125_v26, %v3135_v52  ;;  %v3117_v42 = vadd.f32 %v3111_v25, %v3043_v39  ;;  %v17843_v25 = vld [vmem:[#allocation16_spill] sm:$0xff] }
 0x2a1   :  { %v3133_v46 = vsel %vm775_vm7, %v3124_v15, %v12097_v40  ;;  %v3134_v4 = vsel %vm775_vm7, %v12056_v17, %v3124_v15  ;;  %v3181_v13 = vmul.f32 %v3180_v7, %v3135_v52  ;;  %v3136_v62 = vsel %vm775_vm7, %v3130_v10, %v3120_v16 }
 0x2a2   :  { %v3145_v50 = vadd.f32 %v3139_v12, %v3071_v36  ;;  %v3159_v48 = vadd.f32 %v3153_v35, %v3085_v11  ;;  %v7387_v18 = vmov 1966171168   ;;  %v3140_v43 = vmul.f32 %v12095_v49, %v3134_v4 }
 0x2a3   :  { %v3203_v63 = vunpack.c.l.s4 %v7387_v18  ;;  %v3141_v39 = vmul.f32 %v12095_v49, %v3133_v46  ;;  %v3154_v38 = vmul.f32 %v12122_v24, %v3134_v4  ;;  %v3173_v44 = vadd.f32 %v3167_v41, %v12062_v19 }
 0x2a4   :  { %v3155_v33 = vmul.f32 %v12122_v24, %v3133_v46  ;;  %v3168_v17 = vmul.f32 %v12125_v26, %v3134_v4  ;;  %v3182_v36 = vmul.f32 %v3180_v7, %v3134_v4  ;;  %v3146_v3 = vadd.f32 %v3140_v43, %v12067_v30  ;;  %v3128_v4 = vpop.permute.xlu0 %3127 }
 0x2a5   :  { %v3204_v11 = vunpack.c.0.s8 %v3203_v63  ;;  %v3160_v16 = vadd.f32 %v3154_v38, %v12071_v31  ;;  %v3169_v22 = vmul.f32 %v12125_v26, %v3133_v46  ;;  %v3187_v61 = vadd.f32 %v3181_v13, %v12065_v20 }
 0x2a6   :  { %v3147_v58 = vadd.f32 %v3141_v39, %v12069_v54  ;;  %v3174_v28 = vadd.f32 %v3168_v17, %v3100_v1  ;;  %v3183_v2 = vmul.f32 %v3180_v7, %v3133_v46  ;;  %v3188_v52 = vadd.f32 %v3182_v36, %v3114_v32 }
 0x2a7   :  { %v12165_v19 = vsub.s32 %v3204_v11, %v17843_v25  ;;  %v3199_v15 = vcombine.low %v3145_v50, %v3146_v3  ;;  %v3251_v12 = vcombine.low %v3159_v48, %v3160_v16  ;;  %v3161_v35 = vadd.f32 %v3155_v33, %v12088_v51 }
 0x2a8   :  { %v3300_v41 = vcombine.low %v3173_v44, %v3174_v28  ;;  %v3144_v30 = vmul.f32 %v12095_v49, %v3136_v62  ;;  %v3158_v31 = vmul.f32 %v12122_v24, %v3136_v62  ;;  %v3175_v20 = vadd.f32 %v3169_v22, %v12092_v23 }
 0x2a9   :  { %17844 = vst [vmem:[#allocation39_spill] sm:$0xff] %v12165_v19  ;;  %v3189_v13 = vadd.f32 %v3183_v2, %v3115_v0  ;;  %v3208_v54 = vrot.slane %v3199_v15, %v12165_v19  ;;  %v3172_v1 = vmul.f32 %v12125_v26, %v3136_v62  ;;  %v3260_v46 = vrot.slane %v3251_v12, %v12165_v19 }
 0x2aa   :  { %v3309_v32 = vrot.slane %v3300_v41, %v12165_v19  ;;  %v3349_v50 = vcombine.low %v3187_v61, %v3188_v52  ;;  %v3186_v48 = vmul.f32 %v3180_v7, %v3136_v62  ;;  %v3150_v51 = vadd.f32 %v3144_v30, %v12102_v56 }
 0x2ab   :  { %v3164_v18 = vadd.f32 %v3158_v31, %v12105_v8  ;;  %v3178_v63 = vadd.f32 %v3172_v1, %v12108_v34  ;;  %v3131_v23 = vsel %vm775_vm7, %v3128_v4, %v3130_v10  ;;  %v3132_v43 = vsel %vm775_vm7, %v12097_v40, %v3128_v4 }
 0x2ac   :  { %v3192_v0 = vadd.f32 %v3186_v48, %v12111_v14  ;;  %v3143_v39 = vmul.f32 %v12095_v49, %v3131_v23  ;;  %v3157_v38 = vmul.f32 %v12122_v24, %v3131_v23  ;;  %v3142_v62 = vmul.f32 %v12095_v49, %v3132_v43 }
 0x2ad   :  { %v3156_v56 = vmul.f32 %v12122_v24, %v3132_v43  ;;  %v3170_v8 = vmul.f32 %v12125_v26, %v3132_v43  ;;  %v3171_v34 = vmul.f32 %v12125_v26, %v3131_v23  ;;  %v3184_v44 = vmul.f32 %v3180_v7, %v3132_v43 }
 0x2ae   :  { %v3149_v10 = vadd.f32 %v3143_v39, %v12116_v57  ;;  %v3163_v14 = vadd.f32 %v3157_v38, %v12131_v27  ;;  %v3185_v33 = vmul.f32 %v3180_v7, %v3131_v23  ;;  %v3148_v40 = vadd.f32 %v3142_v62, %v12113_v47 }
 0x2af   :  { %v3162_v17 = vadd.f32 %v3156_v56, %v12119_v6  ;;  %v3176_v36 = vadd.f32 %v3170_v8, %v12134_v37  ;;  %v3177_v49 = vadd.f32 %v3171_v34, %v12137_v59  ;;  %v3190_v24 = vadd.f32 %v3184_v44, %v12140_v55 }
 0x2b0   :  { %v3191_v11 = vadd.f32 %v3185_v33, %v3117_v42  ;;  %v3201_v3 = vcombine.low %v3149_v10, %v3150_v51  ;;  %v3253_v16 = vcombine.low %v3163_v14, %v3164_v18  ;;  %v3200_v26 = vcombine.low %v3147_v58, %v3148_v40  ;;  %v67_v18 = vld [vmem:[%s17385_s1] sm:$0x3f]  ;;  %s12422_s1 = sld [smem:[#allocation9 + $0x4f]] }
 0x2b1   :  { %v3252_v22 = vcombine.low %v3161_v35, %v3162_v17  ;;  %v3301_v57 = vcombine.low %v3175_v20, %v3176_v36  ;;  %v3302_v61 = vcombine.low %v3177_v49, %v3178_v63  ;;  %v3350_v47 = vcombine.low %v3189_v13, %v3190_v24 }
 0x2b2   :  { %v3222_v27 = vrot.slane %v3201_v3, %v12165_v19  ;;  %v3274_v7 = vrot.slane %v3253_v16, %v12165_v19  ;;  %v3351_v28 = vcombine.low %v3191_v11, %v3192_v0  ;;  %v3215_v6 = vrot.slane %v3200_v26, %v12165_v19 }
 0x2b3   :  { %v3267_v37 = vrot.slane %v3252_v22, %v12165_v19  ;;  %v3316_v59 = vrot.slane %v3301_v57, %v12165_v19  ;;  %v3323_v55 = vrot.slane %v3302_v61, %v12165_v19  ;;  %v3358_v42 = vrot.slane %v3349_v50, %v12165_v19 }
 0x2b4   :  { %v3365_v58 = vrot.slane %v3350_v47, %v12165_v19  ;;  %v3372_v2 = vrot.slane %v3351_v28, %v12165_v19  ;;  %v3223_v52 = vcombine.low %v3208_v54, %v3215_v6  ;;  %v3237_v35 = vrot.slane %v3222_v27, %v12165_v19 }
 0x2b5   :  { %v3275_v15 = vcombine.low %v3260_v46, %v3267_v37  ;;  %v3324_v12 = vcombine.low %v3309_v32, %v3316_v59  ;;  %v3289_v41 = vrot.slane %v3274_v7, %v12165_v19  ;;  %v3338_v13 = vrot.slane %v3323_v55, %v12165_v19 }
 0x2b6   :  { %v3373_v30 = vcombine.low %v3358_v42, %v3365_v58  ;;  %v3230_v31 = vrot.slane %v3223_v52, %v12165_v19  ;;  %v17845_v1 = vlaneseq  ;;  %v17846_v50 = vmov 0 }
 0x2b7   :  { %v3282_v4 = vrot.slane %v3275_v15, %v12165_v19  ;;  %v3331_v20 = vrot.slane %v3324_v12, %v12165_v19  ;;  %v3387_v46 = vrot.slane %v3372_v2, %v12165_v19  ;;  %v12231_v23 = vrot.slane %v67_v18, %v17842_v45 }
 0x2b8   :  { %vm12213_vm8 = vcmp.lt.s32.totalorder %v17845_v1, 768  ;;  %v3380_v54 = vrot.slane %v3373_v30, %v12165_v19  ;;  %v3238_v32 = vcombine.low %v3230_v31, %v3237_v35  ;;  %v12234_v0 = vrot.slane %v67_v18, %v17834_v5 }
 0x2b9   :  { %v17847_v50 = vsel %vm12213_vm8, 4294967295, %v17846_v50  ;;  %v3290_v48 = vcombine.low %v3282_v4, %v3289_v41  ;;  %v3339_v51 = vcombine.low %v3331_v20, %v3338_v13  ;;  %v12237_v43 = vrot.slane %v67_v18, %v17835_v53 }
 0x2ba   :  { %17848 = vst [vmem:[#allocation24_spill] sm:$0xff] %v17847_v50  ;;  %v3388_v63 = vcombine.low %v3380_v54, %v3387_v46  ;;  %3244 = vst.msk [vmem:[#allocation2] ss:$4 sm:$0x3f] %vm12213_vm8, %v3238_v32  ;;  %v12240_v39 = vrot.slane %v67_v18, %v17837_v60  ;;  %v12243_v38 = vrot.slane %v67_v18, %v17838_v9  ;;  %v7388_v1 = vmov 0  }
 0x2bb   :  { %3293 = vst.msk [vmem:[#allocation2 + $0x1] ss:$4 sm:$0x3f] %vm12213_vm8, %v3290_v48  ;;  %3342 = vst.msk [vmem:[#allocation2 + $0x2] ss:$4 sm:$0x3f] %vm12213_vm8, %v3339_v51  ;;  %v12246_v62 = vrot.slane %v67_v18, %v17836_v21  ;;  %v12250_v56 = vcombine.low %v12231_v23, %v12234_v0  ;;  %7291 = vset.pattern.permute.xlu0 %v7388_v1  ;;  %7292 = vset.pattern.permute.xlu1 %v7388_v1 }
 0x2bc   :  { %3391 = vst.msk [vmem:[#allocation2 + $0x3] ss:$4 sm:$0x3f] %vm12213_vm8, %v3388_v63  ;;  %v12254_v8 = vcombine.low %v12237_v43, %v12240_v39 }
 0x2bd   :  { %17849 = vst [vmem:[#allocation25_spill] sm:$0xff] %v12250_v56  ;;  %v12258_v34 = vcombine.low %v12243_v38, %v12246_v62 }
 0x2be   :  { %17850 = vst [vmem:[#allocation40_spill] sm:$0xff] %v12254_v8 }
 0x2bf   :  { %17851 = vst [vmem:[#allocation41_spill] sm:$0xff] %v12258_v34 }
 0x2c3   :  { %v12260_v10 = vld [vmem:[#allocation2] sm:$0xff]  ;;  %v12262_v14 = vld [vmem:[#allocation2 + $0x8] sm:$0xff]  ;;  %v12264_v44 = vld [vmem:[#allocation2 + $0x10] sm:$0xff] }
 0x2c4   :  { %v3432_v33 = vmul.f32 %v12250_v56, %v12260_v10  ;;  %v3433_v40 = vmul.f32 %v12254_v8, %v12262_v14  ;;  %v3434_v17 = vmul.f32 %v12258_v34, %v12264_v44  ;;  %v17882_v8 = vstv %s12422_s1  ;;  %s12856_s1 = sld [smem:[#allocation9 + $0x81]] }
 0x2c6   :  { %v3438_v36 = vcombine.high %v3432_v33, %v3432_v33  ;;  %v3458_v49 = vmul.f32 %v3432_v33, %v3432_v33  ;;  %v3459_v24 = vmul.f32 %v3433_v40, %v3433_v40  ;;  %v3439_v11 = vcombine.high %v3433_v40, %v3433_v40 }
 0x2c7   :  { %v3445_v3 = vsel %vm3444_vm9, %v3432_v33, 0.0  ;;  %v3448_v57 = vsel %vm3444_vm9, %v3433_v40, 0.0  ;;  %v3460_v61 = vmul.f32 %v3434_v17, %v3434_v17  ;;  %v3440_v6 = vcombine.high %v3434_v17, %v3434_v17  ;;  %v3487_v33 = vld [vmem:[%s17387_s3] sm:$0xf]  ;;  %s12378_s3 = sld [smem:[#allocation9 + $0x40]] }
 0x2c8   :  { %v3446_v16 = vsel %vm3444_vm9, %v3438_v36, 0.0  ;;  %v3464_v22 = vcombine.high %v3458_v49, %v3458_v49  ;;  %v3465_v7 = vcombine.high %v3459_v24, %v3459_v24  ;;  %v3470_v47 = vsel %vm3444_vm9, %v3458_v49, 0.0  ;;  %v3491_v36 = vld [vmem:[%s17388_s4] sm:$0xf]  ;;  %s12380_s4 = sld [smem:[#allocation9 + $0x41]] }
 0x2c9   :  { %v3447_v26 = vadd.f32 %v3446_v16, %v3445_v3  ;;  %v3450_v37 = vsel %vm3444_vm9, %v3439_v11, 0.0  ;;  %v3473_v42 = vsel %vm3444_vm9, %v3459_v24, 0.0  ;;  %v3452_v58 = vsel %vm3444_vm9, %v3434_v17, 0.0 }
 0x2ca   :  { %v3471_v28 = vsel %vm3444_vm9, %v3464_v22, 0.0  ;;  %v3466_v15 = vcombine.high %v3460_v61, %v3460_v61  ;;  %v3475_v12 = vsel %vm3444_vm9, %v3465_v7, 0.0  ;;  %v3454_v35 = vsel %vm3444_vm9, %v3440_v6, 0.0 }
 0x2cb   :  { %v3449_v27 = vadd.f32 %v3448_v57, %v3447_v26  ;;  %v3472_v59 = vadd.f32 %v3471_v28, %v3470_v47  ;;  %v3477_v31 = vsel %vm3444_vm9, %v3460_v61, 0.0  ;;  %v7389_v11 = vmov 839922192  }
 0x2cc   :  { %v3479_v20 = vsel %vm3444_vm9, %v3466_v15, 0.0  ;;  %v3499_v3 = vunpack.c.l.s4 %v7389_v11  ;;  %v5515_v11 = vstv %s12406_s20  ;;  %s12750_s20 = sld [smem:[#allocation9 + $0x32]] }
 0x2cd   :  { %v3451_v55 = vadd.f32 %v3450_v37, %v3449_v27  ;;  %v3474_v2 = vadd.f32 %v3473_v42, %v3472_v59 }
 0x2ce   :  { %v3500_v16 = vunpack.c.0.s8 %v3499_v3  ;;  %v5555_v3 = vstv %s12408_s21  ;;  %s12752_s21 = sld [smem:[#allocation9 + $0x33]] }
 0x2cf   :  { %v3453_v52 = vadd.f32 %v3452_v58, %v3451_v55  ;;  %v3476_v41 = vadd.f32 %v3475_v12, %v3474_v2 }
 0x2d0   :  { %v12291_v26 = vsub.s32 %v3500_v16, %v17843_v25 }
 0x2d1   :  { %v3455_v30 = vadd.f32 %v3454_v35, %v3453_v52  ;;  %v3478_v4 = vadd.f32 %v3477_v31, %v3476_v41 }
 0x2d2   :  { %17852 = vst [vmem:[#allocation42_spill] sm:$0xff] %v12291_v26 }
 0x2d3   :  { %3456 = vadd.xlane.f32.xlu0 %v3455_v30  ;;  %v3480_v13 = vadd.f32 %v3479_v20, %v3478_v4 }
 0x2d5   :  { %3481 = vadd.xlane.f32.xlu1 %v3480_v13 }
 0x360   :  { %v3457_v54 = vpop.xlane.xlu0 %3456 }
 0x361   :  { %v3483_v46 = vmul.f32 0.001953125, %v3457_v54 }
 0x362   :  { %v3482_v48 = vpop.xlane.xlu1 %3481 }
 0x363   :  { %v3485_v32 = vmul.f32 %v3483_v46, %v3483_v46  ;;  %v3484_v51 = vmul.f32 0.001953125, %v3482_v48  ;;  %v3905_v48 = vstv %s12380_s4  ;;  %s12541_s4 = sld [smem:[#allocation9 + $0x11]] }
 0x365   :  { %v3486_v18 = vsub.f32 %v3484_v51, %v3485_v32  ;;  %v3865_v32 = vstv %s12378_s3  ;;  %v3945_v51 = vstv %s12382_s14  ;;  %s12539_s3 = sld [smem:[#allocation9 + $0x10]]  ;;  %s12586_s14 = sld [smem:[#allocation9 + $0x12]] }
 0x367   :  { %v3488_v63 = vadd.f32 1e-05, %v3486_v18 }
 0x369   :  { %7293 = vrsqrt.f32 %v3488_v63  ;;  %v3985_v63 = vstv %s12387_s15  ;;  %s12640_s15 = sld [smem:[#allocation9 + $0x13]] }
 0x373   :  { %v7294_v40 = vpop.eup %7293 }
 0x374   :  { %v3490_v17 = vmul.f32 %v7294_v40, %v3487_v33  ;;  %v4650_v33 = vstv %s12389_s9  ;;  %v4690_v40 = vstv %s12391_s2  ;;  %s12662_s9 = sld [smem:[#allocation9 + $0x20]]  ;;  %s12664_s2 = sld [smem:[#allocation9 + $0x21]] }
 0x376   :  { %3496 = vperm.xlu0 %7291, %v3490_v17   ;;  %v3492_v49 = vmul.f32 %v3490_v17, %v3483_v46  ;;  %v4730_v17 = vstv %s12393_s18  ;;  %s12687_s18 = sld [smem:[#allocation9 + $0x22]] }
 0x378   :  { %v3493_v24 = vsub.f32 %v3491_v36, %v3492_v49  ;;  %v4770_v36 = vstv %s12395_s28  ;;  %v5435_v49 = vstv %s12397_s27  ;;  %s12689_s28 = sld [smem:[#allocation9 + $0x23]]  ;;  %s12728_s27 = sld [smem:[#allocation9 + $0x30]] }
 0x37a   :  { %3511 = vperm.xlu1 %7292, %v3493_v24   ;;  %v5475_v24 = vstv %s12401_s19  ;;  %s12730_s19 = sld [smem:[#allocation9 + $0x31]] }
 0x37e   :  { %v12909_v19 = vstv %s12728_s27  ;;  %s12932_s27 = sld [smem:[#allocation9 + $0x6]] }
 0x37f   :  { %17884 = vst [vmem:[#allocation32_spill] sm:$0xff] %v12909_v19 }
 0x380   :  { %v12924_v50 = vstv %s12730_s19  ;;  %s12947_s19 = sld [smem:[#allocation9 + $0x7]] }
 0x381   :  { %17885 = vst [vmem:[#allocation33_spill] sm:$0xff] %v12924_v50 }
 0x3f5   :  { %v3497_v22 = vpop.permute.xlu0 %3496 }
 0x3f6   :  { %v3504_v57 = vrot.slane %v3497_v22, %v12291_v26 }
 0x3f8   :  { %v3506_v27 = vmul.f32 %v3504_v57, %v12260_v10  ;;  %v3507_v7 = vmul.f32 %v3504_v57, %v12262_v14  ;;  %v3508_v47 = vmul.f32 %v3504_v57, %v12264_v44 }
 0x3f9   :  { %v3512_v61 = vpop.permute.xlu1 %3511 }
 0x3fa   :  { %v3519_v28 = vrot.slane %v3512_v61, %v12291_v26  ;;  %v6220_v61 = vstv %s12410_s22  ;;  %s12760_s22 = sld [smem:[#allocation9 + $0x50]]  ;;  %v17880_v26 = vstv %s12418_s24 }
 0x3fb   :  { %s12854_s24 = sld [smem:[#allocation9 + $0x80]] }
 0x3fc   :  { %v3521_v6 = vadd.f32 %v3519_v28, %v3506_v27  ;;  %v3522_v37 = vadd.f32 %v3519_v28, %v3507_v7  ;;  %v3523_v59 = vadd.f32 %v3519_v28, %v3508_v47  ;;  %v6260_v27 = vstv %s12412_s23  ;;  %s12762_s23 = sld [smem:[#allocation9 + $0x51]] }
 0x3fe   :  { %v3527_v55 = vcombine.high %v3521_v6, %v3521_v6  ;;  %v3528_v42 = vcombine.high %v3522_v37, %v3522_v37  ;;  %v3529_v58 = vcombine.high %v3523_v59, %v3523_v59  ;;  %v3533_v25 = vmul.f32 %v3521_v6, %v12231_v23 }
 0x3ff   :  { %v3535_v2 = vmul.f32 %v3522_v37, %v12237_v43  ;;  %v3537_v52 = vmul.f32 %v3523_v59, %v12243_v38 }
 0x400   :  { %v3534_v10 = vmul.f32 %v3527_v55, %v12234_v0  ;;  %v3536_v14 = vmul.f32 %v3528_v42, %v12240_v39  ;;  %v3538_v44 = vmul.f32 %v3529_v58, %v12246_v62  ;;  %v3539_v15 = vmax.f32 %v3533_v25, 0.0 }
 0x401   :  { %v3541_v12 = vmax.f32 %v3535_v2, 0.0  ;;  %v3543_v30 = vmax.f32 %v3537_v52, 0.0  ;;  %v12482_v55 = vstv %s12420_s0  ;;  %v12494_v25 = vstv %s12428_s10  ;;  %s12776_s0 = sld [smem:[#allocation9 + $0x52]]  ;;  %s12778_s10 = sld [smem:[#allocation9 + $0x53]] }
 0x402   :  { %v3540_v35 = vmax.f32 %v3534_v10, 0.0  ;;  %v3542_v41 = vmax.f32 %v3536_v14, 0.0  ;;  %v3544_v31 = vmax.f32 %v3538_v44, 0.0  ;;  %v12792_v14 = vstv %s12664_s2  ;;  %s12844_s2 = sld [smem:[#allocation9 + $0x73]] }
 0x403   :  { %v12939_v42 = vstv %s12760_s22  ;;  %s12996_s22 = sld [smem:[#allocation9 + $0x26]] }
 0x404   :  { %v3551_v4 = vcombine.low %v3539_v15, %v3540_v35  ;;  %v3552_v20 = vcombine.low %v3541_v12, %v3542_v41  ;;  %v3553_v13 = vcombine.low %v3543_v30, %v3544_v31  ;;  %v12789_v12 = vstv %s12662_s9  ;;  %s12842_s9 = sld [smem:[#allocation9 + $0x72]]  ;;  %17889 = vst [vmem:[#allocation16_spill] sm:$0xff] %v12939_v42 }
 0x406   :  { %3557 = vst [vmem:[#allocation3] sm:$0xff] %v3551_v4  ;;  %3558 = vst [vmem:[#allocation3 + $0x8] sm:$0xff] %v3552_v20 }
 0x407   :  { %3559 = vst [vmem:[#allocation3 + $0x10] sm:$0xff] %v3553_v13 }
 0x40e   :  { %v12304_v23 = vld [vmem:[#allocation3] ss:$4 sm:$0x3f]  ;;  %v12399_v54 = vld [vmem:[#allocation3 + $0x1] ss:$4 sm:$0x3f] }
 0x40f   :  { %v3565_v0 = vrot.slane %v12304_v23, %v17842_v45  ;;  %v3573_v43 = vrot.slane %v12304_v23, %v17835_v53  ;;  %v12314_v39 = vrot.slane %v12304_v23, %v17834_v5  ;;  %v3581_v38 = vrot.slane %v12304_v23, %v17838_v9  ;;  %v12452_v16 = vld [vmem:[#allocation3 + $0x2] ss:$4 sm:$0x3f] }
 0x410   :  { %v12325_v62 = vrot.slane %v12304_v23, %v17837_v60  ;;  %v12334_v1 = vrot.slane %v12304_v23, %v17836_v21  ;;  %v12416_v46 = vrot.slane %v12399_v54, %v17842_v45  ;;  %v12435_v18 = vrot.slane %v12399_v54, %v17835_v53 }
 0x411   :  { %3642 = vrot.lane.b32.xlu0 %v3565_v0, %s17494_s25  ;;  %3592 = vrot.lane.b32.xlu1 %v3565_v0, %s17490_s5  ;;  %v12455_v22 = vmul.f32 %v3865_v32, %v12304_v23  ;;  %v12458_v57 = vmul.f32 %v3905_v48, %v12304_v23  ;;  %v12464_v7 = vrot.slane %v12399_v54, %v17838_v9  ;;  %v12638_v48 = vstv %s12541_s4  ;;  %s12814_s4 = sld [smem:[#allocation9 + $0x63]] }
 0x412   :  { %v12467_v47 = vmul.f32 %v3945_v51, %v12304_v23  ;;  %v12470_v28 = vmul.f32 %v3985_v63, %v12304_v23  ;;  %v12475_v37 = vrot.slane %v12399_v54, %v17836_v21  ;;  %v12479_v59 = vrot.slane %v12399_v54, %v17834_v5  ;;  %v12557_v63 = vld [vmem:[#allocation3 + $0x3] ss:$4 sm:$0x3f] }
 0x413   :  { %17853 = vst [vmem:[#allocation48_spill] sm:$0xff] %v12455_v22  ;;  %17854 = vst [vmem:[#allocation34_spill] sm:$0xff] %v12458_v57  ;;  %v12491_v58 = vrot.slane %v12399_v54, %v17837_v60  ;;  %v12500_v2 = vrot.slane %v12452_v16, %v17842_v45  ;;  %v12504_v52 = vrot.slane %v12452_v16, %v17835_v53  ;;  %v12537_v23 = vstv %s12448_s11  ;;  %s12794_s11 = sld [smem:[#allocation9 + $0x60]] }
 0x414   :  { %17855 = vst [vmem:[#allocation35_spill] sm:$0xff] %v12467_v47  ;;  %17856 = vst [vmem:[#allocation36_spill] sm:$0xff] %v12470_v28  ;;  %v12514_v15 = vrot.slane %v12452_v16, %v17836_v21  ;;  %v12567_v32 = vmul.f32 %v4690_v40, %v12399_v54  ;;  %v12606_v40 = vrot.slane %v12557_v63, %v17842_v45  ;;  %v12685_v51 = vstv %s12586_s14  ;;  %s12820_s14 = sld [smem:[#allocation9 + $0x70]] }
 0x415   :  { %3646 = vrot.lane.b32.xlu0 %v3573_v43, %s17494_s25  ;;  %3594 = vrot.lane.b32.xlu1 %v12314_v39, %s17490_s5  ;;  %17857 = vst [vmem:[#allocation37_spill] sm:$0xff] %v12475_v37  ;;  %17858 = vst [vmem:[#allocation43_spill] sm:$0xff] %v12500_v2  ;;  %v12620_v13 = vrot.slane %v12557_v63, %v17836_v21  ;;  %v12673_v30 = vmul.f32 %v5435_v49, %v12452_v16 }
 0x416   :  { %17859 = vst [vmem:[#allocation44_spill] sm:$0xff] %v12504_v52  ;;  %17860 = vst [vmem:[#allocation45_spill] sm:$0xff] %v12514_v15  ;;  %v12678_v4 = vmul.f32 %v5475_v24, %v12452_v16  ;;  %v12698_v31 = vmul.f32 %v5515_v11, %v12452_v16  ;;  %v12709_v49 = vmul.f32 %v5555_v3, %v12452_v16 }
 0x417   :  { %17862 = vst [vmem:[#allocation47_spill] sm:$0xff] %v12567_v32  ;;  %17868 = vst [vmem:[#allocation54_spill] sm:$0xff] %v12606_v40  ;;  %v12713_v24 = vrot.slane %v12557_v63, %v17834_v5  ;;  %v12717_v11 = vrot.slane %v12557_v63, %v17837_v60  ;;  %v12721_v35 = vrot.slane %v12557_v63, %v17838_v9 }
 0x418   :  { %17870 = vst [vmem:[#allocation26_spill] sm:$0xff] %v12620_v13  ;;  %17871 = vst [vmem:[#allocation27_spill] sm:$0xff] %v12673_v30  ;;  %v12726_v20 = vmul.f32 %v6220_v61, %v12557_v63  ;;  %v12741_v41 = vmul.f32 %v6260_v27, %v12557_v63  ;;  %v12748_v61 = vstv %s12640_s15  ;;  %s12822_s15 = sld [smem:[#allocation9 + $0x71]]  ;;  %v12831_v34 = vmul.f32 %v17880_v26, %v12557_v63 }
 0x419   :  { %3650 = vrot.lane.b32.xlu0 %v3581_v38, %s17494_s25  ;;  %3596 = vrot.lane.b32.xlu1 %v3573_v43, %s17490_s5  ;;  %17872 = vst [vmem:[#allocation56_spill] sm:$0xff] %v12678_v4  ;;  %17873 = vst [vmem:[#allocation57_spill] sm:$0xff] %v12698_v31  ;;  %v12836_v3 = vmul.f32 %v17882_v8, %v12557_v63  ;;  %v12942_v8 = vstv %s12762_s23  ;;  %v12954_v4 = vstv %s12778_s10  ;;  %s12998_s23 = sld [smem:[#allocation9 + $0x27]]  ;;  %s14567_s10 = sld [smem:[#allocation9 + $0x54]] }
 0x41a   :  { %17874 = vst [vmem:[#allocation58_spill] sm:$0xff] %v12709_v49  ;;  %17875 = vst [vmem:[#allocation59_spill] sm:$0xff] %v12713_v24  ;;  %v12930_v49 = vstv %s12752_s21  ;;  %v12957_v30 = vstv %s12794_s11  ;;  %s12967_s21 = sld [smem:[#allocation9 + $0x25]]  ;;  %v12970_v31 = vstv %s12814_s4  ;;  %v12973_v24 = vstv %s12820_s14  ;;  %s14766_s4 = sld [smem:[#allocation9 + $0x64]] }
 0x41b   :  { %17876 = vst [vmem:[#allocation60_spill] sm:$0xff] %v12717_v11  ;;  %17877 = vst [vmem:[#allocation61_spill] sm:$0xff] %v12721_v35  ;;  %v12991_v13 = vstv %s12854_s24  ;;  %s14569_s11 = sld [smem:[#allocation9 + $0x55]] }
 0x41c   :  { %17878 = vst [vmem:[#allocation28_spill] sm:$0xff] %v12726_v20  ;;  %17879 = vst [vmem:[#allocation29_spill] sm:$0xff] %v12741_v41  ;;  %v12945_v20 = vstv %s12776_s0  ;;  %s17937_s0 = smov 19   ;;  %s14768_s14 = sld [smem:[#allocation9 + $0x65]] }
 0x41d   :  { %3716 = vrot.lane.b32.xlu0 %v3565_v0, %s17492_s26  ;;  %3598 = vrot.lane.b32.xlu1 %v12325_v62, %s17490_s5  ;;  %17881 = vst [vmem:[#allocation30_spill] sm:$0xff] %v12831_v34  ;;  %17883 = vst [vmem:[#allocation31_spill] sm:$0xff] %v12836_v3  ;;  %v12927_v3 = vstv %s12750_s20  ;;  %s12965_s20 = sld [smem:[#allocation9 + $0x24]]  ;;  %s14890_s24 = sld [smem:[#allocation9 + $0x75]] }
 0x41e   :  { %17886 = vst [vmem:[#allocation38_spill] sm:$0xff] %v12927_v3  ;;  %17887 = vst [vmem:[#allocation23_spill] sm:$0xff] %v12930_v49 }
 0x41f   :  { %17890 = vst [vmem:[#allocation62_spill] sm:$0xff] %v12942_v8  ;;  %17891 = vst [vmem:[#allocation63_spill] sm:$0xff] %v12945_v20  ;;  %v13086_v15 = vstv %s12998_s23  ;;  %s15134_s23 = sld [smem:[#allocation9 + $0x87]] }
 0x420   :  { %17892 = vst [vmem:[#allocation64_spill] sm:$0xff] %v12954_v4  ;;  %17893 = vst [vmem:[#allocation65_spill] sm:$0xff] %v12957_v30  ;;  %v13061_v30 = vstv %s12967_s21  ;;  %s15118_s21 = sld [smem:[#allocation9 + $0x85]] }
 0x421   :  { %3720 = vrot.lane.b32.xlu0 %v3573_v43, %s17492_s26  ;;  %3600 = vrot.lane.b32.xlu1 %v3581_v38, %s17490_s5  ;;  %17896 = vst [vmem:[#allocation68_spill] sm:$0xff] %v12970_v31  ;;  %17897 = vst [vmem:[#allocation69_spill] sm:$0xff] %v12973_v24 }
 0x422   :  { %17901 = vst [vmem:[#allocation73_spill] sm:$0xff] %v12991_v13  ;;  %v13033_v13 = vstv %s12913_s6  ;;  %s17912_s6 = smov 17   ;;  %17915 = vst [vmem:[#allocation86_spill] sm:$0xff] %v13061_v30  ;;  %v13083_v30 = vstv %s12996_s22  ;;  %s15120_s22 = sld [smem:[#allocation9 + $0x86]] }
 0x423   :  { %17910 = vst [vmem:[#allocation82_spill] sm:$0xff] %v13033_v13  ;;  %17916 = vst [vmem:[#allocation87_spill] sm:$0xff] %v13083_v30 }
 0x424   :  { %17917 = vst [vmem:[#allocation88_spill] sm:$0xff] %v13086_v15 }
 0x425   :  { %3724 = vrot.lane.b32.xlu0 %v3581_v38, %s17492_s26  ;;  %3602 = vrot.lane.b32.xlu1 %v12334_v1, %s17490_s5 }
 0x429   :  { %3790 = vrot.lane.b32.xlu0 %v3565_v0, %s17720_s13  ;;  %3644 = vrot.lane.b32.xlu1 %v12314_v39, %s17494_s25 }
 0x42d   :  { %3794 = vrot.lane.b32.xlu0 %v3573_v43, %s17720_s13  ;;  %3648 = vrot.lane.b32.xlu1 %v12325_v62, %s17494_s25 }
 0x431   :  { %3798 = vrot.lane.b32.xlu0 %v3581_v38, %s17720_s13  ;;  %3652 = vrot.lane.b32.xlu1 %v12334_v1, %s17494_s25 }
 0x435   :  { %4024 = vrot.lane.b32.xlu0 %v3565_v0, %s17725_s16  ;;  %3718 = vrot.lane.b32.xlu1 %v12314_v39, %s17492_s26 }
 0x439   :  { %4028 = vrot.lane.b32.xlu0 %v3573_v43, %s17725_s16  ;;  %3722 = vrot.lane.b32.xlu1 %v12325_v62, %s17492_s26 }
 0x43d   :  { %4032 = vrot.lane.b32.xlu0 %v3581_v38, %s17725_s16  ;;  %3726 = vrot.lane.b32.xlu1 %v12334_v1, %s17492_s26 }
 0x441   :  { %4098 = vrot.lane.b32.xlu0 %v3565_v0, %s17728_s29  ;;  %3792 = vrot.lane.b32.xlu1 %v12314_v39, %s17720_s13 }
 0x445   :  { %4102 = vrot.lane.b32.xlu0 %v3573_v43, %s17728_s29  ;;  %3796 = vrot.lane.b32.xlu1 %v12325_v62, %s17720_s13 }
 0x449   :  { %4106 = vrot.lane.b32.xlu0 %v3581_v38, %s17728_s29  ;;  %3800 = vrot.lane.b32.xlu1 %v12334_v1, %s17720_s13 }
 0x44d   :  { %4172 = vrot.lane.b32.xlu0 %v3565_v0, %s17729_s30  ;;  %4026 = vrot.lane.b32.xlu1 %v12314_v39, %s17725_s16 }
 0x451   :  { %4176 = vrot.lane.b32.xlu0 %v3573_v43, %s17729_s30  ;;  %4030 = vrot.lane.b32.xlu1 %v12325_v62, %s17725_s16 }
 0x455   :  { %4180 = vrot.lane.b32.xlu0 %v3581_v38, %s17729_s30  ;;  %4034 = vrot.lane.b32.xlu1 %v12334_v1, %s17725_s16 }
 0x459   :  { %4246 = vrot.lane.b32.xlu0 %v3565_v0, %s17755_s17  ;;  %4100 = vrot.lane.b32.xlu1 %v12314_v39, %s17728_s29  ;;  %v12564_v0 = vmul.f32 %v4650_v33, %v12399_v54  ;;  %v12584_v33 = vstv %s12496_s12  ;;  %s12796_s12 = sld [smem:[#allocation9 + $0x61]] }
 0x45b   :  { %17861 = vst [vmem:[#allocation46_spill] sm:$0xff] %v12564_v0  ;;  %v12988_v0 = vstv %s12844_s2  ;;  %s14888_s2 = sld [smem:[#allocation9 + $0x74]] }
 0x45c   :  { %17900 = vst [vmem:[#allocation72_spill] sm:$0xff] %v12988_v0 }
 0x45d   :  { %4250 = vrot.lane.b32.xlu0 %v3573_v43, %s17755_s17  ;;  %4104 = vrot.lane.b32.xlu1 %v12325_v62, %s17728_s29  ;;  %v12577_v43 = vmul.f32 %v4770_v36, %v12399_v54  ;;  %v12598_v36 = vrot.slane %v12452_v16, %v17837_v60 }
 0x45f   :  { %17864 = vst [vmem:[#allocation50_spill] sm:$0xff] %v12577_v43  ;;  %17866 = vst [vmem:[#allocation52_spill] sm:$0xff] %v12598_v36  ;;  %v12960_v35 = vstv %s12796_s12  ;;  %v12976_v43 = vstv %s12822_s15  ;;  %s14588_s12 = sld [smem:[#allocation9 + $0x56]] }
 0x460   :  { %17894 = vst [vmem:[#allocation66_spill] sm:$0xff] %v12960_v35  ;;  %17898 = vst [vmem:[#allocation70_spill] sm:$0xff] %v12976_v43  ;;  %v13058_v35 = vstv %s12965_s20  ;;  %s14780_s15 = sld [smem:[#allocation9 + $0x66]]  ;;  %s15100_s20 = sld [smem:[#allocation9 + $0x84]] }
 0x461   :  { %4254 = vrot.lane.b32.xlu0 %v3581_v38, %s17755_s17  ;;  %4108 = vrot.lane.b32.xlu1 %v12334_v1, %s17728_s29  ;;  %v12635_v38 = vstv %s12539_s3  ;;  %s12812_s3 = sld [smem:[#allocation9 + $0x62]]  ;;  %17914 = vst [vmem:[#allocation85_spill] sm:$0xff] %v13058_v35 }
 0x465   :  { %4353 = vrot.lane.b32.xlu0 %v12416_v46, %s17490_s5  ;;  %4174 = vrot.lane.b32.xlu1 %v12314_v39, %s17729_s30 }
 0x467   :  { %v12963_v11 = vstv %s12812_s3  ;;  %s14590_s3 = sld [smem:[#allocation9 + $0x57]] }
 0x468   :  { %17895 = vst [vmem:[#allocation67_spill] sm:$0xff] %v12963_v11 }
 0x469   :  { %4357 = vrot.lane.b32.xlu0 %v12435_v18, %s17490_s5  ;;  %4178 = vrot.lane.b32.xlu1 %v12325_v62, %s17729_s30 }
 0x46d   :  { %4361 = vrot.lane.b32.xlu0 %v12464_v7, %s17490_s5  ;;  %4182 = vrot.lane.b32.xlu1 %v12334_v1, %s17729_s30 }
 0x471   :  { %4427 = vrot.lane.b32.xlu0 %v12416_v46, %s17494_s25  ;;  %4248 = vrot.lane.b32.xlu1 %v12314_v39, %s17755_s17  ;;  %v12574_v39 = vmul.f32 %v4730_v17, %v12399_v54  ;;  %v12594_v54 = vrot.slane %v12452_v16, %v17834_v5  ;;  %v12610_v17 = vrot.slane %v12557_v63, %v17835_v53 }
 0x473   :  { %17863 = vst [vmem:[#allocation49_spill] sm:$0xff] %v12574_v39  ;;  %17865 = vst [vmem:[#allocation51_spill] sm:$0xff] %v12594_v54  ;;  %v12979_v39 = vstv %s12842_s9  ;;  %v13030_v54 = vstv %s12911_s7  ;;  %s13120_s7 = sld [smem:[#allocation9 + $0x34]]  ;;  %s14782_s9 = sld [smem:[#allocation9 + $0x67]] }
 0x474   :  { %17869 = vst [vmem:[#allocation55_spill] sm:$0xff] %v12610_v17  ;;  %17899 = vst [vmem:[#allocation71_spill] sm:$0xff] %v12979_v39  ;;  %v12994_v17 = vstv %s12856_s1  ;;  %s14930_s1 = sld [smem:[#allocation9 + $0x76]] }
 0x475   :  { %4431 = vrot.lane.b32.xlu0 %v12435_v18, %s17494_s25  ;;  %4252 = vrot.lane.b32.xlu1 %v12325_v62, %s17755_s17  ;;  %v12602_v62 = vrot.slane %v12452_v16, %v17838_v9  ;;  %v12810_v16 = vstv %s12689_s28  ;;  %s12870_s28 = sld [smem:[#allocation9 + $0x83]]  ;;  %17902 = vst [vmem:[#allocation74_spill] sm:$0xff] %v12994_v17  ;;  %17909 = vst [vmem:[#allocation81_spill] sm:$0xff] %v13030_v54 }
 0x477   :  { %17867 = vst [vmem:[#allocation53_spill] sm:$0xff] %v12602_v62 }
 0x479   :  { %4437 = vrot.lane.b32.xlu0 %v12475_v37, %s17494_s25  ;;  %4256 = vrot.lane.b32.xlu1 %v12334_v1, %s17755_s17  ;;  %v12807_v1 = vstv %s12687_s18  ;;  %s12868_s18 = sld [smem:[#allocation9 + $0x82]]  ;;  %s17888_s17 = smov 18  }
 0x47b   :  { %v13006_v39 = vstv %s12870_s28  ;;  %s14986_s28 = sld [smem:[#allocation9 + $0x9]] }
 0x47c   :  { %17904 = vst [vmem:[#allocation76_spill] sm:$0xff] %v13006_v39 }
 0x47d   :  { %4501 = vrot.lane.b32.xlu0 %v12416_v46, %s17492_s26  ;;  %4355 = vrot.lane.b32.xlu1 %v12479_v59, %s17490_s5 }
 0x47f   :  { %v13003_v40 = vstv %s12868_s18  ;;  %s14932_s18 = sld [smem:[#allocation9 + $0x77]] }
 0x480   :  { %17903 = vst [vmem:[#allocation75_spill] sm:$0xff] %v13003_v40  ;;  %v13025_v40 = vstv %s12898_s8  ;;  %s13122_s8 = sld [smem:[#allocation9 + $0x35]] }
 0x481   :  { %4505 = vrot.lane.b32.xlu0 %v12435_v18, %s17492_s26  ;;  %4359 = vrot.lane.b32.xlu1 %v12491_v58, %s17490_s5  ;;  %17908 = vst [vmem:[#allocation80_spill] sm:$0xff] %v13025_v40  ;;  %v13042_v40 = vstv %s12932_s27  ;;  %s15042_s27 = sld [smem:[#allocation9 + $0xa]] }
 0x482   :  { %17911 = vst [vmem:[#allocation83_spill] sm:$0xff] %v13042_v40 }
 0x483   :  { %v12772_v10 = vpop.permute.xlu0 %3642  ;;  %v12774_v27 = vpop.permute.xlu1 %3592 }
 0x485   :  { %4511 = vrot.lane.b32.xlu0 %v12475_v37, %s17492_s26  ;;  %4363 = vrot.lane.b32.xlu1 %v12475_v37, %s17490_s5  ;;  %s12882_s5 = sld [smem:[#allocation9 + $0x14]]  ;;  %s12884_s26 = sld [smem:[#allocation9 + $0x15]] }
 0x487   :  { %v12838_v56 = vpop.permute.xlu0 %3646  ;;  %v12840_v44 = vpop.permute.xlu1 %3594 }
 0x488   :  { %v3608_v32 = vsel %vm114_vm0, %v12774_v27, %v12840_v44 }
 0x489   :  { %4575 = vrot.lane.b32.xlu0 %v12416_v46, %s17720_s13  ;;  %4429 = vrot.lane.b32.xlu1 %v12479_v59, %s17494_s25  ;;  %s12896_s25 = sld [smem:[#allocation9 + $0x16]]  ;;  %v3621_v39 = vmul.f32 %v12494_v25, %v3608_v32  ;;  %v3637_v34 = vmul.f32 %v12584_v33, %v3608_v32 }
 0x48b   :  { %v12894_v6 = vpop.permute.xlu0 %3650  ;;  %v3597_v26 = vpop.permute.xlu1 %3596  ;;  %v13009_v43 = vstv %s12882_s5  ;;  %v13019_v62 = vstv %s12884_s26  ;;  %s13164_s5 = sld [smem:[#allocation9 + $0x36]]  ;;  %s17925_s26 = smov 109  }
 0x48c   :  { %17905 = vst [vmem:[#allocation77_spill] sm:$0xff] %v13009_v43  ;;  %v3607_v17 = vsel %vm114_vm0, %v12840_v44, %v3597_v26  ;;  %17906 = vst [vmem:[#allocation78_spill] sm:$0xff] %v13019_v62  ;;  %v3613_v43 = vmul.f32 %v12482_v55, %v3608_v32  ;;  %v3629_v44 = vmul.f32 %v12537_v23, %v3608_v32  ;;  %v13050_v32 = vstv %s12947_s19  ;;  %s15044_s19 = sld [smem:[#allocation9 + $0xb]] }
 0x48d   :  { %4579 = vrot.lane.b32.xlu0 %v12435_v18, %s17720_s13  ;;  %4433 = vrot.lane.b32.xlu1 %v12491_v58, %s17888_s17  ;;  %v3622_v54 = vmul.f32 %v12494_v25, %v3607_v17  ;;  %v3630_v31 = vmul.f32 %v12537_v23, %v3607_v17  ;;  %17913 = vst [vmem:[#allocation84_spill] sm:$0xff] %v13050_v32 }
 0x48f   :  { %v12951_v63 = vpop.permute.xlu0 %3716  ;;  %v3599_v41 = vpop.permute.xlu1 %3598  ;;  %v13022_v36 = vstv %s12896_s25  ;;  %s13166_s25 = sld [smem:[#allocation9 + $0x37]] }
 0x490   :  { %17907 = vst [vmem:[#allocation79_spill] sm:$0xff] %v13022_v36  ;;  %v3606_v62 = vsel %vm114_vm0, %v3597_v26, %v3599_v41  ;;  %v3614_v36 = vmul.f32 %v12482_v55, %v3607_v17  ;;  %v3638_v26 = vmul.f32 %v12584_v33, %v3607_v17 }
 0x491   :  { %4585 = vrot.lane.b32.xlu0 %v12475_v37, %s17720_s13  ;;  %4435 = vrot.lane.b32.xlu1 %v12464_v7, %s17888_s17  ;;  %v13064_v21 = vmul.f32 %v12482_v55, %v3606_v62  ;;  %v13067_v9 = vmul.f32 %v12494_v25, %v3606_v62  ;;  %v13075_v17 = vmul.f32 %v12537_v23, %v3606_v62 }
 0x492   :  { %v13078_v35 = vmul.f32 %v12584_v33, %v3606_v62 }
 0x493   :  { %v13016_v0 = vpop.permute.xlu0 %3720  ;;  %v3601_v24 = vpop.permute.xlu1 %3600 }
 0x494   :  { %v3605_v13 = vsel %vm114_vm0, %v3599_v41, %v3601_v24 }
 0x495   :  { %4809 = vrot.lane.b32.xlu0 %v12416_v46, %s17725_s16  ;;  %4503 = vrot.lane.b32.xlu1 %v12479_v59, %s17912_s6  ;;  %v3616_v60 = vmul.f32 %v12482_v55, %v3605_v13  ;;  %v3632_v53 = vmul.f32 %v12537_v23, %v3605_v13 }
 0x497   :  { %v13055_v11 = vpop.permute.xlu0 %3724  ;;  %v3603_v40 = vpop.permute.xlu1 %3602 }
 0x498   :  { %v3604_v32 = vsel %vm114_vm0, %v3601_v24, %v3603_v40  ;;  %v3609_v41 = vsel %vm114_vm0, %v3603_v40, %v12774_v27  ;;  %v3624_v24 = vmul.f32 %v12494_v25, %v3605_v13  ;;  %v3640_v40 = vmul.f32 %v12584_v33, %v3605_v13 }
 0x499   :  { %4813 = vrot.lane.b32.xlu0 %v12435_v18, %s17725_s16  ;;  %4507 = vrot.lane.b32.xlu1 %v12491_v58, %s17912_s6  ;;  %v13095_v62 = vmul.f32 %v12482_v55, %v3609_v41  ;;  %v13098_v27 = vmul.f32 %v12482_v55, %v3604_v32  ;;  %v13101_v30 = vmul.f32 %v12494_v25, %v3609_v41 }
 0x49a   :  { %v13104_v15 = vmul.f32 %v12494_v25, %v3604_v32  ;;  %v13109_v13 = vmul.f32 %v12537_v23, %v3609_v41  ;;  %v13112_v52 = vmul.f32 %v12537_v23, %v3604_v32  ;;  %v3636_v57 = vmul.f32 %v12584_v33, %v3609_v41 }
 0x49b   :  { %v13106_v4 = vpop.permute.xlu0 %3790  ;;  %v3645_v20 = vpop.permute.xlu1 %3644  ;;  %v3641_v5 = vmul.f32 %v12584_v33, %v3604_v32  ;;  %v13189_v32 = vstv %s13122_s8  ;;  %s15252_s8 = sld [smem:[#allocation9 + $0x1b]] }
 0x49c   :  { %17918 = vst [vmem:[#allocation89_spill] sm:$0xff] %v13106_v4  ;;  %v3657_v55 = vsel %vm165_vm1, %v3645_v20, %v12838_v56  ;;  %v3658_v8 = vsel %vm165_vm1, %v12772_v10, %v3645_v20  ;;  %17920 = vst [vmem:[#allocation91_spill] sm:$0xff] %v13189_v32 }
 0x49d   :  { %v3663_v25 = vmul.f32 %v12635_v38, %v3658_v8  ;;  %v3664_v42 = vmul.f32 %v12635_v38, %v3657_v55  ;;  %v3677_v28 = vmul.f32 %v12638_v48, %v3658_v8  ;;  %v3678_v23 = vmul.f32 %v12638_v48, %v3657_v55  ;;  %4817 = vrot.lane.b32.xlu0 %v12464_v7, %s17725_s16 }
 0x49e   :  { %v3691_v47 = vmul.f32 %v12685_v51, %v3658_v8  ;;  %v3692_v45 = vmul.f32 %v12685_v51, %v3657_v55  ;;  %v3705_v20 = vmul.f32 %v12748_v61, %v3658_v8  ;;  %v3706_v2 = vmul.f32 %v12748_v61, %v3657_v55  ;;  %4509 = vrot.lane.b32.xlu1 %v12464_v7, %s17912_s6 }
 0x49f   :  { %v13138_v22 = vadd.f32 %v3663_v25, %v3613_v43  ;;  %v13140_v49 = vadd.f32 %v3664_v42, %v3614_v36  ;;  %v13142_v3 = vpop.permute.xlu0 %3794  ;;  %v3649_v50 = vpop.permute.xlu1 %3648  ;;  %v13144_v19 = vadd.f32 %v3677_v28, %v3621_v39  ;;  %v13146_v4 = vadd.f32 %v3678_v23, %v3622_v54 }
 0x4a0   :  { %v13148_v8 = vadd.f32 %v3691_v47, %v3629_v44  ;;  %v13150_v55 = vadd.f32 %v3692_v45, %v3630_v31  ;;  %v13152_v37 = vadd.f32 %v3705_v20, %v3637_v34  ;;  %v13154_v41 = vadd.f32 %v3706_v2, %v3638_v26 }
 0x4a1   :  { %v3655_v42 = vsel %vm165_vm1, %v3649_v50, %v12894_v6  ;;  %v3656_v43 = vsel %vm165_vm1, %v12838_v56, %v3649_v50  ;;  %4883 = vrot.lane.b32.xlu0 %v12416_v46, %s17728_s29  ;;  %v13186_v44 = vstv %s13120_s7  ;;  %s15244_s7 = sld [smem:[#allocation9 + $0x1a]] }
 0x4a2   :  { %v3665_v45 = vmul.f32 %v12635_v38, %v3656_v43  ;;  %v3666_v34 = vmul.f32 %v12635_v38, %v3655_v42  ;;  %v3679_v47 = vmul.f32 %v12638_v48, %v3656_v43  ;;  %v3680_v28 = vmul.f32 %v12638_v48, %v3655_v42  ;;  %4577 = vrot.lane.b32.xlu1 %v12479_v59, %s17720_s13 }
 0x4a3   :  { %v3693_v50 = vmul.f32 %v12685_v51, %v3656_v43  ;;  %v3694_v56 = vmul.f32 %v12685_v51, %v3655_v42  ;;  %v3707_v2 = vmul.f32 %v12748_v61, %v3656_v43  ;;  %v3708_v31 = vmul.f32 %v12748_v61, %v3655_v42  ;;  %v13178_v39 = vpop.permute.xlu0 %3798  ;;  %v3653_v33 = vpop.permute.xlu1 %3652  ;;  %17919 = vst [vmem:[#allocation90_spill] sm:$0xff] %v13186_v44 }
 0x4a4   :  { %v13181_v54 = vadd.f32 %v3665_v45, %v13064_v21  ;;  %v13183_v36 = vadd.f32 %v3666_v34, %v3616_v60  ;;  %v13192_v26 = vadd.f32 %v3679_v47, %v13067_v9  ;;  %v13194_v25 = vadd.f32 %v3680_v28, %v3624_v24 }
 0x4a5   :  { %v13197_v23 = vadd.f32 %v3693_v50, %v13075_v17  ;;  %v13199_v20 = vadd.f32 %v3694_v56, %v3632_v53  ;;  %4887 = vrot.lane.b32.xlu0 %v12435_v18, %s17728_s29  ;;  %v13204_v21 = vadd.f32 %v3707_v2, %v13078_v35  ;;  %v13206_v60 = vadd.f32 %v3708_v31, %v3640_v40 }
 0x4a6   :  { %v3654_v9 = vsel %vm165_vm1, %v12894_v6, %v3653_v33  ;;  %v3659_v17 = vsel %vm165_vm1, %v3653_v33, %v12772_v10  ;;  %4581 = vrot.lane.b32.xlu1 %v12491_v58, %s17720_s13  ;;  %v13238_v28 = vstv %s13166_s25  ;;  %s15394_s25 = sld [smem:[#allocation9 + $0x2a]] }
 0x4a7   :  { %v3662_v53 = vmul.f32 %v12635_v38, %v3659_v17  ;;  %v3667_v35 = vmul.f32 %v12635_v38, %v3654_v9  ;;  %v3676_v24 = vmul.f32 %v12638_v48, %v3659_v17  ;;  %v3681_v40 = vmul.f32 %v12638_v48, %v3654_v9  ;;  %v13220_v42 = vpop.permute.xlu0 %4024  ;;  %v3719_v6 = vpop.permute.xlu1 %3718  ;;  %17922 = vst [vmem:[#allocation93_spill] sm:$0xff] %v13238_v28 }
 0x4a8   :  { %v3690_v43 = vmul.f32 %v12685_v51, %v3659_v17  ;;  %v3695_v45 = vmul.f32 %v12685_v51, %v3654_v9  ;;  %v3704_v10 = vmul.f32 %v12748_v61, %v3659_v17  ;;  %v3709_v34 = vmul.f32 %v12748_v61, %v3654_v9 }
 0x4a9   :  { %v13227_v47 = vadd.f32 %v3662_v53, %v13095_v62  ;;  %v13230_v38 = vadd.f32 %v3667_v35, %v13098_v27  ;;  %4891 = vrot.lane.b32.xlu0 %v12464_v7, %s17728_s29  ;;  %v13235_v48 = vstv %s13164_s5  ;;  %v13241_v50 = vadd.f32 %v3676_v24, %v13101_v30  ;;  %s15327_s5 = sld [smem:[#allocation9 + $0x28]] }
 0x4aa   :  { %17921 = vst [vmem:[#allocation92_spill] sm:$0xff] %v13235_v48  ;;  %v13244_v51 = vadd.f32 %v3681_v40, %v13104_v15  ;;  %v13247_v61 = vadd.f32 %v3690_v43, %v13109_v13  ;;  %v13250_v62 = vadd.f32 %v3695_v45, %v13112_v52  ;;  %4583 = vrot.lane.b32.xlu1 %v12464_v7, %s17720_s13 }
 0x4ab   :  { %v13254_v27 = vadd.f32 %v3704_v10, %v3636_v57  ;;  %v13256_v56 = vadd.f32 %v3709_v34, %v3641_v5  ;;  %v3731_v30 = vsel %vm240_vm2, %v3719_v6, %v13016_v0  ;;  %v3732_v15 = vsel %vm240_vm2, %v12951_v63, %v3719_v6  ;;  %v13264_v13 = vpop.permute.xlu0 %4028  ;;  %v3723_v2 = vpop.permute.xlu1 %3722 }
 0x4ac   :  { %v3737_v52 = vmul.f32 %v12789_v12, %v3732_v15  ;;  %v3738_v31 = vmul.f32 %v12789_v12, %v3731_v30  ;;  %v3751_v57 = vmul.f32 %v12792_v14, %v3732_v15  ;;  %v3752_v5 = vmul.f32 %v12792_v14, %v3731_v30 }
 0x4ad   :  { %v3765_v33 = vmul.f32 %v12807_v1, %v3732_v15  ;;  %v3766_v9 = vmul.f32 %v12807_v1, %v3731_v30  ;;  %v3779_v17 = vmul.f32 %v12810_v16, %v3732_v15  ;;  %v3780_v53 = vmul.f32 %v12810_v16, %v3731_v30  ;;  %4957 = vrot.lane.b32.xlu0 %v12416_v46, %s17729_s30 }
 0x4ae   :  { %v13277_v35 = vadd.f32 %v3737_v52, %v13138_v22  ;;  %v13280_v24 = vadd.f32 %v3738_v31, %v13140_v49  ;;  %v13283_v40 = vadd.f32 %v3751_v57, %v13144_v19  ;;  %v13286_v6 = vadd.f32 %v3752_v5, %v13146_v4  ;;  %4811 = vrot.lane.b32.xlu1 %v12479_v59, %s17725_s16 }
 0x4af   :  { %v13291_v43 = vadd.f32 %v3765_v33, %v13148_v8  ;;  %v13294_v45 = vadd.f32 %v3766_v9, %v13150_v55  ;;  %v13297_v22 = vadd.f32 %v3779_v17, %v13152_v37  ;;  %v13300_v49 = vadd.f32 %v3780_v53, %v13154_v41  ;;  %v13302_v19 = vpop.permute.xlu0 %4032  ;;  %v3727_v10 = vpop.permute.xlu1 %3726 }
 0x4b0   :  { %v3729_v4 = vsel %vm240_vm2, %v3723_v2, %v13055_v11  ;;  %v3730_v8 = vsel %vm240_vm2, %v13016_v0, %v3723_v2  ;;  %v3728_v55 = vsel %vm240_vm2, %v13055_v11, %v3727_v10  ;;  %v3733_v37 = vsel %vm240_vm2, %v3727_v10, %v12951_v63 }
 0x4b1   :  { %v3739_v41 = vmul.f32 %v12789_v12, %v3730_v8  ;;  %v3740_v34 = vmul.f32 %v12789_v12, %v3729_v4  ;;  %v3753_v30 = vmul.f32 %v12792_v14, %v3730_v8  ;;  %v3754_v15 = vmul.f32 %v12792_v14, %v3729_v4  ;;  %4961 = vrot.lane.b32.xlu0 %v12435_v18, %s17729_s30 }
 0x4b2   :  { %v3767_v0 = vmul.f32 %v12807_v1, %v3730_v8  ;;  %v3768_v2 = vmul.f32 %v12807_v1, %v3729_v4  ;;  %v3781_v11 = vmul.f32 %v12810_v16, %v3730_v8  ;;  %v3782_v52 = vmul.f32 %v12810_v16, %v3729_v4  ;;  %4815 = vrot.lane.b32.xlu1 %v12491_v58, %s17725_s16  ;;  %v17923_v8 = vld [vmem:[#allocation37_spill] sm:$0xff] }
 0x4b3   :  { %v13329_v63 = vadd.f32 %v3739_v41, %v13181_v54  ;;  %v13332_v31 = vadd.f32 %v3740_v34, %v13183_v36  ;;  %v13335_v57 = vadd.f32 %v3753_v30, %v13192_v26  ;;  %v13338_v5 = vadd.f32 %v3754_v15, %v13194_v25  ;;  %v13340_v33 = vpop.permute.xlu0 %4098  ;;  %v3793_v9 = vpop.permute.xlu1 %3792 }
 0x4b4   :  { %v13343_v17 = vadd.f32 %v3767_v0, %v13197_v23  ;;  %v13346_v53 = vadd.f32 %v3768_v2, %v13199_v20  ;;  %v13349_v54 = vadd.f32 %v3781_v11, %v13204_v21  ;;  %v13352_v36 = vadd.f32 %v3782_v52, %v13206_v60  ;;  %v17927_v0 = vld [vmem:[#allocation33_spill] sm:$0xff]  ;;  %v17928_v52 = vld [vmem:[#allocation38_spill] sm:$0xff] }
 0x4b5   :  { %v3736_v26 = vmul.f32 %v12789_v12, %v3733_v37  ;;  %v3741_v25 = vmul.f32 %v12789_v12, %v3728_v55  ;;  %v3750_v10 = vmul.f32 %v12792_v14, %v3733_v37  ;;  %v3755_v4 = vmul.f32 %v12792_v14, %v3728_v55  ;;  %4965 = vrot.lane.b32.xlu0 %v12464_v7, %s17729_s30 }
 0x4b6   :  { %v3764_v23 = vmul.f32 %v12807_v1, %v3733_v37  ;;  %v3769_v20 = vmul.f32 %v12807_v1, %v3728_v55  ;;  %v3778_v21 = vmul.f32 %v12810_v16, %v3733_v37  ;;  %v3783_v60 = vmul.f32 %v12810_v16, %v3728_v55  ;;  %4819 = vrot.lane.b32.xlu1 %v17923_v8, %s17725_s16 }
 0x4b7   :  { %v13367_v12 = vadd.f32 %v3736_v26, %v13227_v47  ;;  %v13370_v41 = vadd.f32 %v3741_v25, %v13230_v38  ;;  %v13373_v14 = vadd.f32 %v3750_v10, %v13241_v50  ;;  %v13376_v34 = vadd.f32 %v3755_v4, %v13244_v51  ;;  %v13378_v1 = vpop.permute.xlu0 %4102  ;;  %v3797_v37 = vpop.permute.xlu1 %3796  ;;  %v17924_v51 = vld [vmem:[#allocation89_spill] sm:$0xff]  ;;  %v17929_v25 = vld [vmem:[#allocation23_spill] sm:$0xff] }
 0x4b8   :  { %v13381_v16 = vadd.f32 %v3764_v23, %v13247_v61  ;;  %v13384_v55 = vadd.f32 %v3769_v20, %v13250_v62  ;;  %v13387_v47 = vadd.f32 %v3778_v21, %v13254_v27  ;;  %v13390_v38 = vadd.f32 %v3783_v60, %v13256_v56  ;;  %v17926_v27 = vld [vmem:[#allocation32_spill] sm:$0xff] }
 0x4b9   :  { %v3805_v50 = vsel %vm315_vm3, %v3793_v9, %v13142_v3  ;;  %v3806_v30 = vsel %vm315_vm3, %v17924_v51, %v3793_v9  ;;  %v3803_v61 = vsel %vm315_vm3, %v3797_v37, %v13178_v39  ;;  %v3804_v62 = vsel %vm315_vm3, %v13142_v3, %v3797_v37  ;;  %5031 = vrot.lane.b32.xlu0 %v12416_v46, %s17925_s26 }
 0x4ba   :  { %v3811_v56 = vmul.f32 %v17926_v27, %v3806_v30  ;;  %v3812_v15 = vmul.f32 %v17926_v27, %v3805_v50  ;;  %v3825_v2 = vmul.f32 %v17927_v0, %v3806_v30  ;;  %v3826_v11 = vmul.f32 %v17927_v0, %v3805_v50  ;;  %4885 = vrot.lane.b32.xlu1 %v12479_v59, %s17728_s29 }
 0x4bb   :  { %v3839_v9 = vmul.f32 %v17928_v52, %v3806_v30  ;;  %v3840_v26 = vmul.f32 %v17928_v52, %v3805_v50  ;;  %v3853_v3 = vmul.f32 %v17929_v25, %v3806_v30  ;;  %v3854_v10 = vmul.f32 %v17929_v25, %v3805_v50  ;;  %v13416_v46 = vpop.permute.xlu0 %4106  ;;  %v3801_v4 = vpop.permute.xlu1 %3800 }
 0x4bc   :  { %v3817_v23 = vadd.f32 %v3811_v56, %v13277_v35  ;;  %v13420_v20 = vadd.f32 %v3812_v15, %v13280_v24  ;;  %v3831_v21 = vadd.f32 %v3825_v2, %v13283_v40  ;;  %v13424_v60 = vadd.f32 %v3826_v11, %v13286_v6 }
 0x4bd   :  { %v3845_v37 = vadd.f32 %v3839_v9, %v13291_v43  ;;  %v13428_v28 = vadd.f32 %v3840_v26, %v13294_v45  ;;  %v3859_v50 = vadd.f32 %v3853_v3, %v13297_v22  ;;  %v13432_v30 = vadd.f32 %v3854_v10, %v13300_v49  ;;  %5035 = vrot.lane.b32.xlu0 %v12435_v18, %s17925_s26 }
 0x4be   :  { %v3813_v35 = vmul.f32 %v17926_v27, %v3804_v62  ;;  %v3814_v24 = vmul.f32 %v17926_v27, %v3803_v61  ;;  %v3827_v40 = vmul.f32 %v17927_v0, %v3804_v62  ;;  %v3828_v6 = vmul.f32 %v17927_v0, %v3803_v61  ;;  %4889 = vrot.lane.b32.xlu1 %v12491_v58, %s17728_s29 }
 0x4bf   :  { %v3841_v43 = vmul.f32 %v17928_v52, %v3804_v62  ;;  %v3842_v45 = vmul.f32 %v17928_v52, %v3803_v61  ;;  %v3855_v22 = vmul.f32 %v17929_v25, %v3804_v62  ;;  %v3856_v49 = vmul.f32 %v17929_v25, %v3803_v61  ;;  %v13446_v18 = vpop.permute.xlu0 %4172  ;;  %v4027_v56 = vpop.permute.xlu1 %4026 }
 0x4c0   :  { %17930 = vst [vmem:[#allocation37_spill] sm:$0xff] %v13446_v18  ;;  %v13449_v15 = vadd.f32 %v3813_v35, %v13329_v63  ;;  %v13452_v2 = vadd.f32 %v3814_v24, %v13332_v31  ;;  %v13455_v11 = vadd.f32 %v3827_v40, %v13335_v57  ;;  %v13458_v9 = vadd.f32 %v3828_v6, %v13338_v5  ;;  %v17931_v5 = vld [vmem:[#allocation48_spill] sm:$0xff] }
 0x4c1   :  { %v13461_v26 = vadd.f32 %v3841_v43, %v13343_v17  ;;  %v13464_v61 = vadd.f32 %v3842_v45, %v13346_v53  ;;  %v13467_v62 = vadd.f32 %v3855_v22, %v13349_v54  ;;  %v13470_v63 = vadd.f32 %v3856_v49, %v13352_v36  ;;  %5039 = vrot.lane.b32.xlu0 %v12464_v7, %s17925_s26  ;;  %v17932_v17 = vld [vmem:[#allocation20_spill] sm:$0xff]  ;;  %v17934_v54 = vld [vmem:[#allocation34_spill] sm:$0xff] }
 0x4c2   :  { %v3802_v31 = vsel %vm315_vm3, %v13178_v39, %v3801_v4  ;;  %v3807_v57 = vsel %vm315_vm3, %v3801_v4, %v17924_v51  ;;  %v17933_v53 = vrot.slane %v17931_v5, %v17932_v17  ;;  %v17935_v10 = vrot.slane %v17934_v54, %v17932_v17  ;;  %4893 = vrot.lane.b32.xlu1 %v17923_v8, %s17728_s29 }
 0x4c3   :  { %v3810_v7 = vmul.f32 %v17926_v27, %v3807_v57  ;;  %v3815_v35 = vmul.f32 %v17926_v27, %v3802_v31  ;;  %v3824_v39 = vmul.f32 %v17927_v0, %v3807_v57  ;;  %v3829_v24 = vmul.f32 %v17927_v0, %v3802_v31  ;;  %v13492_v51 = vpop.permute.xlu0 %4176  ;;  %v4031_v4 = vpop.permute.xlu1 %4030  ;;  %v17938_v0 = vld [vmem:[#allocation43_spill] sm:$0xff] }
 0x4c4   :  { %v3899_v3 = vadd.f32 %v17933_v53, %v3817_v23  ;;  %v3939_v36 = vadd.f32 %v17935_v10, %v3831_v21  ;;  %17936 = vst [vmem:[#allocation89_spill] sm:$0xff] %v13492_v51  ;;  %v3838_v23 = vmul.f32 %v17928_v52, %v3807_v57  ;;  %v3843_v40 = vmul.f32 %v17928_v52, %v3802_v31  ;;  %v17944_v10 = vld [vmem:[#allocation36_spill] sm:$0xff] }
 0x4c5   :  { %v3852_v21 = vmul.f32 %v17929_v25, %v3807_v57  ;;  %v3857_v6 = vmul.f32 %v17929_v25, %v3802_v31  ;;  %v3816_v43 = vadd.f32 %v3810_v7, %v13367_v12  ;;  %v3821_v45 = vadd.f32 %v3815_v35, %v13370_v41  ;;  %5138 = vrot.lane.b32.xlu0 %v17938_v0, %s17937_s0  ;;  %v17939_v12 = vld [vmem:[#allocation18_spill] sm:$0xff] }
 0x4c6   :  { %v3830_v27 = vadd.f32 %v3824_v39, %v13373_v14  ;;  %v13502_v22 = vadd.f32 %v3829_v24, %v13376_v34  ;;  %v3844_v49 = vadd.f32 %v3838_v23, %v13381_v16  ;;  %v13508_v52 = vadd.f32 %v3843_v40, %v13384_v55  ;;  %4959 = vrot.lane.b32.xlu1 %v12479_v59, %s17729_s30  ;;  %v17942_v16 = vld [vmem:[#allocation35_spill] sm:$0xff] }
 0x4c7   :  { %v3858_v57 = vadd.f32 %v3852_v21, %v13387_v47  ;;  %v13512_v25 = vadd.f32 %v3857_v6, %v13390_v38  ;;  %v17940_v41 = vrot.slane %v17931_v5, %v17939_v12  ;;  %v17941_v34 = vrot.slane %v17934_v54, %v17939_v12  ;;  %v13528_v7 = vpop.permute.xlu0 %4180  ;;  %v13530_v35 = vpop.permute.xlu1 %4034  ;;  %v17949_v21 = vld [vmem:[#allocation16_spill] sm:$0xff] }
 0x4c8   :  { %v17943_v55 = vrot.slane %v17942_v16, %v17932_v17  ;;  %v17945_v47 = vrot.slane %v17944_v10, %v17932_v17  ;;  %17946 = vst [vmem:[#allocation32_spill] sm:$0xff] %v13528_v7  ;;  %v17947_v39 = vrot.slane %v17942_v16, %v17939_v12  ;;  %v17948_v23 = vrot.slane %v17944_v10, %v17939_v12 }
 0x4c9   :  { %v3898_v14 = vadd.f32 %v17940_v41, %v3816_v43  ;;  %v3938_v31 = vadd.f32 %v17941_v34, %v3830_v27  ;;  %v17950_v27 = vld [vmem:[#allocation62_spill] sm:$0xff]  ;;  %v17951_v34 = vld [vmem:[#allocation44_spill] sm:$0xff] }
 0x4ca   :  { %v3979_v53 = vadd.f32 %v17943_v55, %v3845_v37  ;;  %v4019_v38 = vadd.f32 %v17945_v47, %v3859_v50  ;;  %v3978_v24 = vadd.f32 %v17947_v39, %v3844_v49  ;;  %v4018_v40 = vadd.f32 %v17948_v23, %v3858_v57  ;;  %5142 = vrot.lane.b32.xlu0 %v17951_v34, %s17937_s0  ;;  %v17952_v57 = vld [vmem:[#allocation63_spill] sm:$0xff]  ;;  %v17953_v39 = vld [vmem:[#allocation64_spill] sm:$0xff] }
 0x4cb   :  { %v4039_v37 = vsel %vm550_vm4, %v4027_v56, %v13264_v13  ;;  %v4040_v50 = vsel %vm550_vm4, %v13220_v42, %v4027_v56  ;;  %4963 = vrot.lane.b32.xlu1 %v12491_v58, %s17729_s30  ;;  %v13564_v44 = vpop.permute.xlu0 %4246  ;;  %v13566_v7 = vpop.permute.xlu1 %4100 }
 0x4cc   :  { %v4044_v6 = vmul.f32 %v17949_v21, %v4040_v50  ;;  %v4045_v43 = vmul.f32 %v17949_v21, %v4039_v37  ;;  %v4058_v41 = vmul.f32 %v17950_v27, %v4040_v50  ;;  %v4059_v49 = vmul.f32 %v17950_v27, %v4039_v37  ;;  %17954 = vst [vmem:[#allocation33_spill] sm:$0xff] %v13564_v44 }
 0x4cd   :  { %v4072_v55 = vmul.f32 %v17952_v57, %v4040_v50  ;;  %v4073_v47 = vmul.f32 %v17952_v57, %v4039_v37  ;;  %v4086_v23 = vmul.f32 %v17953_v39, %v4040_v50  ;;  %v4087_v17 = vmul.f32 %v17953_v39, %v4039_v37 }
 0x4ce   :  { %v13556_v56 = vadd.f32 %v4044_v6, %v3898_v14  ;;  %v13558_v12 = vadd.f32 %v4045_v43, %v3899_v3  ;;  %v13560_v48 = vadd.f32 %v4058_v41, %v3938_v31  ;;  %v13562_v32 = vadd.f32 %v4059_v49, %v3939_v36  ;;  %v17956_v3 = vld [vmem:[#allocation17_spill] sm:$0xff]  ;;  %v17958_v36 = vld [vmem:[#allocation19_spill] sm:$0xff] }
 0x4cf   :  { %v13568_v18 = vadd.f32 %v4072_v55, %v3978_v24  ;;  %v13570_v50 = vadd.f32 %v4073_v47, %v3979_v53  ;;  %v13572_v37 = vadd.f32 %v4086_v23, %v4018_v40  ;;  %v13574_v51 = vadd.f32 %v4087_v17, %v4019_v38  ;;  %v17962_v40 = vld [vmem:[#allocation45_spill] sm:$0xff]  ;;  %4967 = vrot.lane.b32.xlu1 %v17923_v8, %s17729_s30  ;;  %v17967_v23 = vld [vmem:[#allocation22_spill] sm:$0xff] }
 0x4d0   :  { %v17957_v14 = vrot.slane %v17931_v5, %v17956_v3  ;;  %v17959_v6 = vrot.slane %v17931_v5, %v17958_v36  ;;  %v17960_v24 = vrot.slane %v17934_v54, %v17956_v3  ;;  %v17961_v17 = vrot.slane %v17934_v54, %v17958_v36  ;;  %5148 = vrot.lane.b32.xlu0 %v17962_v40, %s17937_s0 }
 0x4d1   :  { %17955 = vst [vmem:[#allocation38_spill] sm:$0xff] %v13574_v51 }
 0x4d2   :  { %v3900_v31 = vadd.f32 %v17957_v14, %v13420_v20  ;;  %v3901_v43 = vadd.f32 %v17959_v6, %v13449_v15  ;;  %v3940_v53 = vadd.f32 %v17960_v24, %v13424_v60  ;;  %v3941_v38 = vadd.f32 %v17961_v17, %v13455_v11  ;;  %v17969_v6 = vld [vmem:[#allocation21_spill] sm:$0xff]  ;;  %v13625_v17 = vpop.permute.xlu0 %4250 }
 0x4d3   :  { %v17963_v20 = vrot.slane %v17942_v16, %v17956_v3  ;;  %v17964_v15 = vrot.slane %v17942_v16, %v17958_v36  ;;  %v17965_v60 = vrot.slane %v17944_v10, %v17956_v3  ;;  %v17966_v11 = vrot.slane %v17944_v10, %v17958_v36  ;;  %17971 = vst [vmem:[#allocation23_spill] sm:$0xff] %v13625_v17 }
 0x4d4   :  { %v17970_v24 = vrot.slane %v17931_v5, %v17969_v6  ;;  %5212 = vrot.lane.b32.xlu0 %v17938_v0, %s17888_s17  ;;  %5033 = vrot.lane.b32.xlu1 %v12479_v59, %s17925_s26  ;;  %v17973_v59 = vrot.slane %v17934_v54, %v17969_v6 }
 0x4d5   :  { %v3980_v41 = vadd.f32 %v17963_v20, %v13428_v28  ;;  %v3981_v49 = vadd.f32 %v17964_v15, %v13461_v26  ;;  %v4020_v55 = vadd.f32 %v17965_v60, %v13432_v30  ;;  %v4021_v47 = vadd.f32 %v17966_v11, %v13467_v62  ;;  %v4105_v20 = vpop.permute.xlu1 %4104 }
 0x4d6   :  { %v4037_v28 = vsel %vm550_vm4, %v4031_v4, %v13302_v19  ;;  %v4038_v26 = vsel %vm550_vm4, %v13264_v13, %v4031_v4  ;;  %v17968_v30 = vrot.slane %v17931_v5, %v17967_v23  ;;  %v3903_v62 = vadd.f32 %v17970_v24, %v3821_v45  ;;  %v13655_v51 = vpop.permute.xlu0 %4254 }
 0x4d7   :  { %v4046_v15 = vmul.f32 %v17949_v21, %v4038_v26  ;;  %v4047_v60 = vmul.f32 %v17949_v21, %v4037_v28  ;;  %v4060_v11 = vmul.f32 %v17950_v27, %v4038_v26  ;;  %v4061_v13 = vmul.f32 %v17950_v27, %v4037_v28 }
 0x4d8   :  { %v3902_v14 = vadd.f32 %v17968_v30, %v13452_v2  ;;  %v4074_v4 = vmul.f32 %v17952_v57, %v4038_v26  ;;  %v4075_v36 = vmul.f32 %v17952_v57, %v4037_v28  ;;  %v4088_v2 = vmul.f32 %v17953_v39, %v4038_v26  ;;  %5216 = vrot.lane.b32.xlu0 %v17951_v34, %s17888_s17 }
 0x4d9   :  { %v4089_v5 = vmul.f32 %v17953_v39, %v4037_v28  ;;  %v13637_v45 = vadd.f32 %v4046_v15, %v3900_v31  ;;  %v13639_v30 = vadd.f32 %v4047_v60, %v3901_v43  ;;  %v13641_v24 = vadd.f32 %v4060_v11, %v3940_v53  ;;  %v13657_v31 = vpop.permute.xlu1 %4108  ;;  %5037 = vrot.lane.b32.xlu1 %v12491_v58, %s17925_s26 }
 0x4da   :  { %v13643_v3 = vadd.f32 %v4061_v13, %v3941_v38  ;;  %v13647_v44 = vadd.f32 %v4074_v4, %v3980_v41  ;;  %v13649_v17 = vadd.f32 %v4075_v36, %v3981_v49  ;;  %v13651_v26 = vadd.f32 %v4088_v2, %v4020_v55  ;;  %v13703_v60 = vpop.permute.xlu0 %4353 }
 0x4db   :  { %v13653_v28 = vadd.f32 %v4089_v5, %v4021_v47  ;;  %v17972_v43 = vrot.slane %v17934_v54, %v17967_v23  ;;  %v3943_v38 = vadd.f32 %v17973_v59, %v13502_v22  ;;  %v17974_v36 = vrot.slane %v17942_v16, %v17967_v23 }
 0x4dc   :  { %v17975_v49 = vrot.slane %v17942_v16, %v17969_v6  ;;  %v17976_v47 = vrot.slane %v17944_v10, %v17967_v23  ;;  %v17977_v54 = vrot.slane %v17944_v10, %v17969_v6  ;;  %5222 = vrot.lane.b32.xlu0 %v17962_v40, %s17888_s17 }
 0x4dd   :  { %v3942_v53 = vadd.f32 %v17972_v43, %v13458_v9  ;;  %v3982_v41 = vadd.f32 %v17974_v36, %v13464_v61  ;;  %v4036_v61 = vsel %vm550_vm4, %v13302_v19, %v13530_v35  ;;  %v4175_v11 = vpop.permute.xlu1 %4174  ;;  %v4112_v43 = vsel %vm625_vm5, %v13378_v1, %v4105_v20  ;;  %5041 = vrot.lane.b32.xlu1 %v17923_v8, %s17925_s26  ;;  %v17979_v36 = vld [vmem:[#allocation66_spill] sm:$0xff] }
 0x4de   :  { %v3983_v55 = vadd.f32 %v17975_v49, %v13508_v52  ;;  %v4022_v9 = vadd.f32 %v17976_v47, %v13470_v63  ;;  %v4023_v22 = vadd.f32 %v17977_v54, %v13512_v25  ;;  %v4041_v52 = vsel %vm550_vm4, %v13530_v35, %v13220_v42  ;;  %v17980_v47 = vld [vmem:[#allocation67_spill] sm:$0xff] }
 0x4df   :  { %v4048_v63 = vmul.f32 %v17949_v21, %v4036_v61  ;;  %v4049_v16 = vmul.f32 %v17949_v21, %v4041_v52  ;;  %v4062_v10 = vmul.f32 %v17950_v27, %v4036_v61  ;;  %v4063_v25 = vmul.f32 %v17950_v27, %v4041_v52 }
 0x4e0   :  { %v4076_v19 = vmul.f32 %v17952_v57, %v4036_v61  ;;  %v4077_v15 = vmul.f32 %v17952_v57, %v4041_v52  ;;  %v4090_v42 = vmul.f32 %v17953_v39, %v4036_v61  ;;  %v4091_v35 = vmul.f32 %v17953_v39, %v4041_v52  ;;  %5286 = vrot.lane.b32.xlu0 %v17938_v0, %s17912_s6 }
 0x4e1   :  { %v13705_v13 = vadd.f32 %v4048_v63, %v3902_v14  ;;  %v13707_v21 = vadd.f32 %v4049_v16, %v3903_v62  ;;  %v13709_v4 = vadd.f32 %v4062_v10, %v3942_v53  ;;  %v13711_v27 = vadd.f32 %v4063_v25, %v3943_v38  ;;  %v17978_v53 = vld [vmem:[#allocation65_spill] sm:$0xff] }
 0x4e2   :  { %v13713_v58 = vadd.f32 %v4076_v19, %v3982_v41  ;;  %v13715_v2 = vadd.f32 %v4077_v15, %v3983_v55  ;;  %v13717_v57 = vadd.f32 %v4090_v42, %v4022_v9  ;;  %v13719_v5 = vadd.f32 %v4091_v35, %v4023_v22  ;;  %v13745_v55 = vpop.permute.xlu1 %4178 }
 0x4e3   :  { %v4113_v39 = vsel %vm625_vm5, %v13566_v7, %v13378_v1  ;;  %v4114_v14 = vsel %vm625_vm5, %v13340_v33, %v13566_v7  ;;  %v4111_v62 = vsel %vm625_vm5, %v4105_v20, %v13416_v46  ;;  %v13743_v7 = vpop.permute.xlu0 %4357  ;;  %v17981_v1 = vld [vmem:[#allocation68_spill] sm:$0xff]  ;;  %v4134_v15 = vmul.f32 %v17979_v36, %v4112_v43 }
 0x4e4   :  { %v4118_v59 = vmul.f32 %v17978_v53, %v4114_v14  ;;  %v4119_v38 = vmul.f32 %v17978_v53, %v4113_v39  ;;  %v4132_v41 = vmul.f32 %v17979_v36, %v4114_v14  ;;  %v4133_v49 = vmul.f32 %v17979_v36, %v4113_v39  ;;  %5290 = vrot.lane.b32.xlu0 %v17951_v34, %s17912_s6 }
 0x4e5   :  { %v4146_v9 = vmul.f32 %v17980_v47, %v4114_v14  ;;  %v4147_v54 = vmul.f32 %v17980_v47, %v4113_v39  ;;  %v4160_v20 = vmul.f32 %v17981_v1, %v4114_v14  ;;  %v4161_v8 = vmul.f32 %v17981_v1, %v4113_v39 }
 0x4e6   :  { %v13752_v22 = vadd.f32 %v4118_v59, %v13556_v56  ;;  %v13755_v61 = vadd.f32 %v4119_v38, %v13558_v12  ;;  %v13758_v52 = vadd.f32 %v4132_v41, %v13560_v48  ;;  %v13761_v63 = vadd.f32 %v4133_v49, %v13562_v32  ;;  %v17982_v12 = vld [vmem:[#allocation38_spill] sm:$0xff]  ;;  %v17983_v48 = vld [vmem:[#allocation51_spill] sm:$0xff] }
 0x4e7   :  { %v13766_v16 = vadd.f32 %v4146_v9, %v13568_v18  ;;  %v13769_v10 = vadd.f32 %v4147_v54, %v13570_v50  ;;  %v13772_v56 = vadd.f32 %v4160_v20, %v13572_v37  ;;  %v13775_v25 = vadd.f32 %v4161_v8, %v17982_v12  ;;  %5140 = vrot.lane.b32.xlu1 %v17983_v48, %s17937_s0  ;;  %v13783_v42 = vpop.permute.xlu0 %4361  ;;  %v13785_v50 = vpop.permute.xlu1 %4182 }
 0x4e8   :  { %v4120_v32 = vmul.f32 %v17978_v53, %v4112_v43  ;;  %v4121_v19 = vmul.f32 %v17978_v53, %v4111_v62  ;;  %v4135_v18 = vmul.f32 %v17979_v36, %v4111_v62  ;;  %v4148_v37 = vmul.f32 %v17980_v47, %v4112_v43  ;;  %5296 = vrot.lane.b32.xlu0 %v17962_v40, %s17912_s6 }
 0x4e9   :  { %v4149_v35 = vmul.f32 %v17980_v47, %v4111_v62  ;;  %v4162_v39 = vmul.f32 %v17981_v1, %v4112_v43  ;;  %v4163_v14 = vmul.f32 %v17981_v1, %v4111_v62  ;;  %v13798_v41 = vadd.f32 %v4134_v15, %v13641_v24  ;;  %v17984_v24 = vld [vmem:[#allocation52_spill] sm:$0xff]  ;;  %v17986_v43 = vld [vmem:[#allocation37_spill] sm:$0xff] }
 0x4ea   :  { %v13792_v59 = vadd.f32 %v4120_v32, %v13637_v45  ;;  %v13795_v38 = vadd.f32 %v4121_v19, %v13639_v30  ;;  %v13801_v49 = vadd.f32 %v4135_v18, %v13643_v3  ;;  %v13806_v9 = vadd.f32 %v4148_v37, %v13647_v44 }
 0x4eb   :  { %v13809_v62 = vadd.f32 %v4149_v35, %v13649_v17  ;;  %v13812_v45 = vadd.f32 %v4162_v39, %v13651_v26  ;;  %v13815_v30 = vadd.f32 %v4163_v14, %v13653_v28  ;;  %5144 = vrot.lane.b32.xlu1 %v17984_v24, %s17937_s0  ;;  %v4110_v3 = vsel %vm625_vm5, %v13416_v46, %v13657_v31  ;;  %v17985_v17 = vld [vmem:[#allocation89_spill] sm:$0xff]  ;;  %v13833_v54 = vpop.permute.xlu0 %4427  ;;  %v13835_v20 = vpop.permute.xlu1 %4248 }
 0x4ec   :  { %v4115_v44 = vsel %vm625_vm5, %v13657_v31, %v13340_v33  ;;  %v4187_v26 = vsel %vm700_vm6, %v4175_v11, %v17985_v17  ;;  %v4188_v28 = vsel %vm700_vm6, %v17986_v43, %v4175_v11  ;;  %v4122_v8 = vmul.f32 %v17978_v53, %v4110_v3  ;;  %5360 = vrot.lane.b32.xlu0 %v17938_v0, %s17720_s13 }
 0x4ed   :  { %v4123_v46 = vmul.f32 %v17978_v53, %v4115_v44  ;;  %v4136_v12 = vmul.f32 %v17979_v36, %v4110_v3  ;;  %v4137_v33 = vmul.f32 %v17979_v36, %v4115_v44  ;;  %v4150_v31 = vmul.f32 %v17980_v47, %v4110_v3 }
 0x4ee   :  { %v4151_v32 = vmul.f32 %v17980_v47, %v4115_v44  ;;  %v4164_v19 = vmul.f32 %v17981_v1, %v4110_v3  ;;  %v4165_v11 = vmul.f32 %v17981_v1, %v4115_v44  ;;  %v13848_v15 = vadd.f32 %v4122_v8, %v13705_v13  ;;  %v17987_v47 = vld [vmem:[#allocation53_spill] sm:$0xff]  ;;  %v17990_v3 = vld [vmem:[#allocation70_spill] sm:$0xff] }
 0x4ef   :  { %v13851_v53 = vadd.f32 %v4123_v46, %v13707_v21  ;;  %v13854_v18 = vadd.f32 %v4136_v12, %v13709_v4  ;;  %v13857_v36 = vadd.f32 %v4137_v33, %v13711_v27  ;;  %5146 = vrot.lane.b32.xlu1 %v17987_v47, %s17937_s0  ;;  %v13862_v1 = vadd.f32 %v4150_v31, %v13713_v58  ;;  %v13873_v4 = vpop.permute.xlu0 %4431  ;;  %v13875_v35 = vpop.permute.xlu1 %4252  ;;  %v17989_v27 = vld [vmem:[#allocation69_spill] sm:$0xff]  ;;  %v17992_v46 = vld [vmem:[#allocation72_spill] sm:$0xff] }
 0x4f0   :  { %v13865_v37 = vadd.f32 %v4151_v32, %v13715_v2  ;;  %v13868_v13 = vadd.f32 %v4164_v19, %v13717_v57  ;;  %v13871_v21 = vadd.f32 %v4165_v11, %v13719_v5  ;;  %17988 = vst [vmem:[#allocation48_spill] sm:$0xff] %v13873_v4  ;;  %v4192_v39 = vmul.f32 %v17989_v27, %v4188_v28  ;;  %v17991_v2 = vld [vmem:[#allocation71_spill] sm:$0xff] }
 0x4f1   :  { %v4193_v14 = vmul.f32 %v17989_v27, %v4187_v26  ;;  %v4206_v58 = vmul.f32 %v17990_v3, %v4188_v28  ;;  %v4207_v44 = vmul.f32 %v17990_v3, %v4187_v26  ;;  %v4220_v8 = vmul.f32 %v17991_v2, %v4188_v28  ;;  %5364 = vrot.lane.b32.xlu0 %v17951_v34, %s17720_s13 }
 0x4f2   :  { %v4221_v57 = vmul.f32 %v17991_v2, %v4187_v26  ;;  %v4234_v12 = vmul.f32 %v17992_v46, %v4188_v28  ;;  %v4235_v5 = vmul.f32 %v17992_v46, %v4187_v26  ;;  %v13888_v33 = vadd.f32 %v4192_v39, %v13752_v22 }
 0x4f3   :  { %v13891_v31 = vadd.f32 %v4193_v14, %v13755_v61  ;;  %v13894_v32 = vadd.f32 %v4206_v58, %v13758_v52  ;;  %v13897_v19 = vadd.f32 %v4207_v44, %v13761_v63  ;;  %5214 = vrot.lane.b32.xlu1 %v17983_v48, %s17888_s17  ;;  %v13902_v26 = vadd.f32 %v4220_v8, %v13766_v16  ;;  %v13913_v52 = vpop.permute.xlu0 %4437  ;;  %v13915_v11 = vpop.permute.xlu1 %4256  ;;  %v17994_v63 = vld [vmem:[#allocation32_spill] sm:$0xff] }
 0x4f4   :  { %v13905_v28 = vadd.f32 %v4221_v57, %v13769_v10  ;;  %v13908_v22 = vadd.f32 %v4234_v12, %v13772_v56  ;;  %v13911_v61 = vadd.f32 %v4235_v5, %v13775_v25  ;;  %17993 = vst [vmem:[#allocation34_spill] sm:$0xff] %v13913_v52  ;;  %v4185_v39 = vsel %vm700_vm6, %v13745_v55, %v17994_v63 }
 0x4f5   :  { %v4186_v16 = vsel %vm700_vm6, %v17985_v17, %v13745_v55  ;;  %v4184_v10 = vsel %vm700_vm6, %v17994_v63, %v13785_v50  ;;  %v4189_v56 = vsel %vm700_vm6, %v13785_v50, %v17986_v43  ;;  %v4195_v14 = vmul.f32 %v17989_v27, %v4185_v39  ;;  %5370 = vrot.lane.b32.xlu0 %v17962_v40, %s17720_s13 }
 0x4f6   :  { %v4194_v25 = vmul.f32 %v17989_v27, %v4186_v16  ;;  %v4208_v58 = vmul.f32 %v17990_v3, %v4186_v16  ;;  %v4209_v44 = vmul.f32 %v17990_v3, %v4185_v39  ;;  %v4222_v55 = vmul.f32 %v17991_v2, %v4186_v16 }
 0x4f7   :  { %v4223_v17 = vmul.f32 %v17991_v2, %v4185_v39  ;;  %v4236_v8 = vmul.f32 %v17992_v46, %v4186_v16  ;;  %v4237_v57 = vmul.f32 %v17992_v46, %v4185_v39  ;;  %5218 = vrot.lane.b32.xlu1 %v17984_v24, %s17888_s17  ;;  %v13949_v43 = vadd.f32 %v4195_v14, %v13795_v38  ;;  %v13957_v63 = vpop.permute.xlu0 %4501  ;;  %v13959_v16 = vpop.permute.xlu1 %4355 }
 0x4f8   :  { %v13946_v50 = vadd.f32 %v4194_v25, %v13792_v59  ;;  %v13952_v12 = vadd.f32 %v4208_v58, %v13798_v41  ;;  %v13955_v5 = vadd.f32 %v4209_v44, %v13801_v49  ;;  %17995 = vst [vmem:[#allocation43_spill] sm:$0xff] %v13957_v63  ;;  %v13962_v39 = vadd.f32 %v4222_v55, %v13806_v9  ;;  %v17998_v55 = vld [vmem:[#allocation33_spill] sm:$0xff] }
 0x4f9   :  { %v13965_v6 = vadd.f32 %v4223_v17, %v13809_v62  ;;  %v13968_v59 = vadd.f32 %v4236_v8, %v13812_v45  ;;  %v13971_v38 = vadd.f32 %v4237_v57, %v13815_v30  ;;  %v4196_v41 = vmul.f32 %v17989_v27, %v4184_v10  ;;  %5594 = vrot.lane.b32.xlu0 %v17938_v0, %s17725_s16  ;;  %v18000_v57 = vld [vmem:[#allocation74_spill] sm:$0xff] }
 0x4fa   :  { %v4197_v49 = vmul.f32 %v17989_v27, %v4189_v56  ;;  %v4210_v25 = vmul.f32 %v17990_v3, %v4184_v10  ;;  %v4211_v14 = vmul.f32 %v17990_v3, %v4189_v56  ;;  %v4224_v9 = vmul.f32 %v17991_v2, %v4184_v10 }
 0x4fb   :  { %v4225_v62 = vmul.f32 %v17991_v2, %v4189_v56  ;;  %v4238_v45 = vmul.f32 %v17992_v46, %v4184_v10  ;;  %v4239_v30 = vmul.f32 %v17992_v46, %v4189_v56  ;;  %5220 = vrot.lane.b32.xlu1 %v17987_v47, %s17888_s17  ;;  %v13986_v27 = vadd.f32 %v4196_v41, %v13848_v15  ;;  %v13997_v2 = vpop.permute.xlu0 %4505  ;;  %v13999_v10 = vpop.permute.xlu1 %4359 }
 0x4fc   :  { %v13989_v58 = vadd.f32 %v4197_v49, %v13851_v53  ;;  %v13992_v3 = vadd.f32 %v4210_v25, %v13854_v18  ;;  %v13995_v44 = vadd.f32 %v4211_v14, %v13857_v36  ;;  %17996 = vst [vmem:[#allocation35_spill] sm:$0xff] %v13997_v2  ;;  %v14002_v46 = vadd.f32 %v4224_v9, %v13862_v1  ;;  %v17997_v18 = vld [vmem:[#allocation23_spill] sm:$0xff]  ;;  %v18002_v9 = vld [vmem:[#allocation76_spill] sm:$0xff] }
 0x4fd   :  { %v14005_v56 = vadd.f32 %v4225_v62, %v13865_v37  ;;  %v14008_v15 = vadd.f32 %v4238_v45, %v13868_v13  ;;  %v14011_v53 = vadd.f32 %v4239_v30, %v13871_v21  ;;  %v4261_v36 = vsel %vm775_vm7, %v13835_v20, %v17997_v18  ;;  %v17999_v21 = vld [vmem:[#allocation73_spill] sm:$0xff]  ;;  %v18001_v49 = vld [vmem:[#allocation75_spill] sm:$0xff]  ;;  %5598 = vrot.lane.b32.xlu0 %v17951_v34, %s17725_s16 }
 0x4fe   :  { %v4262_v1 = vsel %vm775_vm7, %v17998_v55, %v13835_v20  ;;  %v4259_v37 = vsel %vm775_vm7, %v13875_v35, %v13655_v51  ;;  %v4260_v13 = vsel %vm775_vm7, %v17997_v18, %v13875_v35  ;;  %v4267_v8 = vmul.f32 %v17999_v21, %v4261_v36 }
 0x4ff   :  { %v4266_v17 = vmul.f32 %v17999_v21, %v4262_v1  ;;  %v4280_v41 = vmul.f32 %v18000_v57, %v4262_v1  ;;  %v4281_v20 = vmul.f32 %v18000_v57, %v4261_v36  ;;  %5288 = vrot.lane.b32.xlu1 %v17983_v48, %s17912_s6  ;;  %v4294_v25 = vmul.f32 %v18001_v49, %v4262_v1  ;;  %v14041_v45 = vpop.permute.xlu0 %4511  ;;  %v14043_v30 = vpop.permute.xlu1 %4363 }
 0x500   :  { %v4295_v14 = vmul.f32 %v18001_v49, %v4261_v36  ;;  %v4308_v35 = vmul.f32 %v18002_v9, %v4262_v1  ;;  %v4309_v62 = vmul.f32 %v18002_v9, %v4261_v36  ;;  %18003 = vst [vmem:[#allocation36_spill] sm:$0xff] %v14041_v45  ;;  %v14049_v23 = vadd.f32 %v4267_v8, %v13891_v31 }
 0x501   :  { %v14046_v18 = vadd.f32 %v4266_v17, %v13888_v33  ;;  %v14052_v2 = vadd.f32 %v4280_v41, %v13894_v32  ;;  %v14055_v40 = vadd.f32 %v4281_v20, %v13897_v19  ;;  %v14058_v1 = vadd.f32 %v4294_v25, %v13902_v26  ;;  %5602 = vrot.lane.b32.xlu0 %v17987_v47, %s17725_s16 }
 0x502   :  { %v14061_v36 = vadd.f32 %v4295_v14, %v13905_v28  ;;  %v14064_v4 = vadd.f32 %v4308_v35, %v13908_v22  ;;  %v14067_v33 = vadd.f32 %v4309_v62, %v13911_v61  ;;  %v4268_v31 = vmul.f32 %v17999_v21, %v4260_v13 }
 0x503   :  { %v4269_v32 = vmul.f32 %v17999_v21, %v4259_v37  ;;  %v4282_v19 = vmul.f32 %v18000_v57, %v4260_v13  ;;  %v4283_v26 = vmul.f32 %v18000_v57, %v4259_v37  ;;  %5292 = vrot.lane.b32.xlu1 %v17984_v24, %s17912_s6  ;;  %v4296_v28 = vmul.f32 %v18001_v49, %v4260_v13  ;;  %v14081_v8 = vpop.permute.xlu0 %4575  ;;  %v14091_v35 = vpop.permute.xlu1 %4429 }
 0x504   :  { %v4297_v22 = vmul.f32 %v18001_v49, %v4259_v37  ;;  %v4310_v61 = vmul.f32 %v18002_v9, %v4260_v13  ;;  %v4311_v17 = vmul.f32 %v18002_v9, %v4259_v37  ;;  %18004 = vst [vmem:[#allocation16_spill] sm:$0xff] %v14081_v8  ;;  %v4274_v41 = vadd.f32 %v4268_v31, %v13946_v50 }
 0x505   :  { %v14085_v20 = vadd.f32 %v4269_v32, %v13949_v43  ;;  %v4288_v25 = vadd.f32 %v4282_v19, %v13952_v12  ;;  %v14089_v14 = vadd.f32 %v4283_v26, %v13955_v5  ;;  %v4302_v62 = vadd.f32 %v4296_v28, %v13962_v39  ;;  %v18005_v5 = vld [vmem:[#allocation77_spill] sm:$0xff]  ;;  %v18008_v32 = vld [vmem:[#allocation80_spill] sm:$0xff]  ;;  %5668 = vrot.lane.b32.xlu0 %v17938_v0, %s17728_s29 }
 0x506   :  { %v14095_v13 = vadd.f32 %v4297_v22, %v13965_v6  ;;  %v4316_v37 = vadd.f32 %v4310_v61, %v13968_v59  ;;  %v14099_v8 = vadd.f32 %v4311_v17, %v13971_v38  ;;  %v4444_v50 = vsel %vm165_vm1, %v13913_v52, %v13833_v54  ;;  %v18006_v59 = vld [vmem:[#allocation78_spill] sm:$0xff] }
 0x507   :  { %v4258_v43 = vsel %vm775_vm7, %v13655_v51, %v13915_v11  ;;  %v4263_v6 = vsel %vm775_vm7, %v13915_v11, %v17998_v55  ;;  %v4368_v12 = vsel %vm114_vm0, %v13959_v16, %v13743_v7  ;;  %5294 = vrot.lane.b32.xlu1 %v17987_v47, %s17912_s6  ;;  %v14122_v39 = vmul.f32 %v18005_v5, %v4444_v50  ;;  %v18007_v51 = vld [vmem:[#allocation79_spill] sm:$0xff]  ;;  %v14133_v11 = vpop.permute.xlu0 %4579  ;;  %v14139_v61 = vpop.permute.xlu1 %4433 }
 0x508   :  { %v14125_v38 = vmul.f32 %v18006_v59, %v4444_v50  ;;  %v14128_v31 = vmul.f32 %v18007_v51, %v4444_v50  ;;  %v14131_v19 = vmul.f32 %v18008_v32, %v4444_v50  ;;  %18009 = vst [vmem:[#allocation62_spill] sm:$0xff] %v14133_v11  ;;  %v4270_v55 = vmul.f32 %v17999_v21, %v4258_v43 }
 0x509   :  { %v4271_v26 = vmul.f32 %v17999_v21, %v4263_v6  ;;  %v4284_v28 = vmul.f32 %v18000_v57, %v4258_v43  ;;  %v4285_v22 = vmul.f32 %v18000_v57, %v4263_v6  ;;  %18010 = vst [vmem:[#allocation44_spill] sm:$0xff] %v14139_v61  ;;  %v4298_v17 = vmul.f32 %v18001_v49, %v4258_v43 }
 0x50a   :  { %v4299_v52 = vmul.f32 %v18001_v49, %v4263_v6  ;;  %v4312_v51 = vmul.f32 %v18002_v9, %v4258_v43  ;;  %v4313_v50 = vmul.f32 %v18002_v9, %v4263_v6  ;;  %v4276_v11 = vadd.f32 %v4270_v55, %v13986_v27  ;;  %v18013_v55 = vld [vmem:[#allocation82_spill] sm:$0xff]  ;;  %5672 = vrot.lane.b32.xlu0 %v17951_v34, %s17728_s29 }
 0x50b   :  { %v14149_v21 = vadd.f32 %v4271_v26, %v13989_v58  ;;  %v4290_v57 = vadd.f32 %v4284_v28, %v13992_v3  ;;  %v14153_v61 = vadd.f32 %v4285_v22, %v13995_v44  ;;  %5362 = vrot.lane.b32.xlu1 %v17983_v48, %s17720_s13  ;;  %v4304_v49 = vadd.f32 %v4298_v17, %v14002_v46  ;;  %v14165_v58 = vpop.permute.xlu0 %4585  ;;  %v18012_v44 = vld [vmem:[#allocation81_spill] sm:$0xff]  ;;  %v18014_v46 = vld [vmem:[#allocation83_spill] sm:$0xff] }
 0x50c   :  { %v14159_v9 = vadd.f32 %v4299_v52, %v14005_v56  ;;  %v4318_v43 = vadd.f32 %v4312_v51, %v14008_v15  ;;  %v14163_v27 = vadd.f32 %v4313_v50, %v14011_v53  ;;  %18011 = vst [vmem:[#allocation63_spill] sm:$0xff] %v14165_v58  ;;  %v4369_v3 = vsel %vm114_vm0, %v13703_v60, %v13959_v16  ;;  %v14174_v52 = vpop.permute.xlu1 %4435  ;;  %v18016_v51 = vld [vmem:[#allocation84_spill] sm:$0xff] }
 0x50d   :  { %v4375_v6 = vmul.f32 %v18012_v44, %v4368_v12  ;;  %v4389_v26 = vmul.f32 %v18013_v55, %v4368_v12  ;;  %v4403_v28 = vmul.f32 %v18014_v46, %v4368_v12  ;;  %18015 = vst [vmem:[#allocation64_spill] sm:$0xff] %v14174_v52  ;;  %v4374_v56 = vmul.f32 %v18012_v44, %v4369_v3 }
 0x50e   :  { %v4388_v15 = vmul.f32 %v18013_v55, %v4369_v3  ;;  %v4402_v53 = vmul.f32 %v18014_v46, %v4369_v3  ;;  %v4416_v22 = vmul.f32 %v18016_v51, %v4369_v3  ;;  %v4417_v58 = vmul.f32 %v18016_v51, %v4368_v12  ;;  %5676 = vrot.lane.b32.xlu0 %v17987_v47, %s17728_s29 }
 0x50f   :  { %v14182_v16 = vadd.f32 %v4375_v6, %v4274_v41  ;;  %v14184_v17 = vadd.f32 %v4389_v26, %v4288_v25  ;;  %v14186_v50 = vadd.f32 %v4403_v28, %v4302_v62  ;;  %5366 = vrot.lane.b32.xlu1 %v17984_v24, %s17720_s13  ;;  %v14192_v52 = vadd.f32 %v4374_v56, %v14049_v23  ;;  %v14203_v25 = vpop.permute.xlu0 %4809 }
 0x510   :  { %v14195_v32 = vadd.f32 %v4388_v15, %v14055_v40  ;;  %v14198_v3 = vadd.f32 %v4402_v53, %v14061_v36  ;;  %v14201_v41 = vadd.f32 %v4416_v22, %v14067_v33  ;;  %18017 = vst [vmem:[#allocation65_spill] sm:$0xff] %v14203_v25  ;;  %v14205_v62 = vadd.f32 %v4417_v58, %v4316_v37  ;;  %v14219_v36 = vpop.permute.xlu1 %4503 }
 0x511   :  { %v4366_v12 = vsel %vm114_vm0, %v13999_v10, %v13783_v42  ;;  %v4367_v40 = vsel %vm114_vm0, %v13743_v7, %v13999_v10  ;;  %v4518_v23 = vsel %vm240_vm2, %v14041_v45, %v13957_v63 }
 0x512   :  { %v4376_v33 = vmul.f32 %v18012_v44, %v4367_v40  ;;  %v4377_v37 = vmul.f32 %v18012_v44, %v4366_v12  ;;  %v4390_v58 = vmul.f32 %v18013_v55, %v4367_v40  ;;  %v4391_v6 = vmul.f32 %v18013_v55, %v4366_v12  ;;  %5742 = vrot.lane.b32.xlu0 %v17938_v0, %s17729_s30 }
 0x513   :  { %v4404_v7 = vmul.f32 %v18014_v46, %v4367_v40  ;;  %v4405_v10 = vmul.f32 %v18014_v46, %v4366_v12  ;;  %v4418_v26 = vmul.f32 %v18016_v51, %v4367_v40  ;;  %v4419_v28 = vmul.f32 %v18016_v51, %v4366_v12  ;;  %5368 = vrot.lane.b32.xlu1 %v17987_v47, %s17720_s13  ;;  %v14243_v25 = vpop.permute.xlu0 %4813 }
 0x514   :  { %v14234_v56 = vadd.f32 %v4376_v33, %v14085_v20  ;;  %v14236_v15 = vadd.f32 %v4377_v37, %v4276_v11  ;;  %v14239_v53 = vadd.f32 %v4390_v58, %v14089_v14  ;;  %v14241_v22 = vadd.f32 %v4391_v6, %v4290_v57  ;;  %18018 = vst [vmem:[#allocation66_spill] sm:$0xff] %v14243_v25  ;;  %v14255_v20 = vpop.permute.xlu1 %4507  ;;  %v18020_v11 = vld [vmem:[#allocation85_spill] sm:$0xff]  ;;  %v18021_v14 = vld [vmem:[#allocation86_spill] sm:$0xff]  ;;  %v18022_v57 = vld [vmem:[#allocation87_spill] sm:$0xff] }
 0x515   :  { %v14246_v45 = vadd.f32 %v4404_v7, %v14095_v13  ;;  %v14248_v40 = vadd.f32 %v4405_v10, %v4304_v49  ;;  %v14251_v12 = vadd.f32 %v4418_v26, %v14099_v8  ;;  %v14253_v63 = vadd.f32 %v4419_v28, %v4318_v43  ;;  %18019 = vst [vmem:[#allocation67_spill] sm:$0xff] %v14255_v20  ;;  %v18023_v6 = vld [vmem:[#allocation88_spill] sm:$0xff] }
 0x516   :  { %v4521_v33 = vmul.f32 %v18020_v11, %v4518_v23  ;;  %v4535_v37 = vmul.f32 %v18021_v14, %v4518_v23  ;;  %v4549_v58 = vmul.f32 %v18022_v57, %v4518_v23  ;;  %v14261_v25 = vmul.f32 %v18023_v6, %v4518_v23  ;;  %v18024_v49 = vld [vmem:[#allocation48_spill] sm:$0xff]  ;;  %5746 = vrot.lane.b32.xlu0 %v17951_v34, %s17729_s30 }
 0x517   :  { %v4365_v8 = vsel %vm114_vm0, %v13783_v42, %v14043_v30  ;;  %v4370_v13 = vsel %vm114_vm0, %v14043_v30, %v13703_v60  ;;  %v4442_v43 = vsel %vm165_vm1, %v14091_v35, %v18024_v49  ;;  %v4443_v23 = vsel %vm165_vm1, %v13833_v54, %v14091_v35  ;;  %5596 = vrot.lane.b32.xlu1 %v17983_v48, %s17725_s16  ;;  %v14287_v30 = vpop.permute.xlu0 %4817 }
 0x518   :  { %v4373_v42 = vmul.f32 %v18012_v44, %v4370_v13  ;;  %v4378_v7 = vmul.f32 %v18012_v44, %v4365_v8  ;;  %v4387_v10 = vmul.f32 %v18013_v55, %v4370_v13  ;;  %v4392_v60 = vmul.f32 %v18013_v55, %v4365_v8  ;;  %v14293_v35 = vpop.permute.xlu1 %4509 }
 0x519   :  { %v4401_v26 = vmul.f32 %v18014_v46, %v4370_v13  ;;  %v4406_v28 = vmul.f32 %v18014_v46, %v4365_v8  ;;  %v4415_v20 = vmul.f32 %v18016_v51, %v4370_v13  ;;  %v4420_v54 = vmul.f32 %v18016_v51, %v4365_v8 }
 0x51a   :  { %v4379_v6 = vadd.f32 %v4373_v42, %v14046_v18  ;;  %v14297_v44 = vadd.f32 %v4378_v7, %v14149_v21  ;;  %v4393_v57 = vadd.f32 %v4387_v10, %v14052_v2  ;;  %v14301_v55 = vadd.f32 %v4392_v60, %v14153_v61  ;;  %5750 = vrot.lane.b32.xlu0 %v17987_v47, %s17729_s30  ;;  %v18027_v10 = vld [vmem:[#allocation80_spill] sm:$0xff] }
 0x51b   :  { %v4407_v46 = vadd.f32 %v4401_v26, %v14058_v1  ;;  %v14307_v13 = vadd.f32 %v4406_v28, %v14159_v9  ;;  %v4421_v51 = vadd.f32 %v4415_v20, %v14064_v4  ;;  %v14311_v18 = vadd.f32 %v4420_v54, %v14163_v27  ;;  %5600 = vrot.lane.b32.xlu1 %v17984_v24, %s17725_s16  ;;  %v14319_v1 = vpop.permute.xlu0 %4883  ;;  %v18029_v54 = vld [vmem:[#allocation44_spill] sm:$0xff] }
 0x51c   :  { %v4453_v2 = vadd.f32 %v14122_v39, %v4379_v6  ;;  %v4467_v61 = vadd.f32 %v14125_v38, %v4393_v57  ;;  %v4448_v21 = vmul.f32 %v18005_v5, %v4443_v23  ;;  %v4449_v8 = vmul.f32 %v18005_v5, %v4442_v43  ;;  %18025 = vst [vmem:[#allocation68_spill] sm:$0xff] %v14319_v1  ;;  %v14325_v42 = vpop.permute.xlu1 %4577  ;;  %v18026_v57 = vld [vmem:[#allocation79_spill] sm:$0xff] }
 0x51d   :  { %v4481_v9 = vadd.f32 %v14128_v31, %v4407_v46  ;;  %v4495_v4 = vadd.f32 %v14131_v19, %v4421_v51  ;;  %v4462_v27 = vmul.f32 %v18006_v59, %v4443_v23  ;;  %v4463_v20 = vmul.f32 %v18006_v59, %v4442_v43 }
 0x51e   :  { %v14328_v39 = vadd.f32 %v4448_v21, %v14192_v52  ;;  %v14331_v38 = vadd.f32 %v4449_v8, %v14182_v16  ;;  %v4476_v6 = vmul.f32 %v18026_v57, %v4443_v23  ;;  %v4477_v7 = vmul.f32 %v18026_v57, %v4442_v43  ;;  %v18028_v16 = vld [vmem:[#allocation45_spill] sm:$0xff]  ;;  %5816 = vrot.lane.b32.xlu0 %v17938_v0, %s17925_s26 }
 0x51f   :  { %v14338_v31 = vadd.f32 %v4462_v27, %v14195_v32  ;;  %v14341_v19 = vadd.f32 %v4463_v20, %v14184_v17  ;;  %v4490_v60 = vmul.f32 %v18027_v10, %v4443_v23  ;;  %v4491_v52 = vmul.f32 %v18027_v10, %v4442_v43  ;;  %5604 = vrot.lane.b32.xlu1 %v18028_v16, %s17725_s16  ;;  %v14357_v46 = vpop.permute.xlu0 %4887  ;;  %v18031_v27 = vld [vmem:[#allocation16_spill] sm:$0xff]  ;;  %v18032_v20 = vld [vmem:[#allocation63_spill] sm:$0xff] }
 0x520   :  { %v14348_v26 = vadd.f32 %v4476_v6, %v14198_v3  ;;  %v14351_v28 = vadd.f32 %v4477_v7, %v14186_v50  ;;  %v4441_v32 = vsel %vm165_vm1, %v18024_v49, %v18029_v54  ;;  %v4527_v17 = vadd.f32 %v4521_v33, %v4453_v2  ;;  %18030 = vst [vmem:[#allocation38_spill] sm:$0xff] %v14357_v46  ;;  %v14367_v50 = vpop.permute.xlu1 %4581  ;;  %v18037_v7 = vld [vmem:[#allocation93_spill] sm:$0xff] }
 0x521   :  { %v14360_v23 = vadd.f32 %v4490_v60, %v14201_v41  ;;  %v14363_v43 = vadd.f32 %v4491_v52, %v14205_v62  ;;  %v4450_v3 = vmul.f32 %v18005_v5, %v4441_v32  ;;  %v4464_v51 = vmul.f32 %v18006_v59, %v4441_v32  ;;  %v18038_v52 = vld [vmem:[#allocation34_spill] sm:$0xff] }
 0x522   :  { %v4478_v21 = vmul.f32 %v18026_v57, %v4441_v32  ;;  %v4492_v8 = vmul.f32 %v18027_v10, %v4441_v32  ;;  %v4541_v49 = vadd.f32 %v4535_v37, %v4467_v61  ;;  %v4555_v33 = vadd.f32 %v4549_v58, %v4481_v9  ;;  %v18039_v32 = vld [vmem:[#allocation64_spill] sm:$0xff]  ;;  %5820 = vrot.lane.b32.xlu0 %v17951_v34, %s17925_s26 }
 0x523   :  { %v14374_v41 = vadd.f32 %v4450_v3, %v14234_v56  ;;  %v14377_v62 = vadd.f32 %v4464_v51, %v14239_v53  ;;  %v4569_v2 = vadd.f32 %v14261_v25, %v4495_v4  ;;  %v4592_v6 = vsel %vm315_vm3, %v18032_v20, %v18031_v27  ;;  %5670 = vrot.lane.b32.xlu1 %v17983_v48, %s17728_s29  ;;  %v18033_v56 = vld [vmem:[#allocation90_spill] sm:$0xff]  ;;  %v18034_v53 = vld [vmem:[#allocation91_spill] sm:$0xff]  ;;  %v14394_v9 = vpop.permute.xlu0 %4891  ;;  %v18036_v25 = vld [vmem:[#allocation92_spill] sm:$0xff] }
 0x524   :  { %v14387_v37 = vadd.f32 %v4478_v21, %v14246_v45  ;;  %v14390_v0 = vadd.f32 %v4492_v8, %v14251_v12  ;;  %v4595_v58 = vmul.f32 %v18033_v56, %v4592_v6  ;;  %v4609_v61 = vmul.f32 %v18034_v53, %v4592_v6  ;;  %18035 = vst [vmem:[#allocation51_spill] sm:$0xff] %v14394_v9  ;;  %v14406_v12 = vpop.permute.xlu1 %4583 }
 0x525   :  { %v4623_v4 = vmul.f32 %v18036_v25, %v4592_v6  ;;  %v4637_v60 = vmul.f32 %v18037_v7, %v4592_v6  ;;  %v4439_v3 = vsel %vm165_vm1, %v18039_v32, %v18038_v52  ;;  %v4440_v45 = vsel %vm165_vm1, %v18029_v54, %v18039_v32  ;;  %v18042_v32 = vld [vmem:[#allocation43_spill] sm:$0xff] }
 0x526   :  { %v14408_v51 = vadd.f32 %v4595_v58, %v4527_v17  ;;  %v14410_v21 = vadd.f32 %v4609_v61, %v4541_v49  ;;  %v4451_v8 = vmul.f32 %v18005_v5, %v4440_v45  ;;  %v4452_v6 = vmul.f32 %v18005_v5, %v4439_v3  ;;  %5824 = vrot.lane.b32.xlu0 %v17987_v47, %s17925_s26 }
 0x527   :  { %v14416_v9 = vadd.f32 %v4623_v4, %v4555_v33  ;;  %v14418_v52 = vadd.f32 %v4637_v60, %v4569_v2  ;;  %v4465_v1 = vmul.f32 %v18006_v59, %v4440_v45  ;;  %v4466_v54 = vmul.f32 %v18006_v59, %v4439_v3  ;;  %5674 = vrot.lane.b32.xlu1 %v17984_v24, %s17728_s29  ;;  %v14430_v33 = vpop.permute.xlu0 %4957  ;;  %v18041_v60 = vld [vmem:[#allocation35_spill] sm:$0xff] }
 0x528   :  { %v14425_v17 = vadd.f32 %v4451_v8, %v14236_v15  ;;  %v4458_v49 = vadd.f32 %v4452_v6, %v14297_v44  ;;  %v4479_v5 = vmul.f32 %v18026_v57, %v4440_v45  ;;  %v4480_v34 = vmul.f32 %v18026_v57, %v4439_v3  ;;  %18040 = vst [vmem:[#allocation52_spill] sm:$0xff] %v14430_v33  ;;  %v14436_v4 = vpop.permute.xlu1 %4811  ;;  %v18045_v6 = vld [vmem:[#allocation88_spill] sm:$0xff] }
 0x529   :  { %v4471_v2 = vadd.f32 %v4465_v1, %v14241_v22  ;;  %v4472_v58 = vadd.f32 %v4466_v54, %v14301_v55  ;;  %v4493_v59 = vmul.f32 %v18027_v10, %v4440_v45  ;;  %v4494_v61 = vmul.f32 %v18027_v10, %v4439_v3  ;;  %v18043_v45 = vld [vmem:[#allocation87_spill] sm:$0xff] }
 0x52a   :  { %v4485_v15 = vadd.f32 %v4479_v5, %v14248_v40  ;;  %v4486_v44 = vadd.f32 %v4480_v34, %v14307_v13  ;;  %v4516_v57 = vsel %vm240_vm2, %v14219_v36, %v18041_v60  ;;  %v4517_v22 = vsel %vm240_vm2, %v18042_v32, %v14219_v36 }
 0x52b   :  { %v4499_v55 = vadd.f32 %v4493_v59, %v14253_v63  ;;  %v4500_v1 = vadd.f32 %v4494_v61, %v14311_v18  ;;  %v4522_v40 = vmul.f32 %v18020_v11, %v4517_v22  ;;  %v4523_v13 = vmul.f32 %v18020_v11, %v4516_v57  ;;  %5678 = vrot.lane.b32.xlu1 %v18028_v16, %s17728_s29  ;;  %v14460_v47 = vpop.permute.xlu0 %4961 }
 0x52c   :  { %v4536_v10 = vmul.f32 %v18021_v14, %v4517_v22  ;;  %v4537_v3 = vmul.f32 %v18021_v14, %v4516_v57  ;;  %v4550_v36 = vmul.f32 %v18043_v45, %v4517_v22  ;;  %v4551_v8 = vmul.f32 %v18043_v45, %v4516_v57  ;;  %18044 = vst [vmem:[#allocation89_spill] sm:$0xff] %v14460_v47  ;;  %v14466_v34 = vpop.permute.xlu1 %4815  ;;  %v18046_v47 = vld [vmem:[#allocation54_spill] sm:$0xff] }
 0x52d   :  { %v4528_v63 = vadd.f32 %v4522_v40, %v14328_v39  ;;  %v4529_v18 = vadd.f32 %v4523_v13, %v14331_v38  ;;  %v4564_v54 = vmul.f32 %v18045_v6, %v4517_v22  ;;  %v4565_v5 = vmul.f32 %v18045_v6, %v4516_v57  ;;  %5923 = vrot.lane.b32.xlu0 %v18046_v47, %s17937_s0  ;;  %v18047_v22 = vld [vmem:[#allocation67_spill] sm:$0xff]  ;;  %v18048_v40 = vld [vmem:[#allocation36_spill] sm:$0xff] }
 0x52e   :  { %v4542_v59 = vadd.f32 %v4536_v10, %v14338_v31  ;;  %v4543_v61 = vadd.f32 %v4537_v3, %v14341_v19  ;;  %v4556_v32 = vadd.f32 %v4550_v36, %v14348_v26  ;;  %v4557_v33 = vadd.f32 %v4551_v8, %v14351_v28 }
 0x52f   :  { %v4570_v39 = vadd.f32 %v4564_v54, %v14360_v23  ;;  %v4571_v38 = vadd.f32 %v4565_v5, %v14363_v43  ;;  %v4515_v57 = vsel %vm240_vm2, %v18041_v60, %v18047_v22  ;;  %v4513_v31 = vsel %vm240_vm2, %v14293_v35, %v18048_v40  ;;  %5744 = vrot.lane.b32.xlu1 %v17983_v48, %s17729_s30  ;;  %v14490_v43 = vpop.permute.xlu0 %4965  ;;  %v18050_v40 = vld [vmem:[#allocation55_spill] sm:$0xff] }
 0x530   :  { %v4524_v19 = vmul.f32 %v18020_v11, %v4515_v57  ;;  %v4538_v26 = vmul.f32 %v18021_v14, %v4515_v57  ;;  %v4552_v28 = vmul.f32 %v18043_v45, %v4515_v57  ;;  %v4566_v23 = vmul.f32 %v18045_v6, %v4515_v57  ;;  %18049 = vst [vmem:[#allocation37_spill] sm:$0xff] %v14490_v43  ;;  %v14499_v36 = vpop.permute.xlu1 %4819 }
 0x531   :  { %v4514_v60 = vsel %vm240_vm2, %v18047_v22, %v14293_v35  ;;  %v4526_v13 = vmul.f32 %v18020_v11, %v4513_v31  ;;  %v4540_v10 = vmul.f32 %v18021_v14, %v4513_v31  ;;  %v4554_v3 = vmul.f32 %v18043_v45, %v4513_v31  ;;  %5927 = vrot.lane.b32.xlu0 %v18050_v40, %s17937_s0 }
 0x532   :  { %v4530_v8 = vadd.f32 %v4524_v19, %v14374_v41  ;;  %v4544_v54 = vadd.f32 %v4538_v26, %v14377_v62  ;;  %v4558_v5 = vadd.f32 %v4552_v28, %v14387_v37  ;;  %v4572_v57 = vadd.f32 %v4566_v23, %v14390_v0  ;;  %v18052_v26 = vld [vmem:[#allocation62_spill] sm:$0xff] }
 0x533   :  { %v4525_v35 = vmul.f32 %v18020_v11, %v4514_v60  ;;  %v14508_v22 = vadd.f32 %v4526_v13, %v4458_v49  ;;  %v4539_v43 = vmul.f32 %v18021_v14, %v4514_v60  ;;  %v14511_v46 = vadd.f32 %v4540_v10, %v4472_v58  ;;  %5748 = vrot.lane.b32.xlu1 %v17984_v24, %s17729_s30  ;;  %v14520_v19 = vpop.permute.xlu0 %5031 }
 0x534   :  { %v4553_v41 = vmul.f32 %v18043_v45, %v4514_v60  ;;  %v14516_v62 = vadd.f32 %v4554_v3, %v4486_v44  ;;  %v4567_v37 = vmul.f32 %v18045_v6, %v4514_v60  ;;  %v4568_v0 = vmul.f32 %v18045_v6, %v4513_v31  ;;  %18051 = vst [vmem:[#allocation53_spill] sm:$0xff] %v14520_v19  ;;  %v14531_v44 = vpop.permute.xlu1 %4885 }
 0x535   :  { %v4531_v11 = vadd.f32 %v4525_v35, %v14425_v17  ;;  %v4545_v49 = vadd.f32 %v4539_v43, %v4471_v2  ;;  %v4590_v14 = vsel %vm315_vm3, %v14325_v42, %v18052_v26  ;;  %v4591_v58 = vsel %vm315_vm3, %v18031_v27, %v14325_v42  ;;  %v18053_v17 = vld [vmem:[#allocation26_spill] sm:$0xff] }
 0x536   :  { %v4559_v45 = vadd.f32 %v4553_v41, %v4485_v15  ;;  %v4573_v28 = vadd.f32 %v4567_v37, %v4499_v55  ;;  %v4574_v6 = vadd.f32 %v4568_v0, %v4500_v1  ;;  %v4596_v31 = vmul.f32 %v18033_v56, %v4591_v58  ;;  %5933 = vrot.lane.b32.xlu0 %v18053_v17, %s17937_s0 }
 0x537   :  { %v4597_v2 = vmul.f32 %v18033_v56, %v4590_v14  ;;  %v4610_v23 = vmul.f32 %v18034_v53, %v4591_v58  ;;  %v4611_v43 = vmul.f32 %v18034_v53, %v4590_v14  ;;  %v4624_v60 = vmul.f32 %v18036_v25, %v4591_v58  ;;  %5752 = vrot.lane.b32.xlu1 %v18028_v16, %s17729_s30  ;;  %v14545_v1 = vpop.permute.xlu0 %5035 }
 0x538   :  { %v4602_v42 = vadd.f32 %v4596_v31, %v4528_v63  ;;  %v4625_v27 = vmul.f32 %v18036_v25, %v4590_v14  ;;  %v4638_v15 = vmul.f32 %v18037_v7, %v4591_v58  ;;  %v4639_v55 = vmul.f32 %v18037_v7, %v4590_v14  ;;  %18054 = vst [vmem:[#allocation69_spill] sm:$0xff] %v14545_v1  ;;  %v14551_v41 = vpop.permute.xlu1 %4889 }
 0x539   :  { %v14547_v13 = vadd.f32 %v4597_v2, %v4529_v18  ;;  %v4616_v10 = vadd.f32 %v4610_v23, %v4542_v59  ;;  %v14549_v3 = vadd.f32 %v4611_v43, %v4543_v61  ;;  %v4630_v35 = vadd.f32 %v4624_v60, %v4556_v32  ;;  %v18058_v2 = vld [vmem:[#allocation20_spill] sm:$0xff] }
 0x53a   :  { %v14553_v37 = vadd.f32 %v4625_v27, %v4557_v33  ;;  %v4644_v0 = vadd.f32 %v4638_v15, %v4570_v39  ;;  %v14555_v63 = vadd.f32 %v4639_v55, %v4571_v38  ;;  %v4589_v14 = vsel %vm315_vm3, %v18052_v26, %v14367_v50  ;;  %5997 = vrot.lane.b32.xlu0 %v18046_v47, %s17888_s17  ;;  %v18055_v38 = vld [vmem:[#allocation46_spill] sm:$0xff] }
 0x53b   :  { %v4598_v18 = vmul.f32 %v18033_v56, %v4589_v14  ;;  %v4612_v59 = vmul.f32 %v18034_v53, %v4589_v14  ;;  %v4626_v61 = vmul.f32 %v18036_v25, %v4589_v14  ;;  %v4640_v33 = vmul.f32 %v18037_v7, %v4589_v14  ;;  %5818 = vrot.lane.b32.xlu1 %v17983_v48, %s17925_s26  ;;  %v18056_v26 = vld [vmem:[#allocation18_spill] sm:$0xff]  ;;  %v14592_v48 = vpop.permute.xlu0 %5039 }
 0x53c   :  { %v4587_v32 = vsel %vm315_vm3, %v14406_v12, %v18032_v20  ;;  %v4588_v39 = vsel %vm315_vm3, %v14367_v50, %v14406_v12  ;;  %v18057_v58 = vrot.slane %v18055_v38, %v18056_v26  ;;  %v18059_v23 = vrot.slane %v18055_v38, %v18058_v2  ;;  %18060 = vst [vmem:[#allocation70_spill] sm:$0xff] %v14592_v48  ;;  %v14598_v12 = vpop.permute.xlu1 %4893  ;;  %v18073_v48 = vld [vmem:[#allocation59_spill] sm:$0xff] }
 0x53d   :  { %v4604_v20 = vadd.f32 %v4598_v18, %v4530_v8  ;;  %v4618_v60 = vadd.f32 %v4612_v59, %v4544_v54  ;;  %v14594_v27 = vadd.f32 %v4626_v61, %v4558_v5  ;;  %v14596_v50 = vadd.f32 %v4640_v33, %v4572_v57  ;;  %v18064_v33 = vld [vmem:[#allocation49_spill] sm:$0xff] }
 0x53e   :  { %v4683_v31 = vadd.f32 %v18057_v58, %v14408_v51  ;;  %v4684_v43 = vadd.f32 %v18059_v23, %v4602_v42  ;;  %v4599_v51 = vmul.f32 %v18033_v56, %v4588_v39  ;;  %v4600_v15 = vmul.f32 %v18033_v56, %v4587_v32  ;;  %6001 = vrot.lane.b32.xlu0 %v18050_v40, %s17888_s17 }
 0x53f   :  { %v4613_v42 = vmul.f32 %v18034_v53, %v4588_v39  ;;  %v4614_v55 = vmul.f32 %v18034_v53, %v4587_v32  ;;  %v4627_v8 = vmul.f32 %v18036_v25, %v4588_v39  ;;  %v4628_v54 = vmul.f32 %v18036_v25, %v4587_v32  ;;  %5822 = vrot.lane.b32.xlu1 %v17984_v24, %s17925_s26 }
 0x540   :  { %v4641_v5 = vmul.f32 %v18037_v7, %v4588_v39  ;;  %v4642_v57 = vmul.f32 %v18037_v7, %v4587_v32  ;;  %v4605_v14 = vadd.f32 %v4599_v51, %v4531_v11  ;;  %v4606_v56 = vadd.f32 %v4600_v15, %v14508_v22  ;;  %v14627_v11 = vpop.permute.xlu1 %4959  ;;  %v18061_v22 = vld [vmem:[#allocation47_spill] sm:$0xff]  ;;  %v14643_v39 = vpop.permute.xlu0 %5138 }
 0x541   :  { %v14613_v18 = vadd.f32 %v4613_v42, %v4545_v49  ;;  %v14616_v53 = vadd.f32 %v4614_v55, %v14511_v46  ;;  %v14618_v59 = vadd.f32 %v4627_v8, %v4559_v45  ;;  %v14621_v25 = vadd.f32 %v4628_v54, %v14516_v62  ;;  %18067 = vst [vmem:[#allocation71_spill] sm:$0xff] %v14643_v39  ;;  %v18071_v55 = vld [vmem:[#allocation66_spill] sm:$0xff]  ;;  %v18072_v8 = vld [vmem:[#allocation65_spill] sm:$0xff] }
 0x542   :  { %v14623_v7 = vadd.f32 %v4641_v5, %v4573_v28  ;;  %v14625_v24 = vadd.f32 %v4642_v57, %v4574_v6  ;;  %v18062_v49 = vrot.slane %v18061_v22, %v18056_v26  ;;  %v18063_v46 = vrot.slane %v18061_v22, %v18058_v2  ;;  %6007 = vrot.lane.b32.xlu0 %v18053_v17, %s17888_s17 }
 0x543   :  { %v18065_v62 = vrot.slane %v18064_v33, %v18056_v26  ;;  %v18066_v28 = vrot.slane %v18064_v33, %v18058_v2  ;;  %v14655_v15 = vstv %s14567_s10  ;;  %5826 = vrot.lane.b32.xlu1 %v18028_v16, %s17925_s26  ;;  %v14666_v42 = vstv %s14590_s3  ;;  %s15542_s10 = sld [smem:[#allocation9 + $0x39]]  ;;  %s15809_s3 = sld [smem:[#allocation9 + $0x5a]] }
 0x544   :  { %v4723_v61 = vadd.f32 %v18062_v49, %v14410_v21  ;;  %v4724_v45 = vadd.f32 %v18063_v46, %v4616_v10  ;;  %v18068_v21 = vld [vmem:[#allocation50_spill] sm:$0xff]  ;;  %v14680_v49 = vpop.permute.xlu1 %4963  ;;  %v14706_v39 = vpop.permute.xlu0 %5142 }
 0x545   :  { %v4763_v32 = vadd.f32 %v18065_v62, %v14416_v9  ;;  %v4764_v6 = vadd.f32 %v18066_v28, %v4630_v35  ;;  %v18069_v58 = vrot.slane %v18068_v21, %v18056_v26  ;;  %v18070_v10 = vrot.slane %v18068_v21, %v18058_v2  ;;  %18074 = vst [vmem:[#allocation72_spill] sm:$0xff] %v14706_v39 }
 0x546   :  { %v14658_v9 = vstv %s14569_s11  ;;  %v14663_v35 = vstv %s14588_s12  ;;  %6071 = vrot.lane.b32.xlu0 %v18046_v47, %s17912_s6  ;;  %s15544_s11 = sld [smem:[#allocation9 + $0x3a]]  ;;  %s15558_s12 = sld [smem:[#allocation9 + $0x3b]] }
 0x547   :  { %v4803_v23 = vadd.f32 %v18069_v58, %v14418_v52  ;;  %v4804_v51 = vadd.f32 %v18070_v10, %v4644_v0  ;;  %v4824_v52 = vsel %vm550_vm4, %v14436_v4, %v18071_v55  ;;  %v4825_v0 = vsel %vm550_vm4, %v18072_v8, %v14436_v4  ;;  %5925 = vrot.lane.b32.xlu1 %v18073_v48, %s17937_s0 }
 0x548   :  { %v4829_v54 = vmul.f32 %v14655_v15, %v4825_v0  ;;  %v4830_v5 = vmul.f32 %v14655_v15, %v4824_v52  ;;  %v4843_v16 = vmul.f32 %v14658_v9, %v4825_v0  ;;  %v4844_v57 = vmul.f32 %v14658_v9, %v4824_v52 }
 0x549   :  { %v4857_v46 = vmul.f32 %v14663_v35, %v4825_v0  ;;  %v4858_v62 = vmul.f32 %v14663_v35, %v4824_v52  ;;  %v4871_v28 = vmul.f32 %v14666_v42, %v4825_v0  ;;  %v4872_v58 = vmul.f32 %v14666_v42, %v4824_v52 }
 0x54a   :  { %v14688_v4 = vadd.f32 %v4829_v54, %v4683_v31  ;;  %v14690_v10 = vadd.f32 %v4830_v5, %v4684_v43  ;;  %v14692_v2 = vadd.f32 %v4843_v16, %v4723_v61  ;;  %v14694_v26 = vadd.f32 %v4844_v57, %v4724_v45  ;;  %v18075_v31 = vld [vmem:[#allocation17_spill] sm:$0xff]  ;;  %v18077_v45 = vld [vmem:[#allocation19_spill] sm:$0xff]  ;;  %v14722_v16 = vpop.permute.xlu1 %4967  ;;  %6075 = vrot.lane.b32.xlu0 %v18050_v40, %s17912_s6 }
 0x54b   :  { %v14698_v19 = vadd.f32 %v4857_v46, %v4763_v32  ;;  %v14700_v1 = vadd.f32 %v4858_v62, %v4764_v6  ;;  %v14702_v0 = vadd.f32 %v4871_v28, %v4803_v23  ;;  %v14704_v52 = vadd.f32 %v4872_v58, %v4804_v51 }
 0x54c   :  { %v18076_v43 = vrot.slane %v18055_v38, %v18075_v31  ;;  %v18078_v54 = vrot.slane %v18055_v38, %v18077_v45  ;;  %v18079_v32 = vrot.slane %v18061_v22, %v18075_v31  ;;  %v18080_v23 = vrot.slane %v18061_v22, %v18077_v45 }
 0x54d   :  { %v18081_v57 = vrot.slane %v18064_v33, %v18075_v31 }
 0x54e   :  { %v4685_v61 = vadd.f32 %v18076_v43, %v14547_v13  ;;  %v4686_v5 = vadd.f32 %v18078_v54, %v4604_v20  ;;  %v4725_v6 = vadd.f32 %v18079_v32, %v14549_v3  ;;  %v4726_v51 = vadd.f32 %v18080_v23, %v4618_v60  ;;  %v18087_v54 = vld [vmem:[#allocation21_spill] sm:$0xff]  ;;  %v18089_v23 = vld [vmem:[#allocation60_spill] sm:$0xff]  ;;  %6081 = vrot.lane.b32.xlu0 %v18053_v17, %s17912_s6 }
 0x54f   :  { %v4765_v13 = vadd.f32 %v18081_v57, %v14553_v37  ;;  %v18082_v20 = vrot.slane %v18064_v33, %v18077_v45  ;;  %v18083_v3 = vrot.slane %v18068_v21, %v18075_v31  ;;  %v18084_v60 = vrot.slane %v18068_v21, %v18077_v45  ;;  %5929 = vrot.lane.b32.xlu1 %v18089_v23, %s17937_s0 }
 0x550   :  { %v4822_v37 = vsel %vm550_vm4, %v14466_v34, %v14287_v30 }
 0x551   :  { %v4766_v46 = vadd.f32 %v18082_v20, %v14594_v27  ;;  %v4805_v62 = vadd.f32 %v18083_v3, %v14555_v63  ;;  %v4806_v28 = vadd.f32 %v18084_v60, %v14596_v50  ;;  %v4823_v27 = vsel %vm550_vm4, %v18071_v55, %v14466_v34  ;;  %v18085_v63 = vld [vmem:[#allocation22_spill] sm:$0xff] }
 0x552   :  { %v18086_v58 = vrot.slane %v18055_v38, %v18085_v63  ;;  %v18088_v50 = vrot.slane %v18055_v38, %v18087_v54  ;;  %v4831_v57 = vmul.f32 %v14655_v15, %v4823_v27  ;;  %v4832_v20 = vmul.f32 %v14655_v15, %v4822_v37  ;;  %6145 = vrot.lane.b32.xlu0 %v18046_v47, %s17720_s13 }
 0x553   :  { %v4845_v3 = vmul.f32 %v14658_v9, %v4823_v27  ;;  %v4846_v60 = vmul.f32 %v14658_v9, %v4822_v37  ;;  %v4859_v34 = vmul.f32 %v14663_v35, %v4823_v27  ;;  %v4860_v55 = vmul.f32 %v14663_v35, %v4822_v37 }
 0x554   :  { %v4687_v43 = vadd.f32 %v18086_v58, %v4605_v14  ;;  %v4688_v32 = vadd.f32 %v18088_v50, %v4606_v56  ;;  %v4873_v14 = vmul.f32 %v14666_v42, %v4823_v27  ;;  %v4874_v38 = vmul.f32 %v14666_v42, %v4822_v37  ;;  %v14770_v56 = vpop.permute.xlu1 %5033  ;;  %v14784_v27 = vpop.permute.xlu0 %5148 }
 0x555   :  { %v14772_v58 = vadd.f32 %v4831_v57, %v4685_v61  ;;  %v14774_v50 = vadd.f32 %v4832_v20, %v4686_v5  ;;  %v14776_v45 = vadd.f32 %v4845_v3, %v4725_v6  ;;  %v14778_v31 = vadd.f32 %v4846_v60, %v4726_v51  ;;  %18090 = vst [vmem:[#allocation32_spill] sm:$0xff] %v14784_v27  ;;  %v18091_v6 = vld [vmem:[#allocation61_spill] sm:$0xff] }
 0x556   :  { %v14788_v37 = vadd.f32 %v4859_v34, %v4765_v13  ;;  %v14790_v39 = vadd.f32 %v4860_v55, %v4766_v46  ;;  %v14792_v61 = vadd.f32 %v4873_v14, %v4805_v62  ;;  %v14794_v5 = vadd.f32 %v4874_v38, %v4806_v28  ;;  %5931 = vrot.lane.b32.xlu1 %v18091_v6, %s17937_s0  ;;  %s15396_s0 = sld [smem:[#allocation9 + $0x2b]] }
 0x557   :  { %v18092_v51 = vrot.slane %v18061_v22, %v18085_v63  ;;  %v18093_v20 = vrot.slane %v18061_v22, %v18087_v54  ;;  %v18094_v46 = vrot.slane %v18064_v33, %v18085_v63  ;;  %v18095_v28 = vrot.slane %v18064_v33, %v18087_v54  ;;  %6149 = vrot.lane.b32.xlu0 %v18050_v40, %s17720_s13 }
 0x558   :  { %v18096_v60 = vrot.slane %v18068_v21, %v18085_v63  ;;  %v18097_v22 = vrot.slane %v18068_v21, %v18087_v54  ;;  %v14830_v33 = vpop.permute.xlu1 %5037 }
 0x559   :  { %v4727_v57 = vadd.f32 %v18092_v51, %v14613_v18  ;;  %v4728_v13 = vadd.f32 %v18093_v20, %v14616_v53  ;;  %v4767_v62 = vadd.f32 %v18094_v46, %v14618_v59  ;;  %v4768_v3 = vadd.f32 %v18095_v28, %v14621_v25  ;;  %v14852_v51 = vpop.permute.xlu0 %5212 }
 0x55a   :  { %v4807_v18 = vadd.f32 %v18096_v60, %v14623_v7  ;;  %v4808_v53 = vadd.f32 %v18097_v22, %v14625_v24  ;;  %v4821_v59 = vsel %vm550_vm4, %v14287_v30, %v14499_v36  ;;  %v4826_v25 = vsel %vm550_vm4, %v14499_v36, %v18072_v8  ;;  %5999 = vrot.lane.b32.xlu1 %v18073_v48, %s17888_s17 }
 0x55b   :  { %v4833_v34 = vmul.f32 %v14655_v15, %v4821_v59  ;;  %v4834_v7 = vmul.f32 %v14655_v15, %v4826_v25  ;;  %v4847_v55 = vmul.f32 %v14658_v9, %v4821_v59  ;;  %v4848_v24 = vmul.f32 %v14658_v9, %v4826_v25  ;;  %6155 = vrot.lane.b32.xlu0 %v18053_v17, %s17720_s13 }
 0x55c   :  { %v4861_v30 = vmul.f32 %v14663_v35, %v4821_v59  ;;  %v4862_v21 = vmul.f32 %v14663_v35, %v4826_v25  ;;  %v4875_v36 = vmul.f32 %v14666_v42, %v4821_v59  ;;  %v4876_v8 = vmul.f32 %v14666_v42, %v4826_v25  ;;  %v14862_v28 = vpop.permute.xlu1 %5041 }
 0x55d   :  { %v14844_v15 = vadd.f32 %v4833_v34, %v4687_v43  ;;  %v14846_v9 = vadd.f32 %v4834_v7, %v4688_v32  ;;  %v14848_v14 = vadd.f32 %v4847_v55, %v4727_v57  ;;  %v14850_v38 = vadd.f32 %v4848_v24, %v4728_v13  ;;  %v18098_v57 = vld [vmem:[#allocation38_spill] sm:$0xff]  ;;  %v14910_v63 = vpop.permute.xlu0 %5216 }
 0x55e   :  { %v14854_v35 = vadd.f32 %v4861_v30, %v4767_v62  ;;  %v14856_v20 = vadd.f32 %v4862_v21, %v4768_v3  ;;  %v14858_v46 = vadd.f32 %v4875_v36, %v4807_v18  ;;  %v14860_v42 = vadd.f32 %v4876_v8, %v4808_v53  ;;  %v18099_v62 = vld [vmem:[#allocation68_spill] sm:$0xff]  ;;  %v18100_v18 = vld [vmem:[#allocation51_spill] sm:$0xff]  ;;  %6003 = vrot.lane.b32.xlu1 %v18089_v23, %s17888_s17 }
 0x55f   :  { %v4902_v43 = vstv %s14766_s4  ;;  %v4916_v60 = vstv %s14768_s14  ;;  %v4930_v32 = vstv %s14780_s15  ;;  %v14868_v22 = vstv %s14782_s9  ;;  %18101 = vst [vmem:[#allocation23_spill] sm:$0xff] %v14910_v63  ;;  %s15811_s4 = sld [smem:[#allocation9 + $0x5b]]  ;;  %s15960_s14 = sld [smem:[#allocation9 + $0x68]] }
 0x560   :  { %v4898_v13 = vsel %vm625_vm5, %v14531_v44, %v18098_v57  ;;  %v4899_v3 = vsel %vm625_vm5, %v18099_v62, %v14531_v44  ;;  %v4896_v53 = vsel %vm625_vm5, %v14551_v41, %v18100_v18  ;;  %v4897_v59 = vsel %vm625_vm5, %v18098_v57, %v14551_v41  ;;  %v14896_v21 = vpop.permute.xlu1 %5140  ;;  %6379 = vrot.lane.b32.xlu0 %v18046_v47, %s17725_s16  ;;  %s15962_s15 = sld [smem:[#allocation9 + $0x69]]  ;;  %s15972_s9 = sld [smem:[#allocation9 + $0x6a]] }
 0x561   :  { %v4903_v25 = vmul.f32 %v4902_v43, %v4899_v3  ;;  %v4904_v34 = vmul.f32 %v4902_v43, %v4898_v13  ;;  %v4917_v7 = vmul.f32 %v4916_v60, %v4899_v3  ;;  %v4918_v55 = vmul.f32 %v4916_v60, %v4898_v13 }
 0x562   :  { %v4931_v44 = vmul.f32 %v4930_v32, %v4899_v3  ;;  %v4932_v24 = vmul.f32 %v4930_v32, %v4898_v13  ;;  %v4945_v30 = vmul.f32 %v14868_v22, %v4899_v3  ;;  %v4946_v41 = vmul.f32 %v14868_v22, %v4898_v13  ;;  %6005 = vrot.lane.b32.xlu1 %v18091_v6, %s17888_s17  ;;  %s14984_s17 = sld [smem:[#allocation9 + $0x8]] }
 0x563   :  { %v14899_v36 = vadd.f32 %v4903_v25, %v14688_v4  ;;  %v14902_v8 = vadd.f32 %v4904_v34, %v14690_v10  ;;  %v14905_v57 = vadd.f32 %v4917_v7, %v14692_v2  ;;  %v14908_v54 = vadd.f32 %v4918_v55, %v14694_v26 }
 0x564   :  { %v14913_v3 = vadd.f32 %v4931_v44, %v14698_v19  ;;  %v14916_v13 = vadd.f32 %v4932_v24, %v14700_v1  ;;  %v14919_v4 = vadd.f32 %v4945_v30, %v14702_v0  ;;  %v14922_v10 = vadd.f32 %v4946_v41, %v14704_v52  ;;  %v14934_v52 = vpop.permute.xlu1 %5144  ;;  %6383 = vrot.lane.b32.xlu0 %v18050_v40, %s17725_s16 }
 0x565   :  { %v4905_v2 = vmul.f32 %v4902_v43, %v4897_v59  ;;  %v4906_v26 = vmul.f32 %v4902_v43, %v4896_v53  ;;  %v4919_v25 = vmul.f32 %v4916_v60, %v4897_v59  ;;  %v4920_v34 = vmul.f32 %v4916_v60, %v4896_v53 }
 0x566   :  { %v4933_v19 = vmul.f32 %v4930_v32, %v4897_v59  ;;  %v4934_v7 = vmul.f32 %v4930_v32, %v4896_v53  ;;  %v4947_v1 = vmul.f32 %v14868_v22, %v4897_v59  ;;  %v4948_v0 = vmul.f32 %v14868_v22, %v4896_v53  ;;  %6073 = vrot.lane.b32.xlu1 %v18073_v48, %s17912_s6 }
 0x567   :  { %v14937_v55 = vadd.f32 %v4905_v2, %v14772_v58  ;;  %v14940_v44 = vadd.f32 %v4906_v26, %v14774_v50  ;;  %v14943_v24 = vadd.f32 %v4919_v25, %v14776_v45  ;;  %v14946_v59 = vadd.f32 %v4920_v34, %v14778_v31 }
 0x568   :  { %v14949_v53 = vadd.f32 %v4933_v19, %v14788_v37  ;;  %v14952_v30 = vadd.f32 %v4934_v7, %v14790_v39  ;;  %v14955_v41 = vadd.f32 %v4947_v1, %v14792_v61  ;;  %v14958_v58 = vadd.f32 %v4948_v0, %v14794_v5  ;;  %v14976_v37 = vpop.permute.xlu0 %5222  ;;  %v14980_v25 = vpop.permute.xlu1 %5146  ;;  %v18103_v1 = vld [vmem:[#allocation89_spill] sm:$0xff]  ;;  %6387 = vrot.lane.b32.xlu0 %v18091_v6, %s17725_s16 }
 0x569   :  { %v4895_v31 = vsel %vm625_vm5, %v18100_v18, %v14598_v12  ;;  %v4900_v39 = vsel %vm625_vm5, %v14598_v12, %v18099_v62  ;;  %v14971_v45 = vstv %s14888_s2  ;;  %v14974_v50 = vstv %s14890_s24  ;;  %18102 = vst [vmem:[#allocation33_spill] sm:$0xff] %v14980_v25  ;;  %s15974_s2 = sld [smem:[#allocation9 + $0x6b]]  ;;  %s16068_s24 = sld [smem:[#allocation9 + $0x78]] }
 0x56a   :  { %v4907_v61 = vmul.f32 %v4902_v43, %v4895_v31  ;;  %v4908_v5 = vmul.f32 %v4902_v43, %v4900_v39  ;;  %v4921_v2 = vmul.f32 %v4916_v60, %v4895_v31  ;;  %v4922_v26 = vmul.f32 %v4916_v60, %v4900_v39  ;;  %6077 = vrot.lane.b32.xlu1 %v18089_v23, %s17912_s6 }
 0x56b   :  { %v4935_v18 = vmul.f32 %v4930_v32, %v4895_v31  ;;  %v4936_v34 = vmul.f32 %v4930_v32, %v4900_v39  ;;  %v4949_v12 = vmul.f32 %v14868_v22, %v4895_v31  ;;  %v4950_v62 = vmul.f32 %v14868_v22, %v4900_v39 }
 0x56c   :  { %v14989_v19 = vadd.f32 %v4907_v61, %v14844_v15  ;;  %v14992_v43 = vadd.f32 %v4908_v5, %v14846_v9  ;;  %v14995_v60 = vadd.f32 %v4921_v2, %v14848_v14  ;;  %v14998_v32 = vadd.f32 %v4922_v26, %v14850_v38  ;;  %v15030_v0 = vpop.permute.xlu1 %5214  ;;  %v15036_v5 = vpop.permute.xlu0 %5286  ;;  %6453 = vrot.lane.b32.xlu0 %v18046_v47, %s17728_s29 }
 0x56d   :  { %v15003_v22 = vadd.f32 %v4935_v18, %v14854_v35  ;;  %v15006_v7 = vadd.f32 %v4936_v34, %v14856_v20  ;;  %v15009_v15 = vadd.f32 %v4949_v12, %v14858_v46  ;;  %v15012_v9 = vadd.f32 %v4950_v62, %v14860_v42  ;;  %v18104_v20 = vld [vmem:[#allocation52_spill] sm:$0xff]  ;;  %18105 = vst [vmem:[#allocation73_spill] sm:$0xff] %v15030_v0 }
 0x56e   :  { %v15017_v14 = vstv %s14930_s1  ;;  %v15020_v38 = vstv %s14932_s18  ;;  %v4972_v35 = vsel %vm700_vm6, %v14627_v11, %v18103_v1  ;;  %v4973_v46 = vsel %vm700_vm6, %v18104_v20, %v14627_v11  ;;  %18106 = vst [vmem:[#allocation74_spill] sm:$0xff] %v15036_v5  ;;  %6079 = vrot.lane.b32.xlu1 %v18091_v6, %s17912_s6  ;;  %s15242_s6 = sld [smem:[#allocation9 + $0x19]]  ;;  %s16098_s18 = sld [smem:[#allocation9 + $0x7a]] }
 0x56f   :  { %v4977_v42 = vmul.f32 %v14971_v45, %v4973_v46  ;;  %v4978_v31 = vmul.f32 %v14971_v45, %v4972_v35  ;;  %v4991_v39 = vmul.f32 %v14974_v50, %v4973_v46  ;;  %v4992_v61 = vmul.f32 %v14974_v50, %v4972_v35  ;;  %s16070_s1 = sld [smem:[#allocation9 + $0x79]] }
 0x570   :  { %v5005_v2 = vmul.f32 %v15017_v14, %v4973_v46  ;;  %v5006_v26 = vmul.f32 %v15017_v14, %v4972_v35  ;;  %v5019_v18 = vmul.f32 %v15020_v38, %v4973_v46  ;;  %v5020_v11 = vmul.f32 %v15020_v38, %v4972_v35  ;;  %6457 = vrot.lane.b32.xlu0 %v18050_v40, %s17728_s29 }
 0x571   :  { %v15049_v34 = vadd.f32 %v4977_v42, %v14899_v36  ;;  %v15052_v12 = vadd.f32 %v4978_v31, %v14902_v8  ;;  %v15055_v62 = vadd.f32 %v4991_v39, %v14905_v57  ;;  %v15058_v35 = vadd.f32 %v4992_v61, %v14908_v54  ;;  %v15074_v57 = vpop.permute.xlu1 %5218  ;;  %v18108_v42 = vld [vmem:[#allocation37_spill] sm:$0xff] }
 0x572   :  { %v15063_v46 = vadd.f32 %v5005_v2, %v14913_v3  ;;  %v15066_v0 = vadd.f32 %v5006_v26, %v14916_v13  ;;  %v15069_v36 = vadd.f32 %v5019_v18, %v14919_v4  ;;  %v15072_v8 = vadd.f32 %v5020_v11, %v14922_v10  ;;  %18107 = vst [vmem:[#allocation75_spill] sm:$0xff] %v15074_v57  ;;  %v15102_v18 = vpop.permute.xlu0 %5290 }
 0x573   :  { %v4970_v54 = vsel %vm700_vm6, %v14680_v49, %v18108_v42  ;;  %v4971_v3 = vsel %vm700_vm6, %v18103_v1, %v14680_v49  ;;  %v15085_v13 = vstv %s14984_s17  ;;  %v15088_v31 = vstv %s14986_s28  ;;  %18111 = vst [vmem:[#allocation78_spill] sm:$0xff] %v15102_v18  ;;  %6147 = vrot.lane.b32.xlu1 %v18073_v48, %s17720_s13  ;;  %s16100_s17 = sld [smem:[#allocation9 + $0x7b]]  ;;  %s16144_s28 = sld [smem:[#allocation9 + $0xc]] }
 0x574   :  { %18109 = vst [vmem:[#allocation76_spill] sm:$0xff] %v15085_v13  ;;  %18110 = vst [vmem:[#allocation77_spill] sm:$0xff] %v15088_v31  ;;  %v4979_v4 = vmul.f32 %v14971_v45, %v4971_v3  ;;  %v4980_v10 = vmul.f32 %v14971_v45, %v4970_v54  ;;  %v4993_v39 = vmul.f32 %v14974_v50, %v4971_v3  ;;  %6461 = vrot.lane.b32.xlu0 %v18091_v6, %s17728_s29 }
 0x575   :  { %v4994_v61 = vmul.f32 %v14974_v50, %v4970_v54  ;;  %v5007_v2 = vmul.f32 %v15017_v14, %v4971_v3  ;;  %v5008_v26 = vmul.f32 %v15017_v14, %v4970_v54  ;;  %v5021_v49 = vmul.f32 %v15020_v38, %v4971_v3 }
 0x576   :  { %v5022_v1 = vmul.f32 %v15020_v38, %v4970_v54  ;;  %v15107_v11 = vadd.f32 %v4979_v4, %v14937_v55  ;;  %v15110_v57 = vadd.f32 %v4980_v10, %v14940_v44  ;;  %v15113_v63 = vadd.f32 %v4993_v39, %v14943_v24  ;;  %v18114_v4 = vld [vmem:[#allocation71_spill] sm:$0xff] }
 0x577   :  { %v15116_v3 = vadd.f32 %v4994_v61, %v14946_v59  ;;  %v15123_v54 = vadd.f32 %v5007_v2, %v14949_v53  ;;  %v15126_v18 = vadd.f32 %v5008_v26, %v14952_v30  ;;  %v15129_v55 = vadd.f32 %v5021_v49, %v14955_v41  ;;  %v15150_v41 = vpop.permute.xlu1 %5220  ;;  %6151 = vrot.lane.b32.xlu1 %v18089_v23, %s17720_s13 }
 0x578   :  { %v15132_v44 = vadd.f32 %v5022_v1, %v14958_v58  ;;  %v15137_v24 = vstv %s15042_s27  ;;  %v15140_v59 = vstv %s15044_s19  ;;  %v5155_v53 = vsel %vm114_vm0, %v14784_v27, %v18114_v4  ;;  %18115 = vst [vmem:[#allocation83_spill] sm:$0xff] %v15150_v41  ;;  %v15179_v27 = vpop.permute.xlu0 %5296  ;;  %6527 = vrot.lane.b32.xlu0 %v18046_v47, %s17729_s30  ;;  %s16146_s27 = sld [smem:[#allocation9 + $0xd]]  ;;  %s16196_s19 = sld [smem:[#allocation9 + $0xe]] }
 0x579   :  { %18112 = vst [vmem:[#allocation81_spill] sm:$0xff] %v15137_v24  ;;  %18113 = vst [vmem:[#allocation82_spill] sm:$0xff] %v15140_v59  ;;  %v4969_v30 = vsel %vm700_vm6, %v18108_v42, %v14722_v16  ;;  %v15155_v58 = vmul.f32 %v15085_v13, %v5155_v53  ;;  %v15158_v10 = vmul.f32 %v15088_v31, %v5155_v53 }
 0x57a   :  { %v15161_v39 = vmul.f32 %v15137_v24, %v5155_v53  ;;  %v15164_v61 = vmul.f32 %v15140_v59, %v5155_v53  ;;  %v4974_v42 = vsel %vm700_vm6, %v14722_v16, %v18104_v20  ;;  %v4981_v2 = vmul.f32 %v14971_v45, %v4969_v30  ;;  %18116 = vst [vmem:[#allocation84_spill] sm:$0xff] %v15179_v27 }
 0x57b   :  { %v4995_v26 = vmul.f32 %v14974_v50, %v4969_v30  ;;  %v5009_v49 = vmul.f32 %v15017_v14, %v4969_v30  ;;  %v4982_v1 = vmul.f32 %v14971_v45, %v4974_v42  ;;  %v4996_v53 = vmul.f32 %v14974_v50, %v4974_v42  ;;  %6153 = vrot.lane.b32.xlu1 %v18091_v6, %s17720_s13  ;;  %s15236_s13 = sld [smem:[#allocation9 + $0x18]] }
 0x57c   :  { %v5010_v41 = vmul.f32 %v15017_v14, %v4974_v42  ;;  %v5023_v25 = vmul.f32 %v15020_v38, %v4969_v30  ;;  %v15182_v16 = vadd.f32 %v4981_v2, %v14989_v19  ;;  %v5024_v50 = vmul.f32 %v15020_v38, %v4974_v42  ;;  %v15254_v59 = vpop.permute.xlu0 %5360  ;;  %6531 = vrot.lane.b32.xlu0 %v18050_v40, %s17729_s30 }
 0x57d   :  { %v15185_v20 = vadd.f32 %v4995_v26, %v14995_v60  ;;  %v15188_v45 = vadd.f32 %v5009_v49, %v15003_v22  ;;  %v15194_v14 = vadd.f32 %v4982_v1, %v14992_v43  ;;  %v15197_v30 = vadd.f32 %v4996_v53, %v14998_v32  ;;  %v15219_v32 = vpop.permute.xlu1 %5288  ;;  %18123 = vst [vmem:[#allocation79_spill] sm:$0xff] %v15254_v59 }
 0x57e   :  { %v15200_v19 = vadd.f32 %v5010_v41, %v15006_v7  ;;  %v15203_v60 = vadd.f32 %v5023_v25, %v15009_v15  ;;  %v15208_v22 = vadd.f32 %v5024_v50, %v15012_v9  ;;  %v15211_v38 = vstv %s15100_s20  ;;  %18119 = vst [vmem:[#allocation48_spill] sm:$0xff] %v15219_v32  ;;  %v18120_v7 = vld [vmem:[#allocation69_spill] sm:$0xff]  ;;  %v18122_v41 = vld [vmem:[#allocation70_spill] sm:$0xff]  ;;  %s16198_s20 = sld [smem:[#allocation9 + $0xf]] }
 0x57f   :  { %v15214_v42 = vstv %s15118_s21  ;;  %v15217_v43 = vstv %s15120_s22  ;;  %v15222_v2 = vstv %s15134_s23  ;;  %v5046_v25 = vsel %vm775_vm7, %v14770_v56, %v18120_v7  ;;  %v18121_v15 = vld [vmem:[#allocation53_spill] sm:$0xff]  ;;  %6381 = vrot.lane.b32.xlu1 %v18073_v48, %s17725_s16  ;;  %s16250_s21 = sld [smem:[#allocation9 + $0x88]]  ;;  %s16264_s22 = sld [smem:[#allocation9 + $0x89]] }
 0x580   :  { %18117 = vst [vmem:[#allocation85_spill] sm:$0xff] %v15203_v60  ;;  %18118 = vst [vmem:[#allocation86_spill] sm:$0xff] %v15208_v22  ;;  %v5047_v9 = vsel %vm775_vm7, %v18121_v15, %v14770_v56  ;;  %v5044_v26 = vsel %vm775_vm7, %v14830_v33, %v18122_v41  ;;  %v5052_v1 = vmul.f32 %v15211_v38, %v5046_v25  ;;  %6535 = vrot.lane.b32.xlu0 %v18091_v6, %s17729_s30  ;;  %s16266_s23 = sld [smem:[#allocation9 + $0x8a]] }
 0x581   :  { %v5051_v49 = vmul.f32 %v15211_v38, %v5047_v9  ;;  %v5065_v53 = vmul.f32 %v15214_v42, %v5047_v9  ;;  %v5066_v50 = vmul.f32 %v15214_v42, %v5046_v25  ;;  %v5079_v56 = vmul.f32 %v15217_v43, %v5047_v9 }
 0x582   :  { %v5080_v32 = vmul.f32 %v15217_v43, %v5046_v25  ;;  %v5093_v27 = vmul.f32 %v15222_v2, %v5047_v9  ;;  %v5094_v5 = vmul.f32 %v15222_v2, %v5046_v25  ;;  %v15260_v31 = vadd.f32 %v5052_v1, %v15052_v12 }
 0x583   :  { %v5057_v24 = vadd.f32 %v5051_v49, %v15049_v34  ;;  %v5071_v13 = vadd.f32 %v5065_v53, %v15055_v62  ;;  %v15264_v22 = vadd.f32 %v5066_v50, %v15058_v35  ;;  %v5085_v9 = vadd.f32 %v5079_v56, %v15063_v46  ;;  %v15281_v46 = vpop.permute.xlu1 %5292  ;;  %6385 = vrot.lane.b32.xlu1 %v18089_v23, %s17725_s16  ;;  %v15313_v50 = vpop.permute.xlu0 %5364 }
 0x584   :  { %v15268_v25 = vadd.f32 %v5080_v32, %v15066_v0  ;;  %v5099_v59 = vadd.f32 %v5093_v27, %v15069_v36  ;;  %v15272_v60 = vadd.f32 %v5094_v5, %v15072_v8  ;;  %v5045_v34 = vsel %vm775_vm7, %v18120_v7, %v14830_v33  ;;  %6601 = vrot.lane.b32.xlu0 %v18046_v47, %s17925_s26 }
 0x585   :  { %v5054_v12 = vmul.f32 %v15211_v38, %v5044_v26  ;;  %v5068_v62 = vmul.f32 %v15214_v42, %v5044_v26  ;;  %v5082_v35 = vmul.f32 %v15217_v43, %v5044_v26  ;;  %v5053_v27 = vmul.f32 %v15211_v38, %v5045_v34 }
 0x586   :  { %v5067_v0 = vmul.f32 %v15214_v42, %v5045_v34  ;;  %v5081_v33 = vmul.f32 %v15217_v43, %v5045_v34  ;;  %v5095_v5 = vmul.f32 %v15222_v2, %v5045_v34  ;;  %v5096_v7 = vmul.f32 %v15222_v2, %v5044_v26 }
 0x587   :  { %v15292_v36 = vadd.f32 %v5054_v12, %v15110_v57  ;;  %v15295_v8 = vadd.f32 %v5068_v62, %v15116_v3  ;;  %v15298_v32 = vadd.f32 %v5082_v35, %v15126_v18  ;;  %v15302_v49 = vadd.f32 %v5053_v27, %v15107_v11  ;;  %6389 = vrot.lane.b32.xlu1 %v18053_v17, %s17725_s16  ;;  %s15388_s16 = sld [smem:[#allocation9 + $0x29]] }
 0x588   :  { %v15305_v1 = vadd.f32 %v5067_v0, %v15113_v63  ;;  %v15308_v53 = vadd.f32 %v5081_v33, %v15123_v54  ;;  %v15311_v57 = vadd.f32 %v5095_v5, %v15129_v55  ;;  %v15316_v3 = vadd.f32 %v5096_v7, %v15132_v44  ;;  %v15372_v0 = vpop.permute.xlu0 %5370  ;;  %6605 = vrot.lane.b32.xlu0 %v18050_v40, %s17925_s26  ;;  %v18129_v40 = vld [vmem:[#allocation77_spill] sm:$0xff] }
 0x589   :  { %v15319_v18 = vstv %s15236_s13  ;;  %v15322_v26 = vstv %s15242_s6  ;;  %v15325_v11 = vstv %s15244_s7  ;;  %v15332_v63 = vstv %s15252_s8  ;;  %s16282_s13 = sld [smem:[#allocation9 + $0x8b]]  ;;  %s16374_s6 = sld [smem:[#allocation9 + $0x1c]] }
 0x58a   :  { %v5164_v54 = vadd.f32 %v15155_v58, %v5057_v24  ;;  %v5178_v55 = vadd.f32 %v15158_v10, %v5071_v13  ;;  %v5192_v44 = vadd.f32 %v15161_v39, %v5085_v9  ;;  %v5206_v56 = vadd.f32 %v15164_v61, %v5099_v59  ;;  %v15352_v24 = vpop.permute.xlu1 %5294  ;;  %s16382_s7 = sld [smem:[#allocation9 + $0x1d]]  ;;  %s16384_s8 = sld [smem:[#allocation9 + $0x1e]] }
 0x58b   :  { %v5229_v34 = vsel %vm165_vm1, %v14976_v37, %v14852_v51  ;;  %v5043_v12 = vsel %vm775_vm7, %v18122_v41, %v14862_v28  ;;  %v5048_v13 = vsel %vm775_vm7, %v14862_v28, %v18121_v15  ;;  %6455 = vrot.lane.b32.xlu1 %v18073_v48, %s17728_s29 }
 0x58c   :  { %v5232_v58 = vmul.f32 %v15319_v18, %v5229_v34  ;;  %v5246_v59 = vmul.f32 %v15322_v26, %v5229_v34  ;;  %v5260_v10 = vmul.f32 %v15325_v11, %v5229_v34  ;;  %v5274_v39 = vmul.f32 %v15332_v63, %v5229_v34  ;;  %v18126_v34 = vld [vmem:[#allocation85_spill] sm:$0xff]  ;;  %6609 = vrot.lane.b32.xlu0 %v18091_v6, %s17925_s26 }
 0x58d   :  { %v5055_v61 = vmul.f32 %v15211_v38, %v5043_v12  ;;  %v5056_v9 = vmul.f32 %v15211_v38, %v5048_v13  ;;  %v5069_v41 = vmul.f32 %v15214_v42, %v5043_v12  ;;  %v5070_v62 = vmul.f32 %v15214_v42, %v5048_v13 }
 0x58e   :  { %v15364_v28 = vadd.f32 %v5232_v58, %v5164_v54  ;;  %v15366_v15 = vadd.f32 %v5246_v59, %v5178_v55  ;;  %v15368_v35 = vadd.f32 %v5260_v10, %v5192_v44  ;;  %v15370_v27 = vadd.f32 %v5274_v39, %v5206_v56  ;;  %v15413_v55 = vpop.permute.xlu1 %5362  ;;  %v18130_v39 = vld [vmem:[#allocation81_spill] sm:$0xff] }
 0x58f   :  { %v15377_v38 = vadd.f32 %v5055_v61, %v15182_v16  ;;  %v15380_v42 = vadd.f32 %v5056_v9, %v15194_v14  ;;  %v15383_v47 = vadd.f32 %v5069_v41, %v15185_v20  ;;  %v15386_v33 = vadd.f32 %v5070_v62, %v15197_v30  ;;  %v18124_v14 = vld [vmem:[#allocation72_spill] sm:$0xff]  ;;  %18125 = vst [vmem:[#allocation80_spill] sm:$0xff] %v15413_v55  ;;  %v18131_v9 = vld [vmem:[#allocation82_spill] sm:$0xff] }
 0x590   :  { %v5083_v5 = vmul.f32 %v15217_v43, %v5043_v12  ;;  %v5084_v7 = vmul.f32 %v15217_v43, %v5048_v13  ;;  %v5097_v54 = vmul.f32 %v15222_v2, %v5043_v12  ;;  %v5098_v16 = vmul.f32 %v15222_v2, %v5048_v13  ;;  %6459 = vrot.lane.b32.xlu1 %v18089_v23, %s17728_s29  ;;  %v18128_v13 = vld [vmem:[#allocation76_spill] sm:$0xff] }
 0x591   :  { %v5153_v20 = vsel %vm114_vm0, %v14896_v21, %v18124_v14  ;;  %v5154_v30 = vsel %vm114_vm0, %v18114_v4, %v14896_v21  ;;  %v5152_v43 = vsel %vm114_vm0, %v18124_v14, %v14934_v52  ;;  %v15411_v2 = vstv %s15327_s5  ;;  %v18127_v4 = vld [vmem:[#allocation86_spill] sm:$0xff]  ;;  %s16390_s5 = sld [smem:[#allocation9 + $0x1f]] }
 0x592   :  { %v15418_v44 = vadd.f32 %v5083_v5, %v15188_v45  ;;  %v15421_v56 = vadd.f32 %v5084_v7, %v15200_v19  ;;  %v15424_v21 = vadd.f32 %v5097_v54, %v18126_v34  ;;  %v15427_v12 = vadd.f32 %v5098_v16, %v18127_v4  ;;  %v15439_v5 = vpop.permute.xlu0 %5594  ;;  %v15473_v34 = vpop.permute.xlu1 %5366 }
 0x593   :  { %v5159_v58 = vmul.f32 %v18128_v13, %v5154_v30  ;;  %v5160_v59 = vmul.f32 %v18128_v13, %v5153_v20  ;;  %v5173_v10 = vmul.f32 %v18129_v40, %v5154_v30  ;;  %v5174_v45 = vmul.f32 %v18129_v40, %v5153_v20  ;;  %18132 = vst [vmem:[#allocation45_spill] sm:$0xff] %v15439_v5 }
 0x594   :  { %v5187_v19 = vmul.f32 %v18130_v39, %v5154_v30  ;;  %v5188_v61 = vmul.f32 %v18130_v39, %v5153_v20  ;;  %v5201_v41 = vmul.f32 %v18131_v9, %v5154_v30  ;;  %v5202_v62 = vmul.f32 %v18131_v9, %v5153_v20  ;;  %6463 = vrot.lane.b32.xlu1 %v18053_v17, %s17728_s29  ;;  %s15536_s29 = sld [smem:[#allocation9 + $0x38]] }
 0x595   :  { %v15442_v7 = vadd.f32 %v5159_v58, %v15260_v31  ;;  %v15445_v54 = vadd.f32 %v5160_v59, %v15302_v49  ;;  %v15448_v16 = vadd.f32 %v5173_v10, %v15264_v22  ;;  %v15451_v14 = vadd.f32 %v5174_v45, %v15305_v1  ;;  %18133 = vst [vmem:[#allocation44_spill] sm:$0xff] %v15473_v34  ;;  %v18135_v58 = vld [vmem:[#allocation84_spill] sm:$0xff] }
 0x596   :  { %v15456_v20 = vadd.f32 %v5187_v19, %v15268_v25  ;;  %v15459_v31 = vadd.f32 %v5188_v61, %v15308_v53  ;;  %v15462_v30 = vadd.f32 %v5201_v41, %v15272_v60  ;;  %v15465_v49 = vadd.f32 %v5202_v62, %v15311_v57  ;;  %v18134_v57 = vld [vmem:[#allocation74_spill] sm:$0xff]  ;;  %v15504_v34 = vpop.permute.xlu0 %5598 }
 0x597   :  { %v5161_v22 = vmul.f32 %v18128_v13, %v5152_v43  ;;  %v5175_v1 = vmul.f32 %v18129_v40, %v5152_v43  ;;  %v5189_v6 = vmul.f32 %v18130_v39, %v5152_v43  ;;  %v5203_v25 = vmul.f32 %v18131_v9, %v5152_v43  ;;  %18136 = vst [vmem:[#allocation16_spill] sm:$0xff] %v15504_v34 }
 0x598   :  { %v15476_v53 = vstv %s15388_s16  ;;  %v15479_v60 = vstv %s15394_s25  ;;  %v15482_v4 = vstv %s15396_s0  ;;  %v5303_v59 = vsel %vm240_vm2, %v18135_v58, %v18134_v57  ;;  %6529 = vrot.lane.b32.xlu1 %v18073_v48, %s17729_s30  ;;  %s16463_s16 = sld [smem:[#allocation9 + $0x2c]]  ;;  %s16502_s25 = sld [smem:[#allocation9 + $0x2d]] }
 0x599   :  { %v15489_v10 = vadd.f32 %v5161_v22, %v15292_v36  ;;  %v15492_v45 = vadd.f32 %v5175_v1, %v15295_v8  ;;  %v15495_v43 = vadd.f32 %v5189_v6, %v15298_v32  ;;  %v15498_v19 = vadd.f32 %v5203_v25, %v15316_v3  ;;  %v18137_v36 = vld [vmem:[#allocation32_spill] sm:$0xff]  ;;  %v18138_v8 = vld [vmem:[#allocation33_spill] sm:$0xff]  ;;  %v18139_v22 = vld [vmem:[#allocation23_spill] sm:$0xff]  ;;  %s16514_s0 = sld [smem:[#allocation9 + $0x2e]] }
 0x59a   :  { %v5306_v61 = vmul.f32 %v15411_v2, %v5303_v59  ;;  %v5320_v41 = vmul.f32 %v15476_v53, %v5303_v59  ;;  %v5334_v62 = vmul.f32 %v15479_v60, %v5303_v59  ;;  %v5348_v5 = vmul.f32 %v15482_v4, %v5303_v59  ;;  %v18140_v1 = vld [vmem:[#allocation73_spill] sm:$0xff] }
 0x59b   :  { %v5150_v32 = vsel %vm114_vm0, %v18138_v8, %v18137_v36  ;;  %v5151_v3 = vsel %vm114_vm0, %v14934_v52, %v18138_v8  ;;  %v5227_v6 = vsel %vm165_vm1, %v18140_v1, %v18139_v22  ;;  %v5228_v25 = vsel %vm165_vm1, %v14852_v51, %v18140_v1 }
 0x59c   :  { %v15525_v59 = vadd.f32 %v5306_v61, %v15364_v28  ;;  %v15528_v36 = vadd.f32 %v5320_v41, %v15366_v15  ;;  %v15531_v34 = vadd.f32 %v5334_v62, %v15368_v35  ;;  %v15534_v52 = vadd.f32 %v5348_v5, %v15370_v27  ;;  %v15546_v15 = vpop.permute.xlu1 %5368  ;;  %6533 = vrot.lane.b32.xlu1 %v18089_v23, %s17729_s30 }
 0x59d   :  { %v5162_v8 = vmul.f32 %v18128_v13, %v5151_v3  ;;  %v5163_v55 = vmul.f32 %v18128_v13, %v5150_v32  ;;  %v5176_v51 = vmul.f32 %v18129_v40, %v5151_v3  ;;  %v5177_v28 = vmul.f32 %v18129_v40, %v5150_v32 }
 0x59e   :  { %v5190_v35 = vmul.f32 %v18130_v39, %v5151_v3  ;;  %v5191_v27 = vmul.f32 %v18130_v39, %v5150_v32  ;;  %v5204_v5 = vmul.f32 %v18131_v9, %v5151_v3  ;;  %v5205_v61 = vmul.f32 %v18131_v9, %v5150_v32 }
 0x59f   :  { %v5168_v13 = vadd.f32 %v5162_v8, %v15377_v38  ;;  %v5169_v40 = vadd.f32 %v5163_v55, %v15380_v42  ;;  %v5182_v41 = vadd.f32 %v5176_v51, %v15383_v47  ;;  %v5183_v62 = vadd.f32 %v5177_v28, %v15386_v33  ;;  %v15572_v38 = vpop.permute.xlu0 %5602 }
 0x5a0   :  { %v15561_v1 = vadd.f32 %v5190_v35, %v15418_v44  ;;  %v15564_v39 = vadd.f32 %v5191_v27, %v15421_v56  ;;  %v15567_v9 = vadd.f32 %v5204_v5, %v15424_v21  ;;  %v15570_v32 = vadd.f32 %v5205_v61, %v15427_v12  ;;  %18141 = vst [vmem:[#allocation63_spill] sm:$0xff] %v15572_v38  ;;  %v15596_v35 = vpop.permute.xlu1 %5596 }
 0x5a1   :  { %v5233_v42 = vmul.f32 %v15319_v18, %v5228_v25  ;;  %v5234_v47 = vmul.f32 %v15319_v18, %v5227_v6  ;;  %v5247_v33 = vmul.f32 %v15322_v26, %v5228_v25  ;;  %v5248_v55 = vmul.f32 %v15322_v26, %v5227_v6  ;;  %6537 = vrot.lane.b32.xlu1 %v18053_v17, %s17729_s30  ;;  %s15790_s30 = sld [smem:[#allocation9 + $0x58]] }
 0x5a2   :  { %v5261_v44 = vmul.f32 %v15325_v11, %v5228_v25  ;;  %v5262_v56 = vmul.f32 %v15325_v11, %v5227_v6  ;;  %v5275_v21 = vmul.f32 %v15332_v63, %v5228_v25  ;;  %v5276_v12 = vmul.f32 %v15332_v63, %v5227_v6  ;;  %18142 = vst [vmem:[#allocation90_spill] sm:$0xff] %v15596_v35 }
 0x5a3   :  { %v15585_v3 = vadd.f32 %v5233_v42, %v15442_v7  ;;  %v15588_v8 = vadd.f32 %v5234_v47, %v15445_v54  ;;  %v15591_v51 = vadd.f32 %v5247_v33, %v15448_v16  ;;  %v15594_v28 = vadd.f32 %v5248_v55, %v15451_v14  ;;  %v18143_v16 = vld [vmem:[#allocation75_spill] sm:$0xff]  ;;  %v15627_v42 = vpop.permute.xlu0 %5668 }
 0x5a4   :  { %v15599_v6 = vadd.f32 %v5261_v44, %v15456_v20  ;;  %v15602_v25 = vadd.f32 %v5262_v56, %v15459_v31  ;;  %v15605_v7 = vadd.f32 %v5275_v21, %v15462_v30  ;;  %v15608_v54 = vadd.f32 %v5276_v12, %v15465_v49  ;;  %18144 = vst [vmem:[#allocation91_spill] sm:$0xff] %v15627_v42  ;;  %v18145_v47 = vld [vmem:[#allocation79_spill] sm:$0xff] }
 0x5a5   :  { %v5226_v14 = vsel %vm165_vm1, %v18139_v22, %v18143_v16  ;;  %v15615_v27 = vstv %s15536_s29  ;;  %v15618_v5 = vstv %s15542_s10  ;;  %v15621_v20 = vstv %s15544_s11  ;;  %6603 = vrot.lane.b32.xlu1 %v18073_v48, %s17925_s26  ;;  %v18146_v55 = vld [vmem:[#allocation83_spill] sm:$0xff]  ;;  %s16516_s29 = sld [smem:[#allocation9 + $0x2f]]  ;;  %s16633_s10 = sld [smem:[#allocation9 + $0x3c]] }
 0x5a6   :  { %v5235_v31 = vmul.f32 %v15319_v18, %v5226_v14  ;;  %v5249_v61 = vmul.f32 %v15322_v26, %v5226_v14  ;;  %v5263_v30 = vmul.f32 %v15325_v11, %v5226_v14  ;;  %v5277_v49 = vmul.f32 %v15332_v63, %v5226_v14  ;;  %s16639_s11 = sld [smem:[#allocation9 + $0x3d]] }
 0x5a7   :  { %v15632_v22 = vstv %s15558_s12  ;;  %v5377_v33 = vsel %vm315_vm3, %v15372_v0, %v18145_v47  ;;  %v5224_v44 = vsel %vm165_vm1, %v18146_v55, %v14976_v37  ;;  %v5225_v56 = vsel %vm165_vm1, %v18143_v16, %v18146_v55  ;;  %v15662_v55 = vpop.permute.xlu1 %5600  ;;  %s16641_s12 = sld [smem:[#allocation9 + $0x3e]] }
 0x5a8   :  { %v15647_v21 = vadd.f32 %v5235_v31, %v15489_v10  ;;  %v15650_v48 = vadd.f32 %v5249_v61, %v15492_v45  ;;  %v15653_v12 = vadd.f32 %v5263_v30, %v15495_v43  ;;  %v15656_v14 = vadd.f32 %v5277_v49, %v15498_v19  ;;  %18147 = vst [vmem:[#allocation92_spill] sm:$0xff] %v15662_v55 }
 0x5a9   :  { %v5380_v42 = vmul.f32 %v15615_v27, %v5377_v33  ;;  %v5394_v37 = vmul.f32 %v15618_v5, %v5377_v33  ;;  %v5408_v38 = vmul.f32 %v15621_v20, %v5377_v33  ;;  %v5422_v16 = vmul.f32 %v15632_v22, %v5377_v33  ;;  %6607 = vrot.lane.b32.xlu1 %v18089_v23, %s17925_s26 }
 0x5aa   :  { %v5236_v10 = vmul.f32 %v15319_v18, %v5225_v56  ;;  %v5237_v45 = vmul.f32 %v15319_v18, %v5224_v44  ;;  %v5250_v43 = vmul.f32 %v15322_v26, %v5225_v56  ;;  %v5251_v31 = vmul.f32 %v15322_v26, %v5224_v44  ;;  %v15682_v26 = vpop.permute.xlu0 %5672 }
 0x5ab   :  { %v15671_v19 = vadd.f32 %v5380_v42, %v15525_v59  ;;  %v15674_v61 = vadd.f32 %v5394_v37, %v15528_v36  ;;  %v15677_v30 = vadd.f32 %v5408_v38, %v15531_v34  ;;  %v15680_v49 = vadd.f32 %v5422_v16, %v15534_v52  ;;  %v18148_v37 = vld [vmem:[#allocation78_spill] sm:$0xff]  ;;  %v18149_v34 = vld [vmem:[#allocation48_spill] sm:$0xff]  ;;  %v15710_v38 = vpop.permute.xlu1 %5604 }
 0x5ac   :  { %v5242_v18 = vadd.f32 %v5236_v10, %v5168_v13  ;;  %v5243_v33 = vadd.f32 %v5237_v45, %v5169_v40  ;;  %v5256_v55 = vadd.f32 %v5250_v43, %v5182_v41  ;;  %v5257_v35 = vadd.f32 %v5251_v31, %v5183_v62 }
 0x5ad   :  { %v5264_v23 = vmul.f32 %v15325_v11, %v5225_v56  ;;  %v5265_v59 = vmul.f32 %v15325_v11, %v5224_v44  ;;  %v5278_v42 = vmul.f32 %v15332_v63, %v5225_v56  ;;  %v5279_v36 = vmul.f32 %v15332_v63, %v5224_v44  ;;  %6611 = vrot.lane.b32.xlu1 %v18053_v17, %s17925_s26  ;;  %s15792_s26 = sld [smem:[#allocation9 + $0x59]] }
 0x5ae   :  { %v5301_v52 = vsel %vm240_vm2, %v18149_v34, %v18148_v37  ;;  %v5302_v13 = vsel %vm240_vm2, %v18134_v57, %v18149_v34  ;;  %v5300_v40 = vsel %vm240_vm2, %v18148_v37, %v15281_v46  ;;  %v5298_v11 = vsel %vm240_vm2, %v15352_v24, %v18135_v58  ;;  %v15724_v31 = vpop.permute.xlu0 %5676 }
 0x5af   :  { %v5270_v63 = vadd.f32 %v5264_v23, %v15561_v1  ;;  %v5271_v41 = vadd.f32 %v5265_v59, %v15564_v39  ;;  %v5284_v62 = vadd.f32 %v5278_v42, %v15567_v9  ;;  %v5285_v57 = vadd.f32 %v5279_v36, %v15570_v32 }
 0x5b0   :  { %v5307_v44 = vmul.f32 %v15411_v2, %v5302_v13  ;;  %v5308_v56 = vmul.f32 %v15411_v2, %v5301_v52  ;;  %v5321_v16 = vmul.f32 %v15476_v53, %v5302_v13  ;;  %v5322_v58 = vmul.f32 %v15476_v53, %v5301_v52 }
 0x5b1   :  { %v5335_v17 = vmul.f32 %v15479_v60, %v5302_v13  ;;  %v5336_v1 = vmul.f32 %v15479_v60, %v5301_v52  ;;  %v5349_v39 = vmul.f32 %v15482_v4, %v5302_v13  ;;  %v5350_v9 = vmul.f32 %v15482_v4, %v5301_v52 }
 0x5b2   :  { %v5313_v32 = vadd.f32 %v5307_v44, %v15585_v3  ;;  %v5314_v10 = vadd.f32 %v5308_v56, %v15588_v8  ;;  %v5327_v45 = vadd.f32 %v5321_v16, %v15591_v51  ;;  %v5328_v43 = vadd.f32 %v5322_v58, %v15594_v28 }
 0x5b3   :  { %v5341_v23 = vadd.f32 %v5335_v17, %v15599_v6  ;;  %v5342_v59 = vadd.f32 %v5336_v1, %v15602_v25  ;;  %v5355_v42 = vadd.f32 %v5349_v39, %v15605_v7  ;;  %v5356_v36 = vadd.f32 %v5350_v9, %v15608_v54  ;;  %v15741_v54 = vpop.permute.xlu1 %5670 }
 0x5b4   :  { %v5309_v37 = vmul.f32 %v15411_v2, %v5300_v40  ;;  %v5323_v3 = vmul.f32 %v15476_v53, %v5300_v40  ;;  %v5337_v8 = vmul.f32 %v15479_v60, %v5300_v40  ;;  %v5351_v51 = vmul.f32 %v15482_v4, %v5300_v40 }
 0x5b5   :  { %v5299_v28 = vsel %vm240_vm2, %v15281_v46, %v15352_v24  ;;  %v5311_v6 = vmul.f32 %v15411_v2, %v5298_v11  ;;  %v5325_v25 = vmul.f32 %v15476_v53, %v5298_v11  ;;  %v5339_v7 = vmul.f32 %v15479_v60, %v5298_v11 }
 0x5b6   :  { %v5315_v34 = vadd.f32 %v5309_v37, %v15647_v21  ;;  %v5329_v52 = vadd.f32 %v5323_v3, %v15650_v48  ;;  %v5343_v13 = vadd.f32 %v5337_v8, %v15653_v12  ;;  %v5357_v40 = vadd.f32 %v5351_v51, %v15656_v14  ;;  %v15752_v21 = vpop.permute.xlu0 %5742  ;;  %v18150_v12 = vld [vmem:[#allocation80_spill] sm:$0xff] }
 0x5b7   :  { %v5310_v44 = vmul.f32 %v15411_v2, %v5299_v28  ;;  %v5317_v56 = vadd.f32 %v5311_v6, %v5243_v33  ;;  %v5324_v46 = vmul.f32 %v15476_v53, %v5299_v28  ;;  %v5331_v24 = vadd.f32 %v5325_v25, %v5257_v35  ;;  %v18151_v25 = vld [vmem:[#allocation44_spill] sm:$0xff] }
 0x5b8   :  { %v5338_v16 = vmul.f32 %v15479_v60, %v5299_v28  ;;  %v5345_v58 = vadd.f32 %v5339_v7, %v5271_v41  ;;  %v5352_v17 = vmul.f32 %v15482_v4, %v5299_v28  ;;  %v5353_v1 = vmul.f32 %v15482_v4, %v5298_v11  ;;  %v15767_v41 = vpop.permute.xlu1 %5674 }
 0x5b9   :  { %v5316_v48 = vadd.f32 %v5310_v44, %v5242_v18  ;;  %v5330_v39 = vadd.f32 %v5324_v46, %v5256_v55  ;;  %v5375_v2 = vsel %vm315_vm3, %v18150_v12, %v15313_v50  ;;  %v5376_v53 = vsel %vm315_vm3, %v18145_v47, %v18150_v12 }
 0x5ba   :  { %v5344_v60 = vadd.f32 %v5338_v16, %v5270_v63  ;;  %v5358_v35 = vadd.f32 %v5352_v17, %v5284_v62  ;;  %v5359_v14 = vadd.f32 %v5353_v1, %v5285_v57  ;;  %v5381_v33 = vmul.f32 %v15615_v27, %v5376_v53  ;;  %v15784_v7 = vpop.permute.xlu0 %5746  ;;  %v18155_v16 = vld [vmem:[#allocation20_spill] sm:$0xff] }
 0x5bb   :  { %v5382_v4 = vmul.f32 %v15615_v27, %v5375_v2  ;;  %v5395_v18 = vmul.f32 %v15618_v5, %v5376_v53  ;;  %v5396_v55 = vmul.f32 %v15618_v5, %v5375_v2  ;;  %v5409_v11 = vmul.f32 %v15621_v20, %v5376_v53 }
 0x5bc   :  { %v5387_v9 = vadd.f32 %v5381_v33, %v5313_v32  ;;  %v5410_v37 = vmul.f32 %v15621_v20, %v5375_v2  ;;  %v5423_v47 = vmul.f32 %v15632_v22, %v5376_v53  ;;  %v5424_v63 = vmul.f32 %v15632_v22, %v5375_v2  ;;  %v15813_v33 = vpop.permute.xlu1 %5678 }
 0x5bd   :  { %v15772_v62 = vadd.f32 %v5382_v4, %v5314_v10  ;;  %v5401_v57 = vadd.f32 %v5395_v18, %v5327_v45  ;;  %v15774_v3 = vadd.f32 %v5396_v55, %v5328_v43  ;;  %v5415_v8 = vadd.f32 %v5409_v11, %v5341_v23 }
 0x5be   :  { %v15776_v51 = vadd.f32 %v5410_v37, %v5342_v59  ;;  %v5429_v28 = vadd.f32 %v5423_v47, %v5355_v42  ;;  %v15778_v6 = vadd.f32 %v5424_v63, %v5356_v36  ;;  %v5374_v32 = vsel %vm315_vm3, %v15313_v50, %v18151_v25  ;;  %v18152_v59 = vld [vmem:[#allocation27_spill] sm:$0xff]  ;;  %v18153_v42 = vld [vmem:[#allocation18_spill] sm:$0xff]  ;;  %v15827_v37 = vpop.permute.xlu0 %5750 }
 0x5bf   :  { %v5383_v44 = vmul.f32 %v15615_v27, %v5374_v32  ;;  %v5397_v10 = vmul.f32 %v15618_v5, %v5374_v32  ;;  %v5411_v45 = vmul.f32 %v15621_v20, %v5374_v32  ;;  %v5425_v43 = vmul.f32 %v15632_v22, %v5374_v32 }
 0x5c0   :  { %v5372_v23 = vsel %vm315_vm3, %v15546_v15, %v15372_v0  ;;  %v5373_v50 = vsel %vm315_vm3, %v18151_v25, %v15546_v15  ;;  %v18154_v36 = vrot.slane %v18152_v59, %v18153_v42  ;;  %v18156_v17 = vrot.slane %v18152_v59, %v18155_v16  ;;  %v18160_v25 = vld [vmem:[#allocation57_spill] sm:$0xff] }
 0x5c1   :  { %v5389_v12 = vadd.f32 %v5383_v44, %v5315_v34  ;;  %v5403_v0 = vadd.f32 %v5397_v10, %v5329_v52  ;;  %v5417_v2 = vadd.f32 %v5411_v45, %v5343_v13  ;;  %v5431_v53 = vadd.f32 %v5425_v43, %v5357_v40 }
 0x5c2   :  { %v5468_v46 = vadd.f32 %v18154_v36, %v15671_v19  ;;  %v5469_v1 = vadd.f32 %v18156_v17, %v5387_v9  ;;  %v5384_v15 = vmul.f32 %v15615_v27, %v5373_v50  ;;  %v5385_v4 = vmul.f32 %v15615_v27, %v5372_v23  ;;  %v18167_v36 = vld [vmem:[#allocation90_spill] sm:$0xff] }
 0x5c3   :  { %v5398_v19 = vmul.f32 %v15618_v5, %v5373_v50  ;;  %v5399_v18 = vmul.f32 %v15618_v5, %v5372_v23  ;;  %v5412_v55 = vmul.f32 %v15621_v20, %v5373_v50  ;;  %v5413_v11 = vmul.f32 %v15621_v20, %v5372_v23 }
 0x5c4   :  { %v5426_v9 = vmul.f32 %v15632_v22, %v5373_v50  ;;  %v5427_v34 = vmul.f32 %v15632_v22, %v5372_v23  ;;  %v5390_v52 = vadd.f32 %v5384_v15, %v5316_v48  ;;  %v5391_v13 = vadd.f32 %v5385_v4, %v5317_v56  ;;  %v18157_v22 = vld [vmem:[#allocation56_spill] sm:$0xff]  ;;  %v15864_v23 = vpop.permute.xlu1 %5744 }
 0x5c5   :  { %v15823_v40 = vadd.f32 %v5398_v19, %v5330_v39  ;;  %v15825_v27 = vadd.f32 %v5399_v18, %v5331_v24  ;;  %v15829_v5 = vadd.f32 %v5412_v55, %v5344_v60  ;;  %v15831_v47 = vadd.f32 %v5413_v11, %v5345_v58 }
 0x5c6   :  { %v15833_v20 = vadd.f32 %v5426_v9, %v5358_v35  ;;  %v15835_v63 = vadd.f32 %v5427_v34, %v5359_v14  ;;  %v18158_v56 = vrot.slane %v18157_v22, %v18153_v42  ;;  %v18159_v24 = vrot.slane %v18157_v22, %v18155_v16  ;;  %v18163_v14 = vld [vmem:[#allocation58_spill] sm:$0xff] }
 0x5c7   :  { %v18161_v60 = vrot.slane %v18160_v25, %v18153_v42  ;;  %v18162_v58 = vrot.slane %v18160_v25, %v18155_v16  ;;  %v18164_v44 = vrot.slane %v18163_v14, %v18153_v42  ;;  %v15859_v43 = vstv %s15790_s30  ;;  %s16653_s30 = sld [smem:[#allocation9 + $0x3f]] }
 0x5c8   :  { %v5508_v48 = vadd.f32 %v18158_v56, %v15674_v61  ;;  %v5509_v39 = vadd.f32 %v18159_v24, %v5401_v57  ;;  %v18165_v61 = vrot.slane %v18163_v14, %v18155_v16  ;;  %v15862_v57 = vstv %s15792_s26  ;;  %v15888_v56 = vpop.permute.xlu0 %5816  ;;  %s16844_s26 = sld [smem:[#allocation9 + $0x5c]] }
 0x5c9   :  { %v5548_v32 = vadd.f32 %v18161_v60, %v15677_v30  ;;  %v5549_v35 = vadd.f32 %v18162_v58, %v5415_v8  ;;  %v5588_v10 = vadd.f32 %v18164_v44, %v15680_v49  ;;  %v15867_v30 = vstv %s15809_s3  ;;  %v18166_v8 = vld [vmem:[#allocation16_spill] sm:$0xff]  ;;  %v18168_v49 = vld [vmem:[#allocation45_spill] sm:$0xff]  ;;  %18169 = vst [vmem:[#allocation93_spill] sm:$0xff] %v15888_v56  ;;  %s16846_s3 = sld [smem:[#allocation9 + $0x5d]] }
 0x5ca   :  { %v5589_v45 = vadd.f32 %v18165_v61, %v5429_v28  ;;  %v15870_v50 = vstv %s15811_s4  ;;  %v5609_v17 = vsel %vm550_vm4, %v18167_v36, %v18166_v8  ;;  %v5610_v28 = vsel %vm550_vm4, %v18168_v49, %v18167_v36  ;;  %s16863_s4 = sld [smem:[#allocation9 + $0x5e]] }
 0x5cb   :  { %v5614_v15 = vmul.f32 %v15859_v43, %v5610_v28  ;;  %v5615_v4 = vmul.f32 %v15859_v43, %v5609_v17  ;;  %v5628_v19 = vmul.f32 %v15862_v57, %v5610_v28  ;;  %v5629_v18 = vmul.f32 %v15862_v57, %v5609_v17 }
 0x5cc   :  { %v5642_v55 = vmul.f32 %v15867_v30, %v5610_v28  ;;  %v5643_v11 = vmul.f32 %v15867_v30, %v5609_v17  ;;  %v5656_v9 = vmul.f32 %v15870_v50, %v5610_v28  ;;  %v5657_v34 = vmul.f32 %v15870_v50, %v5609_v17  ;;  %v18170_v17 = vld [vmem:[#allocation17_spill] sm:$0xff] }
 0x5cd   :  { %v15890_v24 = vadd.f32 %v5614_v15, %v5468_v46  ;;  %v15892_v60 = vadd.f32 %v5615_v4, %v5469_v1  ;;  %v15894_v58 = vadd.f32 %v5628_v19, %v5508_v48  ;;  %v15896_v44 = vadd.f32 %v5629_v18, %v5509_v39  ;;  %v18172_v1 = vld [vmem:[#allocation19_spill] sm:$0xff] }
 0x5ce   :  { %v15898_v61 = vadd.f32 %v5642_v55, %v5548_v32  ;;  %v15900_v36 = vadd.f32 %v5643_v11, %v5549_v35  ;;  %v15902_v16 = vadd.f32 %v5656_v9, %v5588_v10  ;;  %v15904_v42 = vadd.f32 %v5657_v34, %v5589_v45  ;;  %v15920_v45 = vpop.permute.xlu1 %5748  ;;  %v18180_v11 = vld [vmem:[#allocation63_spill] sm:$0xff]  ;;  %v18181_v9 = vld [vmem:[#allocation92_spill] sm:$0xff] }
 0x5cf   :  { %v18171_v28 = vrot.slane %v18152_v59, %v18170_v17  ;;  %v18173_v15 = vrot.slane %v18152_v59, %v18172_v1  ;;  %v18174_v39 = vrot.slane %v18157_v22, %v18170_v17  ;;  %v18175_v35 = vrot.slane %v18157_v22, %v18172_v1 }
 0x5d0   :  { %v18176_v4 = vrot.slane %v18160_v25, %v18170_v17  ;;  %v18177_v19 = vrot.slane %v18160_v25, %v18172_v1  ;;  %v18178_v18 = vrot.slane %v18163_v14, %v18170_v17  ;;  %v18179_v55 = vrot.slane %v18163_v14, %v18172_v1 }
 0x5d1   :  { %v5470_v46 = vadd.f32 %v18171_v28, %v15772_v62  ;;  %v5471_v48 = vadd.f32 %v18173_v15, %v5389_v12  ;;  %v5510_v32 = vadd.f32 %v18174_v39, %v15774_v3  ;;  %v5511_v10 = vadd.f32 %v18175_v35, %v5403_v0 }
 0x5d2   :  { %v5550_v62 = vadd.f32 %v18176_v4, %v15776_v51  ;;  %v5551_v12 = vadd.f32 %v18177_v19, %v5417_v2  ;;  %v5590_v3 = vadd.f32 %v18178_v18, %v15778_v6  ;;  %v5591_v0 = vadd.f32 %v18179_v55, %v5431_v53  ;;  %v18182_v2 = vld [vmem:[#allocation22_spill] sm:$0xff]  ;;  %v18184_v6 = vld [vmem:[#allocation21_spill] sm:$0xff]  ;;  %v15954_v55 = vpop.permute.xlu0 %5820 }
 0x5d3   :  { %v5607_v34 = vsel %vm550_vm4, %v18181_v9, %v18180_v11  ;;  %v5608_v51 = vsel %vm550_vm4, %v18166_v8, %v18181_v9  ;;  %v18183_v28 = vrot.slane %v18152_v59, %v18182_v2  ;;  %v18185_v39 = vrot.slane %v18152_v59, %v18184_v6 }
 0x5d4   :  { %v5616_v53 = vmul.f32 %v15859_v43, %v5608_v51  ;;  %v5617_v4 = vmul.f32 %v15859_v43, %v5607_v34  ;;  %v5630_v19 = vmul.f32 %v15862_v57, %v5608_v51  ;;  %v5631_v18 = vmul.f32 %v15862_v57, %v5607_v34 }
 0x5d5   :  { %v5472_v15 = vadd.f32 %v18183_v28, %v5390_v52  ;;  %v5473_v35 = vadd.f32 %v18185_v39, %v5391_v13  ;;  %v5644_v8 = vmul.f32 %v15867_v30, %v5608_v51  ;;  %v5645_v9 = vmul.f32 %v15867_v30, %v5607_v34 }
 0x5d6   :  { %v5658_v52 = vmul.f32 %v15870_v50, %v5608_v51  ;;  %v5659_v28 = vmul.f32 %v15870_v50, %v5607_v34  ;;  %v15964_v59 = vadd.f32 %v5616_v53, %v5470_v46  ;;  %v15966_v13 = vadd.f32 %v5617_v4, %v5471_v48  ;;  %v15984_v46 = vpop.permute.xlu1 %5752 }
 0x5d7   :  { %v15968_v39 = vadd.f32 %v5630_v19, %v5510_v32  ;;  %v15970_v1 = vadd.f32 %v5631_v18, %v5511_v10  ;;  %v15976_v17 = vadd.f32 %v5644_v8, %v5550_v62  ;;  %v15978_v51 = vadd.f32 %v5645_v9, %v5551_v12 }
 0x5d8   :  { %v15980_v34 = vadd.f32 %v5658_v52, %v5590_v3  ;;  %v15982_v56 = vadd.f32 %v5659_v28, %v5591_v0  ;;  %v18186_v48 = vrot.slane %v18157_v22, %v18182_v2  ;;  %v18187_v10 = vrot.slane %v18157_v22, %v18184_v6 }
 0x5d9   :  { %v18188_v62 = vrot.slane %v18160_v25, %v18182_v2  ;;  %v18189_v3 = vrot.slane %v18160_v25, %v18184_v6  ;;  %v18190_v4 = vrot.slane %v18163_v14, %v18182_v2  ;;  %v18191_v22 = vrot.slane %v18163_v14, %v18184_v6 }
 0x5da   :  { %v5512_v32 = vadd.f32 %v18186_v48, %v15823_v40  ;;  %v5513_v53 = vadd.f32 %v18187_v10, %v15825_v27 }
 0x5db   :  { %v5552_v12 = vadd.f32 %v18188_v62, %v15829_v5  ;;  %v5553_v0 = vadd.f32 %v18189_v3, %v15831_v47  ;;  %v5592_v40 = vadd.f32 %v18190_v4, %v15833_v20  ;;  %v5593_v27 = vadd.f32 %v18191_v22, %v15835_v63  ;;  %v16022_v63 = vpop.permute.xlu0 %5824 }
 0x5dc   :  { %v5606_v5 = vsel %vm550_vm4, %v18180_v11, %v15710_v38  ;;  %v5611_v47 = vsel %vm550_vm4, %v15710_v38, %v18168_v49  ;;  %v5687_v62 = vstv %s15960_s14  ;;  %v5729_v3 = vstv %s15974_s2  ;;  %s16865_s14 = sld [smem:[#allocation9 + $0x5f]]  ;;  %s17017_s2 = sld [smem:[#allocation9 + $0x6e]] }
 0x5dd   :  { %v5618_v25 = vmul.f32 %v15859_v43, %v5606_v5  ;;  %v5619_v19 = vmul.f32 %v15859_v43, %v5611_v47  ;;  %v5632_v20 = vmul.f32 %v15862_v57, %v5606_v5  ;;  %v5633_v14 = vmul.f32 %v15862_v57, %v5611_v47 }
 0x5de   :  { %v5646_v11 = vmul.f32 %v15867_v30, %v5606_v5  ;;  %v5647_v18 = vmul.f32 %v15867_v30, %v5611_v47  ;;  %v5660_v38 = vmul.f32 %v15870_v50, %v5606_v5  ;;  %v5661_v49 = vmul.f32 %v15870_v50, %v5611_v47  ;;  %v16044_v30 = vpop.permute.xlu1 %5818 }
 0x5df   :  { %v16028_v8 = vadd.f32 %v5618_v25, %v5472_v15  ;;  %v16030_v43 = vadd.f32 %v5619_v19, %v5473_v35  ;;  %v16032_v9 = vadd.f32 %v5632_v20, %v5512_v32  ;;  %v16034_v57 = vadd.f32 %v5633_v14, %v5513_v53  ;;  %v18192_v32 = vld [vmem:[#allocation91_spill] sm:$0xff]  ;;  %v16066_v5 = vpop.permute.xlu0 %5923 }
 0x5e0   :  { %v16036_v52 = vadd.f32 %v5646_v11, %v5552_v12  ;;  %v16038_v28 = vadd.f32 %v5647_v18, %v5553_v0  ;;  %v16040_v48 = vadd.f32 %v5660_v38, %v5592_v40  ;;  %v16042_v10 = vadd.f32 %v5661_v49, %v5593_v27 }
 0x5e1   :  { %v5701_v50 = vstv %s15962_s15  ;;  %v5715_v15 = vstv %s15972_s9  ;;  %v5683_v35 = vsel %vm625_vm5, %v15741_v54, %v15682_v26  ;;  %v5684_v53 = vsel %vm625_vm5, %v18192_v32, %v15741_v54  ;;  %s17007_s15 = sld [smem:[#allocation9 + $0x6c]]  ;;  %s17015_s9 = sld [smem:[#allocation9 + $0x6d]] }
 0x5e2   :  { %v5681_v12 = vsel %vm625_vm5, %v15767_v41, %v15724_v31  ;;  %v5682_v0 = vsel %vm625_vm5, %v15682_v26, %v15767_v41  ;;  %v5688_v4 = vmul.f32 %v5687_v62, %v5684_v53  ;;  %v5689_v40 = vmul.f32 %v5687_v62, %v5683_v35 }
 0x5e3   :  { %v5702_v22 = vmul.f32 %v5701_v50, %v5684_v53  ;;  %v5703_v27 = vmul.f32 %v5701_v50, %v5683_v35  ;;  %v5716_v54 = vmul.f32 %v5715_v15, %v5684_v53  ;;  %v5717_v47 = vmul.f32 %v5715_v15, %v5683_v35 }
 0x5e4   :  { %v5730_v25 = vmul.f32 %v5729_v3, %v5684_v53  ;;  %v5731_v19 = vmul.f32 %v5729_v3, %v5683_v35  ;;  %v16073_v20 = vadd.f32 %v5688_v4, %v15890_v24  ;;  %v16076_v14 = vadd.f32 %v5689_v40, %v15892_v60  ;;  %v16096_v60 = vpop.permute.xlu1 %5822 }
 0x5e5   :  { %v16079_v26 = vadd.f32 %v5702_v22, %v15894_v58  ;;  %v16082_v41 = vadd.f32 %v5703_v27, %v15896_v44  ;;  %v16085_v11 = vadd.f32 %v5716_v54, %v15898_v61  ;;  %v16088_v18 = vadd.f32 %v5717_v47, %v15900_v36  ;;  %v16114_v27 = vpop.permute.xlu0 %5927 }
 0x5e6   :  { %v16091_v38 = vadd.f32 %v5730_v25, %v15902_v16  ;;  %v16094_v24 = vadd.f32 %v5731_v19, %v15904_v42  ;;  %v5690_v49 = vmul.f32 %v5687_v62, %v5682_v0  ;;  %v5691_v58 = vmul.f32 %v5687_v62, %v5681_v12 }
 0x5e7   :  { %v5704_v35 = vmul.f32 %v5701_v50, %v5682_v0  ;;  %v5705_v53 = vmul.f32 %v5701_v50, %v5681_v12  ;;  %v5718_v44 = vmul.f32 %v5715_v15, %v5682_v0  ;;  %v5719_v4 = vmul.f32 %v5715_v15, %v5681_v12 }
 0x5e8   :  { %v5732_v61 = vmul.f32 %v5729_v3, %v5682_v0  ;;  %v5733_v40 = vmul.f32 %v5729_v3, %v5681_v12  ;;  %v16103_v16 = vadd.f32 %v5690_v49, %v15964_v59  ;;  %v16106_v42 = vadd.f32 %v5691_v58, %v15966_v13 }
 0x5e9   :  { %v16109_v36 = vadd.f32 %v5704_v35, %v15968_v39  ;;  %v16112_v22 = vadd.f32 %v5705_v53, %v15970_v1  ;;  %v16117_v12 = vadd.f32 %v5718_v44, %v15976_v17  ;;  %v16120_v0 = vadd.f32 %v5719_v4, %v15978_v51 }
 0x5ea   :  { %v16123_v59 = vadd.f32 %v5732_v61, %v15980_v34  ;;  %v16126_v13 = vadd.f32 %v5733_v40, %v15982_v56  ;;  %v5680_v1 = vsel %vm625_vm5, %v15724_v31, %v15813_v33  ;;  %v5685_v17 = vsel %vm625_vm5, %v15813_v33, %v18192_v32  ;;  %v16142_v56 = vpop.permute.xlu1 %5826 }
 0x5eb   :  { %v16137_v39 = vstv %s16068_s24  ;;  %v16140_v51 = vstv %s16070_s1  ;;  %v5692_v54 = vmul.f32 %v5687_v62, %v5680_v1  ;;  %v5693_v34 = vmul.f32 %v5687_v62, %v5685_v17  ;;  %s17029_s24 = sld [smem:[#allocation9 + $0x6f]]  ;;  %s17111_s1 = sld [smem:[#allocation9 + $0x7c]] }
 0x5ec   :  { %v5706_v47 = vmul.f32 %v5701_v50, %v5680_v1  ;;  %v5707_v25 = vmul.f32 %v5701_v50, %v5685_v17  ;;  %v5720_v19 = vmul.f32 %v5715_v15, %v5680_v1  ;;  %v5721_v49 = vmul.f32 %v5715_v15, %v5685_v17 }
 0x5ed   :  { %v5734_v31 = vmul.f32 %v5729_v3, %v5680_v1  ;;  %v5735_v58 = vmul.f32 %v5729_v3, %v5685_v17  ;;  %v16149_v33 = vadd.f32 %v5692_v54, %v16028_v8  ;;  %v16152_v32 = vadd.f32 %v5693_v34, %v16030_v43  ;;  %v16172_v43 = vpop.permute.xlu0 %5933 }
 0x5ee   :  { %v16155_v62 = vadd.f32 %v5706_v47, %v16032_v9  ;;  %v16158_v50 = vadd.f32 %v5707_v25, %v16034_v57  ;;  %v16161_v15 = vadd.f32 %v5720_v19, %v16036_v52  ;;  %v16164_v3 = vadd.f32 %v5721_v49, %v16038_v28  ;;  %18193 = vst [vmem:[#allocation34_spill] sm:$0xff] %v16172_v43 }
 0x5ef   :  { %v16167_v35 = vadd.f32 %v5734_v31, %v16040_v48  ;;  %v16170_v8 = vadd.f32 %v5735_v58, %v16042_v10  ;;  %v16175_v53 = vstv %s16098_s18  ;;  %v16178_v9 = vstv %s16100_s17  ;;  %s17113_s18 = sld [smem:[#allocation9 + $0x7d]]  ;;  %s17121_s17 = sld [smem:[#allocation9 + $0x7e]] }
 0x5f0   :  { %v5757_v57 = vsel %vm700_vm6, %v15864_v23, %v15784_v7  ;;  %v5758_v52 = vsel %vm700_vm6, %v15752_v21, %v15864_v23  ;;  %v16200_v23 = vpop.permute.xlu1 %5925 }
 0x5f1   :  { %v5762_v28 = vmul.f32 %v16137_v39, %v5758_v52  ;;  %v5763_v48 = vmul.f32 %v16137_v39, %v5757_v57  ;;  %v5776_v10 = vmul.f32 %v16140_v51, %v5758_v52  ;;  %v5777_v44 = vmul.f32 %v16140_v51, %v5757_v57 }
 0x5f2   :  { %v5790_v4 = vmul.f32 %v16175_v53, %v5758_v52  ;;  %v5791_v61 = vmul.f32 %v16175_v53, %v5757_v57  ;;  %v5804_v40 = vmul.f32 %v16178_v9, %v5758_v52  ;;  %v5805_v1 = vmul.f32 %v16178_v9, %v5757_v57 }
 0x5f3   :  { %v16203_v17 = vadd.f32 %v5762_v28, %v16073_v20  ;;  %v16206_v54 = vadd.f32 %v5763_v48, %v16076_v14  ;;  %v16209_v34 = vadd.f32 %v5776_v10, %v16079_v26  ;;  %v16212_v47 = vadd.f32 %v5777_v44, %v16082_v41 }
 0x5f4   :  { %v16215_v25 = vadd.f32 %v5790_v4, %v16085_v11  ;;  %v16218_v19 = vadd.f32 %v5791_v61, %v16088_v18  ;;  %v16221_v49 = vadd.f32 %v5804_v40, %v16091_v38  ;;  %v16224_v20 = vadd.f32 %v5805_v1, %v16094_v24  ;;  %v16240_v18 = vpop.permute.xlu0 %5997  ;;  %v16268_v4 = vpop.permute.xlu1 %5929 }
 0x5f5   :  { %v5755_v14 = vsel %vm700_vm6, %v15920_v45, %v15827_v37  ;;  %v5756_v26 = vsel %vm700_vm6, %v15784_v7, %v15920_v45  ;;  %v16235_v41 = vstv %s16144_s28  ;;  %v16238_v11 = vstv %s16146_s27  ;;  %s17123_s28 = sld [smem:[#allocation9 + $0x7f]]  ;;  %s17219_s27 = sld [smem:[#allocation9 + $0x8c]] }
 0x5f6   :  { %v5764_v38 = vmul.f32 %v16137_v39, %v5756_v26  ;;  %v5765_v24 = vmul.f32 %v16137_v39, %v5755_v14  ;;  %v5778_v31 = vmul.f32 %v16140_v51, %v5756_v26  ;;  %v5779_v58 = vmul.f32 %v16140_v51, %v5755_v14 }
 0x5f7   :  { %v5792_v57 = vmul.f32 %v16175_v53, %v5756_v26  ;;  %v5793_v52 = vmul.f32 %v16175_v53, %v5755_v14  ;;  %v5806_v7 = vmul.f32 %v16178_v9, %v5756_v26  ;;  %v5807_v45 = vmul.f32 %v16178_v9, %v5755_v14 }
 0x5f8   :  { %v16253_v28 = vadd.f32 %v5764_v38, %v16103_v16  ;;  %v16256_v48 = vadd.f32 %v5765_v24, %v16106_v42  ;;  %v16259_v10 = vadd.f32 %v5778_v31, %v16109_v36  ;;  %v16262_v44 = vadd.f32 %v5779_v58, %v16112_v22  ;;  %v16310_v26 = vpop.permute.xlu0 %6001 }
 0x5f9   :  { %v16271_v61 = vadd.f32 %v5792_v57, %v16117_v12  ;;  %v16274_v16 = vadd.f32 %v5793_v52, %v16120_v0  ;;  %v16277_v42 = vadd.f32 %v5806_v7, %v16123_v59  ;;  %v16280_v36 = vadd.f32 %v5807_v45, %v16126_v13  ;;  %18196 = vst [vmem:[#allocation43_spill] sm:$0xff] %v16310_v26 }
 0x5fa   :  { %v16285_v22 = vstv %s16196_s19  ;;  %v16288_v40 = vstv %s16198_s20  ;;  %v5940_v12 = vsel %vm114_vm0, %v16172_v43, %v16066_v5  ;;  %v5754_v0 = vsel %vm700_vm6, %v15827_v37, %v15984_v46  ;;  %s17221_s19 = sld [smem:[#allocation9 + $0x8d]]  ;;  %s17223_s20 = sld [smem:[#allocation9 + $0x8e]] }
 0x5fb   :  { %18194 = vst [vmem:[#allocation64_spill] sm:$0xff] %v16285_v22  ;;  %18195 = vst [vmem:[#allocation35_spill] sm:$0xff] %v16288_v40  ;;  %v16299_v59 = vmul.f32 %v16235_v41, %v5940_v12  ;;  %v16302_v13 = vmul.f32 %v16238_v11, %v5940_v12  ;;  %v16305_v1 = vmul.f32 %v16285_v22, %v5940_v12 }
 0x5fc   :  { %v16308_v14 = vmul.f32 %v16288_v40, %v5940_v12  ;;  %v5759_v38 = vsel %vm700_vm6, %v15984_v46, %v15752_v21  ;;  %v5766_v37 = vmul.f32 %v16137_v39, %v5754_v0  ;;  %v5780_v24 = vmul.f32 %v16140_v51, %v5754_v0 }
 0x5fd   :  { %v5794_v31 = vmul.f32 %v16175_v53, %v5754_v0  ;;  %v5767_v58 = vmul.f32 %v16137_v39, %v5759_v38  ;;  %v5781_v57 = vmul.f32 %v16140_v51, %v5759_v38  ;;  %v5795_v52 = vmul.f32 %v16175_v53, %v5759_v38  ;;  %v16333_v39 = vpop.permute.xlu1 %5931 }
 0x5fe   :  { %v5808_v7 = vmul.f32 %v16178_v9, %v5754_v0  ;;  %v16324_v21 = vadd.f32 %v5766_v37, %v16149_v33  ;;  %v16327_v46 = vadd.f32 %v5780_v24, %v16155_v62  ;;  %v5809_v12 = vmul.f32 %v16178_v9, %v5759_v38  ;;  %18197 = vst [vmem:[#allocation87_spill] sm:$0xff] %v16333_v39  ;;  %v16376_v37 = vpop.permute.xlu0 %6007 }
 0x5ff   :  { %v16330_v45 = vadd.f32 %v5794_v31, %v16161_v15  ;;  %v16336_v51 = vadd.f32 %v5767_v58, %v16152_v32  ;;  %v16339_v53 = vadd.f32 %v5781_v57, %v16158_v50  ;;  %v16342_v0 = vadd.f32 %v5795_v52, %v16164_v3  ;;  %v18200_v3 = vld [vmem:[#allocation93_spill] sm:$0xff] }
 0x600   :  { %v16345_v33 = vadd.f32 %v5808_v7, %v16167_v35  ;;  %v16348_v62 = vadd.f32 %v5809_v12, %v16170_v8  ;;  %v16351_v15 = vstv %s16250_s21  ;;  %v16354_v9 = vstv %s16264_s22  ;;  %s17225_s21 = sld [smem:[#allocation9 + $0x8f]] }
 0x601   :  { %v16357_v38 = vstv %s16266_s23  ;;  %v16360_v32 = vstv %s16282_s13  ;;  %v5831_v50 = vsel %vm775_vm7, %v16044_v30, %v15954_v55  ;;  %v5832_v35 = vsel %vm775_vm7, %v18200_v3, %v16044_v30  ;;  %v16400_v22 = vpop.permute.xlu1 %5999  ;;  %s18254_s13 = sld [smem:[#allocation94_spill]] }
 0x602   :  { %18198 = vst [vmem:[#allocation88_spill] sm:$0xff] %v16345_v33  ;;  %18199 = vst [vmem:[#allocation54_spill] sm:$0xff] %v16348_v62  ;;  %v5829_v8 = vsel %vm775_vm7, %v16096_v60, %v16022_v63  ;;  %v5836_v24 = vmul.f32 %v16351_v15, %v5832_v35  ;;  %v5837_v31 = vmul.f32 %v16351_v15, %v5831_v50 }
 0x603   :  { %v5850_v58 = vmul.f32 %v16354_v9, %v5832_v35  ;;  %v5851_v57 = vmul.f32 %v16354_v9, %v5831_v50  ;;  %v5864_v30 = vmul.f32 %v16357_v38, %v5832_v35  ;;  %v5865_v52 = vmul.f32 %v16357_v38, %v5831_v50 }
 0x604   :  { %v5878_v7 = vmul.f32 %v16360_v32, %v5832_v35  ;;  %v5879_v12 = vmul.f32 %v16360_v32, %v5831_v50  ;;  %v5842_v26 = vadd.f32 %v5836_v24, %v16203_v17  ;;  %v16394_v39 = vadd.f32 %v5837_v31, %v16206_v54  ;;  %v16421_v24 = vpop.permute.xlu0 %6071 }
 0x605   :  { %v5856_v43 = vadd.f32 %v5850_v58, %v16209_v34  ;;  %v16398_v40 = vadd.f32 %v5851_v57, %v16212_v47  ;;  %v5870_v62 = vadd.f32 %v5864_v30, %v16215_v25  ;;  %v16404_v35 = vadd.f32 %v5865_v52, %v16218_v19 }
 0x606   :  { %v5884_v50 = vadd.f32 %v5878_v7, %v16221_v49  ;;  %v16408_v33 = vadd.f32 %v5879_v12, %v16224_v20  ;;  %v5830_v17 = vsel %vm775_vm7, %v15954_v55, %v16096_v60  ;;  %v5839_v54 = vmul.f32 %v16351_v15, %v5829_v8 }
 0x607   :  { %v5853_v34 = vmul.f32 %v16354_v9, %v5829_v8  ;;  %v5867_v47 = vmul.f32 %v16357_v38, %v5829_v8  ;;  %v5838_v25 = vmul.f32 %v16351_v15, %v5830_v17  ;;  %v5852_v19 = vmul.f32 %v16354_v9, %v5830_v17 }
 0x608   :  { %v5866_v49 = vmul.f32 %v16357_v38, %v5830_v17  ;;  %v5880_v20 = vmul.f32 %v16360_v32, %v5830_v17  ;;  %v16424_v55 = vadd.f32 %v5839_v54, %v16256_v48  ;;  %v5881_v58 = vmul.f32 %v16360_v32, %v5829_v8  ;;  %v16455_v8 = vpop.permute.xlu1 %6003 }
 0x609   :  { %v16427_v60 = vadd.f32 %v5853_v34, %v16262_v44  ;;  %v16430_v31 = vadd.f32 %v5867_v47, %v16274_v16  ;;  %v5844_v57 = vadd.f32 %v5838_v25, %v16253_v28  ;;  %v16435_v30 = vadd.f32 %v5852_v19, %v16259_v10 }
 0x60a   :  { %v16438_v52 = vadd.f32 %v5866_v49, %v16271_v61  ;;  %v16441_v7 = vadd.f32 %v5880_v20, %v16277_v42  ;;  %v16444_v48 = vadd.f32 %v5881_v58, %v16280_v36  ;;  %v16447_v44 = vstv %s16374_s6 }
 0x60b   :  { %v16450_v16 = vstv %s16382_s7  ;;  %v16453_v12 = vstv %s16384_s8  ;;  %v16458_v28 = vstv %s16390_s5  ;;  %v5949_v10 = vadd.f32 %v16299_v59, %v5842_v26  ;;  %v16482_v26 = vpop.permute.xlu0 %6075  ;;  %s18255_s8 = sld [smem:[#allocation95_spill]]  ;;  %s7390_s5 = smov [#allocation11]  }
 0x60c   :  { %v5963_v61 = vadd.f32 %v16302_v13, %v5856_v43  ;;  %v5977_v42 = vadd.f32 %v16305_v1, %v5870_v62  ;;  %v5991_v36 = vadd.f32 %v16308_v14, %v5884_v50  ;;  %v6014_v17 = vsel %vm165_vm1, %v16376_v37, %v16240_v18 }
 0x60d   :  { %v5828_v54 = vsel %vm775_vm7, %v16022_v63, %v16142_v56  ;;  %v5833_v43 = vsel %vm775_vm7, %v16142_v56, %v18200_v3  ;;  %v6017_v59 = vmul.f32 %v16447_v44, %v6014_v17  ;;  %v6031_v13 = vmul.f32 %v16450_v16, %v6014_v17 }
 0x60e   :  { %v6045_v1 = vmul.f32 %v16453_v12, %v6014_v17  ;;  %v6059_v14 = vmul.f32 %v16458_v28, %v6014_v17  ;;  %v5840_v62 = vmul.f32 %v16351_v15, %v5828_v54  ;;  %v5841_v50 = vmul.f32 %v16351_v15, %v5833_v43  ;;  %v16504_v15 = vpop.permute.xlu1 %6005 }
 0x60f   :  { %v5854_v63 = vmul.f32 %v16354_v9, %v5828_v54  ;;  %v5855_v34 = vmul.f32 %v16354_v9, %v5833_v43  ;;  %v16488_v47 = vadd.f32 %v6017_v59, %v5949_v10  ;;  %v16490_v56 = vadd.f32 %v6031_v13, %v5963_v61 }
 0x610   :  { %v16492_v3 = vadd.f32 %v6045_v1, %v5977_v42  ;;  %v16494_v25 = vadd.f32 %v6059_v14, %v5991_v36  ;;  %v16497_v19 = vadd.f32 %v5840_v62, %v16324_v21  ;;  %v16500_v49 = vadd.f32 %v5841_v50, %v16336_v51  ;;  %v18203_v1 = vld [vmem:[#allocation54_spill] sm:$0xff]  ;;  %v18204_v62 = vld [vmem:[#allocation64_spill] sm:$0xff] }
 0x611   :  { %v5868_v10 = vmul.f32 %v16357_v38, %v5828_v54  ;;  %v5869_v61 = vmul.f32 %v16357_v38, %v5833_v43  ;;  %v5882_v21 = vmul.f32 %v16360_v32, %v5828_v54  ;;  %v5883_v51 = vmul.f32 %v16360_v32, %v5833_v43  ;;  %v16545_v43 = vpop.permute.xlu0 %6081 }
 0x612   :  { %v16519_v42 = vadd.f32 %v5854_v63, %v16327_v46  ;;  %v16522_v36 = vadd.f32 %v5855_v34, %v16339_v53  ;;  %v5938_v17 = vsel %vm114_vm0, %v16200_v23, %v16114_v27  ;;  %v5939_v38 = vsel %vm114_vm0, %v16066_v5, %v16200_v23 }
 0x613   :  { %v16533_v32 = vadd.f32 %v5868_v10, %v16330_v45  ;;  %v16536_v54 = vadd.f32 %v5869_v61, %v16342_v0  ;;  %v5937_v46 = vsel %vm114_vm0, %v16114_v27, %v16268_v4  ;;  %v16543_v53 = vstv %s16463_s16  ;;  %v18202_v45 = vld [vmem:[#allocation88_spill] sm:$0xff]  ;;  %v18205_v10 = vld [vmem:[#allocation35_spill] sm:$0xff]  ;;  %s6979_s16 = sshll.u32 %s7390_s5, 4  ;;  %s6980_s16 = int_to_ptr.vmem [resolvable:$true] %s6979_s16 }
 0x614   :  { %v5944_v59 = vmul.f32 %v16235_v41, %v5939_v38  ;;  %v5945_v13 = vmul.f32 %v16235_v41, %v5938_v17  ;;  %v5958_v5 = vmul.f32 %v16238_v11, %v5939_v38  ;;  %v5959_v23 = vmul.f32 %v16238_v11, %v5938_v17  ;;  %p7351_p5 = scmp.lt.s32.totalorder %s6980_s16, %s6980_s16 }
 0x615   :  { %v16552_v0 = vadd.f32 %v5882_v21, %v18202_v45  ;;  %v16555_v14 = vadd.f32 %v5883_v51, %v18203_v1  ;;  %v5972_v27 = vmul.f32 %v18204_v62, %v5939_v38  ;;  %v5973_v50 = vmul.f32 %v18204_v62, %v5938_v17  ;;  %v16566_v45 = vpop.permute.xlu1 %6073 }
 0x616   :  { %v16560_v63 = vadd.f32 %v5944_v59, %v16394_v39  ;;  %v16562_v34 = vadd.f32 %v5945_v13, %v5844_v57  ;;  %v5986_v61 = vmul.f32 %v18205_v10, %v5939_v38  ;;  %v5987_v21 = vmul.f32 %v18205_v10, %v5938_v17 }
 0x617   :  { %v5964_v51 = vadd.f32 %v5958_v5, %v16398_v40  ;;  %v5965_v1 = vadd.f32 %v5959_v23, %v16435_v30  ;;  %v5978_v58 = vadd.f32 %v5972_v27, %v16404_v35  ;;  %v5979_v20 = vadd.f32 %v5973_v50, %v16438_v52  ;;  %v16589_v35 = vpop.permute.xlu0 %6145 }
 0x618   :  { %v5946_v6 = vmul.f32 %v16235_v41, %v5937_v46  ;;  %v5960_v39 = vmul.f32 %v16238_v11, %v5937_v46  ;;  %v5974_v57 = vmul.f32 %v18204_v62, %v5937_v46  ;;  %v5988_v38 = vmul.f32 %v18205_v10, %v5937_v46  ;;  %18206 = vst [vmem:[#allocation67_spill] sm:$0xff] %v16589_v35 }
 0x619   :  { %v16577_v59 = vstv %s16502_s25  ;;  %v16580_v17 = vstv %s16514_s0  ;;  %v16583_v13 = vstv %s16516_s29  ;;  %v6088_v40 = vsel %vm240_vm2, %v16545_v43, %v16421_v24  ;;  %s7346_s25 = scalar_lea.vmem %s6980_s16, 384 }
 0x61a   :  { %v5992_v30 = vadd.f32 %v5986_v61, %v16408_v33  ;;  %v5993_v52 = vadd.f32 %v5987_v21, %v16441_v7  ;;  %v16594_v5 = vadd.f32 %v5946_v6, %v16424_v55  ;;  %v16597_v46 = vadd.f32 %v5960_v39, %v16427_v60  ;;  %v18207_v33 = vld [vmem:[#allocation34_spill] sm:$0xff]  ;;  %v18208_v61 = vld [vmem:[#allocation87_spill] sm:$0xff]  ;;  %v16618_v7 = vpop.permute.xlu1 %6077  ;;  %p7347_p4 = scmp.ne.s32.totalorder %s6980_s16, %s7346_s25  ;;  %p7352_p6 = scmp.lt.s32.totalorder %s7346_s25, %s7346_s25 }
 0x61b   :  { %v6091_v23 = vmul.f32 %v16543_v53, %v6088_v40  ;;  %v6105_v27 = vmul.f32 %v16577_v59, %v6088_v40  ;;  %v6119_v50 = vmul.f32 %v16580_v17, %v6088_v40  ;;  %v6133_v2 = vmul.f32 %v16583_v13, %v6088_v40 }
 0x61c   :  { %v16604_v9 = vadd.f32 %v5974_v57, %v16430_v31  ;;  %v5935_v6 = vsel %vm114_vm0, %v18208_v61, %v18207_v33  ;;  %v5936_v55 = vsel %vm114_vm0, %v16268_v4, %v18208_v61  ;;  %v6013_v60 = vsel %vm165_vm1, %v16240_v18, %v16400_v22  ;;  %v18209_v57 = vld [vmem:[#allocation43_spill] sm:$0xff]  ;;  %p7353_p7 = por %p7352_p6, %p7351_p5 }
 0x61d   :  { %v16621_v31 = vadd.f32 %v5988_v38, %v16444_v48  ;;  %v16624_v21 = vadd.f32 %v6091_v23, %v16488_v47  ;;  %v16627_v39 = vadd.f32 %v6105_v27, %v16490_v56  ;;  %v6012_v4 = vsel %vm165_vm1, %v16400_v22, %v18209_v57  ;;  %v16647_v27 = vpop.permute.xlu0 %6149 }
 0x61e   :  { %v5947_v18 = vmul.f32 %v16235_v41, %v5936_v55  ;;  %v5948_v40 = vmul.f32 %v16235_v41, %v5935_v6  ;;  %v5961_v48 = vmul.f32 %v16238_v11, %v5936_v55  ;;  %v5962_v38 = vmul.f32 %v16238_v11, %v5935_v6  ;;  %p7354_p8 = pnand %p7353_p7, %p7347_p4 }
 0x61f   :  { %v6125_v47 = vadd.f32 %v6119_v50, %v16492_v3  ;;  %v6139_v56 = vadd.f32 %v6133_v2, %v16494_v25  ;;  %v5975_v22 = vmul.f32 %v18204_v62, %v5936_v55  ;;  %v5976_v23 = vmul.f32 %v18204_v62, %v5935_v6 }
 0x620   :  { %v5953_v41 = vadd.f32 %v5947_v18, %v16497_v19  ;;  %v5954_v33 = vadd.f32 %v5948_v40, %v16500_v49  ;;  %v5989_v11 = vmul.f32 %v18205_v10, %v5936_v55  ;;  %v5990_v61 = vmul.f32 %v18205_v10, %v5935_v6  ;;  %v16665_v10 = vpop.permute.xlu1 %6079 }
 0x621   :  { %v5967_v3 = vadd.f32 %v5961_v48, %v16519_v42  ;;  %v5968_v2 = vadd.f32 %v5962_v38, %v16522_v36  ;;  %v16658_v25 = vadd.f32 %v5975_v22, %v16533_v32  ;;  %v5982_v62 = vadd.f32 %v5976_v23, %v16536_v54 }
 0x622   :  { %v6018_v50 = vmul.f32 %v16447_v44, %v6013_v60  ;;  %v6019_v19 = vmul.f32 %v16447_v44, %v6012_v4  ;;  %v6032_v49 = vmul.f32 %v16450_v16, %v6013_v60  ;;  %v6033_v55 = vmul.f32 %v16450_v16, %v6012_v4 }
 0x623   :  { %v6046_v42 = vmul.f32 %v16453_v12, %v6013_v60  ;;  %v6047_v36 = vmul.f32 %v16453_v12, %v6012_v4  ;;  %v6060_v32 = vmul.f32 %v16458_v28, %v6013_v60  ;;  %v6061_v54 = vmul.f32 %v16458_v28, %v6012_v4  ;;  %v16689_v4 = vpop.permute.xlu0 %6155 }
 0x624   :  { %v16672_v6 = vadd.f32 %v6018_v50, %v16560_v63  ;;  %v16675_v18 = vadd.f32 %v6019_v19, %v16562_v34  ;;  %v16677_v40 = vadd.f32 %v6032_v49, %v5964_v51  ;;  %v16679_v48 = vadd.f32 %v6033_v55, %v5965_v1  ;;  %18210 = vst [vmem:[#allocation36_spill] sm:$0xff] %v16689_v4  ;;  %v16723_v55 = vpop.permute.xlu1 %6147 }
 0x625   :  { %v16681_v38 = vadd.f32 %v6046_v42, %v5978_v58  ;;  %v16683_v22 = vadd.f32 %v6047_v36, %v5979_v20  ;;  %v16685_v23 = vadd.f32 %v6060_v32, %v5992_v30  ;;  %v16687_v60 = vadd.f32 %v6061_v54, %v5993_v52 }
 0x626   :  { %v6011_v63 = vsel %vm165_vm1, %v18209_v57, %v16455_v8  ;;  %v16696_v34 = vstv %s16633_s10  ;;  %v16699_v51 = vstv %s16639_s11  ;;  %v16702_v1 = vstv %s16641_s12 }
 0x627   :  { %v6020_v20 = vmul.f32 %v16447_v44, %v6011_v63  ;;  %v6034_v58 = vmul.f32 %v16450_v16, %v6011_v63  ;;  %v6048_v30 = vmul.f32 %v16453_v12, %v6011_v63  ;;  %v6062_v52 = vmul.f32 %v16458_v28, %v6011_v63 }
 0x628   :  { %v16709_v50 = vstv %s16653_s30  ;;  %v6162_v57 = vsel %vm315_vm3, %v16689_v4, %v16589_v35  ;;  %v6009_v19 = vsel %vm165_vm1, %v16504_v15, %v16376_v37  ;;  %v6010_v49 = vsel %vm165_vm1, %v16455_v8, %v16504_v15 }
 0x629   :  { %18211 = vst [vmem:[#allocation55_spill] sm:$0xff] %v16709_v50  ;;  %v5995_v42 = vadd.f32 %v5989_v11, %v16552_v0  ;;  %v5996_v36 = vadd.f32 %v5990_v61, %v16555_v14  ;;  %v6026_v32 = vadd.f32 %v6020_v20, %v16594_v5  ;;  %v6040_v54 = vadd.f32 %v6034_v58, %v16597_v46 }
 0x62a   :  { %v6165_v63 = vmul.f32 %v16696_v34, %v6162_v57  ;;  %v6179_v4 = vmul.f32 %v16699_v51, %v6162_v57  ;;  %v6193_v37 = vmul.f32 %v16702_v1, %v6162_v57  ;;  %v6207_v35 = vmul.f32 %v16709_v50, %v6162_v57 }
 0x62b   :  { %v6021_v8 = vmul.f32 %v16447_v44, %v6010_v49  ;;  %v6022_v15 = vmul.f32 %v16447_v44, %v6009_v19  ;;  %v6035_v0 = vmul.f32 %v16450_v16, %v6010_v49  ;;  %v6036_v14 = vmul.f32 %v16450_v16, %v6009_v19 }
 0x62c   :  { %v6054_v5 = vadd.f32 %v6048_v30, %v16604_v9  ;;  %v6068_v46 = vadd.f32 %v6062_v52, %v16621_v31  ;;  %v16740_v11 = vadd.f32 %v6165_v63, %v16624_v21  ;;  %v16743_v61 = vadd.f32 %v6179_v4, %v16627_v39  ;;  %v16753_v30 = vpop.permute.xlu1 %6151 }
 0x62d   :  { %v16745_v20 = vadd.f32 %v6193_v37, %v6125_v47  ;;  %v16747_v58 = vadd.f32 %v6207_v35, %v6139_v56  ;;  %v6027_v57 = vadd.f32 %v6021_v8, %v5953_v41  ;;  %v6028_v44 = vadd.f32 %v6022_v15, %v5954_v33  ;;  %v16790_v15 = vpop.permute.xlu0 %6379 }
 0x62e   :  { %v6049_v50 = vmul.f32 %v16453_v12, %v6010_v49  ;;  %v6050_v16 = vmul.f32 %v16453_v12, %v6009_v19  ;;  %v6063_v9 = vmul.f32 %v16458_v28, %v6010_v49  ;;  %v6064_v31 = vmul.f32 %v16458_v28, %v6009_v19 }
 0x62f   :  { %v6041_v21 = vadd.f32 %v6035_v0, %v5967_v3  ;;  %v6042_v52 = vadd.f32 %v6036_v14, %v5968_v2  ;;  %v6086_v35 = vsel %vm240_vm2, %v16566_v45, %v16482_v26  ;;  %v6087_v39 = vsel %vm240_vm2, %v16421_v24, %v16566_v45 }
 0x630   :  { %v6055_v12 = vadd.f32 %v6049_v50, %v16658_v25  ;;  %v6056_v47 = vadd.f32 %v6050_v16, %v5982_v62  ;;  %v6085_v28 = vsel %vm240_vm2, %v16482_v26, %v16618_v7  ;;  %v6083_v56 = vsel %vm240_vm2, %v16665_v10, %v16545_v43 }
 0x631   :  { %v6092_v41 = vmul.f32 %v16543_v53, %v6087_v39  ;;  %v6093_v33 = vmul.f32 %v16543_v53, %v6086_v35  ;;  %v6106_v3 = vmul.f32 %v16577_v59, %v6087_v39  ;;  %v6107_v24 = vmul.f32 %v16577_v59, %v6086_v35 }
 0x632   :  { %v6069_v45 = vadd.f32 %v6063_v9, %v5995_v42  ;;  %v6070_v2 = vadd.f32 %v6064_v31, %v5996_v36  ;;  %v6120_v25 = vmul.f32 %v16580_v17, %v6087_v39  ;;  %v6121_v62 = vmul.f32 %v16580_v17, %v6086_v35  ;;  %v6154_v36 = vpop.permute.xlu1 %6153 }
 0x633   :  { %v6098_v26 = vadd.f32 %v6092_v41, %v16672_v6  ;;  %v6099_v4 = vadd.f32 %v6093_v33, %v16675_v18  ;;  %v6134_v43 = vmul.f32 %v16583_v13, %v6087_v39  ;;  %v6135_v50 = vmul.f32 %v16583_v13, %v6086_v35 }
 0x634   :  { %v6112_v19 = vadd.f32 %v6106_v3, %v16677_v40  ;;  %v6113_v49 = vadd.f32 %v6107_v24, %v16679_v48  ;;  %v6126_v63 = vadd.f32 %v6120_v25, %v16681_v38  ;;  %v6127_v42 = vadd.f32 %v6121_v62, %v16683_v22  ;;  %v18213_v62 = vld [vmem:[#allocation55_spill] sm:$0xff] }
 0x635   :  { %v6094_v37 = vmul.f32 %v16543_v53, %v6085_v28  ;;  %v6108_v8 = vmul.f32 %v16577_v59, %v6085_v28  ;;  %v6122_v6 = vmul.f32 %v16580_v17, %v6085_v28  ;;  %v6136_v18 = vmul.f32 %v16583_v13, %v6085_v28 }
 0x636   :  { %v6084_v40 = vsel %vm240_vm2, %v16618_v7, %v16665_v10  ;;  %v6096_v48 = vmul.f32 %v16543_v53, %v6083_v56  ;;  %v6110_v38 = vmul.f32 %v16577_v59, %v6083_v56  ;;  %v6124_v22 = vmul.f32 %v16580_v17, %v6083_v56 }
 0x637   :  { %v6140_v0 = vadd.f32 %v6134_v43, %v16685_v23  ;;  %v6141_v14 = vadd.f32 %v6135_v50, %v16687_v60  ;;  %v6100_v16 = vadd.f32 %v6094_v37, %v6026_v32  ;;  %v6114_v9 = vadd.f32 %v6108_v8, %v6040_v54  ;;  %v18212_v60 = vld [vmem:[#allocation67_spill] sm:$0xff] }
 0x638   :  { %v6128_v31 = vadd.f32 %v6122_v6, %v6054_v5  ;;  %v6142_v35 = vadd.f32 %v6136_v18, %v6068_v46  ;;  %v6095_v39 = vmul.f32 %v16543_v53, %v6084_v40  ;;  %v6109_v28 = vmul.f32 %v16577_v59, %v6084_v40  ;;  %v16814_v59 = vpop.permute.xlu1 %6381  ;;  %v18215_v18 = vld [vmem:[#allocation28_spill] sm:$0xff] }
 0x639   :  { %v6102_v41 = vadd.f32 %v6096_v48, %v6028_v44  ;;  %v6123_v7 = vmul.f32 %v16580_v17, %v6084_v40  ;;  %v6137_v10 = vmul.f32 %v16583_v13, %v6084_v40  ;;  %v6138_v33 = vmul.f32 %v16583_v13, %v6083_v56  ;;  %v16817_v13 = vpop.permute.xlu0 %6383  ;;  %v18216_v40 = vld [vmem:[#allocation18_spill] sm:$0xff] }
 0x63a   :  { %v6116_v3 = vadd.f32 %v6110_v38, %v6042_v52  ;;  %v6130_v24 = vadd.f32 %v6124_v22, %v6056_v47  ;;  %v6160_v23 = vsel %vm315_vm3, %v16723_v55, %v16647_v27  ;;  %v6161_v53 = vsel %vm315_vm3, %v18212_v60, %v16723_v55  ;;  %v18218_v22 = vld [vmem:[#allocation20_spill] sm:$0xff] }
 0x63b   :  { %v6101_v32 = vadd.f32 %v6095_v39, %v6027_v57  ;;  %v6115_v17 = vadd.f32 %v6109_v28, %v6041_v21  ;;  %v6129_v54 = vadd.f32 %v6123_v7, %v6055_v12  ;;  %v6166_v5 = vmul.f32 %v16696_v34, %v6161_v53 }
 0x63c   :  { %v6167_v46 = vmul.f32 %v16696_v34, %v6160_v23  ;;  %v6180_v44 = vmul.f32 %v16699_v51, %v6161_v53  ;;  %v6181_v52 = vmul.f32 %v16699_v51, %v6160_v23  ;;  %v6194_v47 = vmul.f32 %v16702_v1, %v6161_v53 }
 0x63d   :  { %v16823_v56 = vadd.f32 %v6137_v10, %v6069_v45  ;;  %v16825_v55 = vadd.f32 %v6138_v33, %v6070_v2  ;;  %v6172_v25 = vadd.f32 %v6166_v5, %v6098_v26  ;;  %v6195_v57 = vmul.f32 %v16702_v1, %v6160_v23  ;;  %v16867_v7 = vpop.permute.xlu0 %6387 }
 0x63e   :  { %v16828_v21 = vadd.f32 %v6167_v46, %v6099_v4  ;;  %v6186_v12 = vadd.f32 %v6180_v44, %v6112_v19  ;;  %v6208_v43 = vmul.f32 %v18213_v62, %v6161_v53  ;;  %v6209_v50 = vmul.f32 %v18213_v62, %v6160_v23 }
 0x63f   :  { %v16832_v37 = vadd.f32 %v6181_v52, %v6113_v49  ;;  %v6200_v8 = vadd.f32 %v6194_v47, %v6126_v63  ;;  %v16834_v6 = vadd.f32 %v6195_v57, %v6127_v42  ;;  %v6159_v45 = vsel %vm315_vm3, %v16647_v27, %v16753_v30  ;;  %v16848_v49 = vpop.permute.xlu1 %6385  ;;  %v18214_v63 = vld [vmem:[#allocation36_spill] sm:$0xff] }
 0x640   :  { %v6168_v2 = vmul.f32 %v16696_v34, %v6159_v45  ;;  %v6182_v26 = vmul.f32 %v16699_v51, %v6159_v45  ;;  %v6196_v4 = vmul.f32 %v16702_v1, %v6159_v45  ;;  %v6210_v19 = vmul.f32 %v18213_v62, %v6159_v45 }
 0x641   :  { %v6157_v42 = vsel %vm315_vm3, %v6154_v36, %v18214_v63  ;;  %v6158_v27 = vsel %vm315_vm3, %v16753_v30, %v6154_v36  ;;  %v18217_v48 = vrot.slane %v18215_v18, %v18216_v40  ;;  %v18219_v39 = vrot.slane %v18215_v18, %v18218_v22 }
 0x642   :  { %v6214_v10 = vadd.f32 %v6208_v43, %v6140_v0  ;;  %v6215_v33 = vadd.f32 %v6209_v50, %v6141_v14  ;;  %v6174_v23 = vadd.f32 %v6168_v2, %v6100_v16  ;;  %v6188_v60 = vadd.f32 %v6182_v26, %v6114_v9  ;;  %v16901_v43 = vpop.permute.xlu0 %6453  ;;  %v18226_v50 = vld [vmem:[#allocation31_spill] sm:$0xff] }
 0x643   :  { %v6253_v38 = vadd.f32 %v18217_v48, %v16740_v11  ;;  %v6254_v28 = vadd.f32 %v18219_v39, %v6172_v25  ;;  %v6169_v30 = vmul.f32 %v16696_v34, %v6158_v27  ;;  %v6170_v36 = vmul.f32 %v16696_v34, %v6157_v42 }
 0x644   :  { %v6183_v11 = vmul.f32 %v16699_v51, %v6158_v27  ;;  %v6184_v53 = vmul.f32 %v16699_v51, %v6157_v42  ;;  %v6202_v5 = vadd.f32 %v6196_v4, %v6128_v31  ;;  %v6216_v46 = vadd.f32 %v6210_v19, %v6142_v35  ;;  %v16885_v35 = vpop.permute.xlu1 %6389 }
 0x645   :  { %v6197_v44 = vmul.f32 %v16702_v1, %v6158_v27  ;;  %v6198_v52 = vmul.f32 %v16702_v1, %v6157_v42  ;;  %v6175_v47 = vadd.f32 %v6169_v30, %v6101_v32  ;;  %v6176_v0 = vadd.f32 %v6170_v36, %v6102_v41  ;;  %v18220_v1 = vld [vmem:[#allocation29_spill] sm:$0xff] }
 0x646   :  { %v6211_v14 = vmul.f32 %v18213_v62, %v6158_v27  ;;  %v6212_v16 = vmul.f32 %v18213_v62, %v6157_v42  ;;  %v16877_v34 = vadd.f32 %v6183_v11, %v6115_v17  ;;  %v16879_v9 = vadd.f32 %v6184_v53, %v6116_v3  ;;  %v18223_v17 = vld [vmem:[#allocation30_spill] sm:$0xff] }
 0x647   :  { %v16881_v51 = vadd.f32 %v6197_v44, %v6129_v54  ;;  %v16883_v31 = vadd.f32 %v6198_v52, %v6130_v24  ;;  %v18221_v41 = vrot.slane %v18220_v1, %v18216_v40  ;;  %v18222_v25 = vrot.slane %v18220_v1, %v18218_v22 }
 0x648   :  { %v18224_v3 = vrot.slane %v18223_v17, %v18216_v40  ;;  %v18225_v24 = vrot.slane %v18223_v17, %v18218_v22  ;;  %v18227_v45 = vrot.slane %v18226_v50, %v18216_v40  ;;  %v18228_v2 = vrot.slane %v18226_v50, %v18218_v22  ;;  %v16944_v53 = vpop.permute.xlu1 %6455 }
 0x649   :  { %v6293_v32 = vadd.f32 %v18221_v41, %v16743_v61  ;;  %v6294_v57 = vadd.f32 %v18222_v25, %v6186_v12  ;;  %v16911_v26 = vstv %s16844_s26  ;;  %v16914_v4 = vstv %s16846_s3  ;;  %v18231_v41 = vld [vmem:[#allocation19_spill] sm:$0xff] }
 0x64a   :  { %v6333_v62 = vadd.f32 %v18224_v3, %v16745_v20  ;;  %v6334_v54 = vadd.f32 %v18225_v24, %v6200_v8  ;;  %v6373_v61 = vadd.f32 %v18227_v45, %v16747_v58  ;;  %v6374_v12 = vadd.f32 %v18228_v2, %v6214_v10 }
 0x64b   :  { %v16917_v20 = vstv %s16863_s4  ;;  %v16920_v19 = vstv %s16865_s14  ;;  %v6394_v8 = vsel %vm550_vm4, %v16814_v59, %v16817_v13  ;;  %v6395_v58 = vsel %vm550_vm4, %v16790_v15, %v16814_v59 }
 0x64c   :  { %v6399_v63 = vmul.f32 %v16911_v26, %v6395_v58  ;;  %v6400_v42 = vmul.f32 %v16911_v26, %v6394_v8  ;;  %v6413_v27 = vmul.f32 %v16914_v4, %v6395_v58  ;;  %v6414_v40 = vmul.f32 %v16914_v4, %v6394_v8 }
 0x64d   :  { %v6217_v48 = vadd.f32 %v6211_v14, %v16823_v56  ;;  %v6218_v22 = vadd.f32 %v6212_v16, %v16825_v55  ;;  %v6427_v39 = vmul.f32 %v16917_v20, %v6395_v58  ;;  %v6428_v10 = vmul.f32 %v16917_v20, %v6394_v8  ;;  %v16954_v14 = vpop.permute.xlu0 %6457 }
 0x64e   :  { %v16938_v30 = vadd.f32 %v6399_v63, %v6253_v38  ;;  %v16940_v36 = vadd.f32 %v6400_v42, %v6254_v28  ;;  %v6441_v59 = vmul.f32 %v16920_v19, %v6395_v58  ;;  %v6442_v11 = vmul.f32 %v16920_v19, %v6394_v8  ;;  %v18229_v38 = vld [vmem:[#allocation17_spill] sm:$0xff] }
 0x64f   :  { %v16946_v44 = vadd.f32 %v6413_v27, %v6293_v32  ;;  %v16948_v52 = vadd.f32 %v6414_v40, %v6294_v57  ;;  %v16950_v56 = vadd.f32 %v6427_v39, %v6333_v62  ;;  %v16952_v55 = vadd.f32 %v6428_v10, %v6334_v54 }
 0x650   :  { %v18230_v28 = vrot.slane %v18215_v18, %v18229_v38  ;;  %v18232_v25 = vrot.slane %v18215_v18, %v18231_v41  ;;  %v18233_v32 = vrot.slane %v18220_v1, %v18229_v38  ;;  %v18234_v62 = vrot.slane %v18220_v1, %v18231_v41 }
 0x651   :  { %v18235_v54 = vrot.slane %v18223_v17, %v18229_v38 }
 0x652   :  { %v6255_v16 = vadd.f32 %v18230_v28, %v16828_v21  ;;  %v6256_v3 = vadd.f32 %v18232_v25, %v6174_v23  ;;  %v6295_v57 = vadd.f32 %v18233_v32, %v16832_v37  ;;  %v6296_v24 = vadd.f32 %v18234_v62, %v6188_v60 }
 0x653   :  { %v6335_v45 = vadd.f32 %v18235_v54, %v16834_v6  ;;  %v18236_v21 = vrot.slane %v18223_v17, %v18231_v41  ;;  %v18237_v23 = vrot.slane %v18226_v50, %v18229_v38  ;;  %v18238_v37 = vrot.slane %v18226_v50, %v18231_v41 }
 0x654   :  { %v6392_v60 = vsel %vm550_vm4, %v16848_v49, %v16867_v7  ;;  %v6393_v6 = vsel %vm550_vm4, %v16817_v13, %v16848_v49  ;;  %v17001_v28 = vadd.f32 %v6441_v59, %v6373_v61  ;;  %v17003_v41 = vadd.f32 %v6442_v11, %v6374_v12  ;;  %v17019_v61 = vpop.permute.xlu0 %6461 }
 0x655   :  { %v6336_v2 = vadd.f32 %v18236_v21, %v6202_v5  ;;  %v6375_v8 = vadd.f32 %v18237_v23, %v6215_v33  ;;  %v6376_v58 = vadd.f32 %v18238_v37, %v6216_v46  ;;  %v18239_v5 = vld [vmem:[#allocation22_spill] sm:$0xff]  ;;  %v18241_v33 = vld [vmem:[#allocation21_spill] sm:$0xff]  ;;  %v6401_v46 = vmul.f32 %v16911_v26, %v6393_v6 }
 0x656   :  { %v18240_v63 = vrot.slane %v18215_v18, %v18239_v5  ;;  %v18242_v27 = vrot.slane %v18215_v18, %v18241_v33  ;;  %v6402_v39 = vmul.f32 %v16911_v26, %v6392_v60  ;;  %v6415_v10 = vmul.f32 %v16914_v4, %v6393_v6  ;;  %v6460_v18 = vpop.permute.xlu1 %6459 }
 0x657   :  { %v6416_v38 = vmul.f32 %v16914_v4, %v6392_v60  ;;  %v6429_v13 = vmul.f32 %v16917_v20, %v6393_v6  ;;  %v6430_v49 = vmul.f32 %v16917_v20, %v6392_v60  ;;  %v6443_v25 = vmul.f32 %v16920_v19, %v6393_v6 }
 0x658   :  { %v6257_v42 = vadd.f32 %v18240_v63, %v6175_v47  ;;  %v6258_v40 = vadd.f32 %v18242_v27, %v6176_v0  ;;  %v17009_v47 = vadd.f32 %v6401_v46, %v6255_v16  ;;  %v17011_v0 = vadd.f32 %v6402_v39, %v6256_v3 }
 0x659   :  { %v6444_v32 = vmul.f32 %v16920_v19, %v6392_v60  ;;  %v17021_v12 = vadd.f32 %v6415_v10, %v6295_v57  ;;  %v17023_v59 = vadd.f32 %v6416_v38, %v6296_v24  ;;  %v17025_v11 = vadd.f32 %v6429_v13, %v6335_v45 }
 0x65a   :  { %v17027_v16 = vadd.f32 %v6430_v49, %v6336_v2  ;;  %v18243_v3 = vrot.slane %v18220_v1, %v18239_v5  ;;  %v18244_v54 = vrot.slane %v18220_v1, %v18241_v33  ;;  %v18245_v57 = vrot.slane %v18223_v17, %v18239_v5 }
 0x65b   :  { %v18246_v45 = vrot.slane %v18223_v17, %v18241_v33  ;;  %v18247_v23 = vrot.slane %v18226_v50, %v18239_v5  ;;  %v6450_v5 = vadd.f32 %v6444_v32, %v6376_v58  ;;  %v6486_v10 = vstv %s17015_s9 }
 0x65c   :  { %v6297_v62 = vadd.f32 %v18243_v3, %v16877_v34  ;;  %v6298_v21 = vadd.f32 %v18244_v54, %v16879_v9  ;;  %v6337_v24 = vadd.f32 %v18245_v57, %v16881_v51  ;;  %v18248_v34 = vrot.slane %v18226_v50, %v18241_v33 }
 0x65d   :  { %v6338_v2 = vadd.f32 %v18246_v45, %v16883_v31  ;;  %v6377_v37 = vadd.f32 %v18247_v23, %v6217_v48  ;;  %v6391_v9 = vsel %vm550_vm4, %v16867_v7, %v16885_v35  ;;  %v6396_v51 = vsel %vm550_vm4, %v16885_v35, %v16790_v15  ;;  %v6464_v15 = vpop.permute.xlu1 %6463 }
 0x65e   :  { %v6378_v60 = vadd.f32 %v18248_v34, %v6218_v22  ;;  %v6403_v31 = vmul.f32 %v16911_v26, %v6391_v9  ;;  %v6404_v1 = vmul.f32 %v16911_v26, %v6396_v51  ;;  %v6417_v17 = vmul.f32 %v16914_v4, %v6391_v9 }
 0x65f   :  { %v6418_v48 = vmul.f32 %v16914_v4, %v6396_v51  ;;  %v6431_v50 = vmul.f32 %v16917_v20, %v6391_v9  ;;  %v6432_v22 = vmul.f32 %v16917_v20, %v6396_v51  ;;  %v6445_v7 = vmul.f32 %v16920_v19, %v6391_v9  ;;  %v17073_v4 = vpop.permute.xlu0 %6527 }
 0x660   :  { %v6446_v6 = vmul.f32 %v16920_v19, %v6396_v51  ;;  %v6449_v35 = vadd.f32 %v6443_v25, %v6375_v8  ;;  %v17069_v26 = vadd.f32 %v6403_v31, %v6257_v42  ;;  %v17071_v63 = vadd.f32 %v6404_v1, %v6258_v40 }
 0x661   :  { %v17075_v33 = vadd.f32 %v6417_v17, %v6297_v62  ;;  %v17077_v27 = vadd.f32 %v6418_v48, %v6298_v21  ;;  %v17079_v20 = vadd.f32 %v6431_v50, %v6337_v24  ;;  %v17081_v46 = vadd.f32 %v6432_v22, %v6338_v2  ;;  %v6530_v57 = vpop.permute.xlu1 %6529 }
 0x662   :  { %v17083_v39 = vadd.f32 %v6445_v7, %v6377_v37  ;;  %v6472_v19 = vstv %s17007_s15  ;;  %v6500_v8 = vstv %s17017_s2  ;;  %v17088_v58 = vadd.f32 %v6446_v6, %v6378_v60 }
 0x663   :  { %v6514_v42 = vstv %s17029_s24  ;;  %v6468_v40 = vsel %vm625_vm5, %v16944_v53, %v16954_v14  ;;  %v6469_v38 = vsel %vm625_vm5, %v16901_v43, %v16944_v53  ;;  %v6466_v54 = vsel %vm625_vm5, %v6460_v18, %v17019_v61  ;;  %v17115_v23 = vpop.permute.xlu0 %6531 }
 0x664   :  { %v6473_v13 = vmul.f32 %v6472_v19, %v6469_v38  ;;  %v6474_v49 = vmul.f32 %v6472_v19, %v6468_v40  ;;  %v6487_v25 = vmul.f32 %v6486_v10, %v6469_v38  ;;  %v6488_v32 = vmul.f32 %v6486_v10, %v6468_v40 }
 0x665   :  { %v6501_v3 = vmul.f32 %v6500_v8, %v6469_v38  ;;  %v6502_v62 = vmul.f32 %v6500_v8, %v6468_v40  ;;  %v6467_v21 = vsel %vm625_vm5, %v16954_v14, %v6460_v18  ;;  %v6515_v45 = vmul.f32 %v6514_v42, %v6469_v38  ;;  %v6534_v22 = vpop.permute.xlu1 %6533 }
 0x666   :  { %v17106_v24 = vadd.f32 %v6473_v13, %v16938_v30  ;;  %v17109_v53 = vadd.f32 %v6474_v49, %v16940_v36  ;;  %v6516_v2 = vmul.f32 %v6514_v42, %v6468_v40  ;;  %v6493_v37 = vadd.f32 %v6487_v25, %v16946_v44 }
 0x667   :  { %v6494_v34 = vadd.f32 %v6488_v32, %v16948_v52  ;;  %v6507_v14 = vadd.f32 %v6501_v3, %v16950_v56  ;;  %v6508_v30 = vadd.f32 %v6502_v62, %v16952_v55  ;;  %v6475_v18 = vmul.f32 %v6472_v19, %v6467_v21 }
 0x668   :  { %v6476_v60 = vmul.f32 %v6472_v19, %v6466_v54  ;;  %v6489_v36 = vmul.f32 %v6486_v10, %v6467_v21  ;;  %v6490_v9 = vmul.f32 %v6486_v10, %v6466_v54  ;;  %v6503_v51 = vmul.f32 %v6500_v8, %v6467_v21 }
 0x669   :  { %v6504_v31 = vmul.f32 %v6500_v8, %v6466_v54  ;;  %v6517_v1 = vmul.f32 %v6514_v42, %v6467_v21  ;;  %v6518_v17 = vmul.f32 %v6514_v42, %v6466_v54  ;;  %v17126_v44 = vadd.f32 %v6515_v45, %v17001_v28 }
 0x66a   :  { %v17129_v52 = vadd.f32 %v6516_v2, %v17003_v41  ;;  %v17132_v56 = vadd.f32 %v6475_v18, %v17009_v47  ;;  %v17135_v55 = vadd.f32 %v6476_v60, %v17011_v0  ;;  %v17138_v48 = vadd.f32 %v6489_v36, %v17021_v12 }
 0x66b   :  { %v17141_v50 = vadd.f32 %v6490_v9, %v17023_v59  ;;  %v17144_v28 = vadd.f32 %v6503_v51, %v17025_v11  ;;  %v17147_v41 = vadd.f32 %v6504_v31, %v17027_v16  ;;  %v17149_v47 = vadd.f32 %v6517_v1, %v6449_v35  ;;  %v6536_v59 = vpop.permute.xlu0 %6535 }
 0x66c   :  { %v17151_v7 = vadd.f32 %v6518_v17, %v6450_v5  ;;  %v6465_v0 = vsel %vm625_vm5, %v17019_v61, %v6464_v15  ;;  %v6470_v12 = vsel %vm625_vm5, %v6464_v15, %v16901_v43  ;;  %v6546_v13 = vstv %s17111_s1 }
 0x66d   :  { %v6477_v6 = vmul.f32 %v6472_v19, %v6465_v0  ;;  %v6478_v11 = vmul.f32 %v6472_v19, %v6470_v12  ;;  %v6491_v16 = vmul.f32 %v6486_v10, %v6465_v0  ;;  %v6492_v40 = vmul.f32 %v6486_v10, %v6470_v12 }
 0x66e   :  { %v6505_v38 = vmul.f32 %v6500_v8, %v6465_v0  ;;  %v6506_v35 = vmul.f32 %v6500_v8, %v6470_v12  ;;  %v6560_v5 = vstv %s17113_s18  ;;  %v6519_v25 = vmul.f32 %v6514_v42, %v6465_v0 }
 0x66f   :  { %v17162_v49 = vadd.f32 %v6477_v6, %v17069_v26  ;;  %v17165_v61 = vadd.f32 %v6478_v11, %v17071_v63  ;;  %v6520_v32 = vmul.f32 %v6514_v42, %v6470_v12  ;;  %v17168_v43 = vadd.f32 %v6491_v16, %v17075_v33  ;;  %v6538_v42 = vpop.permute.xlu1 %6537 }
 0x670   :  { %v17171_v15 = vadd.f32 %v6492_v40, %v17077_v27  ;;  %v17174_v19 = vadd.f32 %v6505_v38, %v17079_v20  ;;  %v17177_v10 = vadd.f32 %v6506_v35, %v17081_v46  ;;  %v6574_v8 = vstv %s17121_s17  ;;  %v17187_v20 = vpop.permute.xlu0 %6601 }
 0x671   :  { %v6588_v26 = vstv %s17123_s28  ;;  %v6542_v63 = vsel %vm700_vm6, %v6530_v57, %v17115_v23  ;;  %v6543_v33 = vsel %vm700_vm6, %v17073_v4, %v6530_v57  ;;  %v17190_v46 = vadd.f32 %v6519_v25, %v17083_v39 }
 0x672   :  { %v6547_v3 = vmul.f32 %v6546_v13, %v6543_v33  ;;  %v6548_v27 = vmul.f32 %v6546_v13, %v6542_v63  ;;  %v6561_v62 = vmul.f32 %v6560_v5, %v6543_v33  ;;  %v6562_v54 = vmul.f32 %v6560_v5, %v6542_v63 }
 0x673   :  { %v17193_v21 = vadd.f32 %v6520_v32, %v17088_v58  ;;  %v6575_v45 = vmul.f32 %v6574_v8, %v6543_v33  ;;  %v6576_v2 = vmul.f32 %v6574_v8, %v6542_v63  ;;  %v6589_v60 = vmul.f32 %v6588_v26, %v6543_v33 }
 0x674   :  { %v17196_v18 = vadd.f32 %v6547_v3, %v17106_v24  ;;  %v17199_v57 = vadd.f32 %v6548_v27, %v17109_v53  ;;  %v6590_v36 = vmul.f32 %v6588_v26, %v6542_v63  ;;  %v17201_v9 = vadd.f32 %v6561_v62, %v6493_v37 }
 0x675   :  { %v17203_v51 = vadd.f32 %v6562_v54, %v6494_v34  ;;  %v17205_v31 = vadd.f32 %v6575_v45, %v6507_v14  ;;  %v17207_v39 = vadd.f32 %v6576_v2, %v6508_v30  ;;  %v6540_v58 = vsel %vm700_vm6, %v6534_v22, %v6536_v59 }
 0x676   :  { %v6541_v24 = vsel %vm700_vm6, %v17115_v23, %v6534_v22  ;;  %v6539_v53 = vsel %vm700_vm6, %v6536_v59, %v6538_v42  ;;  %v6544_v37 = vsel %vm700_vm6, %v6538_v42, %v17073_v4  ;;  %v6550_v14 = vmul.f32 %v6546_v13, %v6540_v58  ;;  %v6604_v23 = vpop.permute.xlu1 %6603  ;;  %v6606_v59 = vpop.permute.xlu0 %6605 }
 0x677   :  { %v6549_v34 = vmul.f32 %v6546_v13, %v6541_v24  ;;  %v6563_v30 = vmul.f32 %v6560_v5, %v6541_v24  ;;  %v6564_v1 = vmul.f32 %v6560_v5, %v6540_v58  ;;  %v6577_v17 = vmul.f32 %v6574_v8, %v6541_v24 }
 0x678   :  { %v6578_v22 = vmul.f32 %v6574_v8, %v6540_v58  ;;  %v6591_v0 = vmul.f32 %v6588_v26, %v6541_v24  ;;  %v6592_v12 = vmul.f32 %v6588_v26, %v6540_v58  ;;  %v6595_v4 = vadd.f32 %v6589_v60, %v17126_v44 }
 0x679   :  { %v6596_v6 = vadd.f32 %v6590_v36, %v17129_v52  ;;  %v6555_v11 = vadd.f32 %v6549_v34, %v17132_v56  ;;  %v6556_v16 = vadd.f32 %v6550_v14, %v17135_v55  ;;  %v6569_v40 = vadd.f32 %v6563_v30, %v17138_v48 }
 0x67a   :  { %v6570_v38 = vadd.f32 %v6564_v1, %v17141_v50  ;;  %v17234_v35 = vadd.f32 %v6577_v17, %v17144_v28  ;;  %v17237_v25 = vadd.f32 %v6578_v22, %v17147_v41  ;;  %v6551_v32 = vmul.f32 %v6546_v13, %v6539_v53 }
 0x67b   :  { %v6552_v63 = vmul.f32 %v6546_v13, %v6544_v37  ;;  %v6565_v33 = vmul.f32 %v6560_v5, %v6539_v53  ;;  %v6566_v44 = vmul.f32 %v6560_v5, %v6544_v37  ;;  %v17240_v52 = vadd.f32 %v6591_v0, %v17149_v47  ;;  %v6608_v5 = vpop.permute.xlu1 %6607 }
 0x67c   :  { %v17243_v56 = vadd.f32 %v6592_v12, %v17151_v7  ;;  %v6579_v55 = vmul.f32 %v6574_v8, %v6539_v53  ;;  %v6580_v48 = vmul.f32 %v6574_v8, %v6544_v37  ;;  %v17246_v50 = vadd.f32 %v6551_v32, %v17162_v49  ;;  %v6610_v8 = vpop.permute.xlu0 %6609 }
 0x67d   :  { %v17249_v28 = vadd.f32 %v6552_v63, %v17165_v61  ;;  %v17251_v41 = vmul.f32 %v6588_v26, %v6539_v53  ;;  %v17253_v13 = vmul.f32 %v6588_v26, %v6544_v37  ;;  %v17256_v47 = vadd.f32 %v6565_v33, %v17168_v43 }
 0x67e   :  { %v17259_v7 = vadd.f32 %v6566_v44, %v17171_v15  ;;  %v17262_v42 = vadd.f32 %v6579_v55, %v17174_v19  ;;  %v17265_v49 = vadd.f32 %v6580_v48, %v17177_v10  ;;  %v6620_v61 = vstv %s17219_s27  ;;  %v18249_v44 = vld [vmem:[#allocation39_spill] sm:$0xff] }
 0x67f   :  { %v6634_v3 = vstv %s17221_s19  ;;  %v17270_v27 = vstv %s17223_s20  ;;  %v17273_v26 = vstv %s17225_s21  ;;  %v6616_v43 = vsel %vm775_vm7, %v6604_v23, %v6606_v59  ;;  %v6612_v48 = vpop.permute.xlu1 %6611 }
 0x680   :  { %v6617_v15 = vsel %vm775_vm7, %v17187_v20, %v6604_v23  ;;  %v6614_v19 = vsel %vm775_vm7, %v6608_v5, %v6610_v8  ;;  %v6615_v10 = vsel %vm775_vm7, %v6606_v59, %v6608_v5  ;;  %v6622_v54 = vmul.f32 %v6620_v61, %v6616_v43 }
 0x681   :  { %v6621_v62 = vmul.f32 %v6620_v61, %v6617_v15  ;;  %v6635_v45 = vmul.f32 %v6634_v3, %v6617_v15  ;;  %v6636_v2 = vmul.f32 %v6634_v3, %v6616_v43  ;;  %v6649_v60 = vmul.f32 %v17270_v27, %v6617_v15 }
 0x682   :  { %v6650_v36 = vmul.f32 %v17270_v27, %v6616_v43  ;;  %v6663_v58 = vmul.f32 %v17273_v26, %v6617_v15  ;;  %v6664_v24 = vmul.f32 %v17273_v26, %v6616_v43  ;;  %v6628_v37 = vadd.f32 %v6622_v54, %v17199_v57 }
 0x683   :  { %v6627_v53 = vadd.f32 %v6621_v62, %v17196_v18  ;;  %v6641_v34 = vadd.f32 %v6635_v45, %v17201_v9  ;;  %v6642_v14 = vadd.f32 %v6636_v2, %v17203_v51  ;;  %v6655_v30 = vadd.f32 %v6649_v60, %v17205_v31 }
 0x684   :  { %v6656_v1 = vadd.f32 %v6650_v36, %v17207_v39  ;;  %v6669_v23 = vadd.f32 %v6663_v58, %v6595_v4  ;;  %v6670_v17 = vadd.f32 %v6664_v24, %v6596_v6  ;;  %v6623_v12 = vmul.f32 %v6620_v61, %v6615_v10 }
 0x685   :  { %v6681_v22 = vcombine.low %v6627_v53, %v6628_v37  ;;  %v6729_v0 = vcombine.low %v6641_v34, %v6642_v14  ;;  %v6624_v59 = vmul.f32 %v6620_v61, %v6614_v19  ;;  %v6637_v33 = vmul.f32 %v6634_v3, %v6615_v10 }
 0x686   :  { %v6777_v32 = vcombine.low %v6655_v30, %v6656_v1  ;;  %v6825_v63 = vcombine.low %v6669_v23, %v6670_v17  ;;  %v6638_v18 = vmul.f32 %v6634_v3, %v6614_v19  ;;  %v6629_v55 = vadd.f32 %v6623_v12, %v6555_v11 }
 0x687   :  { %v6690_v57 = vrot.slane %v6681_v22, %v18249_v44  ;;  %v6738_v9 = vrot.slane %v6729_v0, %v18249_v44  ;;  %v6630_v51 = vadd.f32 %v6624_v59, %v6556_v16  ;;  %v6643_v4 = vadd.f32 %v6637_v33, %v6569_v40 }
 0x688   :  { %v6786_v31 = vrot.slane %v6777_v32, %v18249_v44  ;;  %v6834_v39 = vrot.slane %v6825_v63, %v18249_v44  ;;  %v6644_v6 = vadd.f32 %v6638_v18, %v6570_v38  ;;  %v6651_v5 = vmul.f32 %v17270_v27, %v6615_v10 }
 0x689   :  { %v6652_v43 = vmul.f32 %v17270_v27, %v6614_v19  ;;  %v6665_v15 = vmul.f32 %v17273_v26, %v6615_v10  ;;  %v6666_v62 = vmul.f32 %v17273_v26, %v6614_v19  ;;  %v6682_v54 = vcombine.low %v6629_v55, %v6630_v51 }
 0x68a   :  { %v6730_v45 = vcombine.low %v6643_v4, %v6644_v6  ;;  %v6613_v11 = vsel %vm775_vm7, %v6610_v8, %v6612_v48  ;;  %v6618_v16 = vsel %vm775_vm7, %v6612_v48, %v17187_v20  ;;  %v6657_v40 = vadd.f32 %v6651_v5, %v17234_v35  ;;  %v6931_v48 = vld [vmem:[#allocation4] sm:$0xff] }
 0x68b   :  { %v6658_v38 = vadd.f32 %v6652_v43, %v17237_v25  ;;  %v6671_v2 = vadd.f32 %v6665_v15, %v17240_v52  ;;  %v6672_v60 = vadd.f32 %v6666_v62, %v17243_v56  ;;  %v6697_v10 = vrot.slane %v6682_v54, %v18249_v44  ;;  %v18251_v43 = vld [vmem:[#allocation25_spill] sm:$0xff] }
 0x68c   :  { %v6745_v19 = vrot.slane %v6730_v45, %v18249_v44  ;;  %v6625_v36 = vmul.f32 %v6620_v61, %v6613_v11  ;;  %v6626_v58 = vmul.f32 %v6620_v61, %v6618_v16  ;;  %v6639_v53 = vmul.f32 %v6634_v3, %v6613_v11  ;;  %v18253_v54 = vld [vmem:[#allocation41_spill] sm:$0xff] }
 0x68d   :  { %v6778_v24 = vcombine.low %v6657_v40, %v6658_v38  ;;  %v6826_v8 = vcombine.low %v6671_v2, %v6672_v60  ;;  %v6640_v37 = vmul.f32 %v6634_v3, %v6618_v16  ;;  %v6705_v29 = vcombine.low %v6690_v57, %v6697_v10 }
 0x68e   :  { %v6753_v20 = vcombine.low %v6738_v9, %v6745_v19  ;;  %v6631_v35 = vadd.f32 %v6625_v36, %v17246_v50  ;;  %v6632_v25 = vadd.f32 %v6626_v58, %v17249_v28  ;;  %v6645_v34 = vadd.f32 %v6639_v53, %v17256_v47 }
 0x68f   :  { %v6793_v52 = vrot.slane %v6778_v24, %v18249_v44  ;;  %v6841_v56 = vrot.slane %v6826_v8, %v18249_v44  ;;  %v6646_v14 = vadd.f32 %v6640_v37, %v17259_v7  ;;  %v6599_v61 = vadd.f32 %v17251_v41, %v17190_v46 }
 0x690   :  { %v6600_v3 = vadd.f32 %v17253_v13, %v17193_v21  ;;  %v6653_v30 = vmul.f32 %v17270_v27, %v6613_v11  ;;  %v6654_v50 = vmul.f32 %v17270_v27, %v6618_v16  ;;  %v6667_v23 = vmul.f32 %v17273_v26, %v6613_v11 }
 0x691   :  { %v6801_v1 = vcombine.low %v6786_v31, %v6793_v52  ;;  %v6849_v28 = vcombine.low %v6834_v39, %v6841_v56  ;;  %v6668_v17 = vmul.f32 %v17273_v26, %v6618_v16  ;;  %v6683_v22 = vcombine.low %v6631_v35, %v6632_v25 }
 0x692   :  { %v6659_v47 = vadd.f32 %v6653_v30, %v17262_v42  ;;  %v6660_v7 = vadd.f32 %v6654_v50, %v17265_v49  ;;  %v6731_v0 = vcombine.low %v6645_v34, %v6646_v14  ;;  %v6673_v46 = vadd.f32 %v6667_v23, %v6599_v61 }
 0x693   :  { %v6674_v41 = vadd.f32 %v6668_v17, %v6600_v3  ;;  %v6704_v21 = vrot.slane %v6683_v22, %v18249_v44  ;;  %v6712_v27 = vrot.slane %v6705_v29, %v18249_v44  ;;  %v6760_v32 = vrot.slane %v6753_v20, %v18249_v44 }
 0x694   :  { %v6752_v13 = vrot.slane %v6731_v0, %v18249_v44  ;;  %v6779_v12 = vcombine.low %v6659_v47, %v6660_v7  ;;  %v6808_v33 = vrot.slane %v6801_v1, %v18249_v44  ;;  %v6856_v55 = vrot.slane %v6849_v28, %v18249_v44 }
 0x695   :  { %v6827_v59 = vcombine.low %v6673_v46, %v6674_v41  ;;  %v6719_v26 = vrot.slane %v6704_v21, %v18249_v44 }
 0x696   :  { %v6767_v42 = vrot.slane %v6752_v13, %v18249_v44  ;;  %v6800_v49 = vrot.slane %v6779_v12, %v18249_v44  ;;  %v6924_v12 = vld [vmem:[%s18254_s13] sm:$0xf] }
 0x697   :  { %v6848_v63 = vrot.slane %v6827_v59, %v18249_v44  ;;  %v6720_v18 = vcombine.low %v6712_v27, %v6719_v26 }
 0x698   :  { %v6768_v57 = vcombine.low %v6760_v32, %v6767_v42  ;;  %v6815_v9 = vrot.slane %v6800_v49, %v18249_v44  ;;  %v6928_v32 = vld [vmem:[%s18255_s8] sm:$0xf] }
 0x699   :  { %v6863_v51 = vrot.slane %v6848_v63, %v18249_v44  ;;  %6722 = vst.msk [vmem:[#allocation2] ss:$4 sm:$0x3f] %vm12213_vm8, %v6720_v18  ;;  %v18252_v44 = vld [vmem:[#allocation40_spill] sm:$0xff]  ;;  %v18256_v63 = vld [vmem:[#allocation42_spill] sm:$0xff] }
 0x69a   :  { %6770 = vst.msk [vmem:[#allocation2 + $0x1] ss:$4 sm:$0x3f] %vm12213_vm8, %v6768_v57  ;;  %v6816_v31 = vcombine.low %v6808_v33, %v6815_v9 }
 0x69b   :  { %v6864_v39 = vcombine.low %v6856_v55, %v6863_v51 }
 0x69c   :  { %6818 = vst.msk [vmem:[#allocation2 + $0x2] ss:$4 sm:$0x3f] %vm12213_vm8, %v6816_v31  ;;  %v6932_v31 = vld [vmem:[#allocation4 + $0x8] sm:$0xff] }
 0x69d   :  { %6866 = vst.msk [vmem:[#allocation2 + $0x3] ss:$4 sm:$0x3f] %vm12213_vm8, %v6864_v39  ;;  %v6933_v39 = vld [vmem:[#allocation4 + $0x10] sm:$0xff] }
 0x6a4   :  { %v6867_v4 = vld [vmem:[#allocation2] sm:$0xff]  ;;  %v6868_v6 = vld [vmem:[#allocation2 + $0x8] sm:$0xff]  ;;  %v6869_v5 = vld [vmem:[#allocation2 + $0x10] sm:$0xff] }
 0x6a5   :  { %v6870_v15 = vmul.f32 %v6867_v4, %v18251_v43  ;;  %v6871_v62 = vmul.f32 %v6868_v6, %v18252_v44  ;;  %v6872_v45 = vmul.f32 %v6869_v5, %v18253_v54 }
 0x6a7   :  { %v6876_v11 = vcombine.high %v6870_v15, %v6870_v15  ;;  %v6895_v16 = vmul.f32 %v6870_v15, %v6870_v15  ;;  %v6896_v40 = vmul.f32 %v6871_v62, %v6871_v62  ;;  %v6877_v38 = vcombine.high %v6871_v62, %v6871_v62 }
 0x6a8   :  { %v6882_v2 = vsel %vm3444_vm9, %v6870_v15, 0.0  ;;  %v6885_v36 = vsel %vm3444_vm9, %v6871_v62, 0.0  ;;  %v6897_v58 = vmul.f32 %v6872_v45, %v6872_v45  ;;  %v6878_v29 = vcombine.high %v6872_v45, %v6872_v45 }
 0x6a9   :  { %v6883_v60 = vsel %vm3444_vm9, %v6876_v11, 0.0  ;;  %v6901_v19 = vcombine.high %v6895_v16, %v6895_v16  ;;  %v6902_v8 = vcombine.high %v6896_v40, %v6896_v40  ;;  %v6907_v53 = vsel %vm3444_vm9, %v6895_v16, 0.0 }
 0x6aa   :  { %v6884_v10 = vadd.f32 %v6883_v60, %v6882_v2  ;;  %v6887_v20 = vsel %vm3444_vm9, %v6877_v38, 0.0  ;;  %v6910_v52 = vsel %vm3444_vm9, %v6896_v40, 0.0  ;;  %v6889_v56 = vsel %vm3444_vm9, %v6872_v45, 0.0 }
 0x6ab   :  { %v6908_v37 = vsel %vm3444_vm9, %v6901_v19, 0.0  ;;  %v6903_v61 = vcombine.high %v6897_v58, %v6897_v58  ;;  %v6912_v3 = vsel %vm3444_vm9, %v6902_v8, 0.0  ;;  %v6891_v30 = vsel %vm3444_vm9, %v6878_v29, 0.0 }
 0x6ac   :  { %v6886_v24 = vadd.f32 %v6885_v36, %v6884_v10  ;;  %v6909_v35 = vadd.f32 %v6908_v37, %v6907_v53  ;;  %v6914_v28 = vsel %vm3444_vm9, %v6897_v58, 0.0 }
 0x6ad   :  { %v6916_v17 = vsel %vm3444_vm9, %v6903_v61, 0.0 }
 0x6ae   :  { %v6888_v25 = vadd.f32 %v6887_v20, %v6886_v24  ;;  %v6911_v34 = vadd.f32 %v6910_v52, %v6909_v35 }
 0x6b0   :  { %v6890_v14 = vadd.f32 %v6889_v56, %v6888_v25  ;;  %v6913_v50 = vadd.f32 %v6912_v3, %v6911_v34 }
 0x6b2   :  { %v6892_v1 = vadd.f32 %v6891_v30, %v6890_v14  ;;  %v6915_v23 = vadd.f32 %v6914_v28, %v6913_v50 }
 0x6b4   :  { %6893 = vadd.xlane.f32.xlu0 %v6892_v1  ;;  %v6917_v47 = vadd.f32 %v6916_v17, %v6915_v23 }
 0x6b6   :  { %6918 = vadd.xlane.f32.xlu1 %v6917_v47 }
 0x741   :  { %v6894_v7 = vpop.xlane.xlu0 %6893 }
 0x742   :  { %v6920_v22 = vmul.f32 0.001953125, %v6894_v7 }
 0x743   :  { %v6919_v46 = vpop.xlane.xlu1 %6918 }
 0x744   :  { %v6922_v0 = vmul.f32 %v6920_v22, %v6920_v22  ;;  %v6921_v41 = vmul.f32 0.001953125, %v6919_v46 }
 0x746   :  { %v6923_v21 = vsub.f32 %v6921_v41, %v6922_v0 }
 0x748   :  { %v6925_v13 = vadd.f32 1e-05, %v6923_v21 }
 0x74a   :  { %7295 = vrsqrt.f32 %v6925_v13 }
 0x754   :  { %v7296_v27 = vpop.eup %7295 }
 0x755   :  { %v6927_v59 = vmul.f32 %v7296_v27, %v6924_v12 }
 0x757   :  { %6936 = vperm.xlu0 %7291, %v6927_v59   ;;  %v6929_v26 = vmul.f32 %v6927_v59, %v6920_v22 }
 0x759   :  { %v6930_v42 = vsub.f32 %v6928_v32, %v6929_v26 }
 0x75b   :  { %6951 = vperm.xlu1 %7292, %v6930_v42  }
 0x7d6   :  { %v6937_v49 = vpop.permute.xlu0 %6936 }
 0x7d7   :  { %v6944_v33 = vrot.slane %v6937_v49, %v18256_v63 }
 0x7d9   :  { %v6946_v57 = vmul.f32 %v6944_v33, %v6867_v4  ;;  %v6947_v9 = vmul.f32 %v6944_v33, %v6868_v6  ;;  %v6948_v55 = vmul.f32 %v6944_v33, %v6869_v5 }
 0x7da   :  { %v6952_v18 = vpop.permute.xlu1 %6951 }
 0x7db   :  { %v6959_v51 = vrot.slane %v6952_v18, %v18256_v63 }
 0x7dd   :  { %v6961_v43 = vadd.f32 %v6959_v51, %v6946_v57  ;;  %v6962_v15 = vadd.f32 %v6959_v51, %v6947_v9  ;;  %v6963_v44 = vadd.f32 %v6959_v51, %v6948_v55 }
 0x7df   :  { %v6964_v62 = vadd.f32 %v6961_v43, %v6931_v48  ;;  %v6965_v54 = vadd.f32 %v6962_v15, %v6932_v31  ;;  %v6966_v45 = vadd.f32 %v6963_v44, %v6933_v39 }
 0x7e1   :  { %v6967_v11 = vmax.f32 %v6964_v62, 0.0  ;;  %v6968_v16 = vmax.f32 %v6965_v54, 0.0  ;;  %v6969_v40 = vmax.f32 %v6966_v45, 0.0 }
 0x7e3   :  { %6970 = vst [vmem:[#allocation11] sm:$0xff] %v6967_v11  ;;  %6971 = vst [vmem:[#allocation11 + $0x8] sm:$0xff] %v6968_v16 }
 0x7e4   :  { %6972 = vst [vmem:[#allocation11 + $0x10] sm:$0xff] %v6969_v40 }
 0x7e5   :  { %7357 = shalt.err (!%p7354_p8)
}
 0x7e6   :  { %s18257_s10 = sld [smem:[#allocation96_spill]] }
 0x7ec   :  { %s7358_s11 = scalar_lea.hbm %s18257_s10, 384 }
 0x7ed   :  { %p7359_p9 = scmp.ne.s32.totalorder %s18257_s10, %s7358_s11  ;;  %p7362_p10 = scmp.lt.u32.totalorder %s7358_s11, %s18257_s10 }
 0x7ef   :  { %p7364_p11 = pnand %p7362_p10, %p7359_p9 }
 0x7f1   :  { %7367 = shalt.err (!%p7364_p11)
}
 0x7f2   :  { %6982 = dma.vmem_to_hbm [thread:$0]  %s6980_s16, 384, %s18257_s10, [#allocation6]  }
 0x7f3   :  { %7374 = dma.done.wait [#allocation6], 384  }
 0x7f4   :  { %7375 = vsyncadd [#allocation6], 4294966912 }
 0x7f5   :  { %6986 = vsyncpa [#allocation5], 1 }
 0x7f6   :  { %6987 = vsyncpa [#allocation6], 1 }
 0x7f7   :  { %6988 = vsyncpa [#allocation7], 1 }
 0x7f8   :  { %6989 = vsyncpa [#allocation10], 1 }

</bundles_post_ra>
